<compile_context>
chip_gen: v5e
topology: v5e:2x2
jax: 0.10.0
libtpu: 0.0.40
codegen_flags: <defaults>
</compile_context>

<pallas_src>
import numpy as np
import jax
import jax.numpy as jnp
from jax import lax
from jax.experimental import pallas as pl
from jax.experimental.pallas import tpu as pltpu

# ---- problem sizes (spatial fixed at 32x32 by Linear(32*32*hidden, 10)) ----
N = 2            # batch
C = 1            # in_channels == hidden_channel (SimpleResNet default)
H = W = 32       # spatial
NB = 5           # num_res_blocks
NCLS = 10        # n_classes
EPS = 1e-5       # BatchNorm2d eps

NC = N * C       # images packed along the lane axis
NW = NC * W      # packed lane width (64)
K = C * H * W    # flattened feature size (1024)
OPAD = 128       # logits padded to a full 128-lane tile


def resnet_kernel(x_ref, cw_ref, cb_ref, g_ref, bt_ref, lw_ref, lb_ref,
                  o_ref, pack_ref, flat_ref):
    """Fused: 5 residual blocks + flatten + linear classifier (C == 1).

    x_ref   : (N, C, H, W)  f32 VMEM   input activations (NCHW)
    cw_ref  : (NB*2*9,)     f32 SMEM   conv weights (OIHW flattened, C=1)
    cb_ref  : (NB*2,)       f32 SMEM   conv biases
    g_ref   : (NB*2,)       f32 SMEM   BN gamma
    bt_ref  : (NB*2,)       f32 SMEM   BN beta
    lw_ref  : (K, OPAD)     f32 VMEM   linear weight, transposed + lane-padded
    lb_ref  : (1, OPAD)     f32 VMEM   linear bias, lane-padded
    o_ref   : (N, OPAD)     f32 VMEM   padded logits (lane-dense output)
    pack_ref: (H, NW)       f32 VMEM   scratch: lane-packed activations
    flat_ref: (N, K)        f32 VMEM   scratch: torch-order flattened features
    """
    # --- masks / iotas hoisted once (JAX does not CSE these) ---------------
    row = lax.broadcasted_iota(jnp.int32, (H, NW), 0)      # h index
    col = lax.broadcasted_iota(jnp.int32, (H, NW), 1)      # packed lane index
    wmod = col
    for _ in range(NC - 1):                                # w index within image
        wmod = jnp.where(wmod >= W, wmod - W, wmod)

    m_up = row >= 1            # tap v[h-1] valid
    m_down = row < H - 1       # tap v[h+1] valid
    m_left = wmod >= 1         # tap v[w-1] valid (also kills cross-image wrap)
    m_right = wmod < W - 1     # tap v[w+1] valid (also kills cross-image wrap)
    lane_tap = {-1: (1, m_left), 1: (NW - 1, m_right)}

    def conv3x3(v, cidx):
        # one in / one out channel (C == 1); v is the lane-packed whole batch
        wb = cidx * 9
        # row-shifted (zero-padded) views, built once per conv: 2 sublane rolls
        vrow = {
            0: v,
            -1: jnp.where(m_up, pltpu.roll(v, shift=1, axis=0), 0.0),       # v[h-1]
            1: jnp.where(m_down, pltpu.roll(v, shift=H - 1, axis=0), 0.0),  # v[h+1]
        }
        acc = cb_ref[cidx] + cw_ref[wb + 4] * v            # bias + center tap
        for ky in range(3):
            dy = ky - 1
            for kx in range(3):
                dx = kx - 1
                if dy == 0 and dx == 0:
                    continue
                t = vrow[dy]
                if dx != 0:
                    shift, msk = lane_tap[dx]
                    t = jnp.where(msk, pltpu.roll(t, shift=shift, axis=1), 0.0)
                acc = acc + cw_ref[wb + ky * 3 + kx] * t
        return acc

    def batchnorm(v, cidx):
        # training-mode BN: batch mean / biased variance over (N, H, W); C == 1
        # single pass in f32: var = E[x^2] - mean^2 (fine at 1e-3 tolerance)
        inv_cnt = 1.0 / float(N * H * W)
        s1 = jnp.sum(v, axis=(0, 1), keepdims=True)
        s2 = jnp.sum(v * v, axis=(0, 1), keepdims=True)
        mean = s1 * inv_cnt
        var = s2 * inv_cnt - mean * mean
        scale = g_ref[cidx] * lax.rsqrt(var + EPS)         # (1, 1)
        return (v - mean) * scale + bt_ref[cidx]

    # --- pack images along the lane axis: (N, C, H, W) -> (H, N*C*W) --------
    for n in range(N):
        for c in range(C):
            off = (n * C + c) * W
            pack_ref[:, off:off + W] = x_ref[n, c]
    p = pack_ref[...]

    # --- 5 residual blocks, whole batch per op ------------------------------
    for blk in range(NB):
        identity = p
        h1 = jnp.maximum(batchnorm(conv3x3(p, blk * 2 + 0), blk * 2 + 0), 0.0)
        h2 = batchnorm(conv3x3(h1, blk * 2 + 1), blk * 2 + 1)
        p = jnp.maximum(h2 + identity, 0.0)

    # --- flatten to torch x.view(B, -1) order (c, h, w); C == 1 -------------
    for n in range(N):
        for h in range(H):
            flat_ref[n:n + 1, h * W:(h + 1) * W] = p[h:h + 1, n * W:(n + 1) * W]

    # --- fused classifier on the MXU; 128-lane-dense output -----------------
    o_ref[...] = jnp.dot(flat_ref[...], lw_ref[...],
                         preferred_element_type=jnp.float32) + lb_ref[...]


def pack_params(params):
    """One-time packing of PyTorch-layout params into kernel-ready arrays."""
    cw = params["conv_w"].reshape(-1).astype(jnp.float32)       # (NB*2*C*C*9,)
    cb = params["conv_b"].reshape(-1).astype(jnp.float32)       # (NB*2*C,)
    g = params["gamma"].reshape(-1).astype(jnp.float32)
    bt = params["beta"].reshape(-1).astype(jnp.float32)
    lw = params["lin_w"].astype(jnp.float32)                    # (NCLS, K)
    lb = params["lin_b"].astype(jnp.float32)                    # (NCLS,)
    lw_pad = jnp.zeros((K, OPAD), jnp.float32).at[:, :NCLS].set(lw.T)
    lb_pad = jnp.zeros((1, OPAD), jnp.float32).at[:, :NCLS].set(lb[None, :])
    return dict(cw=cw, cb=cb, g=g, bt=bt, lw_pad=lw_pad, lb_pad=lb_pad)


def simple_resnet_forward(x, packed):
    vmem = pl.BlockSpec(memory_space=pltpu.MemorySpace.VMEM)
    smem = pl.BlockSpec(memory_space=pltpu.MemorySpace.SMEM)
    # Single fused launch; whole model (<1 MiB) lives in VMEM, so no grid /
    # tiling is used.  NOTE: for large batches on v7x, add a 1-D grid over N
    # with dimension_semantics=("parallel",) so both TensorCores are used.
    logits_pad = pl.pallas_call(
        resnet_kernel,
        out_shape=jax.ShapeDtypeStruct((N, OPAD), jnp.float32),
        in_specs=[vmem, smem, smem, smem, smem, vmem, vmem],
        out_specs=vmem,
        scratch_shapes=[pltpu.VMEM((H, NW), jnp.float32),
                        pltpu.VMEM((N, K), jnp.float32)],
    )(x, packed["cw"], packed["cb"], packed["g"], packed["bt"],
      packed["lw_pad"], packed["lb_pad"])
    return logits_pad[:, :NCLS]


def reference_forward(x, params):
    """Pure-JAX reference for verification."""
    cw, cb, g, bt, lw, lb = (params["conv_w"], params["conv_b"], params["gamma"],
                             params["beta"], params["lin_w"], params["lin_b"])

    def bn(v, gamma, beta):
        mean = jnp.mean(v, axis=(0, 2, 3), keepdims=True)
        var = jnp.mean((v - mean) ** 2, axis=(0, 2, 3), keepdims=True)
        return ((v - mean) * lax.rsqrt(var + EPS) * gamma.reshape(1, -1, 1, 1)
                + beta.reshape(1, -1, 1, 1))

    def conv(v, w, b):
        y = lax.conv_general_dilated(v, w, window_strides=(1, 1),
                                     padding=((1, 1), (1, 1)),
                                     dimension_numbers=("NCHW", "OIHW", "NCHW"))
        return y + b.reshape(1, -1, 1, 1)

    h = x
    for blk in range(NB):
        idn = h
        t = jax.nn.relu(bn(conv(h, cw[blk, 0], cb[blk, 0]), g[blk, 0], bt[blk, 0]))
        t = bn(conv(t, cw[blk, 1], cb[blk, 1]), g[blk, 1], bt[blk, 1])
        h = jax.nn.relu(t + idn)
    flat = h.reshape(N, -1)
    return flat @ lw.T + lb


if __name__ == "__main__":
    key = jax.random.PRNGKey(0)
    ks = jax.random.split(key, 7)

    fan_conv = C * 9
    bc = 1.0 / np.sqrt(fan_conv)
    conv_w = jax.random.uniform(ks[0], (NB, 2, C, C, 3, 3), jnp.float32, -bc, bc)
    conv_b = jax.random.uniform(ks[1], (NB, 2, C), jnp.float32, -bc, bc)
    gamma = 1.0 + 0.1 * jax.random.normal(ks[2], (NB, 2, C), dtype=jnp.float32)
    beta = 0.1 * jax.random.normal(ks[3], (NB, 2, C), dtype=jnp.float32)

    fan_lin = C * H * W
    bl = 1.0 / np.sqrt(fan_lin)
    lin_w = jax.random.uniform(ks[4], (NCLS, C * H * W), jnp.float32, -bl, bl)
    lin_b = jax.random.uniform(ks[5], (NCLS,), jnp.float32, -bl, bl)

    x = jax.random.normal(ks[6], (N, C, H, W), dtype=jnp.float32)

    params = dict(conv_w=conv_w, conv_b=conv_b, gamma=gamma, beta=beta,
                  lin_w=lin_w, lin_b=lin_b)
    packed = pack_params(params)          # one-time weight packing / padding

    out = simple_resnet_forward(x, packed)
    out = jax.block_until_ready(out)
    assert out.shape == (N, NCLS)

    ref = reference_forward(x, params)
    np.testing.assert_allclose(np.asarray(out), np.asarray(ref),
                               rtol=1e-3, atol=1e-3)
    print("KERNEL_OK")
</pallas_src>

<mosaic_0001>
module attributes {stable_mosaic.version = 11 : i64} {
  func.func @resnet_kernel(%arg0: memref<2x1x32x32xf32, #tpu.memory_space<vmem>>, %arg1: memref<90xf32, #tpu.memory_space<smem>>, %arg2: memref<10xf32, #tpu.memory_space<smem>>, %arg3: memref<10xf32, #tpu.memory_space<smem>>, %arg4: memref<10xf32, #tpu.memory_space<smem>>, %arg5: memref<1024x128xf32, #tpu.memory_space<vmem>>, %arg6: memref<1x128xf32, #tpu.memory_space<vmem>>, %arg7: memref<2x128xf32, #tpu.memory_space<vmem>>, %arg8: memref<32x64xf32, #tpu.memory_space<vmem>>, %arg9: memref<2x1024xf32, #tpu.memory_space<vmem>>) attributes {dimension_semantics = [], scalar_prefetch = 0 : i64, scratch_operands = 2 : i64, tpu.core_type = #tpu.core_type<tc>} {
    %0 = tpu.iota {dimensions = array<i32: 0>} : vector<32x64xi32>
    %1 = tpu.iota {dimensions = array<i32: 1>} : vector<32x64xi32>
    %c32_i32 = arith.constant 32 : i32
    %2 = vector.broadcast %c32_i32 : i32 to vector<32x64xi32>
    %3 = arith.cmpi sge, %1, %2 : vector<32x64xi32>
    %c32_i32_0 = arith.constant 32 : i32
    %4 = vector.broadcast %c32_i32_0 : i32 to vector<32x64xi32>
    %5 = arith.subi %1, %4 : vector<32x64xi32>
    %6 = arith.select %3, %5, %1 : vector<32x64xi1>, vector<32x64xi32>
    %c1_i32 = arith.constant 1 : i32
    %7 = vector.broadcast %c1_i32 : i32 to vector<32x64xi32>
    %8 = arith.cmpi sge, %0, %7 : vector<32x64xi32>
    %c31_i32 = arith.constant 31 : i32
    %9 = vector.broadcast %c31_i32 : i32 to vector<32x64xi32>
    %10 = arith.cmpi slt, %0, %9 : vector<32x64xi32>
    %c1_i32_1 = arith.constant 1 : i32
    %11 = vector.broadcast %c1_i32_1 : i32 to vector<32x64xi32>
    %12 = arith.cmpi sge, %6, %11 : vector<32x64xi32>
    %c31_i32_2 = arith.constant 31 : i32
    %13 = vector.broadcast %c31_i32_2 : i32 to vector<32x64xi32>
    %14 = arith.cmpi slt, %6, %13 : vector<32x64xi32>
    %c0 = arith.constant 0 : index
    %c0_3 = arith.constant 0 : index
    %c0_4 = arith.constant 0 : index
    %c0_5 = arith.constant 0 : index
    %15 = vector.load %arg0[%c0, %c0_3, %c0_4, %c0_5] : memref<2x1x32x32xf32, #tpu.memory_space<vmem>>, vector<1x1x32x32xf32>
    %16 = vector.shape_cast %15 : vector<1x1x32x32xf32> to vector<32x32xf32>
    %c0_6 = arith.constant 0 : index
    %c0_7 = arith.constant 0 : index
    %17 = vector.load %arg8[%c0_6, %c0_7] : memref<32x64xf32, #tpu.memory_space<vmem>>, vector<32x32xf32>
    tpu.vector_store %arg8[%c0_6, %c0_7], %16 {strides = array<i32>} : memref<32x64xf32, #tpu.memory_space<vmem>>, vector<32x32xf32>,
    %c1 = arith.constant 1 : index
    %c0_8 = arith.constant 0 : index
    %c0_9 = arith.constant 0 : index
    %c0_10 = arith.constant 0 : index
    %18 = vector.load %arg0[%c1, %c0_8, %c0_9, %c0_10] : memref<2x1x32x32xf32, #tpu.memory_space<vmem>>, vector<1x1x32x32xf32>
    %19 = vector.shape_cast %18 : vector<1x1x32x32xf32> to vector<32x32xf32>
    %c0_11 = arith.constant 0 : index
    %c32 = arith.constant 32 : index
    %20 = vector.load %arg8[%c0_11, %c32] : memref<32x64xf32, #tpu.memory_space<vmem>>, vector<32x32xf32>
    tpu.vector_store %arg8[%c0_11, %c32], %19 {strides = array<i32>} : memref<32x64xf32, #tpu.memory_space<vmem>>, vector<32x32xf32>,
    %c0_12 = arith.constant 0 : index
    %c0_13 = arith.constant 0 : index
    %21 = vector.load %arg8[%c0_12, %c0_13] : memref<32x64xf32, #tpu.memory_space<vmem>>, vector<32x64xf32>
    %c1_i32_14 = arith.constant 1 : i32
    %22 = tpu.dynamic_rotate %21 by %c1_i32_14 dim 0 : vector<32x64xf32>, i32 -> vector<32x64xf32>
    %cst = arith.constant 0.000000e+00 : f32
    %23 = vector.broadcast %cst : f32 to vector<32x64xf32>
    %24 = arith.select %8, %22, %23 : vector<32x64xi1>, vector<32x64xf32>
    %c31_i32_15 = arith.constant 31 : i32
    %25 = tpu.dynamic_rotate %21 by %c31_i32_15 dim 0 : vector<32x64xf32>, i32 -> vector<32x64xf32>
    %cst_16 = arith.constant 0.000000e+00 : f32
    %26 = vector.broadcast %cst_16 : f32 to vector<32x64xf32>
    %27 = arith.select %10, %25, %26 : vector<32x64xi1>, vector<32x64xf32>
    %c0_17 = arith.constant 0 : index
    %28 = memref.load %arg2[%c0_17] : memref<10xf32, #tpu.memory_space<smem>>
    %c4 = arith.constant 4 : index
    %29 = memref.load %arg1[%c4] : memref<90xf32, #tpu.memory_space<smem>>
    %30 = vector.broadcast %29 : f32 to vector<32x64xf32>
    %31 = arith.mulf %30, %21 : vector<32x64xf32>
    %32 = vector.broadcast %28 : f32 to vector<32x64xf32>
    %33 = arith.addf %32, %31 : vector<32x64xf32>
    %c1_i32_18 = arith.constant 1 : i32
    %34 = tpu.dynamic_rotate %24 by %c1_i32_18 dim 1 : vector<32x64xf32>, i32 -> vector<32x64xf32>
    %cst_19 = arith.constant 0.000000e+00 : f32
    %35 = vector.broadcast %cst_19 : f32 to vector<32x64xf32>
    %36 = arith.select %12, %34, %35 : vector<32x64xi1>, vector<32x64xf32>
    %c0_20 = arith.constant 0 : index
    %37 = memref.load %arg1[%c0_20] : memref<90xf32, #tpu.memory_space<smem>>
    %38 = vector.broadcast %37 : f32 to vector<32x64xf32>
    %39 = arith.mulf %38, %36 : vector<32x64xf32>
    %40 = arith.addf %33, %39 : vector<32x64xf32>
    %c1_21 = arith.constant 1 : index
    %41 = memref.load %arg1[%c1_21] : memref<90xf32, #tpu.memory_space<smem>>
    %42 = vector.broadcast %41 : f32 to vector<32x64xf32>
    %43 = arith.mulf %42, %24 : vector<32x64xf32>
    %44 = arith.addf %40, %43 : vector<32x64xf32>
    %c63_i32 = arith.constant 63 : i32
    %45 = tpu.dynamic_rotate %24 by %c63_i32 dim 1 : vector<32x64xf32>, i32 -> vector<32x64xf32>
    %cst_22 = arith.constant 0.000000e+00 : f32
    %46 = vector.broadcast %cst_22 : f32 to vector<32x64xf32>
    %47 = arith.select %14, %45, %46 : vector<32x64xi1>, vector<32x64xf32>
    %c2 = arith.constant 2 : index
    %48 = memref.load %arg1[%c2] : memref<90xf32, #tpu.memory_space<smem>>
    %49 = vector.broadcast %48 : f32 to vector<32x64xf32>
    %50 = arith.mulf %49, %47 : vector<32x64xf32>
    %51 = arith.addf %44, %50 : vector<32x64xf32>
    %c1_i32_23 = arith.constant 1 : i32
    %52 = tpu.dynamic_rotate %21 by %c1_i32_23 dim 1 : vector<32x64xf32>, i32 -> vector<32x64xf32>
    %cst_24 = arith.constant 0.000000e+00 : f32
    %53 = vector.broadcast %cst_24 : f32 to vector<32x64xf32>
    %54 = arith.select %12, %52, %53 : vector<32x64xi1>, vector<32x64xf32>
    %c3 = arith.constant 3 : index
    %55 = memref.load %arg1[%c3] : memref<90xf32, #tpu.memory_space<smem>>
    %56 = vector.broadcast %55 : f32 to vector<32x64xf32>
    %57 = arith.mulf %56, %54 : vector<32x64xf32>
    %58 = arith.addf %51, %57 : vector<32x64xf32>
    %c63_i32_25 = arith.constant 63 : i32
    %59 = tpu.dynamic_rotate %21 by %c63_i32_25 dim 1 : vector<32x64xf32>, i32 -> vector<32x64xf32>
    %cst_26 = arith.constant 0.000000e+00 : f32
    %60 = vector.broadcast %cst_26 : f32 to vector<32x64xf32>
    %61 = arith.select %14, %59, %60 : vector<32x64xi1>, vector<32x64xf32>
    %c5 = arith.constant 5 : index
    %62 = memref.load %arg1[%c5] : memref<90xf32, #tpu.memory_space<smem>>
    %63 = vector.broadcast %62 : f32 to vector<32x64xf32>
    %64 = arith.mulf %63, %61 : vector<32x64xf32>
    %65 = arith.addf %58, %64 : vector<32x64xf32>
    %c1_i32_27 = arith.constant 1 : i32
    %66 = tpu.dynamic_rotate %27 by %c1_i32_27 dim 1 : vector<32x64xf32>, i32 -> vector<32x64xf32>
    %cst_28 = arith.constant 0.000000e+00 : f32
    %67 = vector.broadcast %cst_28 : f32 to vector<32x64xf32>
    %68 = arith.select %12, %66, %67 : vector<32x64xi1>, vector<32x64xf32>
    %c6 = arith.constant 6 : index
    %69 = memref.load %arg1[%c6] : memref<90xf32, #tpu.memory_space<smem>>
    %70 = vector.broadcast %69 : f32 to vector<32x64xf32>
    %71 = arith.mulf %70, %68 : vector<32x64xf32>
    %72 = arith.addf %65, %71 : vector<32x64xf32>
    %c7 = arith.constant 7 : index
    %73 = memref.load %arg1[%c7] : memref<90xf32, #tpu.memory_space<smem>>
    %74 = vector.broadcast %73 : f32 to vector<32x64xf32>
    %75 = arith.mulf %74, %27 : vector<32x64xf32>
    %76 = arith.addf %72, %75 : vector<32x64xf32>
    %c63_i32_29 = arith.constant 63 : i32
    %77 = tpu.dynamic_rotate %27 by %c63_i32_29 dim 1 : vector<32x64xf32>, i32 -> vector<32x64xf32>
    %cst_30 = arith.constant 0.000000e+00 : f32
    %78 = vector.broadcast %cst_30 : f32 to vector<32x64xf32>
    %79 = arith.select %14, %77, %78 : vector<32x64xi1>, vector<32x64xf32>
    %c8 = arith.constant 8 : index
    %80 = memref.load %arg1[%c8] : memref<90xf32, #tpu.memory_space<smem>>
    %81 = vector.broadcast %80 : f32 to vector<32x64xf32>
    %82 = arith.mulf %81, %79 : vector<32x64xf32>
    %83 = arith.addf %76, %82 : vector<32x64xf32>
    %84 = vector.shape_cast %83 : vector<32x64xf32> to vector<1x32x64xf32>
    %cst_31 = arith.constant dense<0.000000e+00> : vector<1xf32>
    %85 = vector.multi_reduction <add>, %84, %cst_31 [1, 2] : vector<1x32x64xf32> to vector<1xf32>
    %86 = vector.shape_cast %85 : vector<1xf32> to vector<1x1x1xf32>
    %87 = vector.extract %86[0, 0, 0] : f32 from vector<1x1x1xf32>
    %88 = vector.broadcast %87 : f32 to vector<1x1xf32>
    %89 = arith.mulf %83, %83 : vector<32x64xf32>
    %90 = vector.shape_cast %89 : vector<32x64xf32> to vector<1x32x64xf32>
    %cst_32 = arith.constant dense<0.000000e+00> : vector<1xf32>
    %91 = vector.multi_reduction <add>, %90, %cst_32 [1, 2] : vector<1x32x64xf32> to vector<1xf32>
    %92 = vector.shape_cast %91 : vector<1xf32> to vector<1x1x1xf32>
    %93 = vector.extract %92[0, 0, 0] : f32 from vector<1x1x1xf32>
    %94 = vector.broadcast %93 : f32 to vector<1x1xf32>
    %cst_33 = arith.constant 4.8828125E-4 : f32
    %95 = vector.broadcast %cst_33 : f32 to vector<1x1xf32>
    %96 = arith.mulf %88, %95 : vector<1x1xf32>
    %cst_34 = arith.constant 4.8828125E-4 : f32
    %97 = vector.broadcast %cst_34 : f32 to vector<1x1xf32>
    %98 = arith.mulf %94, %97 : vector<1x1xf32>
    %99 = arith.mulf %96, %96 : vector<1x1xf32>
    %100 = arith.subf %98, %99 : vector<1x1xf32>
    %c0_35 = arith.constant 0 : index
    %101 = memref.load %arg3[%c0_35] : memref<10xf32, #tpu.memory_space<smem>>
    %cst_36 = arith.constant 9.99999974E-6 : f32
    %102 = vector.broadcast %cst_36 : f32 to vector<1x1xf32>
    %103 = arith.addf %100, %102 : vector<1x1xf32>
    %104 = math.rsqrt %103 : vector<1x1xf32>
    %105 = vector.broadcast %101 : f32 to vector<1x1xf32>
    %106 = arith.mulf %105, %104 : vector<1x1xf32>
    %107 = vector.broadcast %96 : vector<1x1xf32> to vector<32x64xf32>
    %108 = arith.subf %83, %107 : vector<32x64xf32>
    %109 = vector.broadcast %106 : vector<1x1xf32> to vector<32x64xf32>
    %110 = arith.mulf %108, %109 : vector<32x64xf32>
    %c0_37 = arith.constant 0 : index
    %111 = memref.load %arg4[%c0_37] : memref<10xf32, #tpu.memory_space<smem>>
    %112 = vector.broadcast %111 : f32 to vector<32x64xf32>
    %113 = arith.addf %110, %112 : vector<32x64xf32>
    %cst_38 = arith.constant 0.000000e+00 : f32
    %114 = vector.broadcast %cst_38 : f32 to vector<32x64xf32>
    %115 = arith.maximumf %113, %114 : vector<32x64xf32>
    %c1_i32_39 = arith.constant 1 : i32
    %116 = tpu.dynamic_rotate %115 by %c1_i32_39 dim 0 : vector<32x64xf32>, i32 -> vector<32x64xf32>
    %cst_40 = arith.constant 0.000000e+00 : f32
    %117 = vector.broadcast %cst_40 : f32 to vector<32x64xf32>
    %118 = arith.select %8, %116, %117 : vector<32x64xi1>, vector<32x64xf32>
    %c31_i32_41 = arith.constant 31 : i32
    %119 = tpu.dynamic_rotate %115 by %c31_i32_41 dim 0 : vector<32x64xf32>, i32 -> vector<32x64xf32>
    %cst_42 = arith.constant 0.000000e+00 : f32
    %120 = vector.broadcast %cst_42 : f32 to vector<32x64xf32>
    %121 = arith.select %10, %119, %120 : vector<32x64xi1>, vector<32x64xf32>
    %c1_43 = arith.constant 1 : index
    %122 = memref.load %arg2[%c1_43] : memref<10xf32, #tpu.memory_space<smem>>
    %c13 = arith.constant 13 : index
    %123 = memref.load %arg1[%c13] : memref<90xf32, #tpu.memory_space<smem>>
    %124 = vector.broadcast %123 : f32 to vector<32x64xf32>
    %125 = arith.mulf %124, %115 : vector<32x64xf32>
    %126 = vector.broadcast %122 : f32 to vector<32x64xf32>
    %127 = arith.addf %126, %125 : vector<32x64xf32>
    %c1_i32_44 = arith.constant 1 : i32
    %128 = tpu.dynamic_rotate %118 by %c1_i32_44 dim 1 : vector<32x64xf32>, i32 -> vector<32x64xf32>
    %cst_45 = arith.constant 0.000000e+00 : f32
    %129 = vector.broadcast %cst_45 : f32 to vector<32x64xf32>
    %130 = arith.select %12, %128, %129 : vector<32x64xi1>, vector<32x64xf32>
    %c9 = arith.constant 9 : index
    %131 = memref.load %arg1[%c9] : memref<90xf32, #tpu.memory_space<smem>>
    %132 = vector.broadcast %131 : f32 to vector<32x64xf32>
    %133 = arith.mulf %132, %130 : vector<32x64xf32>
    %134 = arith.addf %127, %133 : vector<32x64xf32>
    %c10 = arith.constant 10 : index
    %135 = memref.load %arg1[%c10] : memref<90xf32, #tpu.memory_space<smem>>
    %136 = vector.broadcast %135 : f32 to vector<32x64xf32>
    %137 = arith.mulf %136, %118 : vector<32x64xf32>
    %138 = arith.addf %134, %137 : vector<32x64xf32>
    %c63_i32_46 = arith.constant 63 : i32
    %139 = tpu.dynamic_rotate %118 by %c63_i32_46 dim 1 : vector<32x64xf32>, i32 -> vector<32x64xf32>
    %cst_47 = arith.constant 0.000000e+00 : f32
    %140 = vector.broadcast %cst_47 : f32 to vector<32x64xf32>
    %141 = arith.select %14, %139, %140 : vector<32x64xi1>, vector<32x64xf32>
    %c11 = arith.constant 11 : index
    %142 = memref.load %arg1[%c11] : memref<90xf32, #tpu.memory_space<smem>>
    %143 = vector.broadcast %142 : f32 to vector<32x64xf32>
    %144 = arith.mulf %143, %141 : vector<32x64xf32>
    %145 = arith.addf %138, %144 : vector<32x64xf32>
    %c1_i32_48 = arith.constant 1 : i32
    %146 = tpu.dynamic_rotate %115 by %c1_i32_48 dim 1 : vector<32x64xf32>, i32 -> vector<32x64xf32>
    %cst_49 = arith.constant 0.000000e+00 : f32
    %147 = vector.broadcast %cst_49 : f32 to vector<32x64xf32>
    %148 = arith.select %12, %146, %147 : vector<32x64xi1>, vector<32x64xf32>
    %c12 = arith.constant 12 : index
    %149 = memref.load %arg1[%c12] : memref<90xf32, #tpu.memory_space<smem>>
    %150 = vector.broadcast %149 : f32 to vector<32x64xf32>
    %151 = arith.mulf %150, %148 : vector<32x64xf32>
    %152 = arith.addf %145, %151 : vector<32x64xf32>
    %c63_i32_50 = arith.constant 63 : i32
    %153 = tpu.dynamic_rotate %115 by %c63_i32_50 dim 1 : vector<32x64xf32>, i32 -> vector<32x64xf32>
    %cst_51 = arith.constant 0.000000e+00 : f32
    %154 = vector.broadcast %cst_51 : f32 to vector<32x64xf32>
    %155 = arith.select %14, %153, %154 : vector<32x64xi1>, vector<32x64xf32>
    %c14 = arith.constant 14 : index
    %156 = memref.load %arg1[%c14] : memref<90xf32, #tpu.memory_space<smem>>
    %157 = vector.broadcast %156 : f32 to vector<32x64xf32>
    %158 = arith.mulf %157, %155 : vector<32x64xf32>
    %159 = arith.addf %152, %158 : vector<32x64xf32>
    %c1_i32_52 = arith.constant 1 : i32
    %160 = tpu.dynamic_rotate %121 by %c1_i32_52 dim 1 : vector<32x64xf32>, i32 -> vector<32x64xf32>
    %cst_53 = arith.constant 0.000000e+00 : f32
    %161 = vector.broadcast %cst_53 : f32 to vector<32x64xf32>
    %162 = arith.select %12, %160, %161 : vector<32x64xi1>, vector<32x64xf32>
    %c15 = arith.constant 15 : index
    %163 = memref.load %arg1[%c15] : memref<90xf32, #tpu.memory_space<smem>>
    %164 = vector.broadcast %163 : f32 to vector<32x64xf32>
    %165 = arith.mulf %164, %162 : vector<32x64xf32>
    %166 = arith.addf %159, %165 : vector<32x64xf32>
    %c16 = arith.constant 16 : index
    %167 = memref.load %arg1[%c16] : memref<90xf32, #tpu.memory_space<smem>>
    %168 = vector.broadcast %167 : f32 to vector<32x64xf32>
    %169 = arith.mulf %168, %121 : vector<32x64xf32>
    %170 = arith.addf %166, %169 : vector<32x64xf32>
    %c63_i32_54 = arith.constant 63 : i32
    %171 = tpu.dynamic_rotate %121 by %c63_i32_54 dim 1 : vector<32x64xf32>, i32 -> vector<32x64xf32>
    %cst_55 = arith.constant 0.000000e+00 : f32
    %172 = vector.broadcast %cst_55 : f32 to vector<32x64xf32>
    %173 = arith.select %14, %171, %172 : vector<32x64xi1>, vector<32x64xf32>
    %c17 = arith.constant 17 : index
    %174 = memref.load %arg1[%c17] : memref<90xf32, #tpu.memory_space<smem>>
    %175 = vector.broadcast %174 : f32 to vector<32x64xf32>
    %176 = arith.mulf %175, %173 : vector<32x64xf32>
    %177 = arith.addf %170, %176 : vector<32x64xf32>
    %178 = vector.shape_cast %177 : vector<32x64xf32> to vector<1x32x64xf32>
    %cst_56 = arith.constant dense<0.000000e+00> : vector<1xf32>
    %179 = vector.multi_reduction <add>, %178, %cst_56 [1, 2] : vector<1x32x64xf32> to vector<1xf32>
    %180 = vector.shape_cast %179 : vector<1xf32> to vector<1x1x1xf32>
    %181 = vector.extract %180[0, 0, 0] : f32 from vector<1x1x1xf32>
    %182 = vector.broadcast %181 : f32 to vector<1x1xf32>
    %183 = arith.mulf %177, %177 : vector<32x64xf32>
    %184 = vector.shape_cast %183 : vector<32x64xf32> to vector<1x32x64xf32>
    %cst_57 = arith.constant dense<0.000000e+00> : vector<1xf32>
    %185 = vector.multi_reduction <add>, %184, %cst_57 [1, 2] : vector<1x32x64xf32> to vector<1xf32>
    %186 = vector.shape_cast %185 : vector<1xf32> to vector<1x1x1xf32>
    %187 = vector.extract %186[0, 0, 0] : f32 from vector<1x1x1xf32>
    %188 = vector.broadcast %187 : f32 to vector<1x1xf32>
    %cst_58 = arith.constant 4.8828125E-4 : f32
    %189 = vector.broadcast %cst_58 : f32 to vector<1x1xf32>
    %190 = arith.mulf %182, %189 : vector<1x1xf32>
    %cst_59 = arith.constant 4.8828125E-4 : f32
    %191 = vector.broadcast %cst_59 : f32 to vector<1x1xf32>
    %192 = arith.mulf %188, %191 : vector<1x1xf32>
    %193 = arith.mulf %190, %190 : vector<1x1xf32>
    %194 = arith.subf %192, %193 : vector<1x1xf32>
    %c1_60 = arith.constant 1 : index
    %195 = memref.load %arg3[%c1_60] : memref<10xf32, #tpu.memory_space<smem>>
    %cst_61 = arith.constant 9.99999974E-6 : f32
    %196 = vector.broadcast %cst_61 : f32 to vector<1x1xf32>
    %197 = arith.addf %194, %196 : vector<1x1xf32>
    %198 = math.rsqrt %197 : vector<1x1xf32>
    %199 = vector.broadcast %195 : f32 to vector<1x1xf32>
    %200 = arith.mulf %199, %198 : vector<1x1xf32>
    %201 = vector.broadcast %190 : vector<1x1xf32> to vector<32x64xf32>
    %202 = arith.subf %177, %201 : vector<32x64xf32>
    %203 = vector.broadcast %200 : vector<1x1xf32> to vector<32x64xf32>
    %204 = arith.mulf %202, %203 : vector<32x64xf32>
    %c1_62 = arith.constant 1 : index
    %205 = memref.load %arg4[%c1_62] : memref<10xf32, #tpu.memory_space<smem>>
    %206 = vector.broadcast %205 : f32 to vector<32x64xf32>
    %207 = arith.addf %204, %206 : vector<32x64xf32>
    %208 = arith.addf %207, %21 : vector<32x64xf32>
    %cst_63 = arith.constant 0.000000e+00 : f32
    %209 = vector.broadcast %cst_63 : f32 to vector<32x64xf32>
    %210 = arith.maximumf %208, %209 : vector<32x64xf32>
    %c1_i32_64 = arith.constant 1 : i32
    %211 = tpu.dynamic_rotate %210 by %c1_i32_64 dim 0 : vector<32x64xf32>, i32 -> vector<32x64xf32>
    %cst_65 = arith.constant 0.000000e+00 : f32
    %212 = vector.broadcast %cst_65 : f32 to vector<32x64xf32>
    %213 = arith.select %8, %211, %212 : vector<32x64xi1>, vector<32x64xf32>
    %c31_i32_66 = arith.constant 31 : i32
    %214 = tpu.dynamic_rotate %210 by %c31_i32_66 dim 0 : vector<32x64xf32>, i32 -> vector<32x64xf32>
    %cst_67 = arith.constant 0.000000e+00 : f32
    %215 = vector.broadcast %cst_67 : f32 to vector<32x64xf32>
    %216 = arith.select %10, %214, %215 : vector<32x64xi1>, vector<32x64xf32>
    %c2_68 = arith.constant 2 : index
    %217 = memref.load %arg2[%c2_68] : memref<10xf32, #tpu.memory_space<smem>>
    %c22 = arith.constant 22 : index
    %218 = memref.load %arg1[%c22] : memref<90xf32, #tpu.memory_space<smem>>
    %219 = vector.broadcast %218 : f32 to vector<32x64xf32>
    %220 = arith.mulf %219, %210 : vector<32x64xf32>
    %221 = vector.broadcast %217 : f32 to vector<32x64xf32>
    %222 = arith.addf %221, %220 : vector<32x64xf32>
    %c1_i32_69 = arith.constant 1 : i32
    %223 = tpu.dynamic_rotate %213 by %c1_i32_69 dim 1 : vector<32x64xf32>, i32 -> vector<32x64xf32>
    %cst_70 = arith.constant 0.000000e+00 : f32
    %224 = vector.broadcast %cst_70 : f32 to vector<32x64xf32>
    %225 = arith.select %12, %223, %224 : vector<32x64xi1>, vector<32x64xf32>
    %c18 = arith.constant 18 : index
    %226 = memref.load %arg1[%c18] : memref<90xf32, #tpu.memory_space<smem>>
    %227 = vector.broadcast %226 : f32 to vector<32x64xf32>
    %228 = arith.mulf %227, %225 : vector<32x64xf32>
    %229 = arith.addf %222, %228 : vector<32x64xf32>
    %c19 = arith.constant 19 : index
    %230 = memref.load %arg1[%c19] : memref<90xf32, #tpu.memory_space<smem>>
    %231 = vector.broadcast %230 : f32 to vector<32x64xf32>
    %232 = arith.mulf %231, %213 : vector<32x64xf32>
    %233 = arith.addf %229, %232 : vector<32x64xf32>
    %c63_i32_71 = arith.constant 63 : i32
    %234 = tpu.dynamic_rotate %213 by %c63_i32_71 dim 1 : vector<32x64xf32>, i32 -> vector<32x64xf32>
    %cst_72 = arith.constant 0.000000e+00 : f32
    %235 = vector.broadcast %cst_72 : f32 to vector<32x64xf32>
    %236 = arith.select %14, %234, %235 : vector<32x64xi1>, vector<32x64xf32>
    %c20 = arith.constant 20 : index
    %237 = memref.load %arg1[%c20] : memref<90xf32, #tpu.memory_space<smem>>
    %238 = vector.broadcast %237 : f32 to vector<32x64xf32>
    %239 = arith.mulf %238, %236 : vector<32x64xf32>
    %240 = arith.addf %233, %239 : vector<32x64xf32>
    %c1_i32_73 = arith.constant 1 : i32
    %241 = tpu.dynamic_rotate %210 by %c1_i32_73 dim 1 : vector<32x64xf32>, i32 -> vector<32x64xf32>
    %cst_74 = arith.constant 0.000000e+00 : f32
    %242 = vector.broadcast %cst_74 : f32 to vector<32x64xf32>
    %243 = arith.select %12, %241, %242 : vector<32x64xi1>, vector<32x64xf32>
    %c21 = arith.constant 21 : index
    %244 = memref.load %arg1[%c21] : memref<90xf32, #tpu.memory_space<smem>>
    %245 = vector.broadcast %244 : f32 to vector<32x64xf32>
    %246 = arith.mulf %245, %243 : vector<32x64xf32>
    %247 = arith.addf %240, %246 : vector<32x64xf32>
    %c63_i32_75 = arith.constant 63 : i32
    %248 = tpu.dynamic_rotate %210 by %c63_i32_75 dim 1 : vector<32x64xf32>, i32 -> vector<32x64xf32>
    %cst_76 = arith.constant 0.000000e+00 : f32
    %249 = vector.broadcast %cst_76 : f32 to vector<32x64xf32>
    %250 = arith.select %14, %248, %249 : vector<32x64xi1>, vector<32x64xf32>
    %c23 = arith.constant 23 : index
    %251 = memref.load %arg1[%c23] : memref<90xf32, #tpu.memory_space<smem>>
    %252 = vector.broadcast %251 : f32 to vector<32x64xf32>
    %253 = arith.mulf %252, %250 : vector<32x64xf32>
    %254 = arith.addf %247, %253 : vector<32x64xf32>
    %c1_i32_77 = arith.constant 1 : i32
    %255 = tpu.dynamic_rotate %216 by %c1_i32_77 dim 1 : vector<32x64xf32>, i32 -> vector<32x64xf32>
    %cst_78 = arith.constant 0.000000e+00 : f32
    %256 = vector.broadcast %cst_78 : f32 to vector<32x64xf32>
    %257 = arith.select %12, %255, %256 : vector<32x64xi1>, vector<32x64xf32>
    %c24 = arith.constant 24 : index
    %258 = memref.load %arg1[%c24] : memref<90xf32, #tpu.memory_space<smem>>
    %259 = vector.broadcast %258 : f32 to vector<32x64xf32>
    %260 = arith.mulf %259, %257 : vector<32x64xf32>
    %261 = arith.addf %254, %260 : vector<32x64xf32>
    %c25 = arith.constant 25 : index
    %262 = memref.load %arg1[%c25] : memref<90xf32, #tpu.memory_space<smem>>
    %263 = vector.broadcast %262 : f32 to vector<32x64xf32>
    %264 = arith.mulf %263, %216 : vector<32x64xf32>
    %265 = arith.addf %261, %264 : vector<32x64xf32>
    %c63_i32_79 = arith.constant 63 : i32
    %266 = tpu.dynamic_rotate %216 by %c63_i32_79 dim 1 : vector<32x64xf32>, i32 -> vector<32x64xf32>
    %cst_80 = arith.constant 0.000000e+00 : f32
    %267 = vector.broadcast %cst_80 : f32 to vector<32x64xf32>
    %268 = arith.select %14, %266, %267 : vector<32x64xi1>, vector<32x64xf32>
    %c26 = arith.constant 26 : index
    %269 = memref.load %arg1[%c26] : memref<90xf32, #tpu.memory_space<smem>>
    %270 = vector.broadcast %269 : f32 to vector<32x64xf32>
    %271 = arith.mulf %270, %268 : vector<32x64xf32>
    %272 = arith.addf %265, %271 : vector<32x64xf32>
    %273 = vector.shape_cast %272 : vector<32x64xf32> to vector<1x32x64xf32>
    %cst_81 = arith.constant dense<0.000000e+00> : vector<1xf32>
    %274 = vector.multi_reduction <add>, %273, %cst_81 [1, 2] : vector<1x32x64xf32> to vector<1xf32>
    %275 = vector.shape_cast %274 : vector<1xf32> to vector<1x1x1xf32>
    %276 = vector.extract %275[0, 0, 0] : f32 from vector<1x1x1xf32>
    %277 = vector.broadcast %276 : f32 to vector<1x1xf32>
    %278 = arith.mulf %272, %272 : vector<32x64xf32>
    %279 = vector.shape_cast %278 : vector<32x64xf32> to vector<1x32x64xf32>
    %cst_82 = arith.constant dense<0.000000e+00> : vector<1xf32>
    %280 = vector.multi_reduction <add>, %279, %cst_82 [1, 2] : vector<1x32x64xf32> to vector<1xf32>
    %281 = vector.shape_cast %280 : vector<1xf32> to vector<1x1x1xf32>
    %282 = vector.extract %281[0, 0, 0] : f32 from vector<1x1x1xf32>
    %283 = vector.broadcast %282 : f32 to vector<1x1xf32>
    %cst_83 = arith.constant 4.8828125E-4 : f32
    %284 = vector.broadcast %cst_83 : f32 to vector<1x1xf32>
    %285 = arith.mulf %277, %284 : vector<1x1xf32>
    %cst_84 = arith.constant 4.8828125E-4 : f32
    %286 = vector.broadcast %cst_84 : f32 to vector<1x1xf32>
    %287 = arith.mulf %283, %286 : vector<1x1xf32>
    %288 = arith.mulf %285, %285 : vector<1x1xf32>
    %289 = arith.subf %287, %288 : vector<1x1xf32>
    %c2_85 = arith.constant 2 : index
    %290 = memref.load %arg3[%c2_85] : memref<10xf32, #tpu.memory_space<smem>>
    %cst_86 = arith.constant 9.99999974E-6 : f32
    %291 = vector.broadcast %cst_86 : f32 to vector<1x1xf32>
    %292 = arith.addf %289, %291 : vector<1x1xf32>
    %293 = math.rsqrt %292 : vector<1x1xf32>
    %294 = vector.broadcast %290 : f32 to vector<1x1xf32>
    %295 = arith.mulf %294, %293 : vector<1x1xf32>
    %296 = vector.broadcast %285 : vector<1x1xf32> to vector<32x64xf32>
    %297 = arith.subf %272, %296 : vector<32x64xf32>
    %298 = vector.broadcast %295 : vector<1x1xf32> to vector<32x64xf32>
    %299 = arith.mulf %297, %298 : vector<32x64xf32>
    %c2_87 = arith.constant 2 : index
    %300 = memref.load %arg4[%c2_87] : memref<10xf32, #tpu.memory_space<smem>>
    %301 = vector.broadcast %300 : f32 to vector<32x64xf32>
    %302 = arith.addf %299, %301 : vector<32x64xf32>
    %cst_88 = arith.constant 0.000000e+00 : f32
    %303 = vector.broadcast %cst_88 : f32 to vector<32x64xf32>
    %304 = arith.maximumf %302, %303 : vector<32x64xf32>
    %c1_i32_89 = arith.constant 1 : i32
    %305 = tpu.dynamic_rotate %304 by %c1_i32_89 dim 0 : vector<32x64xf32>, i32 -> vector<32x64xf32>
    %cst_90 = arith.constant 0.000000e+00 : f32
    %306 = vector.broadcast %cst_90 : f32 to vector<32x64xf32>
    %307 = arith.select %8, %305, %306 : vector<32x64xi1>, vector<32x64xf32>
    %c31_i32_91 = arith.constant 31 : i32
    %308 = tpu.dynamic_rotate %304 by %c31_i32_91 dim 0 : vector<32x64xf32>, i32 -> vector<32x64xf32>
    %cst_92 = arith.constant 0.000000e+00 : f32
    %309 = vector.broadcast %cst_92 : f32 to vector<32x64xf32>
    %310 = arith.select %10, %308, %309 : vector<32x64xi1>, vector<32x64xf32>
    %c3_93 = arith.constant 3 : index
    %311 = memref.load %arg2[%c3_93] : memref<10xf32, #tpu.memory_space<smem>>
    %c31 = arith.constant 31 : index
    %312 = memref.load %arg1[%c31] : memref<90xf32, #tpu.memory_space<smem>>
    %313 = vector.broadcast %312 : f32 to vector<32x64xf32>
    %314 = arith.mulf %313, %304 : vector<32x64xf32>
    %315 = vector.broadcast %311 : f32 to vector<32x64xf32>
    %316 = arith.addf %315, %314 : vector<32x64xf32>
    %c1_i32_94 = arith.constant 1 : i32
    %317 = tpu.dynamic_rotate %307 by %c1_i32_94 dim 1 : vector<32x64xf32>, i32 -> vector<32x64xf32>
    %cst_95 = arith.constant 0.000000e+00 : f32
    %318 = vector.broadcast %cst_95 : f32 to vector<32x64xf32>
    %319 = arith.select %12, %317, %318 : vector<32x64xi1>, vector<32x64xf32>
    %c27 = arith.constant 27 : index
    %320 = memref.load %arg1[%c27] : memref<90xf32, #tpu.memory_space<smem>>
    %321 = vector.broadcast %320 : f32 to vector<32x64xf32>
    %322 = arith.mulf %321, %319 : vector<32x64xf32>
    %323 = arith.addf %316, %322 : vector<32x64xf32>
    %c28 = arith.constant 28 : index
    %324 = memref.load %arg1[%c28] : memref<90xf32, #tpu.memory_space<smem>>
    %325 = vector.broadcast %324 : f32 to vector<32x64xf32>
    %326 = arith.mulf %325, %307 : vector<32x64xf32>
    %327 = arith.addf %323, %326 : vector<32x64xf32>
    %c63_i32_96 = arith.constant 63 : i32
    %328 = tpu.dynamic_rotate %307 by %c63_i32_96 dim 1 : vector<32x64xf32>, i32 -> vector<32x64xf32>
    %cst_97 = arith.constant 0.000000e+00 : f32
    %329 = vector.broadcast %cst_97 : f32 to vector<32x64xf32>
    %330 = arith.select %14, %328, %329 : vector<32x64xi1>, vector<32x64xf32>
    %c29 = arith.constant 29 : index
    %331 = memref.load %arg1[%c29] : memref<90xf32, #tpu.memory_space<smem>>
    %332 = vector.broadcast %331 : f32 to vector<32x64xf32>
    %333 = arith.mulf %332, %330 : vector<32x64xf32>
    %334 = arith.addf %327, %333 : vector<32x64xf32>
    %c1_i32_98 = arith.constant 1 : i32
    %335 = tpu.dynamic_rotate %304 by %c1_i32_98 dim 1 : vector<32x64xf32>, i32 -> vector<32x64xf32>
    %cst_99 = arith.constant 0.000000e+00 : f32
    %336 = vector.broadcast %cst_99 : f32 to vector<32x64xf32>
    %337 = arith.select %12, %335, %336 : vector<32x64xi1>, vector<32x64xf32>
    %c30 = arith.constant 30 : index
    %338 = memref.load %arg1[%c30] : memref<90xf32, #tpu.memory_space<smem>>
    %339 = vector.broadcast %338 : f32 to vector<32x64xf32>
    %340 = arith.mulf %339, %337 : vector<32x64xf32>
    %341 = arith.addf %334, %340 : vector<32x64xf32>
    %c63_i32_100 = arith.constant 63 : i32
    %342 = tpu.dynamic_rotate %304 by %c63_i32_100 dim 1 : vector<32x64xf32>, i32 -> vector<32x64xf32>
    %cst_101 = arith.constant 0.000000e+00 : f32
    %343 = vector.broadcast %cst_101 : f32 to vector<32x64xf32>
    %344 = arith.select %14, %342, %343 : vector<32x64xi1>, vector<32x64xf32>
    %c32_102 = arith.constant 32 : index
    %345 = memref.load %arg1[%c32_102] : memref<90xf32, #tpu.memory_space<smem>>
    %346 = vector.broadcast %345 : f32 to vector<32x64xf32>
    %347 = arith.mulf %346, %344 : vector<32x64xf32>
    %348 = arith.addf %341, %347 : vector<32x64xf32>
    %c1_i32_103 = arith.constant 1 : i32
    %349 = tpu.dynamic_rotate %310 by %c1_i32_103 dim 1 : vector<32x64xf32>, i32 -> vector<32x64xf32>
    %cst_104 = arith.constant 0.000000e+00 : f32
    %350 = vector.broadcast %cst_104 : f32 to vector<32x64xf32>
    %351 = arith.select %12, %349, %350 : vector<32x64xi1>, vector<32x64xf32>
    %c33 = arith.constant 33 : index
    %352 = memref.load %arg1[%c33] : memref<90xf32, #tpu.memory_space<smem>>
    %353 = vector.broadcast %352 : f32 to vector<32x64xf32>
    %354 = arith.mulf %353, %351 : vector<32x64xf32>
    %355 = arith.addf %348, %354 : vector<32x64xf32>
    %c34 = arith.constant 34 : index
    %356 = memref.load %arg1[%c34] : memref<90xf32, #tpu.memory_space<smem>>
    %357 = vector.broadcast %356 : f32 to vector<32x64xf32>
    %358 = arith.mulf %357, %310 : vector<32x64xf32>
    %359 = arith.addf %355, %358 : vector<32x64xf32>
    %c63_i32_105 = arith.constant 63 : i32
    %360 = tpu.dynamic_rotate %310 by %c63_i32_105 dim 1 : vector<32x64xf32>, i32 -> vector<32x64xf32>
    %cst_106 = arith.constant 0.000000e+00 : f32
    %361 = vector.broadcast %cst_106 : f32 to vector<32x64xf32>
    %362 = arith.select %14, %360, %361 : vector<32x64xi1>, vector<32x64xf32>
    %c35 = arith.constant 35 : index
    %363 = memref.load %arg1[%c35] : memref<90xf32, #tpu.memory_space<smem>>
    %364 = vector.broadcast %363 : f32 to vector<32x64xf32>
    %365 = arith.mulf %364, %362 : vector<32x64xf32>
    %366 = arith.addf %359, %365 : vector<32x64xf32>
    %367 = vector.shape_cast %366 : vector<32x64xf32> to vector<1x32x64xf32>
    %cst_107 = arith.constant dense<0.000000e+00> : vector<1xf32>
    %368 = vector.multi_reduction <add>, %367, %cst_107 [1, 2] : vector<1x32x64xf32> to vector<1xf32>
    %369 = vector.shape_cast %368 : vector<1xf32> to vector<1x1x1xf32>
    %370 = vector.extract %369[0, 0, 0] : f32 from vector<1x1x1xf32>
    %371 = vector.broadcast %370 : f32 to vector<1x1xf32>
    %372 = arith.mulf %366, %366 : vector<32x64xf32>
    %373 = vector.shape_cast %372 : vector<32x64xf32> to vector<1x32x64xf32>
    %cst_108 = arith.constant dense<0.000000e+00> : vector<1xf32>
    %374 = vector.multi_reduction <add>, %373, %cst_108 [1, 2] : vector<1x32x64xf32> to vector<1xf32>
    %375 = vector.shape_cast %374 : vector<1xf32> to vector<1x1x1xf32>
    %376 = vector.extract %375[0, 0, 0] : f32 from vector<1x1x1xf32>
    %377 = vector.broadcast %376 : f32 to vector<1x1xf32>
    %cst_109 = arith.constant 4.8828125E-4 : f32
    %378 = vector.broadcast %cst_109 : f32 to vector<1x1xf32>
    %379 = arith.mulf %371, %378 : vector<1x1xf32>
    %cst_110 = arith.constant 4.8828125E-4 : f32
    %380 = vector.broadcast %cst_110 : f32 to vector<1x1xf32>
    %381 = arith.mulf %377, %380 : vector<1x1xf32>
    %382 = arith.mulf %379, %379 : vector<1x1xf32>
    %383 = arith.subf %381, %382 : vector<1x1xf32>
    %c3_111 = arith.constant 3 : index
    %384 = memref.load %arg3[%c3_111] : memref<10xf32, #tpu.memory_space<smem>>
    %cst_112 = arith.constant 9.99999974E-6 : f32
    %385 = vector.broadcast %cst_112 : f32 to vector<1x1xf32>
    %386 = arith.addf %383, %385 : vector<1x1xf32>
    %387 = math.rsqrt %386 : vector<1x1xf32>
    %388 = vector.broadcast %384 : f32 to vector<1x1xf32>
    %389 = arith.mulf %388, %387 : vector<1x1xf32>
    %390 = vector.broadcast %379 : vector<1x1xf32> to vector<32x64xf32>
    %391 = arith.subf %366, %390 : vector<32x64xf32>
    %392 = vector.broadcast %389 : vector<1x1xf32> to vector<32x64xf32>
    %393 = arith.mulf %391, %392 : vector<32x64xf32>
    %c3_113 = arith.constant 3 : index
    %394 = memref.load %arg4[%c3_113] : memref<10xf32, #tpu.memory_space<smem>>
    %395 = vector.broadcast %394 : f32 to vector<32x64xf32>
    %396 = arith.addf %393, %395 : vector<32x64xf32>
    %397 = arith.addf %396, %210 : vector<32x64xf32>
    %cst_114 = arith.constant 0.000000e+00 : f32
    %398 = vector.broadcast %cst_114 : f32 to vector<32x64xf32>
    %399 = arith.maximumf %397, %398 : vector<32x64xf32>
    %c1_i32_115 = arith.constant 1 : i32
    %400 = tpu.dynamic_rotate %399 by %c1_i32_115 dim 0 : vector<32x64xf32>, i32 -> vector<32x64xf32>
    %cst_116 = arith.constant 0.000000e+00 : f32
    %401 = vector.broadcast %cst_116 : f32 to vector<32x64xf32>
    %402 = arith.select %8, %400, %401 : vector<32x64xi1>, vector<32x64xf32>
    %c31_i32_117 = arith.constant 31 : i32
    %403 = tpu.dynamic_rotate %399 by %c31_i32_117 dim 0 : vector<32x64xf32>, i32 -> vector<32x64xf32>
    %cst_118 = arith.constant 0.000000e+00 : f32
    %404 = vector.broadcast %cst_118 : f32 to vector<32x64xf32>
    %405 = arith.select %10, %403, %404 : vector<32x64xi1>, vector<32x64xf32>
    %c4_119 = arith.constant 4 : index
    %406 = memref.load %arg2[%c4_119] : memref<10xf32, #tpu.memory_space<smem>>
    %c40 = arith.constant 40 : index
    %407 = memref.load %arg1[%c40] : memref<90xf32, #tpu.memory_space<smem>>
    %408 = vector.broadcast %407 : f32 to vector<32x64xf32>
    %409 = arith.mulf %408, %399 : vector<32x64xf32>
    %410 = vector.broadcast %406 : f32 to vector<32x64xf32>
    %411 = arith.addf %410, %409 : vector<32x64xf32>
    %c1_i32_120 = arith.constant 1 : i32
    %412 = tpu.dynamic_rotate %402 by %c1_i32_120 dim 1 : vector<32x64xf32>, i32 -> vector<32x64xf32>
    %cst_121 = arith.constant 0.000000e+00 : f32
    %413 = vector.broadcast %cst_121 : f32 to vector<32x64xf32>
    %414 = arith.select %12, %412, %413 : vector<32x64xi1>, vector<32x64xf32>
    %c36 = arith.constant 36 : index
    %415 = memref.load %arg1[%c36] : memref<90xf32, #tpu.memory_space<smem>>
    %416 = vector.broadcast %415 : f32 to vector<32x64xf32>
    %417 = arith.mulf %416, %414 : vector<32x64xf32>
    %418 = arith.addf %411, %417 : vector<32x64xf32>
    %c37 = arith.constant 37 : index
    %419 = memref.load %arg1[%c37] : memref<90xf32, #tpu.memory_space<smem>>
    %420 = vector.broadcast %419 : f32 to vector<32x64xf32>
    %421 = arith.mulf %420, %402 : vector<32x64xf32>
    %422 = arith.addf %418, %421 : vector<32x64xf32>
    %c63_i32_122 = arith.constant 63 : i32
    %423 = tpu.dynamic_rotate %402 by %c63_i32_122 dim 1 : vector<32x64xf32>, i32 -> vector<32x64xf32>
    %cst_123 = arith.constant 0.000000e+00 : f32
    %424 = vector.broadcast %cst_123 : f32 to vector<32x64xf32>
    %425 = arith.select %14, %423, %424 : vector<32x64xi1>, vector<32x64xf32>
    %c38 = arith.constant 38 : index
    %426 = memref.load %arg1[%c38] : memref<90xf32, #tpu.memory_space<smem>>
    %427 = vector.broadcast %426 : f32 to vector<32x64xf32>
    %428 = arith.mulf %427, %425 : vector<32x64xf32>
    %429 = arith.addf %422, %428 : vector<32x64xf32>
    %c1_i32_124 = arith.constant 1 : i32
    %430 = tpu.dynamic_rotate %399 by %c1_i32_124 dim 1 : vector<32x64xf32>, i32 -> vector<32x64xf32>
    %cst_125 = arith.constant 0.000000e+00 : f32
    %431 = vector.broadcast %cst_125 : f32 to vector<32x64xf32>
    %432 = arith.select %12, %430, %431 : vector<32x64xi1>, vector<32x64xf32>
    %c39 = arith.constant 39 : index
    %433 = memref.load %arg1[%c39] : memref<90xf32, #tpu.memory_space<smem>>
    %434 = vector.broadcast %433 : f32 to vector<32x64xf32>
    %435 = arith.mulf %434, %432 : vector<32x64xf32>
    %436 = arith.addf %429, %435 : vector<32x64xf32>
    %c63_i32_126 = arith.constant 63 : i32
    %437 = tpu.dynamic_rotate %399 by %c63_i32_126 dim 1 : vector<32x64xf32>, i32 -> vector<32x64xf32>
    %cst_127 = arith.constant 0.000000e+00 : f32
    %438 = vector.broadcast %cst_127 : f32 to vector<32x64xf32>
    %439 = arith.select %14, %437, %438 : vector<32x64xi1>, vector<32x64xf32>
    %c41 = arith.constant 41 : index
    %440 = memref.load %arg1[%c41] : memref<90xf32, #tpu.memory_space<smem>>
    %441 = vector.broadcast %440 : f32 to vector<32x64xf32>
    %442 = arith.mulf %441, %439 : vector<32x64xf32>
    %443 = arith.addf %436, %442 : vector<32x64xf32>
    %c1_i32_128 = arith.constant 1 : i32
    %444 = tpu.dynamic_rotate %405 by %c1_i32_128 dim 1 : vector<32x64xf32>, i32 -> vector<32x64xf32>
    %cst_129 = arith.constant 0.000000e+00 : f32
    %445 = vector.broadcast %cst_129 : f32 to vector<32x64xf32>
    %446 = arith.select %12, %444, %445 : vector<32x64xi1>, vector<32x64xf32>
    %c42 = arith.constant 42 : index
    %447 = memref.load %arg1[%c42] : memref<90xf32, #tpu.memory_space<smem>>
    %448 = vector.broadcast %447 : f32 to vector<32x64xf32>
    %449 = arith.mulf %448, %446 : vector<32x64xf32>
    %450 = arith.addf %443, %449 : vector<32x64xf32>
    %c43 = arith.constant 43 : index
    %451 = memref.load %arg1[%c43] : memref<90xf32, #tpu.memory_space<smem>>
    %452 = vector.broadcast %451 : f32 to vector<32x64xf32>
    %453 = arith.mulf %452, %405 : vector<32x64xf32>
    %454 = arith.addf %450, %453 : vector<32x64xf32>
    %c63_i32_130 = arith.constant 63 : i32
    %455 = tpu.dynamic_rotate %405 by %c63_i32_130 dim 1 : vector<32x64xf32>, i32 -> vector<32x64xf32>
    %cst_131 = arith.constant 0.000000e+00 : f32
    %456 = vector.broadcast %cst_131 : f32 to vector<32x64xf32>
    %457 = arith.select %14, %455, %456 : vector<32x64xi1>, vector<32x64xf32>
    %c44 = arith.constant 44 : index
    %458 = memref.load %arg1[%c44] : memref<90xf32, #tpu.memory_space<smem>>
    %459 = vector.broadcast %458 : f32 to vector<32x64xf32>
    %460 = arith.mulf %459, %457 : vector<32x64xf32>
    %461 = arith.addf %454, %460 : vector<32x64xf32>
    %462 = vector.shape_cast %461 : vector<32x64xf32> to vector<1x32x64xf32>
    %cst_132 = arith.constant dense<0.000000e+00> : vector<1xf32>
    %463 = vector.multi_reduction <add>, %462, %cst_132 [1, 2] : vector<1x32x64xf32> to vector<1xf32>
    %464 = vector.shape_cast %463 : vector<1xf32> to vector<1x1x1xf32>
    %465 = vector.extract %464[0, 0, 0] : f32 from vector<1x1x1xf32>
    %466 = vector.broadcast %465 : f32 to vector<1x1xf32>
    %467 = arith.mulf %461, %461 : vector<32x64xf32>
    %468 = vector.shape_cast %467 : vector<32x64xf32> to vector<1x32x64xf32>
    %cst_133 = arith.constant dense<0.000000e+00> : vector<1xf32>
    %469 = vector.multi_reduction <add>, %468, %cst_133 [1, 2] : vector<1x32x64xf32> to vector<1xf32>
    %470 = vector.shape_cast %469 : vector<1xf32> to vector<1x1x1xf32>
    %471 = vector.extract %470[0, 0, 0] : f32 from vector<1x1x1xf32>
    %472 = vector.broadcast %471 : f32 to vector<1x1xf32>
    %cst_134 = arith.constant 4.8828125E-4 : f32
    %473 = vector.broadcast %cst_134 : f32 to vector<1x1xf32>
    %474 = arith.mulf %466, %473 : vector<1x1xf32>
    %cst_135 = arith.constant 4.8828125E-4 : f32
    %475 = vector.broadcast %cst_135 : f32 to vector<1x1xf32>
    %476 = arith.mulf %472, %475 : vector<1x1xf32>
    %477 = arith.mulf %474, %474 : vector<1x1xf32>
    %478 = arith.subf %476, %477 : vector<1x1xf32>
    %c4_136 = arith.constant 4 : index
    %479 = memref.load %arg3[%c4_136] : memref<10xf32, #tpu.memory_space<smem>>
    %cst_137 = arith.constant 9.99999974E-6 : f32
    %480 = vector.broadcast %cst_137 : f32 to vector<1x1xf32>
    %481 = arith.addf %478, %480 : vector<1x1xf32>
    %482 = math.rsqrt %481 : vector<1x1xf32>
    %483 = vector.broadcast %479 : f32 to vector<1x1xf32>
    %484 = arith.mulf %483, %482 : vector<1x1xf32>
    %485 = vector.broadcast %474 : vector<1x1xf32> to vector<32x64xf32>
    %486 = arith.subf %461, %485 : vector<32x64xf32>
    %487 = vector.broadcast %484 : vector<1x1xf32> to vector<32x64xf32>
    %488 = arith.mulf %486, %487 : vector<32x64xf32>
    %c4_138 = arith.constant 4 : index
    %489 = memref.load %arg4[%c4_138] : memref<10xf32, #tpu.memory_space<smem>>
    %490 = vector.broadcast %489 : f32 to vector<32x64xf32>
    %491 = arith.addf %488, %490 : vector<32x64xf32>
    %cst_139 = arith.constant 0.000000e+00 : f32
    %492 = vector.broadcast %cst_139 : f32 to vector<32x64xf32>
    %493 = arith.maximumf %491, %492 : vector<32x64xf32>
    %c1_i32_140 = arith.constant 1 : i32
    %494 = tpu.dynamic_rotate %493 by %c1_i32_140 dim 0 : vector<32x64xf32>, i32 -> vector<32x64xf32>
    %cst_141 = arith.constant 0.000000e+00 : f32
    %495 = vector.broadcast %cst_141 : f32 to vector<32x64xf32>
    %496 = arith.select %8, %494, %495 : vector<32x64xi1>, vector<32x64xf32>
    %c31_i32_142 = arith.constant 31 : i32
    %497 = tpu.dynamic_rotate %493 by %c31_i32_142 dim 0 : vector<32x64xf32>, i32 -> vector<32x64xf32>
    %cst_143 = arith.constant 0.000000e+00 : f32
    %498 = vector.broadcast %cst_143 : f32 to vector<32x64xf32>
    %499 = arith.select %10, %497, %498 : vector<32x64xi1>, vector<32x64xf32>
    %c5_144 = arith.constant 5 : index
    %500 = memref.load %arg2[%c5_144] : memref<10xf32, #tpu.memory_space<smem>>
    %c49 = arith.constant 49 : index
    %501 = memref.load %arg1[%c49] : memref<90xf32, #tpu.memory_space<smem>>
    %502 = vector.broadcast %501 : f32 to vector<32x64xf32>
    %503 = arith.mulf %502, %493 : vector<32x64xf32>
    %504 = vector.broadcast %500 : f32 to vector<32x64xf32>
    %505 = arith.addf %504, %503 : vector<32x64xf32>
    %c1_i32_145 = arith.constant 1 : i32
    %506 = tpu.dynamic_rotate %496 by %c1_i32_145 dim 1 : vector<32x64xf32>, i32 -> vector<32x64xf32>
    %cst_146 = arith.constant 0.000000e+00 : f32
    %507 = vector.broadcast %cst_146 : f32 to vector<32x64xf32>
    %508 = arith.select %12, %506, %507 : vector<32x64xi1>, vector<32x64xf32>
    %c45 = arith.constant 45 : index
    %509 = memref.load %arg1[%c45] : memref<90xf32, #tpu.memory_space<smem>>
    %510 = vector.broadcast %509 : f32 to vector<32x64xf32>
    %511 = arith.mulf %510, %508 : vector<32x64xf32>
    %512 = arith.addf %505, %511 : vector<32x64xf32>
    %c46 = arith.constant 46 : index
    %513 = memref.load %arg1[%c46] : memref<90xf32, #tpu.memory_space<smem>>
    %514 = vector.broadcast %513 : f32 to vector<32x64xf32>
    %515 = arith.mulf %514, %496 : vector<32x64xf32>
    %516 = arith.addf %512, %515 : vector<32x64xf32>
    %c63_i32_147 = arith.constant 63 : i32
    %517 = tpu.dynamic_rotate %496 by %c63_i32_147 dim 1 : vector<32x64xf32>, i32 -> vector<32x64xf32>
    %cst_148 = arith.constant 0.000000e+00 : f32
    %518 = vector.broadcast %cst_148 : f32 to vector<32x64xf32>
    %519 = arith.select %14, %517, %518 : vector<32x64xi1>, vector<32x64xf32>
    %c47 = arith.constant 47 : index
    %520 = memref.load %arg1[%c47] : memref<90xf32, #tpu.memory_space<smem>>
    %521 = vector.broadcast %520 : f32 to vector<32x64xf32>
    %522 = arith.mulf %521, %519 : vector<32x64xf32>
    %523 = arith.addf %516, %522 : vector<32x64xf32>
    %c1_i32_149 = arith.constant 1 : i32
    %524 = tpu.dynamic_rotate %493 by %c1_i32_149 dim 1 : vector<32x64xf32>, i32 -> vector<32x64xf32>
    %cst_150 = arith.constant 0.000000e+00 : f32
    %525 = vector.broadcast %cst_150 : f32 to vector<32x64xf32>
    %526 = arith.select %12, %524, %525 : vector<32x64xi1>, vector<32x64xf32>
    %c48 = arith.constant 48 : index
    %527 = memref.load %arg1[%c48] : memref<90xf32, #tpu.memory_space<smem>>
    %528 = vector.broadcast %527 : f32 to vector<32x64xf32>
    %529 = arith.mulf %528, %526 : vector<32x64xf32>
    %530 = arith.addf %523, %529 : vector<32x64xf32>
    %c63_i32_151 = arith.constant 63 : i32
    %531 = tpu.dynamic_rotate %493 by %c63_i32_151 dim 1 : vector<32x64xf32>, i32 -> vector<32x64xf32>
    %cst_152 = arith.constant 0.000000e+00 : f32
    %532 = vector.broadcast %cst_152 : f32 to vector<32x64xf32>
    %533 = arith.select %14, %531, %532 : vector<32x64xi1>, vector<32x64xf32>
    %c50 = arith.constant 50 : index
    %534 = memref.load %arg1[%c50] : memref<90xf32, #tpu.memory_space<smem>>
    %535 = vector.broadcast %534 : f32 to vector<32x64xf32>
    %536 = arith.mulf %535, %533 : vector<32x64xf32>
    %537 = arith.addf %530, %536 : vector<32x64xf32>
    %c1_i32_153 = arith.constant 1 : i32
    %538 = tpu.dynamic_rotate %499 by %c1_i32_153 dim 1 : vector<32x64xf32>, i32 -> vector<32x64xf32>
    %cst_154 = arith.constant 0.000000e+00 : f32
    %539 = vector.broadcast %cst_154 : f32 to vector<32x64xf32>
    %540 = arith.select %12, %538, %539 : vector<32x64xi1>, vector<32x64xf32>
    %c51 = arith.constant 51 : index
    %541 = memref.load %arg1[%c51] : memref<90xf32, #tpu.memory_space<smem>>
    %542 = vector.broadcast %541 : f32 to vector<32x64xf32>
    %543 = arith.mulf %542, %540 : vector<32x64xf32>
    %544 = arith.addf %537, %543 : vector<32x64xf32>
    %c52 = arith.constant 52 : index
    %545 = memref.load %arg1[%c52] : memref<90xf32, #tpu.memory_space<smem>>
    %546 = vector.broadcast %545 : f32 to vector<32x64xf32>
    %547 = arith.mulf %546, %499 : vector<32x64xf32>
    %548 = arith.addf %544, %547 : vector<32x64xf32>
    %c63_i32_155 = arith.constant 63 : i32
    %549 = tpu.dynamic_rotate %499 by %c63_i32_155 dim 1 : vector<32x64xf32>, i32 -> vector<32x64xf32>
    %cst_156 = arith.constant 0.000000e+00 : f32
    %550 = vector.broadcast %cst_156 : f32 to vector<32x64xf32>
    %551 = arith.select %14, %549, %550 : vector<32x64xi1>, vector<32x64xf32>
    %c53 = arith.constant 53 : index
    %552 = memref.load %arg1[%c53] : memref<90xf32, #tpu.memory_space<smem>>
    %553 = vector.broadcast %552 : f32 to vector<32x64xf32>
    %554 = arith.mulf %553, %551 : vector<32x64xf32>
    %555 = arith.addf %548, %554 : vector<32x64xf32>
    %556 = vector.shape_cast %555 : vector<32x64xf32> to vector<1x32x64xf32>
    %cst_157 = arith.constant dense<0.000000e+00> : vector<1xf32>
    %557 = vector.multi_reduction <add>, %556, %cst_157 [1, 2] : vector<1x32x64xf32> to vector<1xf32>
    %558 = vector.shape_cast %557 : vector<1xf32> to vector<1x1x1xf32>
    %559 = vector.extract %558[0, 0, 0] : f32 from vector<1x1x1xf32>
    %560 = vector.broadcast %559 : f32 to vector<1x1xf32>
    %561 = arith.mulf %555, %555 : vector<32x64xf32>
    %562 = vector.shape_cast %561 : vector<32x64xf32> to vector<1x32x64xf32>
    %cst_158 = arith.constant dense<0.000000e+00> : vector<1xf32>
    %563 = vector.multi_reduction <add>, %562, %cst_158 [1, 2] : vector<1x32x64xf32> to vector<1xf32>
    %564 = vector.shape_cast %563 : vector<1xf32> to vector<1x1x1xf32>
    %565 = vector.extract %564[0, 0, 0] : f32 from vector<1x1x1xf32>
    %566 = vector.broadcast %565 : f32 to vector<1x1xf32>
    %cst_159 = arith.constant 4.8828125E-4 : f32
    %567 = vector.broadcast %cst_159 : f32 to vector<1x1xf32>
    %568 = arith.mulf %560, %567 : vector<1x1xf32>
    %cst_160 = arith.constant 4.8828125E-4 : f32
    %569 = vector.broadcast %cst_160 : f32 to vector<1x1xf32>
    %570 = arith.mulf %566, %569 : vector<1x1xf32>
    %571 = arith.mulf %568, %568 : vector<1x1xf32>
    %572 = arith.subf %570, %571 : vector<1x1xf32>
    %c5_161 = arith.constant 5 : index
    %573 = memref.load %arg3[%c5_161] : memref<10xf32, #tpu.memory_space<smem>>
    %cst_162 = arith.constant 9.99999974E-6 : f32
    %574 = vector.broadcast %cst_162 : f32 to vector<1x1xf32>
    %575 = arith.addf %572, %574 : vector<1x1xf32>
    %576 = math.rsqrt %575 : vector<1x1xf32>
    %577 = vector.broadcast %573 : f32 to vector<1x1xf32>
    %578 = arith.mulf %577, %576 : vector<1x1xf32>
    %579 = vector.broadcast %568 : vector<1x1xf32> to vector<32x64xf32>
    %580 = arith.subf %555, %579 : vector<32x64xf32>
    %581 = vector.broadcast %578 : vector<1x1xf32> to vector<32x64xf32>
    %582 = arith.mulf %580, %581 : vector<32x64xf32>
    %c5_163 = arith.constant 5 : index
    %583 = memref.load %arg4[%c5_163] : memref<10xf32, #tpu.memory_space<smem>>
    %584 = vector.broadcast %583 : f32 to vector<32x64xf32>
    %585 = arith.addf %582, %584 : vector<32x64xf32>
    %586 = arith.addf %585, %399 : vector<32x64xf32>
    %cst_164 = arith.constant 0.000000e+00 : f32
    %587 = vector.broadcast %cst_164 : f32 to vector<32x64xf32>
    %588 = arith.maximumf %586, %587 : vector<32x64xf32>
    %c1_i32_165 = arith.constant 1 : i32
    %589 = tpu.dynamic_rotate %588 by %c1_i32_165 dim 0 : vector<32x64xf32>, i32 -> vector<32x64xf32>
    %cst_166 = arith.constant 0.000000e+00 : f32
    %590 = vector.broadcast %cst_166 : f32 to vector<32x64xf32>
    %591 = arith.select %8, %589, %590 : vector<32x64xi1>, vector<32x64xf32>
    %c31_i32_167 = arith.constant 31 : i32
    %592 = tpu.dynamic_rotate %588 by %c31_i32_167 dim 0 : vector<32x64xf32>, i32 -> vector<32x64xf32>
    %cst_168 = arith.constant 0.000000e+00 : f32
    %593 = vector.broadcast %cst_168 : f32 to vector<32x64xf32>
    %594 = arith.select %10, %592, %593 : vector<32x64xi1>, vector<32x64xf32>
    %c6_169 = arith.constant 6 : index
    %595 = memref.load %arg2[%c6_169] : memref<10xf32, #tpu.memory_space<smem>>
    %c58 = arith.constant 58 : index
    %596 = memref.load %arg1[%c58] : memref<90xf32, #tpu.memory_space<smem>>
    %597 = vector.broadcast %596 : f32 to vector<32x64xf32>
    %598 = arith.mulf %597, %588 : vector<32x64xf32>
    %599 = vector.broadcast %595 : f32 to vector<32x64xf32>
    %600 = arith.addf %599, %598 : vector<32x64xf32>
    %c1_i32_170 = arith.constant 1 : i32
    %601 = tpu.dynamic_rotate %591 by %c1_i32_170 dim 1 : vector<32x64xf32>, i32 -> vector<32x64xf32>
    %cst_171 = arith.constant 0.000000e+00 : f32
    %602 = vector.broadcast %cst_171 : f32 to vector<32x64xf32>
    %603 = arith.select %12, %601, %602 : vector<32x64xi1>, vector<32x64xf32>
    %c54 = arith.constant 54 : index
    %604 = memref.load %arg1[%c54] : memref<90xf32, #tpu.memory_space<smem>>
    %605 = vector.broadcast %604 : f32 to vector<32x64xf32>
    %606 = arith.mulf %605, %603 : vector<32x64xf32>
    %607 = arith.addf %600, %606 : vector<32x64xf32>
    %c55 = arith.constant 55 : index
    %608 = memref.load %arg1[%c55] : memref<90xf32, #tpu.memory_space<smem>>
    %609 = vector.broadcast %608 : f32 to vector<32x64xf32>
    %610 = arith.mulf %609, %591 : vector<32x64xf32>
    %611 = arith.addf %607, %610 : vector<32x64xf32>
    %c63_i32_172 = arith.constant 63 : i32
    %612 = tpu.dynamic_rotate %591 by %c63_i32_172 dim 1 : vector<32x64xf32>, i32 -> vector<32x64xf32>
    %cst_173 = arith.constant 0.000000e+00 : f32
    %613 = vector.broadcast %cst_173 : f32 to vector<32x64xf32>
    %614 = arith.select %14, %612, %613 : vector<32x64xi1>, vector<32x64xf32>
    %c56 = arith.constant 56 : index
    %615 = memref.load %arg1[%c56] : memref<90xf32, #tpu.memory_space<smem>>
    %616 = vector.broadcast %615 : f32 to vector<32x64xf32>
    %617 = arith.mulf %616, %614 : vector<32x64xf32>
    %618 = arith.addf %611, %617 : vector<32x64xf32>
    %c1_i32_174 = arith.constant 1 : i32
    %619 = tpu.dynamic_rotate %588 by %c1_i32_174 dim 1 : vector<32x64xf32>, i32 -> vector<32x64xf32>
    %cst_175 = arith.constant 0.000000e+00 : f32
    %620 = vector.broadcast %cst_175 : f32 to vector<32x64xf32>
    %621 = arith.select %12, %619, %620 : vector<32x64xi1>, vector<32x64xf32>
    %c57 = arith.constant 57 : index
    %622 = memref.load %arg1[%c57] : memref<90xf32, #tpu.memory_space<smem>>
    %623 = vector.broadcast %622 : f32 to vector<32x64xf32>
    %624 = arith.mulf %623, %621 : vector<32x64xf32>
    %625 = arith.addf %618, %624 : vector<32x64xf32>
    %c63_i32_176 = arith.constant 63 : i32
    %626 = tpu.dynamic_rotate %588 by %c63_i32_176 dim 1 : vector<32x64xf32>, i32 -> vector<32x64xf32>
    %cst_177 = arith.constant 0.000000e+00 : f32
    %627 = vector.broadcast %cst_177 : f32 to vector<32x64xf32>
    %628 = arith.select %14, %626, %627 : vector<32x64xi1>, vector<32x64xf32>
    %c59 = arith.constant 59 : index
    %629 = memref.load %arg1[%c59] : memref<90xf32, #tpu.memory_space<smem>>
    %630 = vector.broadcast %629 : f32 to vector<32x64xf32>
    %631 = arith.mulf %630, %628 : vector<32x64xf32>
    %632 = arith.addf %625, %631 : vector<32x64xf32>
    %c1_i32_178 = arith.constant 1 : i32
    %633 = tpu.dynamic_rotate %594 by %c1_i32_178 dim 1 : vector<32x64xf32>, i32 -> vector<32x64xf32>
    %cst_179 = arith.constant 0.000000e+00 : f32
    %634 = vector.broadcast %cst_179 : f32 to vector<32x64xf32>
    %635 = arith.select %12, %633, %634 : vector<32x64xi1>, vector<32x64xf32>
    %c60 = arith.constant 60 : index
    %636 = memref.load %arg1[%c60] : memref<90xf32, #tpu.memory_space<smem>>
    %637 = vector.broadcast %636 : f32 to vector<32x64xf32>
    %638 = arith.mulf %637, %635 : vector<32x64xf32>
    %639 = arith.addf %632, %638 : vector<32x64xf32>
    %c61 = arith.constant 61 : index
    %640 = memref.load %arg1[%c61] : memref<90xf32, #tpu.memory_space<smem>>
    %641 = vector.broadcast %640 : f32 to vector<32x64xf32>
    %642 = arith.mulf %641, %594 : vector<32x64xf32>
    %643 = arith.addf %639, %642 : vector<32x64xf32>
    %c63_i32_180 = arith.constant 63 : i32
    %644 = tpu.dynamic_rotate %594 by %c63_i32_180 dim 1 : vector<32x64xf32>, i32 -> vector<32x64xf32>
    %cst_181 = arith.constant 0.000000e+00 : f32
    %645 = vector.broadcast %cst_181 : f32 to vector<32x64xf32>
    %646 = arith.select %14, %644, %645 : vector<32x64xi1>, vector<32x64xf32>
    %c62 = arith.constant 62 : index
    %647 = memref.load %arg1[%c62] : memref<90xf32, #tpu.memory_space<smem>>
    %648 = vector.broadcast %647 : f32 to vector<32x64xf32>
    %649 = arith.mulf %648, %646 : vector<32x64xf32>
    %650 = arith.addf %643, %649 : vector<32x64xf32>
    %651 = vector.shape_cast %650 : vector<32x64xf32> to vector<1x32x64xf32>
    %cst_182 = arith.constant dense<0.000000e+00> : vector<1xf32>
    %652 = vector.multi_reduction <add>, %651, %cst_182 [1, 2] : vector<1x32x64xf32> to vector<1xf32>
    %653 = vector.shape_cast %652 : vector<1xf32> to vector<1x1x1xf32>
    %654 = vector.extract %653[0, 0, 0] : f32 from vector<1x1x1xf32>
    %655 = vector.broadcast %654 : f32 to vector<1x1xf32>
    %656 = arith.mulf %650, %650 : vector<32x64xf32>
    %657 = vector.shape_cast %656 : vector<32x64xf32> to vector<1x32x64xf32>
    %cst_183 = arith.constant dense<0.000000e+00> : vector<1xf32>
    %658 = vector.multi_reduction <add>, %657, %cst_183 [1, 2] : vector<1x32x64xf32> to vector<1xf32>
    %659 = vector.shape_cast %658 : vector<1xf32> to vector<1x1x1xf32>
    %660 = vector.extract %659[0, 0, 0] : f32 from vector<1x1x1xf32>
    %661 = vector.broadcast %660 : f32 to vector<1x1xf32>
    %cst_184 = arith.constant 4.8828125E-4 : f32
    %662 = vector.broadcast %cst_184 : f32 to vector<1x1xf32>
    %663 = arith.mulf %655, %662 : vector<1x1xf32>
    %cst_185 = arith.constant 4.8828125E-4 : f32
    %664 = vector.broadcast %cst_185 : f32 to vector<1x1xf32>
    %665 = arith.mulf %661, %664 : vector<1x1xf32>
    %666 = arith.mulf %663, %663 : vector<1x1xf32>
    %667 = arith.subf %665, %666 : vector<1x1xf32>
    %c6_186 = arith.constant 6 : index
    %668 = memref.load %arg3[%c6_186] : memref<10xf32, #tpu.memory_space<smem>>
    %cst_187 = arith.constant 9.99999974E-6 : f32
    %669 = vector.broadcast %cst_187 : f32 to vector<1x1xf32>
    %670 = arith.addf %667, %669 : vector<1x1xf32>
    %671 = math.rsqrt %670 : vector<1x1xf32>
    %672 = vector.broadcast %668 : f32 to vector<1x1xf32>
    %673 = arith.mulf %672, %671 : vector<1x1xf32>
    %674 = vector.broadcast %663 : vector<1x1xf32> to vector<32x64xf32>
    %675 = arith.subf %650, %674 : vector<32x64xf32>
    %676 = vector.broadcast %673 : vector<1x1xf32> to vector<32x64xf32>
    %677 = arith.mulf %675, %676 : vector<32x64xf32>
    %c6_188 = arith.constant 6 : index
    %678 = memref.load %arg4[%c6_188] : memref<10xf32, #tpu.memory_space<smem>>
    %679 = vector.broadcast %678 : f32 to vector<32x64xf32>
    %680 = arith.addf %677, %679 : vector<32x64xf32>
    %cst_189 = arith.constant 0.000000e+00 : f32
    %681 = vector.broadcast %cst_189 : f32 to vector<32x64xf32>
    %682 = arith.maximumf %680, %681 : vector<32x64xf32>
    %c1_i32_190 = arith.constant 1 : i32
    %683 = tpu.dynamic_rotate %682 by %c1_i32_190 dim 0 : vector<32x64xf32>, i32 -> vector<32x64xf32>
    %cst_191 = arith.constant 0.000000e+00 : f32
    %684 = vector.broadcast %cst_191 : f32 to vector<32x64xf32>
    %685 = arith.select %8, %683, %684 : vector<32x64xi1>, vector<32x64xf32>
    %c31_i32_192 = arith.constant 31 : i32
    %686 = tpu.dynamic_rotate %682 by %c31_i32_192 dim 0 : vector<32x64xf32>, i32 -> vector<32x64xf32>
    %cst_193 = arith.constant 0.000000e+00 : f32
    %687 = vector.broadcast %cst_193 : f32 to vector<32x64xf32>
    %688 = arith.select %10, %686, %687 : vector<32x64xi1>, vector<32x64xf32>
    %c7_194 = arith.constant 7 : index
    %689 = memref.load %arg2[%c7_194] : memref<10xf32, #tpu.memory_space<smem>>
    %c67 = arith.constant 67 : index
    %690 = memref.load %arg1[%c67] : memref<90xf32, #tpu.memory_space<smem>>
    %691 = vector.broadcast %690 : f32 to vector<32x64xf32>
    %692 = arith.mulf %691, %682 : vector<32x64xf32>
    %693 = vector.broadcast %689 : f32 to vector<32x64xf32>
    %694 = arith.addf %693, %692 : vector<32x64xf32>
    %c1_i32_195 = arith.constant 1 : i32
    %695 = tpu.dynamic_rotate %685 by %c1_i32_195 dim 1 : vector<32x64xf32>, i32 -> vector<32x64xf32>
    %cst_196 = arith.constant 0.000000e+00 : f32
    %696 = vector.broadcast %cst_196 : f32 to vector<32x64xf32>
    %697 = arith.select %12, %695, %696 : vector<32x64xi1>, vector<32x64xf32>
    %c63 = arith.constant 63 : index
    %698 = memref.load %arg1[%c63] : memref<90xf32, #tpu.memory_space<smem>>
    %699 = vector.broadcast %698 : f32 to vector<32x64xf32>
    %700 = arith.mulf %699, %697 : vector<32x64xf32>
    %701 = arith.addf %694, %700 : vector<32x64xf32>
    %c64 = arith.constant 64 : index
    %702 = memref.load %arg1[%c64] : memref<90xf32, #tpu.memory_space<smem>>
    %703 = vector.broadcast %702 : f32 to vector<32x64xf32>
    %704 = arith.mulf %703, %685 : vector<32x64xf32>
    %705 = arith.addf %701, %704 : vector<32x64xf32>
    %c63_i32_197 = arith.constant 63 : i32
    %706 = tpu.dynamic_rotate %685 by %c63_i32_197 dim 1 : vector<32x64xf32>, i32 -> vector<32x64xf32>
    %cst_198 = arith.constant 0.000000e+00 : f32
    %707 = vector.broadcast %cst_198 : f32 to vector<32x64xf32>
    %708 = arith.select %14, %706, %707 : vector<32x64xi1>, vector<32x64xf32>
    %c65 = arith.constant 65 : index
    %709 = memref.load %arg1[%c65] : memref<90xf32, #tpu.memory_space<smem>>
    %710 = vector.broadcast %709 : f32 to vector<32x64xf32>
    %711 = arith.mulf %710, %708 : vector<32x64xf32>
    %712 = arith.addf %705, %711 : vector<32x64xf32>
    %c1_i32_199 = arith.constant 1 : i32
    %713 = tpu.dynamic_rotate %682 by %c1_i32_199 dim 1 : vector<32x64xf32>, i32 -> vector<32x64xf32>
    %cst_200 = arith.constant 0.000000e+00 : f32
    %714 = vector.broadcast %cst_200 : f32 to vector<32x64xf32>
    %715 = arith.select %12, %713, %714 : vector<32x64xi1>, vector<32x64xf32>
    %c66 = arith.constant 66 : index
    %716 = memref.load %arg1[%c66] : memref<90xf32, #tpu.memory_space<smem>>
    %717 = vector.broadcast %716 : f32 to vector<32x64xf32>
    %718 = arith.mulf %717, %715 : vector<32x64xf32>
    %719 = arith.addf %712, %718 : vector<32x64xf32>
    %c63_i32_201 = arith.constant 63 : i32
    %720 = tpu.dynamic_rotate %682 by %c63_i32_201 dim 1 : vector<32x64xf32>, i32 -> vector<32x64xf32>
    %cst_202 = arith.constant 0.000000e+00 : f32
    %721 = vector.broadcast %cst_202 : f32 to vector<32x64xf32>
    %722 = arith.select %14, %720, %721 : vector<32x64xi1>, vector<32x64xf32>
    %c68 = arith.constant 68 : index
    %723 = memref.load %arg1[%c68] : memref<90xf32, #tpu.memory_space<smem>>
    %724 = vector.broadcast %723 : f32 to vector<32x64xf32>
    %725 = arith.mulf %724, %722 : vector<32x64xf32>
    %726 = arith.addf %719, %725 : vector<32x64xf32>
    %c1_i32_203 = arith.constant 1 : i32
    %727 = tpu.dynamic_rotate %688 by %c1_i32_203 dim 1 : vector<32x64xf32>, i32 -> vector<32x64xf32>
    %cst_204 = arith.constant 0.000000e+00 : f32
    %728 = vector.broadcast %cst_204 : f32 to vector<32x64xf32>
    %729 = arith.select %12, %727, %728 : vector<32x64xi1>, vector<32x64xf32>
    %c69 = arith.constant 69 : index
    %730 = memref.load %arg1[%c69] : memref<90xf32, #tpu.memory_space<smem>>
    %731 = vector.broadcast %730 : f32 to vector<32x64xf32>
    %732 = arith.mulf %731, %729 : vector<32x64xf32>
    %733 = arith.addf %726, %732 : vector<32x64xf32>
    %c70 = arith.constant 70 : index
    %734 = memref.load %arg1[%c70] : memref<90xf32, #tpu.memory_space<smem>>
    %735 = vector.broadcast %734 : f32 to vector<32x64xf32>
    %736 = arith.mulf %735, %688 : vector<32x64xf32>
    %737 = arith.addf %733, %736 : vector<32x64xf32>
    %c63_i32_205 = arith.constant 63 : i32
    %738 = tpu.dynamic_rotate %688 by %c63_i32_205 dim 1 : vector<32x64xf32>, i32 -> vector<32x64xf32>
    %cst_206 = arith.constant 0.000000e+00 : f32
    %739 = vector.broadcast %cst_206 : f32 to vector<32x64xf32>
    %740 = arith.select %14, %738, %739 : vector<32x64xi1>, vector<32x64xf32>
    %c71 = arith.constant 71 : index
    %741 = memref.load %arg1[%c71] : memref<90xf32, #tpu.memory_space<smem>>
    %742 = vector.broadcast %741 : f32 to vector<32x64xf32>
    %743 = arith.mulf %742, %740 : vector<32x64xf32>
    %744 = arith.addf %737, %743 : vector<32x64xf32>
    %745 = vector.shape_cast %744 : vector<32x64xf32> to vector<1x32x64xf32>
    %cst_207 = arith.constant dense<0.000000e+00> : vector<1xf32>
    %746 = vector.multi_reduction <add>, %745, %cst_207 [1, 2] : vector<1x32x64xf32> to vector<1xf32>
    %747 = vector.shape_cast %746 : vector<1xf32> to vector<1x1x1xf32>
    %748 = vector.extract %747[0, 0, 0] : f32 from vector<1x1x1xf32>
    %749 = vector.broadcast %748 : f32 to vector<1x1xf32>
    %750 = arith.mulf %744, %744 : vector<32x64xf32>
    %751 = vector.shape_cast %750 : vector<32x64xf32> to vector<1x32x64xf32>
    %cst_208 = arith.constant dense<0.000000e+00> : vector<1xf32>
    %752 = vector.multi_reduction <add>, %751, %cst_208 [1, 2] : vector<1x32x64xf32> to vector<1xf32>
    %753 = vector.shape_cast %752 : vector<1xf32> to vector<1x1x1xf32>
    %754 = vector.extract %753[0, 0, 0] : f32 from vector<1x1x1xf32>
    %755 = vector.broadcast %754 : f32 to vector<1x1xf32>
    %cst_209 = arith.constant 4.8828125E-4 : f32
    %756 = vector.broadcast %cst_209 : f32 to vector<1x1xf32>
    %757 = arith.mulf %749, %756 : vector<1x1xf32>
    %cst_210 = arith.constant 4.8828125E-4 : f32
    %758 = vector.broadcast %cst_210 : f32 to vector<1x1xf32>
    %759 = arith.mulf %755, %758 : vector<1x1xf32>
    %760 = arith.mulf %757, %757 : vector<1x1xf32>
    %761 = arith.subf %759, %760 : vector<1x1xf32>
    %c7_211 = arith.constant 7 : index
    %762 = memref.load %arg3[%c7_211] : memref<10xf32, #tpu.memory_space<smem>>
    %cst_212 = arith.constant 9.99999974E-6 : f32
    %763 = vector.broadcast %cst_212 : f32 to vector<1x1xf32>
    %764 = arith.addf %761, %763 : vector<1x1xf32>
    %765 = math.rsqrt %764 : vector<1x1xf32>
    %766 = vector.broadcast %762 : f32 to vector<1x1xf32>
    %767 = arith.mulf %766, %765 : vector<1x1xf32>
    %768 = vector.broadcast %757 : vector<1x1xf32> to vector<32x64xf32>
    %769 = arith.subf %744, %768 : vector<32x64xf32>
    %770 = vector.broadcast %767 : vector<1x1xf32> to vector<32x64xf32>
    %771 = arith.mulf %769, %770 : vector<32x64xf32>
    %c7_213 = arith.constant 7 : index
    %772 = memref.load %arg4[%c7_213] : memref<10xf32, #tpu.memory_space<smem>>
    %773 = vector.broadcast %772 : f32 to vector<32x64xf32>
    %774 = arith.addf %771, %773 : vector<32x64xf32>
    %775 = arith.addf %774, %588 : vector<32x64xf32>
    %cst_214 = arith.constant 0.000000e+00 : f32
    %776 = vector.broadcast %cst_214 : f32 to vector<32x64xf32>
    %777 = arith.maximumf %775, %776 : vector<32x64xf32>
    %c1_i32_215 = arith.constant 1 : i32
    %778 = tpu.dynamic_rotate %777 by %c1_i32_215 dim 0 : vector<32x64xf32>, i32 -> vector<32x64xf32>
    %cst_216 = arith.constant 0.000000e+00 : f32
    %779 = vector.broadcast %cst_216 : f32 to vector<32x64xf32>
    %780 = arith.select %8, %778, %779 : vector<32x64xi1>, vector<32x64xf32>
    %c31_i32_217 = arith.constant 31 : i32
    %781 = tpu.dynamic_rotate %777 by %c31_i32_217 dim 0 : vector<32x64xf32>, i32 -> vector<32x64xf32>
    %cst_218 = arith.constant 0.000000e+00 : f32
    %782 = vector.broadcast %cst_218 : f32 to vector<32x64xf32>
    %783 = arith.select %10, %781, %782 : vector<32x64xi1>, vector<32x64xf32>
    %c8_219 = arith.constant 8 : index
    %784 = memref.load %arg2[%c8_219] : memref<10xf32, #tpu.memory_space<smem>>
    %c76 = arith.constant 76 : index
    %785 = memref.load %arg1[%c76] : memref<90xf32, #tpu.memory_space<smem>>
    %786 = vector.broadcast %785 : f32 to vector<32x64xf32>
    %787 = arith.mulf %786, %777 : vector<32x64xf32>
    %788 = vector.broadcast %784 : f32 to vector<32x64xf32>
    %789 = arith.addf %788, %787 : vector<32x64xf32>
    %c1_i32_220 = arith.constant 1 : i32
    %790 = tpu.dynamic_rotate %780 by %c1_i32_220 dim 1 : vector<32x64xf32>, i32 -> vector<32x64xf32>
    %cst_221 = arith.constant 0.000000e+00 : f32
    %791 = vector.broadcast %cst_221 : f32 to vector<32x64xf32>
    %792 = arith.select %12, %790, %791 : vector<32x64xi1>, vector<32x64xf32>
    %c72 = arith.constant 72 : index
    %793 = memref.load %arg1[%c72] : memref<90xf32, #tpu.memory_space<smem>>
    %794 = vector.broadcast %793 : f32 to vector<32x64xf32>
    %795 = arith.mulf %794, %792 : vector<32x64xf32>
    %796 = arith.addf %789, %795 : vector<32x64xf32>
    %c73 = arith.constant 73 : index
    %797 = memref.load %arg1[%c73] : memref<90xf32, #tpu.memory_space<smem>>
    %798 = vector.broadcast %797 : f32 to vector<32x64xf32>
    %799 = arith.mulf %798, %780 : vector<32x64xf32>
    %800 = arith.addf %796, %799 : vector<32x64xf32>
    %c63_i32_222 = arith.constant 63 : i32
    %801 = tpu.dynamic_rotate %780 by %c63_i32_222 dim 1 : vector<32x64xf32>, i32 -> vector<32x64xf32>
    %cst_223 = arith.constant 0.000000e+00 : f32
    %802 = vector.broadcast %cst_223 : f32 to vector<32x64xf32>
    %803 = arith.select %14, %801, %802 : vector<32x64xi1>, vector<32x64xf32>
    %c74 = arith.constant 74 : index
    %804 = memref.load %arg1[%c74] : memref<90xf32, #tpu.memory_space<smem>>
    %805 = vector.broadcast %804 : f32 to vector<32x64xf32>
    %806 = arith.mulf %805, %803 : vector<32x64xf32>
    %807 = arith.addf %800, %806 : vector<32x64xf32>
    %c1_i32_224 = arith.constant 1 : i32
    %808 = tpu.dynamic_rotate %777 by %c1_i32_224 dim 1 : vector<32x64xf32>, i32 -> vector<32x64xf32>
    %cst_225 = arith.constant 0.000000e+00 : f32
    %809 = vector.broadcast %cst_225 : f32 to vector<32x64xf32>
    %810 = arith.select %12, %808, %809 : vector<32x64xi1>, vector<32x64xf32>
    %c75 = arith.constant 75 : index
    %811 = memref.load %arg1[%c75] : memref<90xf32, #tpu.memory_space<smem>>
    %812 = vector.broadcast %811 : f32 to vector<32x64xf32>
    %813 = arith.mulf %812, %810 : vector<32x64xf32>
    %814 = arith.addf %807, %813 : vector<32x64xf32>
    %c63_i32_226 = arith.constant 63 : i32
    %815 = tpu.dynamic_rotate %777 by %c63_i32_226 dim 1 : vector<32x64xf32>, i32 -> vector<32x64xf32>
    %cst_227 = arith.constant 0.000000e+00 : f32
    %816 = vector.broadcast %cst_227 : f32 to vector<32x64xf32>
    %817 = arith.select %14, %815, %816 : vector<32x64xi1>, vector<32x64xf32>
    %c77 = arith.constant 77 : index
    %818 = memref.load %arg1[%c77] : memref<90xf32, #tpu.memory_space<smem>>
    %819 = vector.broadcast %818 : f32 to vector<32x64xf32>
    %820 = arith.mulf %819, %817 : vector<32x64xf32>
    %821 = arith.addf %814, %820 : vector<32x64xf32>
    %c1_i32_228 = arith.constant 1 : i32
    %822 = tpu.dynamic_rotate %783 by %c1_i32_228 dim 1 : vector<32x64xf32>, i32 -> vector<32x64xf32>
    %cst_229 = arith.constant 0.000000e+00 : f32
    %823 = vector.broadcast %cst_229 : f32 to vector<32x64xf32>
    %824 = arith.select %12, %822, %823 : vector<32x64xi1>, vector<32x64xf32>
    %c78 = arith.constant 78 : index
    %825 = memref.load %arg1[%c78] : memref<90xf32, #tpu.memory_space<smem>>
    %826 = vector.broadcast %825 : f32 to vector<32x64xf32>
    %827 = arith.mulf %826, %824 : vector<32x64xf32>
    %828 = arith.addf %821, %827 : vector<32x64xf32>
    %c79 = arith.constant 79 : index
    %829 = memref.load %arg1[%c79] : memref<90xf32, #tpu.memory_space<smem>>
    %830 = vector.broadcast %829 : f32 to vector<32x64xf32>
    %831 = arith.mulf %830, %783 : vector<32x64xf32>
    %832 = arith.addf %828, %831 : vector<32x64xf32>
    %c63_i32_230 = arith.constant 63 : i32
    %833 = tpu.dynamic_rotate %783 by %c63_i32_230 dim 1 : vector<32x64xf32>, i32 -> vector<32x64xf32>
    %cst_231 = arith.constant 0.000000e+00 : f32
    %834 = vector.broadcast %cst_231 : f32 to vector<32x64xf32>
    %835 = arith.select %14, %833, %834 : vector<32x64xi1>, vector<32x64xf32>
    %c80 = arith.constant 80 : index
    %836 = memref.load %arg1[%c80] : memref<90xf32, #tpu.memory_space<smem>>
    %837 = vector.broadcast %836 : f32 to vector<32x64xf32>
    %838 = arith.mulf %837, %835 : vector<32x64xf32>
    %839 = arith.addf %832, %838 : vector<32x64xf32>
    %840 = vector.shape_cast %839 : vector<32x64xf32> to vector<1x32x64xf32>
    %cst_232 = arith.constant dense<0.000000e+00> : vector<1xf32>
    %841 = vector.multi_reduction <add>, %840, %cst_232 [1, 2] : vector<1x32x64xf32> to vector<1xf32>
    %842 = vector.shape_cast %841 : vector<1xf32> to vector<1x1x1xf32>
    %843 = vector.extract %842[0, 0, 0] : f32 from vector<1x1x1xf32>
    %844 = vector.broadcast %843 : f32 to vector<1x1xf32>
    %845 = arith.mulf %839, %839 : vector<32x64xf32>
    %846 = vector.shape_cast %845 : vector<32x64xf32> to vector<1x32x64xf32>
    %cst_233 = arith.constant dense<0.000000e+00> : vector<1xf32>
    %847 = vector.multi_reduction <add>, %846, %cst_233 [1, 2] : vector<1x32x64xf32> to vector<1xf32>
    %848 = vector.shape_cast %847 : vector<1xf32> to vector<1x1x1xf32>
    %849 = vector.extract %848[0, 0, 0] : f32 from vector<1x1x1xf32>
    %850 = vector.broadcast %849 : f32 to vector<1x1xf32>
    %cst_234 = arith.constant 4.8828125E-4 : f32
    %851 = vector.broadcast %cst_234 : f32 to vector<1x1xf32>
    %852 = arith.mulf %844, %851 : vector<1x1xf32>
    %cst_235 = arith.constant 4.8828125E-4 : f32
    %853 = vector.broadcast %cst_235 : f32 to vector<1x1xf32>
    %854 = arith.mulf %850, %853 : vector<1x1xf32>
    %855 = arith.mulf %852, %852 : vector<1x1xf32>
    %856 = arith.subf %854, %855 : vector<1x1xf32>
    %c8_236 = arith.constant 8 : index
    %857 = memref.load %arg3[%c8_236] : memref<10xf32, #tpu.memory_space<smem>>
    %cst_237 = arith.constant 9.99999974E-6 : f32
    %858 = vector.broadcast %cst_237 : f32 to vector<1x1xf32>
    %859 = arith.addf %856, %858 : vector<1x1xf32>
    %860 = math.rsqrt %859 : vector<1x1xf32>
    %861 = vector.broadcast %857 : f32 to vector<1x1xf32>
    %862 = arith.mulf %861, %860 : vector<1x1xf32>
    %863 = vector.broadcast %852 : vector<1x1xf32> to vector<32x64xf32>
    %864 = arith.subf %839, %863 : vector<32x64xf32>
    %865 = vector.broadcast %862 : vector<1x1xf32> to vector<32x64xf32>
    %866 = arith.mulf %864, %865 : vector<32x64xf32>
    %c8_238 = arith.constant 8 : index
    %867 = memref.load %arg4[%c8_238] : memref<10xf32, #tpu.memory_space<smem>>
    %868 = vector.broadcast %867 : f32 to vector<32x64xf32>
    %869 = arith.addf %866, %868 : vector<32x64xf32>
    %cst_239 = arith.constant 0.000000e+00 : f32
    %870 = vector.broadcast %cst_239 : f32 to vector<32x64xf32>
    %871 = arith.maximumf %869, %870 : vector<32x64xf32>
    %c1_i32_240 = arith.constant 1 : i32
    %872 = tpu.dynamic_rotate %871 by %c1_i32_240 dim 0 : vector<32x64xf32>, i32 -> vector<32x64xf32>
    %cst_241 = arith.constant 0.000000e+00 : f32
    %873 = vector.broadcast %cst_241 : f32 to vector<32x64xf32>
    %874 = arith.select %8, %872, %873 : vector<32x64xi1>, vector<32x64xf32>
    %c31_i32_242 = arith.constant 31 : i32
    %875 = tpu.dynamic_rotate %871 by %c31_i32_242 dim 0 : vector<32x64xf32>, i32 -> vector<32x64xf32>
    %cst_243 = arith.constant 0.000000e+00 : f32
    %876 = vector.broadcast %cst_243 : f32 to vector<32x64xf32>
    %877 = arith.select %10, %875, %876 : vector<32x64xi1>, vector<32x64xf32>
    %c9_244 = arith.constant 9 : index
    %878 = memref.load %arg2[%c9_244] : memref<10xf32, #tpu.memory_space<smem>>
    %c85 = arith.constant 85 : index
    %879 = memref.load %arg1[%c85] : memref<90xf32, #tpu.memory_space<smem>>
    %880 = vector.broadcast %879 : f32 to vector<32x64xf32>
    %881 = arith.mulf %880, %871 : vector<32x64xf32>
    %882 = vector.broadcast %878 : f32 to vector<32x64xf32>
    %883 = arith.addf %882, %881 : vector<32x64xf32>
    %c1_i32_245 = arith.constant 1 : i32
    %884 = tpu.dynamic_rotate %874 by %c1_i32_245 dim 1 : vector<32x64xf32>, i32 -> vector<32x64xf32>
    %cst_246 = arith.constant 0.000000e+00 : f32
    %885 = vector.broadcast %cst_246 : f32 to vector<32x64xf32>
    %886 = arith.select %12, %884, %885 : vector<32x64xi1>, vector<32x64xf32>
    %c81 = arith.constant 81 : index
    %887 = memref.load %arg1[%c81] : memref<90xf32, #tpu.memory_space<smem>>
    %888 = vector.broadcast %887 : f32 to vector<32x64xf32>
    %889 = arith.mulf %888, %886 : vector<32x64xf32>
    %890 = arith.addf %883, %889 : vector<32x64xf32>
    %c82 = arith.constant 82 : index
    %891 = memref.load %arg1[%c82] : memref<90xf32, #tpu.memory_space<smem>>
    %892 = vector.broadcast %891 : f32 to vector<32x64xf32>
    %893 = arith.mulf %892, %874 : vector<32x64xf32>
    %894 = arith.addf %890, %893 : vector<32x64xf32>
    %c63_i32_247 = arith.constant 63 : i32
    %895 = tpu.dynamic_rotate %874 by %c63_i32_247 dim 1 : vector<32x64xf32>, i32 -> vector<32x64xf32>
    %cst_248 = arith.constant 0.000000e+00 : f32
    %896 = vector.broadcast %cst_248 : f32 to vector<32x64xf32>
    %897 = arith.select %14, %895, %896 : vector<32x64xi1>, vector<32x64xf32>
    %c83 = arith.constant 83 : index
    %898 = memref.load %arg1[%c83] : memref<90xf32, #tpu.memory_space<smem>>
    %899 = vector.broadcast %898 : f32 to vector<32x64xf32>
    %900 = arith.mulf %899, %897 : vector<32x64xf32>
    %901 = arith.addf %894, %900 : vector<32x64xf32>
    %c1_i32_249 = arith.constant 1 : i32
    %902 = tpu.dynamic_rotate %871 by %c1_i32_249 dim 1 : vector<32x64xf32>, i32 -> vector<32x64xf32>
    %cst_250 = arith.constant 0.000000e+00 : f32
    %903 = vector.broadcast %cst_250 : f32 to vector<32x64xf32>
    %904 = arith.select %12, %902, %903 : vector<32x64xi1>, vector<32x64xf32>
    %c84 = arith.constant 84 : index
    %905 = memref.load %arg1[%c84] : memref<90xf32, #tpu.memory_space<smem>>
    %906 = vector.broadcast %905 : f32 to vector<32x64xf32>
    %907 = arith.mulf %906, %904 : vector<32x64xf32>
    %908 = arith.addf %901, %907 : vector<32x64xf32>
    %c63_i32_251 = arith.constant 63 : i32
    %909 = tpu.dynamic_rotate %871 by %c63_i32_251 dim 1 : vector<32x64xf32>, i32 -> vector<32x64xf32>
    %cst_252 = arith.constant 0.000000e+00 : f32
    %910 = vector.broadcast %cst_252 : f32 to vector<32x64xf32>
    %911 = arith.select %14, %909, %910 : vector<32x64xi1>, vector<32x64xf32>
    %c86 = arith.constant 86 : index
    %912 = memref.load %arg1[%c86] : memref<90xf32, #tpu.memory_space<smem>>
    %913 = vector.broadcast %912 : f32 to vector<32x64xf32>
    %914 = arith.mulf %913, %911 : vector<32x64xf32>
    %915 = arith.addf %908, %914 : vector<32x64xf32>
    %c1_i32_253 = arith.constant 1 : i32
    %916 = tpu.dynamic_rotate %877 by %c1_i32_253 dim 1 : vector<32x64xf32>, i32 -> vector<32x64xf32>
    %cst_254 = arith.constant 0.000000e+00 : f32
    %917 = vector.broadcast %cst_254 : f32 to vector<32x64xf32>
    %918 = arith.select %12, %916, %917 : vector<32x64xi1>, vector<32x64xf32>
    %c87 = arith.constant 87 : index
    %919 = memref.load %arg1[%c87] : memref<90xf32, #tpu.memory_space<smem>>
    %920 = vector.broadcast %919 : f32 to vector<32x64xf32>
    %921 = arith.mulf %920, %918 : vector<32x64xf32>
    %922 = arith.addf %915, %921 : vector<32x64xf32>
    %c88 = arith.constant 88 : index
    %923 = memref.load %arg1[%c88] : memref<90xf32, #tpu.memory_space<smem>>
    %924 = vector.broadcast %923 : f32 to vector<32x64xf32>
    %925 = arith.mulf %924, %877 : vector<32x64xf32>
    %926 = arith.addf %922, %925 : vector<32x64xf32>
    %c63_i32_255 = arith.constant 63 : i32
    %927 = tpu.dynamic_rotate %877 by %c63_i32_255 dim 1 : vector<32x64xf32>, i32 -> vector<32x64xf32>
    %cst_256 = arith.constant 0.000000e+00 : f32
    %928 = vector.broadcast %cst_256 : f32 to vector<32x64xf32>
    %929 = arith.select %14, %927, %928 : vector<32x64xi1>, vector<32x64xf32>
    %c89 = arith.constant 89 : index
    %930 = memref.load %arg1[%c89] : memref<90xf32, #tpu.memory_space<smem>>
    %931 = vector.broadcast %930 : f32 to vector<32x64xf32>
    %932 = arith.mulf %931, %929 : vector<32x64xf32>
    %933 = arith.addf %926, %932 : vector<32x64xf32>
    %934 = vector.shape_cast %933 : vector<32x64xf32> to vector<1x32x64xf32>
    %cst_257 = arith.constant dense<0.000000e+00> : vector<1xf32>
    %935 = vector.multi_reduction <add>, %934, %cst_257 [1, 2] : vector<1x32x64xf32> to vector<1xf32>
    %936 = vector.shape_cast %935 : vector<1xf32> to vector<1x1x1xf32>
    %937 = vector.extract %936[0, 0, 0] : f32 from vector<1x1x1xf32>
    %938 = vector.broadcast %937 : f32 to vector<1x1xf32>
    %939 = arith.mulf %933, %933 : vector<32x64xf32>
    %940 = vector.shape_cast %939 : vector<32x64xf32> to vector<1x32x64xf32>
    %cst_258 = arith.constant dense<0.000000e+00> : vector<1xf32>
    %941 = vector.multi_reduction <add>, %940, %cst_258 [1, 2] : vector<1x32x64xf32> to vector<1xf32>
    %942 = vector.shape_cast %941 : vector<1xf32> to vector<1x1x1xf32>
    %943 = vector.extract %942[0, 0, 0] : f32 from vector<1x1x1xf32>
    %944 = vector.broadcast %943 : f32 to vector<1x1xf32>
    %cst_259 = arith.constant 4.8828125E-4 : f32
    %945 = vector.broadcast %cst_259 : f32 to vector<1x1xf32>
    %946 = arith.mulf %938, %945 : vector<1x1xf32>
    %cst_260 = arith.constant 4.8828125E-4 : f32
    %947 = vector.broadcast %cst_260 : f32 to vector<1x1xf32>
    %948 = arith.mulf %944, %947 : vector<1x1xf32>
    %949 = arith.mulf %946, %946 : vector<1x1xf32>
    %950 = arith.subf %948, %949 : vector<1x1xf32>
    %c9_261 = arith.constant 9 : index
    %951 = memref.load %arg3[%c9_261] : memref<10xf32, #tpu.memory_space<smem>>
    %cst_262 = arith.constant 9.99999974E-6 : f32
    %952 = vector.broadcast %cst_262 : f32 to vector<1x1xf32>
    %953 = arith.addf %950, %952 : vector<1x1xf32>
    %954 = math.rsqrt %953 : vector<1x1xf32>
    %955 = vector.broadcast %951 : f32 to vector<1x1xf32>
    %956 = arith.mulf %955, %954 : vector<1x1xf32>
    %957 = vector.broadcast %946 : vector<1x1xf32> to vector<32x64xf32>
    %958 = arith.subf %933, %957 : vector<32x64xf32>
    %959 = vector.broadcast %956 : vector<1x1xf32> to vector<32x64xf32>
    %960 = arith.mulf %958, %959 : vector<32x64xf32>
    %c9_263 = arith.constant 9 : index
    %961 = memref.load %arg4[%c9_263] : memref<10xf32, #tpu.memory_space<smem>>
    %962 = vector.broadcast %961 : f32 to vector<32x64xf32>
    %963 = arith.addf %960, %962 : vector<32x64xf32>
    %964 = arith.addf %963, %777 : vector<32x64xf32>
    %cst_264 = arith.constant 0.000000e+00 : f32
    %965 = vector.broadcast %cst_264 : f32 to vector<32x64xf32>
    %966 = arith.maximumf %964, %965 : vector<32x64xf32>
    %967 = vector.extract_strided_slice %966 {offsets = [0, 0], sizes = [1, 32], strides = [1, 1]} : vector<32x64xf32> to vector<1x32xf32>
    %c0_265 = arith.constant 0 : index
    %c0_266 = arith.constant 0 : index
    %968 = vector.load %arg9[%c0_265, %c0_266] : memref<2x1024xf32, #tpu.memory_space<vmem>>, vector<1x32xf32>
    tpu.vector_store %arg9[%c0_265, %c0_266], %967 {strides = array<i32>} : memref<2x1024xf32, #tpu.memory_space<vmem>>, vector<1x32xf32>,
    %969 = vector.extract_strided_slice %966 {offsets = [1, 0], sizes = [1, 32], strides = [1, 1]} : vector<32x64xf32> to vector<1x32xf32>
    %c0_267 = arith.constant 0 : index
    %c32_268 = arith.constant 32 : index
    %970 = vector.load %arg9[%c0_267, %c32_268] : memref<2x1024xf32, #tpu.memory_space<vmem>>, vector<1x32xf32>
    tpu.vector_store %arg9[%c0_267, %c32_268], %969 {strides = array<i32>} : memref<2x1024xf32, #tpu.memory_space<vmem>>, vector<1x32xf32>,
    %971 = vector.extract_strided_slice %966 {offsets = [2, 0], sizes = [1, 32], strides = [1, 1]} : vector<32x64xf32> to vector<1x32xf32>
    %c0_269 = arith.constant 0 : index
    %c64_270 = arith.constant 64 : index
    %972 = vector.load %arg9[%c0_269, %c64_270] : memref<2x1024xf32, #tpu.memory_space<vmem>>, vector<1x32xf32>
    tpu.vector_store %arg9[%c0_269, %c64_270], %971 {strides = array<i32>} : memref<2x1024xf32, #tpu.memory_space<vmem>>, vector<1x32xf32>,
    %973 = vector.extract_strided_slice %966 {offsets = [3, 0], sizes = [1, 32], strides = [1, 1]} : vector<32x64xf32> to vector<1x32xf32>
    %c0_271 = arith.constant 0 : index
    %c96 = arith.constant 96 : index
    %974 = vector.load %arg9[%c0_271, %c96] : memref<2x1024xf32, #tpu.memory_space<vmem>>, vector<1x32xf32>
    tpu.vector_store %arg9[%c0_271, %c96], %973 {strides = array<i32>} : memref<2x1024xf32, #tpu.memory_space<vmem>>, vector<1x32xf32>,
    %975 = vector.extract_strided_slice %966 {offsets = [4, 0], sizes = [1, 32], strides = [1, 1]} : vector<32x64xf32> to vector<1x32xf32>
    %c0_272 = arith.constant 0 : index
    %c128 = arith.constant 128 : index
    %976 = vector.load %arg9[%c0_272, %c128] : memref<2x1024xf32, #tpu.memory_space<vmem>>, vector<1x32xf32>
    tpu.vector_store %arg9[%c0_272, %c128], %975 {strides = array<i32>} : memref<2x1024xf32, #tpu.memory_space<vmem>>, vector<1x32xf32>,
    %977 = vector.extract_strided_slice %966 {offsets = [5, 0], sizes = [1, 32], strides = [1, 1]} : vector<32x64xf32> to vector<1x32xf32>
    %c0_273 = arith.constant 0 : index
    %c160 = arith.constant 160 : index
    %978 = vector.load %arg9[%c0_273, %c160] : memref<2x1024xf32, #tpu.memory_space<vmem>>, vector<1x32xf32>
    tpu.vector_store %arg9[%c0_273, %c160], %977 {strides = array<i32>} : memref<2x1024xf32, #tpu.memory_space<vmem>>, vector<1x32xf32>,
    %979 = vector.extract_strided_slice %966 {offsets = [6, 0], sizes = [1, 32], strides = [1, 1]} : vector<32x64xf32> to vector<1x32xf32>
    %c0_274 = arith.constant 0 : index
    %c192 = arith.constant 192 : index
    %980 = vector.load %arg9[%c0_274, %c192] : memref<2x1024xf32, #tpu.memory_space<vmem>>, vector<1x32xf32>
    tpu.vector_store %arg9[%c0_274, %c192], %979 {strides = array<i32>} : memref<2x1024xf32, #tpu.memory_space<vmem>>, vector<1x32xf32>,
    %981 = vector.extract_strided_slice %966 {offsets = [7, 0], sizes = [1, 32], strides = [1, 1]} : vector<32x64xf32> to vector<1x32xf32>
    %c0_275 = arith.constant 0 : index
    %c224 = arith.constant 224 : index
    %982 = vector.load %arg9[%c0_275, %c224] : memref<2x1024xf32, #tpu.memory_space<vmem>>, vector<1x32xf32>
    tpu.vector_store %arg9[%c0_275, %c224], %981 {strides = array<i32>} : memref<2x1024xf32, #tpu.memory_space<vmem>>, vector<1x32xf32>,
    %983 = vector.extract_strided_slice %966 {offsets = [8, 0], sizes = [1, 32], strides = [1, 1]} : vector<32x64xf32> to vector<1x32xf32>
    %c0_276 = arith.constant 0 : index
    %c256 = arith.constant 256 : index
    %984 = vector.load %arg9[%c0_276, %c256] : memref<2x1024xf32, #tpu.memory_space<vmem>>, vector<1x32xf32>
    tpu.vector_store %arg9[%c0_276, %c256], %983 {strides = array<i32>} : memref<2x1024xf32, #tpu.memory_space<vmem>>, vector<1x32xf32>,
    %985 = vector.extract_strided_slice %966 {offsets = [9, 0], sizes = [1, 32], strides = [1, 1]} : vector<32x64xf32> to vector<1x32xf32>
    %c0_277 = arith.constant 0 : index
    %c288 = arith.constant 288 : index
    %986 = vector.load %arg9[%c0_277, %c288] : memref<2x1024xf32, #tpu.memory_space<vmem>>, vector<1x32xf32>
    tpu.vector_store %arg9[%c0_277, %c288], %985 {strides = array<i32>} : memref<2x1024xf32, #tpu.memory_space<vmem>>, vector<1x32xf32>,
    %987 = vector.extract_strided_slice %966 {offsets = [10, 0], sizes = [1, 32], strides = [1, 1]} : vector<32x64xf32> to vector<1x32xf32>
    %c0_278 = arith.constant 0 : index
    %c320 = arith.constant 320 : index
    %988 = vector.load %arg9[%c0_278, %c320] : memref<2x1024xf32, #tpu.memory_space<vmem>>, vector<1x32xf32>
    tpu.vector_store %arg9[%c0_278, %c320], %987 {strides = array<i32>} : memref<2x1024xf32, #tpu.memory_space<vmem>>, vector<1x32xf32>,
    %989 = vector.extract_strided_slice %966 {offsets = [11, 0], sizes = [1, 32], strides = [1, 1]} : vector<32x64xf32> to vector<1x32xf32>
    %c0_279 = arith.constant 0 : index
    %c352 = arith.constant 352 : index
    %990 = vector.load %arg9[%c0_279, %c352] : memref<2x1024xf32, #tpu.memory_space<vmem>>, vector<1x32xf32>
    tpu.vector_store %arg9[%c0_279, %c352], %989 {strides = array<i32>} : memref<2x1024xf32, #tpu.memory_space<vmem>>, vector<1x32xf32>,
    %991 = vector.extract_strided_slice %966 {offsets = [12, 0], sizes = [1, 32], strides = [1, 1]} : vector<32x64xf32> to vector<1x32xf32>
    %c0_280 = arith.constant 0 : index
    %c384 = arith.constant 384 : index
    %992 = vector.load %arg9[%c0_280, %c384] : memref<2x1024xf32, #tpu.memory_space<vmem>>, vector<1x32xf32>
    tpu.vector_store %arg9[%c0_280, %c384], %991 {strides = array<i32>} : memref<2x1024xf32, #tpu.memory_space<vmem>>, vector<1x32xf32>,
    %993 = vector.extract_strided_slice %966 {offsets = [13, 0], sizes = [1, 32], strides = [1, 1]} : vector<32x64xf32> to vector<1x32xf32>
    %c0_281 = arith.constant 0 : index
    %c416 = arith.constant 416 : index
    %994 = vector.load %arg9[%c0_281, %c416] : memref<2x1024xf32, #tpu.memory_space<vmem>>, vector<1x32xf32>
    tpu.vector_store %arg9[%c0_281, %c416], %993 {strides = array<i32>} : memref<2x1024xf32, #tpu.memory_space<vmem>>, vector<1x32xf32>,
    %995 = vector.extract_strided_slice %966 {offsets = [14, 0], sizes = [1, 32], strides = [1, 1]} : vector<32x64xf32> to vector<1x32xf32>
    %c0_282 = arith.constant 0 : index
    %c448 = arith.constant 448 : index
    %996 = vector.load %arg9[%c0_282, %c448] : memref<2x1024xf32, #tpu.memory_space<vmem>>, vector<1x32xf32>
    tpu.vector_store %arg9[%c0_282, %c448], %995 {strides = array<i32>} : memref<2x1024xf32, #tpu.memory_space<vmem>>, vector<1x32xf32>,
    %997 = vector.extract_strided_slice %966 {offsets = [15, 0], sizes = [1, 32], strides = [1, 1]} : vector<32x64xf32> to vector<1x32xf32>
    %c0_283 = arith.constant 0 : index
    %c480 = arith.constant 480 : index
    %998 = vector.load %arg9[%c0_283, %c480] : memref<2x1024xf32, #tpu.memory_space<vmem>>, vector<1x32xf32>
    tpu.vector_store %arg9[%c0_283, %c480], %997 {strides = array<i32>} : memref<2x1024xf32, #tpu.memory_space<vmem>>, vector<1x32xf32>,
    %999 = vector.extract_strided_slice %966 {offsets = [16, 0], sizes = [1, 32], strides = [1, 1]} : vector<32x64xf32> to vector<1x32xf32>
    %c0_284 = arith.constant 0 : index
    %c512 = arith.constant 512 : index
    %1000 = vector.load %arg9[%c0_284, %c512] : memref<2x1024xf32, #tpu.memory_space<vmem>>, vector<1x32xf32>
    tpu.vector_store %arg9[%c0_284, %c512], %999 {strides = array<i32>} : memref<2x1024xf32, #tpu.memory_space<vmem>>, vector<1x32xf32>,
    %1001 = vector.extract_strided_slice %966 {offsets = [17, 0], sizes = [1, 32], strides = [1, 1]} : vector<32x64xf32> to vector<1x32xf32>
    %c0_285 = arith.constant 0 : index
    %c544 = arith.constant 544 : index
    %1002 = vector.load %arg9[%c0_285, %c544] : memref<2x1024xf32, #tpu.memory_space<vmem>>, vector<1x32xf32>
    tpu.vector_store %arg9[%c0_285, %c544], %1001 {strides = array<i32>} : memref<2x1024xf32, #tpu.memory_space<vmem>>, vector<1x32xf32>,
    %1003 = vector.extract_strided_slice %966 {offsets = [18, 0], sizes = [1, 32], strides = [1, 1]} : vector<32x64xf32> to vector<1x32xf32>
    %c0_286 = arith.constant 0 : index
    %c576 = arith.constant 576 : index
    %1004 = vector.load %arg9[%c0_286, %c576] : memref<2x1024xf32, #tpu.memory_space<vmem>>, vector<1x32xf32>
    tpu.vector_store %arg9[%c0_286, %c576], %1003 {strides = array<i32>} : memref<2x1024xf32, #tpu.memory_space<vmem>>, vector<1x32xf32>,
    %1005 = vector.extract_strided_slice %966 {offsets = [19, 0], sizes = [1, 32], strides = [1, 1]} : vector<32x64xf32> to vector<1x32xf32>
    %c0_287 = arith.constant 0 : index
    %c608 = arith.constant 608 : index
    %1006 = vector.load %arg9[%c0_287, %c608] : memref<2x1024xf32, #tpu.memory_space<vmem>>, vector<1x32xf32>
    tpu.vector_store %arg9[%c0_287, %c608], %1005 {strides = array<i32>} : memref<2x1024xf32, #tpu.memory_space<vmem>>, vector<1x32xf32>,
    %1007 = vector.extract_strided_slice %966 {offsets = [20, 0], sizes = [1, 32], strides = [1, 1]} : vector<32x64xf32> to vector<1x32xf32>
    %c0_288 = arith.constant 0 : index
    %c640 = arith.constant 640 : index
    %1008 = vector.load %arg9[%c0_288, %c640] : memref<2x1024xf32, #tpu.memory_space<vmem>>, vector<1x32xf32>
    tpu.vector_store %arg9[%c0_288, %c640], %1007 {strides = array<i32>} : memref<2x1024xf32, #tpu.memory_space<vmem>>, vector<1x32xf32>,
    %1009 = vector.extract_strided_slice %966 {offsets = [21, 0], sizes = [1, 32], strides = [1, 1]} : vector<32x64xf32> to vector<1x32xf32>
    %c0_289 = arith.constant 0 : index
    %c672 = arith.constant 672 : index
    %1010 = vector.load %arg9[%c0_289, %c672] : memref<2x1024xf32, #tpu.memory_space<vmem>>, vector<1x32xf32>
    tpu.vector_store %arg9[%c0_289, %c672], %1009 {strides = array<i32>} : memref<2x1024xf32, #tpu.memory_space<vmem>>, vector<1x32xf32>,
    %1011 = vector.extract_strided_slice %966 {offsets = [22, 0], sizes = [1, 32], strides = [1, 1]} : vector<32x64xf32> to vector<1x32xf32>
    %c0_290 = arith.constant 0 : index
    %c704 = arith.constant 704 : index
    %1012 = vector.load %arg9[%c0_290, %c704] : memref<2x1024xf32, #tpu.memory_space<vmem>>, vector<1x32xf32>
    tpu.vector_store %arg9[%c0_290, %c704], %1011 {strides = array<i32>} : memref<2x1024xf32, #tpu.memory_space<vmem>>, vector<1x32xf32>,
    %1013 = vector.extract_strided_slice %966 {offsets = [23, 0], sizes = [1, 32], strides = [1, 1]} : vector<32x64xf32> to vector<1x32xf32>
    %c0_291 = arith.constant 0 : index
    %c736 = arith.constant 736 : index
    %1014 = vector.load %arg9[%c0_291, %c736] : memref<2x1024xf32, #tpu.memory_space<vmem>>, vector<1x32xf32>
    tpu.vector_store %arg9[%c0_291, %c736], %1013 {strides = array<i32>} : memref<2x1024xf32, #tpu.memory_space<vmem>>, vector<1x32xf32>,
    %1015 = vector.extract_strided_slice %966 {offsets = [24, 0], sizes = [1, 32], strides = [1, 1]} : vector<32x64xf32> to vector<1x32xf32>
    %c0_292 = arith.constant 0 : index
    %c768 = arith.constant 768 : index
    %1016 = vector.load %arg9[%c0_292, %c768] : memref<2x1024xf32, #tpu.memory_space<vmem>>, vector<1x32xf32>
    tpu.vector_store %arg9[%c0_292, %c768], %1015 {strides = array<i32>} : memref<2x1024xf32, #tpu.memory_space<vmem>>, vector<1x32xf32>,
    %1017 = vector.extract_strided_slice %966 {offsets = [25, 0], sizes = [1, 32], strides = [1, 1]} : vector<32x64xf32> to vector<1x32xf32>
    %c0_293 = arith.constant 0 : index
    %c800 = arith.constant 800 : index
    %1018 = vector.load %arg9[%c0_293, %c800] : memref<2x1024xf32, #tpu.memory_space<vmem>>, vector<1x32xf32>
    tpu.vector_store %arg9[%c0_293, %c800], %1017 {strides = array<i32>} : memref<2x1024xf32, #tpu.memory_space<vmem>>, vector<1x32xf32>,
    %1019 = vector.extract_strided_slice %966 {offsets = [26, 0], sizes = [1, 32], strides = [1, 1]} : vector<32x64xf32> to vector<1x32xf32>
    %c0_294 = arith.constant 0 : index
    %c832 = arith.constant 832 : index
    %1020 = vector.load %arg9[%c0_294, %c832] : memref<2x1024xf32, #tpu.memory_space<vmem>>, vector<1x32xf32>
    tpu.vector_store %arg9[%c0_294, %c832], %1019 {strides = array<i32>} : memref<2x1024xf32, #tpu.memory_space<vmem>>, vector<1x32xf32>,
    %1021 = vector.extract_strided_slice %966 {offsets = [27, 0], sizes = [1, 32], strides = [1, 1]} : vector<32x64xf32> to vector<1x32xf32>
    %c0_295 = arith.constant 0 : index
    %c864 = arith.constant 864 : index
    %1022 = vector.load %arg9[%c0_295, %c864] : memref<2x1024xf32, #tpu.memory_space<vmem>>, vector<1x32xf32>
    tpu.vector_store %arg9[%c0_295, %c864], %1021 {strides = array<i32>} : memref<2x1024xf32, #tpu.memory_space<vmem>>, vector<1x32xf32>,
    %1023 = vector.extract_strided_slice %966 {offsets = [28, 0], sizes = [1, 32], strides = [1, 1]} : vector<32x64xf32> to vector<1x32xf32>
    %c0_296 = arith.constant 0 : index
    %c896 = arith.constant 896 : index
    %1024 = vector.load %arg9[%c0_296, %c896] : memref<2x1024xf32, #tpu.memory_space<vmem>>, vector<1x32xf32>
    tpu.vector_store %arg9[%c0_296, %c896], %1023 {strides = array<i32>} : memref<2x1024xf32, #tpu.memory_space<vmem>>, vector<1x32xf32>,
    %1025 = vector.extract_strided_slice %966 {offsets = [29, 0], sizes = [1, 32], strides = [1, 1]} : vector<32x64xf32> to vector<1x32xf32>
    %c0_297 = arith.constant 0 : index
    %c928 = arith.constant 928 : index
    %1026 = vector.load %arg9[%c0_297, %c928] : memref<2x1024xf32, #tpu.memory_space<vmem>>, vector<1x32xf32>
    tpu.vector_store %arg9[%c0_297, %c928], %1025 {strides = array<i32>} : memref<2x1024xf32, #tpu.memory_space<vmem>>, vector<1x32xf32>,
    %1027 = vector.extract_strided_slice %966 {offsets = [30, 0], sizes = [1, 32], strides = [1, 1]} : vector<32x64xf32> to vector<1x32xf32>
    %c0_298 = arith.constant 0 : index
    %c960 = arith.constant 960 : index
    %1028 = vector.load %arg9[%c0_298, %c960] : memref<2x1024xf32, #tpu.memory_space<vmem>>, vector<1x32xf32>
    tpu.vector_store %arg9[%c0_298, %c960], %1027 {strides = array<i32>} : memref<2x1024xf32, #tpu.memory_space<vmem>>, vector<1x32xf32>,
    %1029 = vector.extract_strided_slice %966 {offsets = [31, 0], sizes = [1, 32], strides = [1, 1]} : vector<32x64xf32> to vector<1x32xf32>
    %c0_299 = arith.constant 0 : index
    %c992 = arith.constant 992 : index
    %1030 = vector.load %arg9[%c0_299, %c992] : memref<2x1024xf32, #tpu.memory_space<vmem>>, vector<1x32xf32>
    tpu.vector_store %arg9[%c0_299, %c992], %1029 {strides = array<i32>} : memref<2x1024xf32, #tpu.memory_space<vmem>>, vector<1x32xf32>,
    %1031 = vector.extract_strided_slice %966 {offsets = [0, 32], sizes = [1, 32], strides = [1, 1]} : vector<32x64xf32> to vector<1x32xf32>
    %c1_300 = arith.constant 1 : index
    %c0_301 = arith.constant 0 : index
    %1032 = vector.load %arg9[%c1_300, %c0_301] : memref<2x1024xf32, #tpu.memory_space<vmem>>, vector<1x32xf32>
    tpu.vector_store %arg9[%c1_300, %c0_301], %1031 {strides = array<i32>} : memref<2x1024xf32, #tpu.memory_space<vmem>>, vector<1x32xf32>,
    %1033 = vector.extract_strided_slice %966 {offsets = [1, 32], sizes = [1, 32], strides = [1, 1]} : vector<32x64xf32> to vector<1x32xf32>
    %c1_302 = arith.constant 1 : index
    %c32_303 = arith.constant 32 : index
    %1034 = vector.load %arg9[%c1_302, %c32_303] : memref<2x1024xf32, #tpu.memory_space<vmem>>, vector<1x32xf32>
    tpu.vector_store %arg9[%c1_302, %c32_303], %1033 {strides = array<i32>} : memref<2x1024xf32, #tpu.memory_space<vmem>>, vector<1x32xf32>,
    %1035 = vector.extract_strided_slice %966 {offsets = [2, 32], sizes = [1, 32], strides = [1, 1]} : vector<32x64xf32> to vector<1x32xf32>
    %c1_304 = arith.constant 1 : index
    %c64_305 = arith.constant 64 : index
    %1036 = vector.load %arg9[%c1_304, %c64_305] : memref<2x1024xf32, #tpu.memory_space<vmem>>, vector<1x32xf32>
    tpu.vector_store %arg9[%c1_304, %c64_305], %1035 {strides = array<i32>} : memref<2x1024xf32, #tpu.memory_space<vmem>>, vector<1x32xf32>,
    %1037 = vector.extract_strided_slice %966 {offsets = [3, 32], sizes = [1, 32], strides = [1, 1]} : vector<32x64xf32> to vector<1x32xf32>
    %c1_306 = arith.constant 1 : index
    %c96_307 = arith.constant 96 : index
    %1038 = vector.load %arg9[%c1_306, %c96_307] : memref<2x1024xf32, #tpu.memory_space<vmem>>, vector<1x32xf32>
    tpu.vector_store %arg9[%c1_306, %c96_307], %1037 {strides = array<i32>} : memref<2x1024xf32, #tpu.memory_space<vmem>>, vector<1x32xf32>,
    %1039 = vector.extract_strided_slice %966 {offsets = [4, 32], sizes = [1, 32], strides = [1, 1]} : vector<32x64xf32> to vector<1x32xf32>
    %c1_308 = arith.constant 1 : index
    %c128_309 = arith.constant 128 : index
    %1040 = vector.load %arg9[%c1_308, %c128_309] : memref<2x1024xf32, #tpu.memory_space<vmem>>, vector<1x32xf32>
    tpu.vector_store %arg9[%c1_308, %c128_309], %1039 {strides = array<i32>} : memref<2x1024xf32, #tpu.memory_space<vmem>>, vector<1x32xf32>,
    %1041 = vector.extract_strided_slice %966 {offsets = [5, 32], sizes = [1, 32], strides = [1, 1]} : vector<32x64xf32> to vector<1x32xf32>
    %c1_310 = arith.constant 1 : index
    %c160_311 = arith.constant 160 : index
    %1042 = vector.load %arg9[%c1_310, %c160_311] : memref<2x1024xf32, #tpu.memory_space<vmem>>, vector<1x32xf32>
    tpu.vector_store %arg9[%c1_310, %c160_311], %1041 {strides = array<i32>} : memref<2x1024xf32, #tpu.memory_space<vmem>>, vector<1x32xf32>,
    %1043 = vector.extract_strided_slice %966 {offsets = [6, 32], sizes = [1, 32], strides = [1, 1]} : vector<32x64xf32> to vector<1x32xf32>
    %c1_312 = arith.constant 1 : index
    %c192_313 = arith.constant 192 : index
    %1044 = vector.load %arg9[%c1_312, %c192_313] : memref<2x1024xf32, #tpu.memory_space<vmem>>, vector<1x32xf32>
    tpu.vector_store %arg9[%c1_312, %c192_313], %1043 {strides = array<i32>} : memref<2x1024xf32, #tpu.memory_space<vmem>>, vector<1x32xf32>,
    %1045 = vector.extract_strided_slice %966 {offsets = [7, 32], sizes = [1, 32], strides = [1, 1]} : vector<32x64xf32> to vector<1x32xf32>
    %c1_314 = arith.constant 1 : index
    %c224_315 = arith.constant 224 : index
    %1046 = vector.load %arg9[%c1_314, %c224_315] : memref<2x1024xf32, #tpu.memory_space<vmem>>, vector<1x32xf32>
    tpu.vector_store %arg9[%c1_314, %c224_315], %1045 {strides = array<i32>} : memref<2x1024xf32, #tpu.memory_space<vmem>>, vector<1x32xf32>,
    %1047 = vector.extract_strided_slice %966 {offsets = [8, 32], sizes = [1, 32], strides = [1, 1]} : vector<32x64xf32> to vector<1x32xf32>
    %c1_316 = arith.constant 1 : index
    %c256_317 = arith.constant 256 : index
    %1048 = vector.load %arg9[%c1_316, %c256_317] : memref<2x1024xf32, #tpu.memory_space<vmem>>, vector<1x32xf32>
    tpu.vector_store %arg9[%c1_316, %c256_317], %1047 {strides = array<i32>} : memref<2x1024xf32, #tpu.memory_space<vmem>>, vector<1x32xf32>,
    %1049 = vector.extract_strided_slice %966 {offsets = [9, 32], sizes = [1, 32], strides = [1, 1]} : vector<32x64xf32> to vector<1x32xf32>
    %c1_318 = arith.constant 1 : index
    %c288_319 = arith.constant 288 : index
    %1050 = vector.load %arg9[%c1_318, %c288_319] : memref<2x1024xf32, #tpu.memory_space<vmem>>, vector<1x32xf32>
    tpu.vector_store %arg9[%c1_318, %c288_319], %1049 {strides = array<i32>} : memref<2x1024xf32, #tpu.memory_space<vmem>>, vector<1x32xf32>,
    %1051 = vector.extract_strided_slice %966 {offsets = [10, 32], sizes = [1, 32], strides = [1, 1]} : vector<32x64xf32> to vector<1x32xf32>
    %c1_320 = arith.constant 1 : index
    %c320_321 = arith.constant 320 : index
    %1052 = vector.load %arg9[%c1_320, %c320_321] : memref<2x1024xf32, #tpu.memory_space<vmem>>, vector<1x32xf32>
    tpu.vector_store %arg9[%c1_320, %c320_321], %1051 {strides = array<i32>} : memref<2x1024xf32, #tpu.memory_space<vmem>>, vector<1x32xf32>,
    %1053 = vector.extract_strided_slice %966 {offsets = [11, 32], sizes = [1, 32], strides = [1, 1]} : vector<32x64xf32> to vector<1x32xf32>
    %c1_322 = arith.constant 1 : index
    %c352_323 = arith.constant 352 : index
    %1054 = vector.load %arg9[%c1_322, %c352_323] : memref<2x1024xf32, #tpu.memory_space<vmem>>, vector<1x32xf32>
    tpu.vector_store %arg9[%c1_322, %c352_323], %1053 {strides = array<i32>} : memref<2x1024xf32, #tpu.memory_space<vmem>>, vector<1x32xf32>,
    %1055 = vector.extract_strided_slice %966 {offsets = [12, 32], sizes = [1, 32], strides = [1, 1]} : vector<32x64xf32> to vector<1x32xf32>
    %c1_324 = arith.constant 1 : index
    %c384_325 = arith.constant 384 : index
    %1056 = vector.load %arg9[%c1_324, %c384_325] : memref<2x1024xf32, #tpu.memory_space<vmem>>, vector<1x32xf32>
    tpu.vector_store %arg9[%c1_324, %c384_325], %1055 {strides = array<i32>} : memref<2x1024xf32, #tpu.memory_space<vmem>>, vector<1x32xf32>,
    %1057 = vector.extract_strided_slice %966 {offsets = [13, 32], sizes = [1, 32], strides = [1, 1]} : vector<32x64xf32> to vector<1x32xf32>
    %c1_326 = arith.constant 1 : index
    %c416_327 = arith.constant 416 : index
    %1058 = vector.load %arg9[%c1_326, %c416_327] : memref<2x1024xf32, #tpu.memory_space<vmem>>, vector<1x32xf32>
    tpu.vector_store %arg9[%c1_326, %c416_327], %1057 {strides = array<i32>} : memref<2x1024xf32, #tpu.memory_space<vmem>>, vector<1x32xf32>,
    %1059 = vector.extract_strided_slice %966 {offsets = [14, 32], sizes = [1, 32], strides = [1, 1]} : vector<32x64xf32> to vector<1x32xf32>
    %c1_328 = arith.constant 1 : index
    %c448_329 = arith.constant 448 : index
    %1060 = vector.load %arg9[%c1_328, %c448_329] : memref<2x1024xf32, #tpu.memory_space<vmem>>, vector<1x32xf32>
    tpu.vector_store %arg9[%c1_328, %c448_329], %1059 {strides = array<i32>} : memref<2x1024xf32, #tpu.memory_space<vmem>>, vector<1x32xf32>,
    %1061 = vector.extract_strided_slice %966 {offsets = [15, 32], sizes = [1, 32], strides = [1, 1]} : vector<32x64xf32> to vector<1x32xf32>
    %c1_330 = arith.constant 1 : index
    %c480_331 = arith.constant 480 : index
    %1062 = vector.load %arg9[%c1_330, %c480_331] : memref<2x1024xf32, #tpu.memory_space<vmem>>, vector<1x32xf32>
    tpu.vector_store %arg9[%c1_330, %c480_331], %1061 {strides = array<i32>} : memref<2x1024xf32, #tpu.memory_space<vmem>>, vector<1x32xf32>,
    %1063 = vector.extract_strided_slice %966 {offsets = [16, 32], sizes = [1, 32], strides = [1, 1]} : vector<32x64xf32> to vector<1x32xf32>
    %c1_332 = arith.constant 1 : index
    %c512_333 = arith.constant 512 : index
    %1064 = vector.load %arg9[%c1_332, %c512_333] : memref<2x1024xf32, #tpu.memory_space<vmem>>, vector<1x32xf32>
    tpu.vector_store %arg9[%c1_332, %c512_333], %1063 {strides = array<i32>} : memref<2x1024xf32, #tpu.memory_space<vmem>>, vector<1x32xf32>,
    %1065 = vector.extract_strided_slice %966 {offsets = [17, 32], sizes = [1, 32], strides = [1, 1]} : vector<32x64xf32> to vector<1x32xf32>
    %c1_334 = arith.constant 1 : index
    %c544_335 = arith.constant 544 : index
    %1066 = vector.load %arg9[%c1_334, %c544_335] : memref<2x1024xf32, #tpu.memory_space<vmem>>, vector<1x32xf32>
    tpu.vector_store %arg9[%c1_334, %c544_335], %1065 {strides = array<i32>} : memref<2x1024xf32, #tpu.memory_space<vmem>>, vector<1x32xf32>,
    %1067 = vector.extract_strided_slice %966 {offsets = [18, 32], sizes = [1, 32], strides = [1, 1]} : vector<32x64xf32> to vector<1x32xf32>
    %c1_336 = arith.constant 1 : index
    %c576_337 = arith.constant 576 : index
    %1068 = vector.load %arg9[%c1_336, %c576_337] : memref<2x1024xf32, #tpu.memory_space<vmem>>, vector<1x32xf32>
    tpu.vector_store %arg9[%c1_336, %c576_337], %1067 {strides = array<i32>} : memref<2x1024xf32, #tpu.memory_space<vmem>>, vector<1x32xf32>,
    %1069 = vector.extract_strided_slice %966 {offsets = [19, 32], sizes = [1, 32], strides = [1, 1]} : vector<32x64xf32> to vector<1x32xf32>
    %c1_338 = arith.constant 1 : index
    %c608_339 = arith.constant 608 : index
    %1070 = vector.load %arg9[%c1_338, %c608_339] : memref<2x1024xf32, #tpu.memory_space<vmem>>, vector<1x32xf32>
    tpu.vector_store %arg9[%c1_338, %c608_339], %1069 {strides = array<i32>} : memref<2x1024xf32, #tpu.memory_space<vmem>>, vector<1x32xf32>,
    %1071 = vector.extract_strided_slice %966 {offsets = [20, 32], sizes = [1, 32], strides = [1, 1]} : vector<32x64xf32> to vector<1x32xf32>
    %c1_340 = arith.constant 1 : index
    %c640_341 = arith.constant 640 : index
    %1072 = vector.load %arg9[%c1_340, %c640_341] : memref<2x1024xf32, #tpu.memory_space<vmem>>, vector<1x32xf32>
    tpu.vector_store %arg9[%c1_340, %c640_341], %1071 {strides = array<i32>} : memref<2x1024xf32, #tpu.memory_space<vmem>>, vector<1x32xf32>,
    %1073 = vector.extract_strided_slice %966 {offsets = [21, 32], sizes = [1, 32], strides = [1, 1]} : vector<32x64xf32> to vector<1x32xf32>
    %c1_342 = arith.constant 1 : index
    %c672_343 = arith.constant 672 : index
    %1074 = vector.load %arg9[%c1_342, %c672_343] : memref<2x1024xf32, #tpu.memory_space<vmem>>, vector<1x32xf32>
    tpu.vector_store %arg9[%c1_342, %c672_343], %1073 {strides = array<i32>} : memref<2x1024xf32, #tpu.memory_space<vmem>>, vector<1x32xf32>,
    %1075 = vector.extract_strided_slice %966 {offsets = [22, 32], sizes = [1, 32], strides = [1, 1]} : vector<32x64xf32> to vector<1x32xf32>
    %c1_344 = arith.constant 1 : index
    %c704_345 = arith.constant 704 : index
    %1076 = vector.load %arg9[%c1_344, %c704_345] : memref<2x1024xf32, #tpu.memory_space<vmem>>, vector<1x32xf32>
    tpu.vector_store %arg9[%c1_344, %c704_345], %1075 {strides = array<i32>} : memref<2x1024xf32, #tpu.memory_space<vmem>>, vector<1x32xf32>,
    %1077 = vector.extract_strided_slice %966 {offsets = [23, 32], sizes = [1, 32], strides = [1, 1]} : vector<32x64xf32> to vector<1x32xf32>
    %c1_346 = arith.constant 1 : index
    %c736_347 = arith.constant 736 : index
    %1078 = vector.load %arg9[%c1_346, %c736_347] : memref<2x1024xf32, #tpu.memory_space<vmem>>, vector<1x32xf32>
    tpu.vector_store %arg9[%c1_346, %c736_347], %1077 {strides = array<i32>} : memref<2x1024xf32, #tpu.memory_space<vmem>>, vector<1x32xf32>,
    %1079 = vector.extract_strided_slice %966 {offsets = [24, 32], sizes = [1, 32], strides = [1, 1]} : vector<32x64xf32> to vector<1x32xf32>
    %c1_348 = arith.constant 1 : index
    %c768_349 = arith.constant 768 : index
    %1080 = vector.load %arg9[%c1_348, %c768_349] : memref<2x1024xf32, #tpu.memory_space<vmem>>, vector<1x32xf32>
    tpu.vector_store %arg9[%c1_348, %c768_349], %1079 {strides = array<i32>} : memref<2x1024xf32, #tpu.memory_space<vmem>>, vector<1x32xf32>,
    %1081 = vector.extract_strided_slice %966 {offsets = [25, 32], sizes = [1, 32], strides = [1, 1]} : vector<32x64xf32> to vector<1x32xf32>
    %c1_350 = arith.constant 1 : index
    %c800_351 = arith.constant 800 : index
    %1082 = vector.load %arg9[%c1_350, %c800_351] : memref<2x1024xf32, #tpu.memory_space<vmem>>, vector<1x32xf32>
    tpu.vector_store %arg9[%c1_350, %c800_351], %1081 {strides = array<i32>} : memref<2x1024xf32, #tpu.memory_space<vmem>>, vector<1x32xf32>,
    %1083 = vector.extract_strided_slice %966 {offsets = [26, 32], sizes = [1, 32], strides = [1, 1]} : vector<32x64xf32> to vector<1x32xf32>
    %c1_352 = arith.constant 1 : index
    %c832_353 = arith.constant 832 : index
    %1084 = vector.load %arg9[%c1_352, %c832_353] : memref<2x1024xf32, #tpu.memory_space<vmem>>, vector<1x32xf32>
    tpu.vector_store %arg9[%c1_352, %c832_353], %1083 {strides = array<i32>} : memref<2x1024xf32, #tpu.memory_space<vmem>>, vector<1x32xf32>,
    %1085 = vector.extract_strided_slice %966 {offsets = [27, 32], sizes = [1, 32], strides = [1, 1]} : vector<32x64xf32> to vector<1x32xf32>
    %c1_354 = arith.constant 1 : index
    %c864_355 = arith.constant 864 : index
    %1086 = vector.load %arg9[%c1_354, %c864_355] : memref<2x1024xf32, #tpu.memory_space<vmem>>, vector<1x32xf32>
    tpu.vector_store %arg9[%c1_354, %c864_355], %1085 {strides = array<i32>} : memref<2x1024xf32, #tpu.memory_space<vmem>>, vector<1x32xf32>,
    %1087 = vector.extract_strided_slice %966 {offsets = [28, 32], sizes = [1, 32], strides = [1, 1]} : vector<32x64xf32> to vector<1x32xf32>
    %c1_356 = arith.constant 1 : index
    %c896_357 = arith.constant 896 : index
    %1088 = vector.load %arg9[%c1_356, %c896_357] : memref<2x1024xf32, #tpu.memory_space<vmem>>, vector<1x32xf32>
    tpu.vector_store %arg9[%c1_356, %c896_357], %1087 {strides = array<i32>} : memref<2x1024xf32, #tpu.memory_space<vmem>>, vector<1x32xf32>,
    %1089 = vector.extract_strided_slice %966 {offsets = [29, 32], sizes = [1, 32], strides = [1, 1]} : vector<32x64xf32> to vector<1x32xf32>
    %c1_358 = arith.constant 1 : index
    %c928_359 = arith.constant 928 : index
    %1090 = vector.load %arg9[%c1_358, %c928_359] : memref<2x1024xf32, #tpu.memory_space<vmem>>, vector<1x32xf32>
    tpu.vector_store %arg9[%c1_358, %c928_359], %1089 {strides = array<i32>} : memref<2x1024xf32, #tpu.memory_space<vmem>>, vector<1x32xf32>,
    %1091 = vector.extract_strided_slice %966 {offsets = [30, 32], sizes = [1, 32], strides = [1, 1]} : vector<32x64xf32> to vector<1x32xf32>
    %c1_360 = arith.constant 1 : index
    %c960_361 = arith.constant 960 : index
    %1092 = vector.load %arg9[%c1_360, %c960_361] : memref<2x1024xf32, #tpu.memory_space<vmem>>, vector<1x32xf32>
    tpu.vector_store %arg9[%c1_360, %c960_361], %1091 {strides = array<i32>} : memref<2x1024xf32, #tpu.memory_space<vmem>>, vector<1x32xf32>,
    %1093 = vector.extract_strided_slice %966 {offsets = [31, 32], sizes = [1, 32], strides = [1, 1]} : vector<32x64xf32> to vector<1x32xf32>
    %c1_362 = arith.constant 1 : index
    %c992_363 = arith.constant 992 : index
    %1094 = vector.load %arg9[%c1_362, %c992_363] : memref<2x1024xf32, #tpu.memory_space<vmem>>, vector<1x32xf32>
    tpu.vector_store %arg9[%c1_362, %c992_363], %1093 {strides = array<i32>} : memref<2x1024xf32, #tpu.memory_space<vmem>>, vector<1x32xf32>,
    %c0_364 = arith.constant 0 : index
    %c0_365 = arith.constant 0 : index
    %1095 = vector.load %arg9[%c0_364, %c0_365] : memref<2x1024xf32, #tpu.memory_space<vmem>>, vector<2x1024xf32>
    %c0_366 = arith.constant 0 : index
    %c0_367 = arith.constant 0 : index
    %1096 = vector.load %arg5[%c0_366, %c0_367] : memref<1024x128xf32, #tpu.memory_space<vmem>>, vector<1024x128xf32>
    %cst_368 = arith.constant dense<0.000000e+00> : vector<2x128xf32>
    %1097 = tpu.matmul %1095, %1096, %cst_368 {dimension_numbers = #tpu.dot_dimension_numbers<[1], [0], [0], [1], [0, 0, 1, 1], [], []>} : vector<2x1024xf32>, vector<1024x128xf32>, vector<2x128xf32> -> vector<2x128xf32>
    %c0_369 = arith.constant 0 : index
    %c0_370 = arith.constant 0 : index
    %1098 = vector.load %arg6[%c0_369, %c0_370] : memref<1x128xf32, #tpu.memory_space<vmem>>, vector<1x128xf32>
    %1099 = vector.broadcast %1098 : vector<1x128xf32> to vector<2x128xf32>
    %1100 = arith.addf %1097, %1099 : vector<2x128xf32>
    %c0_371 = arith.constant 0 : index
    %c0_372 = arith.constant 0 : index
    %1101 = vector.load %arg7[%c0_371, %c0_372] : memref<2x128xf32, #tpu.memory_space<vmem>>, vector<2x128xf32>
    tpu.vector_store %arg7[%c0_371, %c0_372], %1100 {strides = array<i32>} : memref<2x128xf32, #tpu.memory_space<vmem>>, vector<2x128xf32>,
    return
  }
}

</mosaic_0001>

<bundles_post_ra>
// kernel: tpu_custom_call.1
= control target key start
LH: loop header
LB: loop body
LE: loop exit
PB: predicated region body
PF: predicated region fallthrough
CT: control target
= control target key end

     0   :  { %12 = vsyncpa [#allocation5], 0  ;;  %s8163_s0 = inlined_call_operand.hbm [shape: f32[2,1,32,32], index: 0, kind: input, shape index: {}]   ;;  %s8164_s1 = inlined_call_operand.hbm [shape: f32[90], index: 1, kind: input, shape index: {}]   ;;  %s8165_s2 = inlined_call_operand.vmem [shape: f32[10], index: 2, kind: input, shape index: {}]   ;;  %s8166_s3 = inlined_call_operand.vmem [shape: f32[10], index: 3, kind: input, shape index: {}]   ;;  %s8167_s4 = inlined_call_operand.vmem [shape: f32[10], index: 4, kind: input, shape index: {}]   ;;  %s8168_s5 = inlined_call_operand.hbm [shape: f32[1024,128], index: 5, kind: input, shape index: {}]   ;;  %s8169_s6 = inlined_call_operand.vmem [shape: f32[1,128], index: 6, kind: input, shape index: {}]   ;;  %s8170_s7 = inlined_call_operand.hbm [shape: f32[2,128], index: 7, kind: output, shape index: {}]  }
   0x1   :  { %13 = vsyncpa [#allocation7], 0 }
   0x2   :  { %14 = vsyncpa [#allocation8], 0 }
   0x3   :  { %15 = vsyncpa [#allocation12], 0 }
   0x4   :  { %16 = vsyncpa [#allocation15], 0  ;;  %s54_s26 = sshll.u32 %s8166_s3, 4  ;;  %s55_s26 = int_to_ptr.vmem [resolvable:$true] %s54_s26 }
   0x5   :  { %17 = vsyncpa [#allocation6], 0  ;;  %s22_s29 = sshll.u32 %s8163_s0, 4  ;;  %s5007_s30 = smov [#allocation11]   ;;  %s23_s29 = int_to_ptr.hbm [resolvable:$true] %s22_s29 }
   0x6   :  { %57 = dma.vmem_to_smem %s55_s26, 16, %s5007_s30, [#allocation12]  }
   0x7   :  { %s5008_s8 = smov [#allocation4]   ;;  %s5009_s10 = smov 128  }
   0x8   :  { %s24_s9 = sshll.u32 %s5008_s8, 4  ;;  %s5010_s11 = smov 8   ;;  %s25_s9 = int_to_ptr.vmem [resolvable:$true] %s24_s9 }
   0x9   :  { %30 = dma.hbm_to_vmem [thread:$0]  %s23_s29, 1024, %s25_s9, [#allocation5], %s5009_s10, %s5009_s10, %s5010_s11  }
   0xa   :  { %s36_s14 = sshll.u32 %s8164_s1, 4  ;;  %s45_s16 = sshll.u32 %s8165_s2, 4  ;;  %s37_s14 = int_to_ptr.hbm [resolvable:$true] %s36_s14  ;;  %s46_s16 = int_to_ptr.vmem [resolvable:$true] %s45_s16 }
   0xb   :  { %s5011_s17 = smov [#allocation9]   ;;  %s5012_s0 = smov [#allocation10]  }
   0xc   :  { %39 = dma.hbm_to_smem %s37_s14, 16, %s5011_s17, [#allocation7]  }
   0xd   :  { %48 = dma.vmem_to_smem %s46_s16, 16, %s5012_s0, [#allocation8]  }
   0xe   :  { %s63_s20 = sshll.u32 %s8167_s4, 4  ;;  %s71_s23 = sshll.u32 %s8168_s5, 4  ;;  %s64_s20 = int_to_ptr.vmem [resolvable:$true] %s63_s20  ;;  %s72_s23 = int_to_ptr.hbm [resolvable:$true] %s71_s23 }
   0xf   :  { %s5013_s1 = smov [#allocation13]   ;;  %s5014_s24 = smov [#allocation14]  }
  0x10   :  { %66 = dma.vmem_to_smem %s64_s20, 16, %s5013_s1, [#allocation12]  }
  0x11   :  { %s73_s25 = sshll.u32 %s5014_s24, 4  ;;  %s74_s25 = int_to_ptr.vmem [resolvable:$true] %s73_s25 }
  0x12   :  { %79 = dma.hbm_to_vmem [thread:$0]  %s72_s23, 16384, %s74_s25, [#allocation15], %s5009_s10, %s5009_s10, %s5010_s11  }
  0x13   :  { %4995 = dma.done.wait [#allocation5], 1024  }
  0x14   :  { %4996 = vsyncadd [#allocation5], 4294966272 }
  0x15   :  { %4997 = dma.done.wait [#allocation7], 16  }
  0x16   :  { %4998 = vsyncadd [#allocation7], 4294967280 }
  0x17   :  { %4999 = dma.done.wait [#allocation8], 16  }
  0x18   :  { %5000 = vsyncadd [#allocation8], 4294967280 }
  0x19   :  { %5001 = dma.done.wait [#allocation12], 32  }
  0x1a   :  { %5002 = vsyncadd [#allocation12], 4294967264 }
  0x1b   :  { %5003 = dma.done.wait [#allocation15], 16384  }
  0x1c   :  { %5004 = vsyncadd [#allocation15], 4294950912 }
  0x1d   :  { %106 = sfence }
  0x1e   :  { %v138_v0 = vld [vmem:[#allocation4 + $0x28] sm:$0xff]  ;;  %v137_v1 = vld [vmem:[#allocation4 + $0x20] sm:$0xff]  ;;  %s5015_s2 = smov 32   ;;  %v139_v2 = vld [vmem:[#allocation4 + $0x30] sm:$0xff]  ;;  %vm131_vm0 = vcmask 261120   ;;  %vm157_vm1 = vcmask 523520   ;;  %v107_v14 = vlaneseq }
  0x1f   :  { %147 = vrot.lane.b32.xlu1 %v138_v0, %s5015_s2  ;;  %145 = vrot.lane.b32.xlu0 %v137_v1, %s5015_s2  ;;  %v140_v3 = vld [vmem:[#allocation4 + $0x38] sm:$0xff]  ;;  %v128_v4 = vld [vmem:[#allocation4 + $0x8] sm:$0xff]  ;;  %v127_v5 = vld [vmem:[#allocation4] sm:$0xff]  ;;  %s5016_s4 = smov 64   ;;  %vm204_vm6 = vcmask 1048064   ;;  %s5017_s5 = smov 65  }
  0x20   :  { %133 = vst.msk [vmem:[#allocation2 + $0x8] sm:$0xff] %vm131_vm0, %v128_v4  ;;  %v129_v6 = vld [vmem:[#allocation4 + $0x10] sm:$0xff]  ;;  %v130_v7 = vld [vmem:[#allocation4 + $0x18] sm:$0xff]  ;;  %v5092_v15 = vshrl.u32 %v107_v14, 7  ;;  %s5018_s26 = smov 127   ;;  %s4656_s27 = sld [smem:[#allocation9 + $0x4]] }
  0x21   :  { %132 = vst.msk [vmem:[#allocation2] sm:$0xff] %vm131_vm0, %v127_v5  ;;  %s249_s28 = sld [smem:[#allocation9]]  ;;  %vm465_vm10 = vcmask 523264  }
  0x22   :  { %134 = vst.msk [vmem:[#allocation2 + $0x10] sm:$0xff] %vm131_vm0, %v129_v6  ;;  %vm170_vm2 = vcmp.lt.s32.totalorder %v5092_v15, 1  ;;  %vm183_vm3 = vcmp.lt.s32.totalorder %v5092_v15, 7  ;;  %v5137_v30 = vadd.s32 24, %v5092_v15  ;;  %vm117_vm5 = vcmp.ge.s32.totalorder %v5092_v15, 1  ;;  %s192_s29 = sld [smem:[#allocation10]] }
  0x23   :  { %135 = vst.msk [vmem:[#allocation2 + $0x18] sm:$0xff] %vm131_vm0, %v130_v7  ;;  %s4657_s30 = sld [smem:[#allocation9 + $0x1]] }
  0x24   :  { %vm124_vm4 = vcmp.lt.s32.totalorder %v5137_v30, 31  ;;  %s4658_s8 = sld [smem:[#allocation9 + $0x2]] }
  0x25   :  { %s5287_s9 = sld [smem:[#allocation9 + $0x3]] }
  0x26   :  { %s5291_s10 = sld [smem:[#allocation9 + $0x5]] }
  0x27   :  { %149 = vrot.lane.b32.xlu1 %v139_v2, %s5015_s2  ;;  %151 = vrot.lane.b32.xlu0 %v140_v3, %s5015_s2  ;;  %s5298_s11 = sld [smem:[#allocation9 + $0x7]] }
  0x28   :  { %s5304_s12 = sld [smem:[#allocation9 + $0x6]] }
  0x29   :  { %s5324_s13 = sld [smem:[#allocation9 + $0x8]] }
  0x2a   :  { %s508_s15 = sld [smem:[#allocation11]] }
  0x2b   :  { %s530_s16 = sld [smem:[#allocation13]] }
  0x2c   :  { %s4665_s17 = sld [smem:[#allocation9 + $0xd]] }
  0x2d   :  { %s4666_s0 = sld [smem:[#allocation9 + $0x9]] }
  0x2e   :  { %s4664_s18 = sld [smem:[#allocation10 + $0x1]] }
  0x2f   :  { %s4667_s19 = sld [smem:[#allocation9 + $0xa]] }
  0x30   :  { %s4668_s20 = sld [smem:[#allocation9 + $0xb]] }
  0x31   :  { %s4669_s21 = sld [smem:[#allocation9 + $0xc]] }
  0x32   :  { %s5582_s22 = sld [smem:[#allocation9 + $0xe]] }
  0x33   :  { %s5590_s23 = sld [smem:[#allocation9 + $0x10]] }
  0x34   :  { %s5597_s1 = sld [smem:[#allocation9 + $0xf]] }
  0x35   :  { %s4673_s24 = sld [smem:[#allocation9 + $0x11]] }
  0x91   :  { %v148_v8 = vpop.permute.xlu1 %147  ;;  %v146_v9 = vpop.permute.xlu0 %145 }
  0x92   :  { %159 = vst.msk [vmem:[#allocation2 + $0x8] sm:$0xff] %vm157_vm1, %v148_v8 }
  0x93   :  { %158 = vst.msk [vmem:[#allocation2] sm:$0xff] %vm157_vm1, %v146_v9 }
  0x99   :  { %v150_v10 = vpop.permute.xlu1 %149  ;;  %v152_v11 = vpop.permute.xlu0 %151  ;;  %v5083_v12 = vld [vmem:[#allocation2 + $0x8] sm:$0xff] }
  0x9a   :  { %160 = vst.msk [vmem:[#allocation2 + $0x10] sm:$0xff] %vm157_vm1, %v150_v10  ;;  %298 = vrot.lane.b32.xlu0 %v5083_v12, %s5016_s4  ;;  %v5087_v13 = vld [vmem:[#allocation2] sm:$0xff]  ;;  %v167_v18 = vrot.slane %v5083_v12, 7  ;;  %v180_v24 = vrot.slane %v5083_v12, 1 }
  0x9b   :  { %161 = vst.msk [vmem:[#allocation2 + $0x18] sm:$0xff] %vm157_vm1, %v152_v11  ;;  %295 = vrot.lane.b32.xlu2 %v5087_v13, %s5016_s4  ;;  %v166_v22 = vrot.slane %v5087_v13, 7  ;;  %v179_v23 = vrot.slane %v5087_v13, 1 }
  0x9d   :  { %v5122_v26 = vsel %vm170_vm2, %v166_v22, %v167_v18  ;;  %v5130_v27 = vsel %vm183_vm3, %v179_v23, %v180_v24 }
  0xa1   :  { %v5094_v16 = vld [vmem:[#allocation2 + $0x10] sm:$0xff] }
  0xa2   :  { %301 = vrot.lane.b32.xlu1 %v5094_v16, %s5016_s4  ;;  %v5098_v17 = vld [vmem:[#allocation2 + $0x18] sm:$0xff]  ;;  %v168_v19 = vrot.slane %v5094_v16, 7  ;;  %v181_v28 = vrot.slane %v5094_v16, 1 }
  0xa3   :  { %304 = vrot.lane.b32.xlu2 %v5098_v17, %s5016_s4  ;;  %v169_v21 = vrot.slane %v5098_v17, 7  ;;  %v182_v29 = vrot.slane %v5098_v17, 1 }
  0xa4   :  { %v5107_v20 = vsel %vm170_vm2, %v167_v18, %v168_v19  ;;  %v5141_v31 = vsel %vm183_vm3, %v180_v24, %v181_v28 }
  0xa5   :  { %211 = vrot.lane.b32.xlu0 %v5107_v20, %s5016_s4  ;;  %v5117_v25 = vsel %vm170_vm2, %v168_v19, %v169_v21  ;;  %v187_v32 = vsel %vm183_vm3, %v182_v29, %v179_v23  ;;  %v5148_v33 = vsel %vm183_vm3, %v181_v28, %v182_v29  ;;  %v174_v35 = vsel %vm170_vm2, %v169_v21, %v166_v22 }
  0xa6   :  { %v5156_v34 = vsel %vm124_vm4, %v187_v32, 0.0  ;;  %v5165_v36 = vsel %vm117_vm5, %v174_v35, 0.0 }
  0xaa   :  { %214 = vrot.lane.b32.xlu1 %v5117_v25, %s5016_s4 }
  0xab   :  { %208 = vrot.lane.b32.xlu2 %v5122_v26, %s5016_s4 }
  0xad   :  { %375 = vrot.lane.b32.xlu0 %v5130_v27, %s5016_s4 }
  0xb2   :  { %378 = vrot.lane.b32.xlu1 %v5141_v31, %s5016_s4 }
  0xb3   :  { %381 = vrot.lane.b32.xlu2 %v5148_v33, %s5016_s4 }
  0xb5   :  { %384 = vrot.lane.b32.xlu0 %v5156_v34, %s5016_s4 }
  0xbb   :  { %205 = vrot.lane.b32.xlu2 %v5165_v36, %s5016_s4 }
  0xf5   :  { %v296_v37 = vpop.permute.xlu2 %295 }
  0xf6   :  { %v297_v38 = vsel %vm204_vm6, %v296_v37, %v5087_v13 }
  0xf7   :  { %307 = vrot.lane.b32.xlu2 %v297_v38, %s5016_s4 }
  0xfd   :  { %v305_v39 = vpop.permute.xlu2 %304 }
  0xfe   :  { %v306_v40 = vsel %vm204_vm6, %v305_v39, %v5098_v17 }
  0xff   :  { %313 = vrot.lane.b32.xlu2 %v306_v40, %s5016_s4 }
 0x105   :  { %v209_v41 = vpop.permute.xlu2 %208 }
 0x106   :  { %v210_v42 = vsel %vm204_vm6, %v209_v41, %v5122_v26 }
 0x107   :  { %219 = vrot.lane.b32.xlu2 %v210_v42, %s5016_s4 }
 0x10c   :  { %v299_v43 = vpop.permute.xlu0 %298 }
 0x10d   :  { %v382_v44 = vpop.permute.xlu2 %381  ;;  %v300_v45 = vsel %vm204_vm6, %v299_v43, %v5083_v12 }
 0x10e   :  { %v383_v46 = vsel %vm204_vm6, %v382_v44, %v5148_v33  ;;  %309 = vrot.lane.b32.xlu0 %v300_v45, %s5016_s4  ;;  %v113_v45 = vand.u32 127, %v107_v14 }
 0x10f   :  { %391 = vrot.lane.b32.xlu2 %v383_v46, %s5016_s4 }
 0x110   :  { %vm114_vm7 = vcmp.ge.s32.totalorder %v113_v45, 32 }
 0x114   :  { %v302_v47 = vpop.permute.xlu1 %301 }
 0x115   :  { %v303_v48 = vsel %vm204_vm6, %v302_v47, %v5094_v16  ;;  %v206_v59 = vpop.permute.xlu2 %205 }
 0x116   :  { %311 = vrot.lane.b32.xlu1 %v303_v48, %s5016_s4  ;;  %v207_v60 = vsel %vm204_vm6, %v206_v59, %v5165_v36  ;;  %v4655_v48 = vadd.s32 4294967264, %v113_v45 }
 0x117   :  { %v212_v49 = vpop.permute.xlu0 %211 }
 0x118   :  { %v213_v50 = vsel %vm204_vm6, %v212_v49, %v5107_v20 }
 0x119   :  { %221 = vrot.lane.b32.xlu0 %v213_v50, %s5016_s4  ;;  %v5272_v50 = vsel %vm114_vm7, %v4655_v48, %v113_v45  ;;  %v340_v45 = vstv %s5287_s9  ;;  %s4676_s9 = sld [smem:[#allocation10 + $0x2]] }
 0x11a   :  { %vm125_vm8 = vcmp.ge.s32.totalorder %v5272_v50, 1  ;;  %vm126_vm9 = vcmp.lt.s32.totalorder %v5272_v50, 31 }
 0x11c   :  { %v215_v51 = vpop.permute.xlu1 %214 }
 0x11d   :  { %v216_v52 = vsel %vm204_vm6, %v215_v51, %v5117_v25 }
 0x11e   :  { %223 = vrot.lane.b32.xlu1 %v216_v52, %s5016_s4 }
 0x11f   :  { %v376_v53 = vpop.permute.xlu0 %375 }
 0x120   :  { %v377_v54 = vsel %vm204_vm6, %v376_v53, %v5130_v27  ;;  %v194_v53 = vstv %s4656_s27 }
 0x121   :  { %387 = vrot.lane.b32.xlu0 %v377_v54, %s5016_s4  ;;  %v196_v59 = vmul.f32 %v194_v53, %v5083_v12 }
 0x124   :  { %v379_v55 = vpop.permute.xlu1 %378 }
 0x125   :  { %v380_v56 = vsel %vm204_vm6, %v379_v55, %v5141_v31  ;;  %v197_v55 = vmul.f32 %v194_v53, %v5094_v16 }
 0x126   :  { %389 = vrot.lane.b32.xlu1 %v380_v56, %s5016_s4  ;;  %v250_v56 = vstv %s249_s28  ;;  %s4674_s28 = sld [smem:[#allocation11 + $0x1]] }
 0x127   :  { %v385_v57 = vpop.permute.xlu0 %384 }
 0x128   :  { %v386_v58 = vsel %vm204_vm6, %v385_v57, %v5156_v34 }
 0x129   :  { %393 = vrot.lane.b32.xlu0 %v386_v58, %s5016_s4  ;;  %v198_v58 = vmul.f32 %v194_v53, %v5098_v17 }
 0x12e   :  { %217 = vrot.lane.b32.xlu1 %v207_v60, %s5016_s4 }
 0x151   :  { %v308_v61 = vpop.permute.xlu2 %307 }
 0x152   :  { %v315_v62 = vsel %vm204_vm6, %v308_v61, %v5087_v13 }
 0x153   :  { %323 = vrot.lane.b32.xlu2 %v315_v62, %s5017_s5 }
 0x159   :  { %v314_v3 = vpop.permute.xlu2 %313 }
 0x15a   :  { %v318_v5 = vsel %vm204_vm6, %v314_v3, %v5098_v17 }
 0x161   :  { %v220_v7 = vpop.permute.xlu2 %219 }
 0x162   :  { %v226_v9 = vsel %vm204_vm6, %v220_v7, %v5122_v26 }
 0x169   :  { %v392_v29 = vpop.permute.xlu2 %391 }
 0x16a   :  { %v397_v32 = vsel %vm204_vm6, %v392_v29, %v5148_v33 }
 0x180   :  { %v310_v63 = vpop.permute.xlu0 %309 }
 0x181   :  { %v316_v0 = vsel %vm204_vm6, %v310_v63, %v5083_v12  ;;  %v260_v12 = vstv %s4657_s30  ;;  %s4677_s30 = sld [smem:[#allocation9 + $0x16]] }
 0x182   :  { %351 = vrot.lane.b32.xlu1 %v316_v0, %s5018_s26  ;;  %325 = vrot.lane.b32.xlu0 %v316_v0, %s5017_s5 }
 0x188   :  { %v312_v1 = vpop.permute.xlu1 %311 }
 0x189   :  { %v317_v2 = vsel %vm204_vm6, %v312_v1, %v5094_v16 }
 0x18a   :  { %327 = vrot.lane.b32.xlu2 %v317_v2, %s5017_s5  ;;  %349 = vrot.lane.b32.xlu0 %v315_v62, %s5018_s26  ;;  %v199_v62 = vstv %s192_s29  ;;  %s4675_s29 = sld [smem:[#allocation13 + $0x1]] }
 0x18b   :  { %v222_v8 = vpop.permute.xlu0 %221  ;;  %v202_v1 = vadd.f32 %v199_v62, %v197_v55  ;;  %v203_v16 = vadd.f32 %v199_v62, %v198_v58  ;;  %v366_v55 = vstv %s5291_s10  ;;  %s4679_s10 = sld [smem:[#allocation9 + $0x13]] }
 0x18c   :  { %v227_v10 = vsel %vm204_vm6, %v222_v8, %v5107_v20  ;;  %v195_v8 = vmul.f32 %v194_v53, %v5087_v13 }
 0x190   :  { %v224_v4 = vpop.permute.xlu1 %223 }
 0x191   :  { %v228_v6 = vsel %vm204_vm6, %v224_v4, %v5117_v25  ;;  %v201_v4 = vadd.f32 %v199_v62, %v196_v59 }
 0x192   :  { %329 = vrot.lane.b32.xlu2 %v318_v5, %s5017_s5  ;;  %239 = vrot.lane.b32.xlu1 %v228_v6, %s5017_s5 }
 0x193   :  { %353 = vrot.lane.b32.xlu0 %v317_v2, %s5018_s26  ;;  %v388_v19 = vpop.permute.xlu0 %387 }
 0x194   :  { %v395_v23 = vsel %vm204_vm6, %v388_v19, %v5130_v27 }
 0x198   :  { %v390_v11 = vpop.permute.xlu1 %389 }
 0x199   :  { %v396_v18 = vsel %vm204_vm6, %v390_v11, %v5141_v31  ;;  %v286_v11 = vstv %s4658_s8  ;;  %s4678_s8 = sld [smem:[#allocation9 + $0x12]] }
 0x19a   :  { %235 = vrot.lane.b32.xlu2 %v226_v9, %s5017_s5  ;;  %273 = vrot.lane.b32.xlu1 %v227_v10, %s5018_s26 }
 0x19b   :  { %355 = vrot.lane.b32.xlu0 %v318_v5, %s5018_s26  ;;  %v394_v24 = vpop.permute.xlu0 %393 }
 0x19c   :  { %v398_v28 = vsel %vm204_vm6, %v394_v24, %v5156_v34 }
 0x1a0   :  { %v218_v21 = vpop.permute.xlu1 %217 }
 0x1a1   :  { %v225_v22 = vsel %vm204_vm6, %v218_v21, %v5165_v36 }
 0x1a2   :  { %405 = vrot.lane.b32.xlu2 %v396_v18, %s5017_s5  ;;  %275 = vrot.lane.b32.xlu1 %v228_v6, %s5018_s26 }
 0x1a3   :  { %237 = vrot.lane.b32.xlu0 %v227_v10, %s5017_s5 }
 0x1aa   :  { %269 = vrot.lane.b32.xlu2 %v225_v22, %s5018_s26  ;;  %403 = vrot.lane.b32.xlu1 %v395_v23, %s5017_s5 }
 0x1ab   :  { %271 = vrot.lane.b32.xlu0 %v226_v9, %s5018_s26  ;;  %v263_v9 = vmul.f32 %v260_v12, %v5107_v20  ;;  %v200_v20 = vadd.f32 %v199_v62, %v195_v8 }
 0x1ad   :  { %v5253_v35 = vpop.permute.xlu2 %323 }
 0x1b2   :  { %233 = vrot.lane.b32.xlu1 %v225_v22, %s5017_s5  ;;  %409 = vrot.lane.b32.xlu2 %v398_v28, %s5017_s5  ;;  %v262_v22 = vmul.f32 %v260_v12, %v5122_v26 }
 0x1b3   :  { %439 = vrot.lane.b32.xlu0 %v395_v23, %s5018_s26 }
 0x1ba   :  { %407 = vrot.lane.b32.xlu1 %v397_v32, %s5017_s5  ;;  %443 = vrot.lane.b32.xlu2 %v397_v32, %s5018_s26 }
 0x1bb   :  { %445 = vrot.lane.b32.xlu0 %v398_v28, %s5018_s26  ;;  %v261_v28 = vmul.f32 %v260_v12, %v5165_v36 }
 0x1c2   :  { %441 = vrot.lane.b32.xlu1 %v396_v18, %s5018_s26  ;;  %v264_v18 = vmul.f32 %v260_v12, %v5117_v25 }
 0x1e4   :  { %v5255_v37 = vpop.permute.xlu2 %327 }
 0x1e5   :  { %v337_v25 = vsel %vm125_vm8, %v5255_v37, 0.0 }
 0x1ec   :  { %v5259_v39 = vpop.permute.xlu2 %329 }
 0x1ed   :  { %v338_v29 = vsel %vm125_vm8, %v5259_v39, 0.0  ;;  %v335_v39 = vsel %vm125_vm8, %v5253_v35, 0.0 }
 0x1f4   :  { %v5257_v38 = vpop.permute.xlu0 %325  ;;  %v5261_v40 = vpop.permute.xlu1 %351 }
 0x1f5   :  { %v236_v44 = vpop.permute.xlu2 %235  ;;  %v336_v36 = vsel %vm125_vm8, %v5257_v38, 0.0  ;;  %v362_v38 = vsel %vm126_vm9, %v5261_v40, 0.0 }
 0x1f6   :  { %v246_v57 = vsel %vm125_vm8, %v236_v44, 0.0  ;;  %v342_v58 = vmul.f32 %v340_v45, %v336_v36 }
 0x1f7   :  { %v252_v0 = vmul.f32 %v250_v56, %v246_v57 }
 0x1f9   :  { %v256_v10 = vadd.f32 %v252_v0, %v201_v4  ;;  %v420_v4 = vstv %s5304_s12  ;;  %s4684_s12 = sld [smem:[#allocation9 + $0x19]] }
 0x1fb   :  { %v266_v26 = vadd.f32 %v262_v22, %v256_v10 }
 0x1fc   :  { %v5263_v41 = vpop.permute.xlu0 %349 }
 0x1fd   :  { %v5270_v49 = vpop.permute.xlu2 %405 }
 0x204   :  { %v240_v42 = vpop.permute.xlu1 %239 }
 0x205   :  { %v5265_v43 = vpop.permute.xlu0 %353  ;;  %v248_v54 = vsel %vm125_vm8, %v240_v42, 0.0  ;;  %v270_v60 = vpop.permute.xlu2 %269 }
 0x206   :  { %v254_v63 = vmul.f32 %v250_v56, %v248_v54  ;;  %v344_v54 = vmul.f32 %v340_v45, %v338_v29  ;;  %v281_v57 = vsel %vm126_vm9, %v270_v60, 0.0  ;;  %v363_v60 = vsel %vm126_vm9, %v5265_v43, 0.0 }
 0x208   :  { %v258_v6 = vadd.f32 %v254_v63, %v203_v16  ;;  %v287_v63 = vmul.f32 %v286_v11, %v281_v57  ;;  %v341_v16 = vmul.f32 %v340_v45, %v335_v39 }
 0x20a   :  { %v268_v13 = vadd.f32 %v264_v18, %v258_v6 }
 0x20c   :  { %v274_v46 = vpop.permute.xlu1 %273 }
 0x20d   :  { %v5268_v47 = vpop.permute.xlu0 %355  ;;  %v283_v19 = vsel %vm126_vm9, %v274_v46, 0.0  ;;  %v410_v42 = vpop.permute.xlu2 %409 }
 0x20e   :  { %v289_v32 = vmul.f32 %v286_v11, %v283_v19  ;;  %v364_v35 = vsel %vm126_vm9, %v5268_v47, 0.0  ;;  %v416_v47 = vsel %vm125_vm8, %v5270_v49, 0.0 }
 0x214   :  { %v276_v51 = vpop.permute.xlu1 %275 }
 0x215   :  { %v238_v52 = vpop.permute.xlu0 %237  ;;  %v284_v17 = vsel %vm126_vm9, %v276_v51, 0.0  ;;  %v444_v10 = vpop.permute.xlu2 %443 }
 0x216   :  { %v247_v14 = vsel %vm125_vm8, %v238_v52, 0.0  ;;  %v290_v21 = vmul.f32 %v286_v11, %v284_v17  ;;  %v370_v17 = vmul.f32 %v366_v55, %v364_v35 }
 0x217   :  { %v253_v61 = vmul.f32 %v250_v56, %v247_v14  ;;  %v343_v14 = vmul.f32 %v340_v45, %v337_v25 }
 0x218   :  { %v294_v46 = vadd.f32 %v290_v21, %v268_v13 }
 0x219   :  { %v257_v5 = vadd.f32 %v253_v61, %v202_v1  ;;  %v361_v61 = vsel %vm126_vm9, %v5263_v41, 0.0  ;;  %v418_v41 = vsel %vm125_vm8, %v410_v42, 0.0 }
 0x21a   :  { %v348_v62 = vadd.f32 %v344_v54, %v294_v46  ;;  %v367_v6 = vmul.f32 %v366_v55, %v361_v61 }
 0x21b   :  { %v267_v23 = vadd.f32 %v263_v9, %v257_v5  ;;  %v369_v5 = vmul.f32 %v366_v55, %v363_v60 }
 0x21c   :  { %v5284_v2 = vpop.permute.xlu1 %403 }
 0x21d   :  { %v272_v3 = vpop.permute.xlu0 %271  ;;  %v293_v51 = vadd.f32 %v289_v32, %v267_v23  ;;  %v415_v8 = vsel %vm125_vm8, %v5284_v2, 0.0  ;;  %v424_v23 = vmul.f32 %v420_v4, %v418_v41  ;;  %v453_v2 = vsel %vm126_vm9, %v444_v10, 0.0 }
 0x21e   :  { %v282_v7 = vsel %vm126_vm9, %v272_v3, 0.0  ;;  %v368_v3 = vmul.f32 %v366_v55, %v362_v38  ;;  %v421_v13 = vmul.f32 %v420_v4, %v415_v8 }
 0x21f   :  { %v288_v24 = vmul.f32 %v286_v11, %v282_v7  ;;  %v347_v40 = vadd.f32 %v343_v14, %v293_v51  ;;  %v374_v7 = vadd.f32 %v370_v17, %v348_v62 }
 0x221   :  { %v292_v52 = vadd.f32 %v288_v24, %v266_v26  ;;  %v373_v49 = vadd.f32 %v369_v5, %v347_v40  ;;  %v456_v24 = vstv %s5324_s13  ;;  %v428_v32 = vadd.f32 %v424_v23, %v374_v7  ;;  %s4681_s13 = sld [smem:[#allocation9 + $0x15]] }
 0x223   :  { %v346_v0 = vadd.f32 %v342_v58, %v292_v52 }
 0x224   :  { %v234_v44 = vpop.permute.xlu1 %233 }
 0x225   :  { %v245_v48 = vsel %vm125_vm8, %v234_v44, 0.0  ;;  %v440_v37 = vpop.permute.xlu0 %439  ;;  %v372_v11 = vadd.f32 %v368_v3, %v346_v0 }
 0x226   :  { %v251_v53 = vmul.f32 %v250_v56, %v245_v48  ;;  %v430_v56 = vstv %s5298_s11  ;;  %v451_v29 = vsel %vm126_vm9, %v440_v37, 0.0  ;;  %v459_v48 = vmul.f32 %v456_v24, %v453_v2  ;;  %s4680_s11 = sld [smem:[#allocation9 + $0x14]] }
 0x227   :  { %v433_v22 = vmul.f32 %v430_v56, %v5148_v33  ;;  %v431_v26 = vmul.f32 %v430_v56, %v5130_v27  ;;  %v432_v36 = vmul.f32 %v430_v56, %v5141_v31  ;;  %v434_v46 = vmul.f32 %v430_v56, %v5156_v34 }
 0x228   :  { %v255_v59 = vadd.f32 %v251_v53, %v200_v20  ;;  %v457_v51 = vmul.f32 %v456_v24, %v451_v29 }
 0x229   :  { %v438_v14 = vadd.f32 %v434_v46, %v428_v32 }
 0x22a   :  { %v265_v1 = vadd.f32 %v261_v28, %v255_v59  ;;  %v422_v28 = vmul.f32 %v420_v4, %v416_v47 }
 0x22c   :  { %v291_v12 = vadd.f32 %v287_v63, %v265_v1  ;;  %v408_v43 = vpop.permute.xlu1 %407  ;;  %v426_v45 = vadd.f32 %v422_v28, %v372_v11 }
 0x22d   :  { %v417_v9 = vsel %vm125_vm8, %v408_v43, 0.0  ;;  %v446_v21 = vpop.permute.xlu0 %445 }
 0x22e   :  { %v345_v18 = vadd.f32 %v341_v16, %v291_v12  ;;  %v423_v19 = vmul.f32 %v420_v4, %v417_v9  ;;  %v454_v42 = vsel %vm126_vm9, %v446_v21, 0.0  ;;  %v436_v27 = vadd.f32 %v432_v36, %v426_v45 }
 0x22f   :  { %v460_v52 = vmul.f32 %v456_v24, %v454_v42  ;;  %v520_v45 = vstv %s508_s15  ;;  %s5906_s15 = sld [smem:[#allocation9 + $0x1a]] }
 0x230   :  { %v371_v20 = vadd.f32 %v367_v6, %v345_v18  ;;  %v427_v25 = vadd.f32 %v423_v19, %v373_v49 }
 0x231   :  { %v5367_v38 = vadd.f32 %v460_v52, %v438_v14 }
 0x232   :  { %v425_v44 = vadd.f32 %v421_v13, %v371_v20  ;;  %v437_v33 = vadd.f32 %v433_v22, %v427_v25 }
 0x233   :  { %v486_v62 = vmul.f32 %v5367_v38, %v5367_v38  ;;  %v471_v16 = vsel %vm465_vm10, %v5367_v38, 0.0 }
 0x234   :  { %v435_v39 = vadd.f32 %v431_v26, %v425_v44  ;;  %v442_v53 = vpop.permute.xlu1 %441  ;;  %v5365_v55 = vadd.f32 %v459_v48, %v437_v33 }
 0x235   :  { %v452_v37 = vsel %vm126_vm9, %v442_v53, 0.0  ;;  %v492_v47 = vsel %vm465_vm10, %v486_v62, 0.0  ;;  %v531_v53 = vstv %s530_s16 }
 0x236   :  { %v5363_v54 = vadd.f32 %v457_v51, %v435_v39  ;;  %v458_v57 = vmul.f32 %v456_v24, %v452_v37  ;;  %v485_v56 = vmul.f32 %v5365_v55, %v5365_v55  ;;  %v469_v60 = vsel %vm465_vm10, %v5365_v55, 0.0 }
 0x238   :  { %v5369_v31 = vadd.f32 %v458_v57, %v436_v27  ;;  %v483_v34 = vmul.f32 %v5363_v54, %v5363_v54  ;;  %v466_v58 = vsel %vm465_vm10, %v5363_v54, 0.0  ;;  %v490_v3 = vsel %vm465_vm10, %v485_v56, 0.0 }
 0x23a   :  { %v467_v35 = vsel %vm465_vm10, %v5369_v31, 0.0  ;;  %v484_v59 = vmul.f32 %v5369_v31, %v5369_v31  ;;  %v487_v63 = vsel %vm465_vm10, %v483_v34, 0.0 }
 0x23b   :  { %v468_v61 = vadd.f32 %v467_v35, %v466_v58 }
 0x23c   :  { %v488_v0 = vsel %vm465_vm10, %v484_v59, 0.0 }
 0x23d   :  { %v470_v1 = vadd.f32 %v469_v60, %v468_v61  ;;  %v489_v40 = vadd.f32 %v488_v0, %v487_v63 }
 0x23f   :  { %v472_v4 = vadd.f32 %v471_v16, %v470_v1  ;;  %v491_v17 = vadd.f32 %v490_v3, %v489_v40 }
 0x241   :  { %473 = vadd.xlane.f32.xlu1 %v472_v4  ;;  %v493_v5 = vadd.f32 %v492_v47, %v491_v17 }
 0x243   :  { %494 = vadd.xlane.f32.xlu2 %v493_v5 }
 0x2b4   :  { %v474_v41 = vpop.xlane.xlu1 %473 }
 0x2b5   :  { %v475_v12 = vrot.slane %v474_v41, 4 }
 0x2b6   :  { %v495_v43 = vpop.xlane.xlu2 %494 }
 0x2b7   :  { %v476_v6 = vadd.f32 %v475_v12, %v474_v41  ;;  %v496_v7 = vrot.slane %v495_v43, 4 }
 0x2b9   :  { %v497_v8 = vadd.f32 %v496_v7, %v495_v43  ;;  %v477_v9 = vrot.slane %v476_v6, 2 }
 0x2bb   :  { %v478_v10 = vadd.f32 %v477_v9, %v476_v6  ;;  %v498_v11 = vrot.slane %v497_v8, 2 }
 0x2bd   :  { %v479_v18 = vrot.slane %v478_v10, 1  ;;  %v499_v49 = vadd.f32 %v498_v11, %v497_v8 }
 0x2bf   :  { %v480_v19 = vadd.f32 %v479_v18, %v478_v10  ;;  %v500_v21 = vrot.slane %v499_v49, 1 }
 0x2c1   :  { %4796 = vpush %v480_v19  ;;  %v501_v22 = vadd.f32 %v500_v21, %v499_v49 }
 0x2c3   :  { %4798 = vpush %v501_v22 }
 0x2f2   :  { %s4797_s14 = spop %4796 }
 0x2f3   :  { %v482_v23 = vstv %s4797_s14  ;;  %s5863_s14 = sld [smem:[#allocation9 + $0x17]] }
 0x2f4   :  { %v504_v24 = vmul.f32 0.00048828125, %v482_v23  ;;  %s4799_s3 = spop %4798 }
 0x2f5   :  { %v503_v28 = vstv %s4799_s3  ;;  %s5879_s3 = sld [smem:[#allocation9 + $0x18]] }
 0x2f6   :  { %v505_v13 = vmul.f32 0.00048828125, %v503_v28  ;;  %v506_v20 = vmul.f32 %v504_v24, %v504_v24  ;;  %v522_v36 = vsub.f32 %v5363_v54, %v504_v24  ;;  %v523_v48 = vsub.f32 %v5369_v31, %v504_v24 }
 0x2f7   :  { %v524_v39 = vsub.f32 %v5365_v55, %v504_v24  ;;  %v525_v51 = vsub.f32 %v5367_v38, %v504_v24 }
 0x2f8   :  { %v507_v25 = vsub.f32 %v505_v13, %v506_v20 }
 0x2fa   :  { %v509_v2 = vadd.f32 1e-05, %v507_v25 }
 0x2fc   :  { %4851 = vrsqrt.f32 %v509_v2  ;;  %vm516_vm12 = vweird.f32 %v509_v2 }
 0x302   :  { %v4852_v29 = vpop.eup %4851 }
 0x303   :  { %v511_v32 = vmul.f32 %v4852_v29, %v509_v2  ;;  %vm517_vm11 = vweird.f32 %v4852_v29 }
 0x304   :  { %vm518_vm13 = vmor %vm516_vm12, %vm517_vm11 }
 0x305   :  { %v512_v42 = vmul.f32 %v4852_v29, %v511_v32 }
 0x307   :  { %v513_v26 = vmul.f32 0.5, %v512_v42 }
 0x309   :  { %v514_v44 = vsub.f32 1.5, %v513_v26 }
 0x30b   :  { %v515_v33 = vmul.f32 %v4852_v29, %v514_v44 }
 0x30d   :  { %v519_v46 = vsel %vm518_vm13, %v4852_v29, %v515_v33 }
 0x30e   :  { %v521_v52 = vmul.f32 %v520_v45, %v519_v46 }
 0x310   :  { %v529_v14 = vmul.f32 %v525_v51, %v521_v52  ;;  %v528_v37 = vmul.f32 %v524_v39, %v521_v52  ;;  %v527_v27 = vmul.f32 %v523_v48, %v521_v52  ;;  %v526_v57 = vmul.f32 %v522_v36, %v521_v52 }
 0x312   :  { %v535_v34 = vadd.f32 %v531_v53, %v529_v14  ;;  %v534_v58 = vadd.f32 %v531_v53, %v528_v37  ;;  %v533_v35 = vadd.f32 %v531_v53, %v527_v27  ;;  %v532_v59 = vadd.f32 %v531_v53, %v526_v57 }
 0x314   :  { %v5395_v56 = vmax.f32 %v535_v34, 0.0  ;;  %v5397_v54 = vmax.f32 %v534_v58, 0.0  ;;  %v5399_v61 = vmax.f32 %v533_v35, 0.0  ;;  %v5401_v31 = vmax.f32 %v532_v59, 0.0 }
 0x316   :  { %672 = vrot.lane.b32.xlu1 %v5397_v54, %s5016_s4  ;;  %669 = vrot.lane.b32.xlu2 %v5399_v61, %s5016_s4  ;;  %v555_v55 = vrot.slane %v5395_v56, 1  ;;  %v552_v38 = vrot.slane %v5401_v31, 1  ;;  %v554_v60 = vrot.slane %v5397_v54, 1  ;;  %v540_v1 = vrot.slane %v5401_v31, 7 }
 0x317   :  { %666 = vrot.lane.b32.xlu0 %v5401_v31, %s5016_s4  ;;  %v541_v40 = vrot.slane %v5399_v61, 7  ;;  %v542_v3 = vrot.slane %v5397_v54, 7  ;;  %v543_v17 = vrot.slane %v5395_v56, 7  ;;  %v553_v5 = vrot.slane %v5399_v61, 1 }
 0x318   :  { %v559_v62 = vsel %vm183_vm3, %v555_v55, %v552_v38  ;;  %v5416_v63 = vsel %vm183_vm3, %v554_v60, %v555_v55 }
 0x319   :  { %v5420_v0 = vsel %vm124_vm4, %v559_v62, 0.0  ;;  %v5432_v16 = vsel %vm170_vm2, %v540_v1, %v541_v40  ;;  %v5439_v4 = vsel %vm170_vm2, %v541_v40, %v542_v3  ;;  %v5446_v47 = vsel %vm170_vm2, %v542_v3, %v543_v17 }
 0x31a   :  { %v5453_v41 = vsel %vm183_vm3, %v552_v38, %v553_v5  ;;  %v5459_v12 = vsel %vm183_vm3, %v553_v5, %v554_v60  ;;  %v547_v43 = vsel %vm170_vm2, %v543_v17, %v540_v1 }
 0x31b   :  { %v5467_v6 = vsel %vm117_vm5, %v547_v43, 0.0 }
 0x31e   :  { %752 = vrot.lane.b32.xlu2 %v5416_v63, %s5016_s4  ;;  %755 = vrot.lane.b32.xlu1 %v5420_v0, %s5016_s4 }
 0x31f   :  { %675 = vrot.lane.b32.xlu0 %v5395_v56, %s5016_s4 }
 0x327   :  { %579 = vrot.lane.b32.xlu0 %v5432_v16, %s5016_s4 }
 0x32f   :  { %582 = vrot.lane.b32.xlu0 %v5439_v4, %s5016_s4 }
 0x337   :  { %585 = vrot.lane.b32.xlu0 %v5446_v47, %s5016_s4 }
 0x33f   :  { %746 = vrot.lane.b32.xlu0 %v5453_v41, %s5016_s4 }
 0x347   :  { %749 = vrot.lane.b32.xlu0 %v5459_v12, %s5016_s4 }
 0x34f   :  { %576 = vrot.lane.b32.xlu0 %v5467_v6, %s5016_s4 }
 0x370   :  { %v670_v7 = vpop.permute.xlu2 %669 }
 0x371   :  { %v671_v8 = vsel %vm204_vm6, %v670_v7, %v5399_v61 }
 0x372   :  { %680 = vrot.lane.b32.xlu1 %v671_v8, %s5016_s4 }
 0x378   :  { %v753_v23 = vpop.permute.xlu2 %752 }
 0x379   :  { %v754_v28 = vsel %vm204_vm6, %v753_v23, %v5416_v63 }
 0x388   :  { %v673_v9 = vpop.permute.xlu1 %672 }
 0x389   :  { %v667_v10 = vpop.permute.xlu0 %666  ;;  %v674_v11 = vsel %vm204_vm6, %v673_v9, %v5397_v54 }
 0x38a   :  { %v668_v18 = vsel %vm204_vm6, %v667_v10, %v5401_v31  ;;  %682 = vrot.lane.b32.xlu0 %v674_v11, %s5016_s4 }
 0x38b   :  { %678 = vrot.lane.b32.xlu2 %v668_v18, %s5016_s4 }
 0x390   :  { %v756_v32 = vpop.permute.xlu1 %755 }
 0x391   :  { %v676_v49 = vpop.permute.xlu0 %675  ;;  %v757_v26 = vsel %vm204_vm6, %v756_v32, %v5420_v0 }
 0x392   :  { %v677_v19 = vsel %vm204_vm6, %v676_v49, %v5395_v56 }
 0x393   :  { %684 = vrot.lane.b32.xlu2 %v677_v19, %s5016_s4 }
 0x399   :  { %v580_v21 = vpop.permute.xlu0 %579 }
 0x39a   :  { %v581_v22 = vsel %vm204_vm6, %v580_v21, %v5432_v16 }
 0x39b   :  { %590 = vrot.lane.b32.xlu2 %v581_v22, %s5016_s4 }
 0x3a1   :  { %v583_v24 = vpop.permute.xlu0 %582 }
 0x3a2   :  { %v584_v13 = vsel %vm204_vm6, %v583_v24, %v5439_v4 }
 0x3a3   :  { %762 = vrot.lane.b32.xlu2 %v754_v28, %s5016_s4  ;;  %592 = vrot.lane.b32.xlu1 %v584_v13, %s5016_s4  ;;  %v566_v13 = vstv %s4665_s17 }
 0x3a4   :  { %v568_v32 = vmul.f32 %v566_v13, %v5399_v61 }
 0x3a9   :  { %v586_v20 = vpop.permute.xlu0 %585 }
 0x3aa   :  { %v587_v25 = vsel %vm204_vm6, %v586_v20, %v5446_v47 }
 0x3ab   :  { %594 = vrot.lane.b32.xlu0 %v587_v25, %s5016_s4  ;;  %v621_v25 = vstv %s4666_s0  ;;  %s4686_s0 = sld [smem:[#allocation11 + $0x2]] }
 0x3b1   :  { %v747_v2 = vpop.permute.xlu0 %746 }
 0x3b2   :  { %v748_v29 = vsel %vm204_vm6, %v747_v2, %v5453_v41 }
 0x3b3   :  { %758 = vrot.lane.b32.xlu1 %v748_v29, %s5016_s4  ;;  %v570_v29 = vmul.f32 %v566_v13, %v5395_v56 }
 0x3b9   :  { %v750_v42 = vpop.permute.xlu0 %749 }
 0x3ba   :  { %v751_v44 = vsel %vm204_vm6, %v750_v42, %v5459_v12  ;;  %v571_v42 = vstv %s4664_s18  ;;  %s4687_s18 = sld [smem:[#allocation13 + $0x2]] }
 0x3bb   :  { %764 = vrot.lane.b32.xlu1 %v757_v26, %s5016_s4  ;;  %760 = vrot.lane.b32.xlu0 %v751_v44, %s5016_s4  ;;  %v569_v44 = vmul.f32 %v566_v13, %v5397_v54 }
 0x3c1   :  { %v577_v33 = vpop.permute.xlu0 %576 }
 0x3c2   :  { %v578_v45 = vsel %vm204_vm6, %v577_v33, %v5467_v6 }
 0x3c3   :  { %588 = vrot.lane.b32.xlu0 %v578_v45, %s5016_s4 }
 0x3e4   :  { %v681_v36 = vpop.permute.xlu1 %680 }
 0x3e5   :  { %v679_v46 = vpop.permute.xlu2 %678  ;;  %v687_v48 = vsel %vm204_vm6, %v681_v36, %v5399_v61  ;;  %v574_v61 = vadd.f32 %v571_v42, %v569_v44 }
 0x3e6   :  { %v686_v39 = vsel %vm204_vm6, %v679_v46, %v5401_v31  ;;  %696 = vrot.lane.b32.xlu1 %v687_v48, %s5017_s5  ;;  %722 = vrot.lane.b32.xlu0 %v687_v48, %s5018_s26 }
 0x3e7   :  { %694 = vrot.lane.b32.xlu2 %v686_v39, %s5017_s5 }
 0x3ed   :  { %v685_v53 = vpop.permute.xlu2 %684 }
 0x3ee   :  { %720 = vrot.lane.b32.xlu1 %v686_v39, %s5018_s26  ;;  %v689_v14 = vsel %vm204_vm6, %v685_v53, %v5395_v56  ;;  %v575_v39 = vadd.f32 %v571_v42, %v570_v29  ;;  %v573_v53 = vadd.f32 %v571_v42, %v568_v32 }
 0x3f5   :  { %v591_v37 = vpop.permute.xlu2 %590 }
 0x3f6   :  { %v597_v27 = vsel %vm204_vm6, %v591_v37, %v5432_v16 }
 0x3fc   :  { %v683_v51 = vpop.permute.xlu0 %682 }
 0x3fd   :  { %v688_v52 = vsel %vm204_vm6, %v683_v51, %v5397_v54  ;;  %v763_v17 = vpop.permute.xlu2 %762 }
 0x3fe   :  { %724 = vrot.lane.b32.xlu1 %v688_v52, %s5018_s26  ;;  %698 = vrot.lane.b32.xlu2 %v688_v52, %s5017_s5  ;;  %v768_v5 = vsel %vm204_vm6, %v763_v17, %v5416_v63  ;;  %v631_v52 = vstv %s4667_s19  ;;  %s4689_s19 = sld [smem:[#allocation9 + $0x1f]] }
 0x406   :  { %726 = vrot.lane.b32.xlu1 %v689_v14, %s5018_s26  ;;  %700 = vrot.lane.b32.xlu2 %v689_v14, %s5017_s5  ;;  %v657_v14 = vstv %s4668_s20  ;;  %s4688_s20 = sld [smem:[#allocation10 + $0x3]] }
 0x40e   :  { %606 = vrot.lane.b32.xlu2 %v597_v27, %s5017_s5 }
 0x415   :  { %v593_v57 = vpop.permute.xlu1 %592 }
 0x416   :  { %v598_v34 = vsel %vm204_vm6, %v593_v57, %v5439_v4 }
 0x417   :  { %608 = vrot.lane.b32.xlu1 %v598_v34, %s5017_s5 }
 0x41d   :  { %v595_v58 = vpop.permute.xlu0 %594 }
 0x41e   :  { %v599_v35 = vsel %vm204_vm6, %v595_v58, %v5446_v47 }
 0x41f   :  { %642 = vrot.lane.b32.xlu1 %v597_v27, %s5018_s26  ;;  %610 = vrot.lane.b32.xlu0 %v599_v35, %s5017_s5 }
 0x425   :  { %v759_v59 = vpop.permute.xlu1 %758 }
 0x426   :  { %v766_v55 = vsel %vm204_vm6, %v759_v59, %v5453_v41  ;;  %v567_v59 = vmul.f32 %v566_v13, %v5401_v31 }
 0x427   :  { %810 = vrot.lane.b32.xlu1 %v766_v55, %s5018_s26  ;;  %644 = vrot.lane.b32.xlu0 %v598_v34, %s5018_s26  ;;  %v635_v34 = vmul.f32 %v631_v52, %v5446_v47 }
 0x42d   :  { %v765_v38 = vpop.permute.xlu1 %764  ;;  %v761_v60 = vpop.permute.xlu0 %760 }
 0x42e   :  { %v769_v62 = vsel %vm204_vm6, %v765_v38, %v5420_v0  ;;  %v767_v1 = vsel %vm204_vm6, %v761_v60, %v5459_v12  ;;  %v634_v60 = vmul.f32 %v631_v52, %v5439_v4  ;;  %v711_v4 = vstv %s4669_s21  ;;  %s4690_s21 = sld [smem:[#allocation9 + $0x1b]] }
 0x42f   :  { %816 = vrot.lane.b32.xlu1 %v769_v62, %s5018_s26  ;;  %646 = vrot.lane.b32.xlu0 %v599_v35, %s5018_s26 }
 0x430   :  { %776 = vrot.lane.b32.xlu2 %v767_v1, %s5017_s5 }
 0x435   :  { %v589_v40 = vpop.permute.xlu0 %588 }
 0x436   :  { %v596_v3 = vsel %vm204_vm6, %v589_v40, %v5467_v6  ;;  %v632_v40 = vmul.f32 %v631_v52, %v5467_v6 }
 0x437   :  { %774 = vrot.lane.b32.xlu0 %v766_v55, %s5017_s5  ;;  %v633_v55 = vmul.f32 %v631_v52, %v5432_v16 }
 0x438   :  { %640 = vrot.lane.b32.xlu2 %v596_v3, %s5018_s26 }
 0x43f   :  { %604 = vrot.lane.b32.xlu0 %v596_v3, %s5017_s5 }
 0x440   :  { %780 = vrot.lane.b32.xlu2 %v769_v62, %s5017_s5 }
 0x441   :  { %v5555_v43 = vpop.permute.xlu2 %694 }
 0x447   :  { %778 = vrot.lane.b32.xlu0 %v768_v5, %s5017_s5 }
 0x448   :  { %814 = vrot.lane.b32.xlu2 %v768_v5, %s5018_s26 }
 0x44f   :  { %812 = vrot.lane.b32.xlu0 %v767_v1, %s5018_s26 }
 0x458   :  { %v697_v7 = vpop.permute.xlu1 %696  ;;  %v5557_v8 = vpop.permute.xlu2 %698 }
 0x459   :  { %v5561_v10 = vpop.permute.xlu0 %722  ;;  %v707_v31 = vsel %vm125_vm8, %v697_v7, 0.0 }
 0x45a   :  { %v713_v29 = vmul.f32 %v711_v4, %v707_v31  ;;  %v827_v31 = vstv %s4673_s24  ;;  %s6142_s24 = sld [smem:[#allocation9 + $0x20]] }
 0x460   :  { %v5559_v9 = vpop.permute.xlu1 %720  ;;  %v701_v11 = vpop.permute.xlu2 %700 }
 0x461   :  { %v709_v3 = vsel %vm125_vm8, %v701_v11, 0.0 }
 0x468   :  { %v607_v19 = vpop.permute.xlu2 %606 }
 0x469   :  { %v617_v2 = vsel %vm125_vm8, %v607_v19, 0.0 }
 0x46a   :  { %v623_v36 = vmul.f32 %v621_v25, %v617_v2  ;;  %v706_v2 = vsel %vm125_vm8, %v5555_v43, 0.0  ;;  %v732_v43 = vsel %vm126_vm9, %v5559_v9, 0.0 }
 0x46b   :  { %v712_v52 = vmul.f32 %v711_v4, %v706_v2 }
 0x46c   :  { %v627_v27 = vadd.f32 %v623_v36, %v573_v53 }
 0x46e   :  { %v637_v47 = vadd.f32 %v633_v55, %v627_v27 }
 0x470   :  { %v5563_v18 = vpop.permute.xlu1 %724 }
 0x478   :  { %v5565_v21 = vpop.permute.xlu1 %726 }
 0x479   :  { %v735_v32 = vsel %vm126_vm9, %v5565_v21, 0.0  ;;  %v734_v21 = vsel %vm126_vm9, %v5563_v18, 0.0 }
 0x489   :  { %v609_v24 = vpop.permute.xlu1 %608 }
 0x48a   :  { %v5567_v23 = vpop.permute.xlu2 %776  ;;  %v618_v26 = vsel %vm125_vm8, %v609_v24, 0.0  ;;  %v737_v24 = vstv %s5582_s22  ;;  %s4691_s22 = sld [smem:[#allocation9 + $0x1c]] }
 0x48b   :  { %v624_v48 = vmul.f32 %v621_v25, %v618_v26  ;;  %v733_v26 = vsel %vm126_vm9, %v5561_v10, 0.0  ;;  %v791_v10 = vstv %s5597_s1  ;;  %v787_v9 = vsel %vm125_vm8, %v5567_v23, 0.0  ;;  %s4693_s1 = sld [smem:[#allocation9 + $0x1e]] }
 0x48c   :  { %v739_v53 = vmul.f32 %v737_v24, %v733_v26  ;;  %v738_v27 = vmul.f32 %v737_v24, %v732_v43  ;;  %v793_v23 = vmul.f32 %v791_v10, %v787_v9 }
 0x48d   :  { %v628_v58 = vadd.f32 %v624_v48, %v574_v61  ;;  %v740_v61 = vmul.f32 %v737_v24, %v734_v21 }
 0x48f   :  { %v638_v5 = vadd.f32 %v634_v60, %v628_v58 }
 0x491   :  { %v611_v49 = vpop.permute.xlu0 %610  ;;  %v643_v46 = vpop.permute.xlu1 %642 }
 0x492   :  { %v619_v20 = vsel %vm125_vm8, %v611_v49, 0.0  ;;  %v641_v33 = vpop.permute.xlu2 %640  ;;  %v653_v54 = vsel %vm126_vm9, %v643_v46, 0.0  ;;  %v572_v49 = vadd.f32 %v571_v42, %v567_v59 }
 0x493   :  { %v625_v45 = vmul.f32 %v621_v25, %v619_v20  ;;  %v659_v38 = vmul.f32 %v657_v14, %v653_v54 }
 0x495   :  { %v629_v37 = vadd.f32 %v625_v45, %v575_v39  ;;  %v663_v6 = vadd.f32 %v659_v38, %v637_v47  ;;  %v801_v45 = vstv %s5590_s23  ;;  %s4692_s23 = sld [smem:[#allocation9 + $0x1d]] }
 0x496   :  { %v804_v60 = vmul.f32 %v801_v45, %v5416_v63 }
 0x497   :  { %v639_v1 = vadd.f32 %v635_v34, %v629_v37  ;;  %v717_v36 = vadd.f32 %v713_v29, %v663_v6 }
 0x499   :  { %v645_v22 = vpop.permute.xlu0 %644  ;;  %v811_v13 = vpop.permute.xlu1 %810 }
 0x49a   :  { %v654_v57 = vsel %vm126_vm9, %v645_v22, 0.0  ;;  %v781_v17 = vpop.permute.xlu2 %780  ;;  %v708_v22 = vsel %vm125_vm8, %v5557_v8, 0.0  ;;  %v652_v8 = vsel %vm126_vm9, %v641_v33, 0.0  ;;  %v741_v33 = vmul.f32 %v737_v24, %v735_v32 }
 0x49b   :  { %v660_v62 = vmul.f32 %v657_v14, %v654_v57  ;;  %v714_v42 = vmul.f32 %v711_v4, %v708_v22  ;;  %v658_v46 = vmul.f32 %v657_v14, %v652_v8  ;;  %v743_v57 = vadd.f32 %v739_v53, %v717_v36 }
 0x49d   :  { %v664_v20 = vadd.f32 %v660_v62, %v638_v5  ;;  %v797_v5 = vadd.f32 %v793_v23, %v743_v57 }
 0x49f   :  { %v718_v48 = vadd.f32 %v714_v42, %v664_v20 }
 0x4a1   :  { %v647_v28 = vpop.permute.xlu0 %646  ;;  %v744_v55 = vadd.f32 %v740_v61, %v718_v48  ;;  %v817_v62 = vpop.permute.xlu1 %816 }
 0x4a2   :  { %v655_v56 = vsel %vm126_vm9, %v647_v28, 0.0  ;;  %v715_v28 = vmul.f32 %v711_v4, %v709_v3  ;;  %v803_v4 = vmul.f32 %v801_v45, %v5459_v12  ;;  %v825_v22 = vsel %vm126_vm9, %v817_v62, 0.0 }
 0x4a3   :  { %v661_v35 = vmul.f32 %v657_v14, %v655_v56  ;;  %v789_v56 = vsel %vm125_vm8, %v781_v17, 0.0  ;;  %v831_v2 = vmul.f32 %v827_v31, %v825_v22 }
 0x4a4   :  { %v795_v58 = vmul.f32 %v791_v10, %v789_v56  ;;  %v807_v20 = vadd.f32 %v803_v4, %v797_v5 }
 0x4a5   :  { %v665_v16 = vadd.f32 %v661_v35, %v639_v1  ;;  %v815_v35 = vpop.permute.xlu2 %814 }
 0x4a6   :  { %v824_v17 = vsel %vm126_vm9, %v815_v35, 0.0 }
 0x4a7   :  { %v719_v44 = vadd.f32 %v715_v28, %v665_v16  ;;  %v805_v16 = vmul.f32 %v801_v45, %v5420_v0 }
 0x4a9   :  { %v5578_v51 = vpop.permute.xlu0 %774  ;;  %v745_v54 = vadd.f32 %v741_v33, %v719_v44 }
 0x4aa   :  { %v786_v14 = vsel %vm125_vm8, %v5578_v51, 0.0  ;;  %v822_v51 = vsel %vm126_vm9, %v811_v13, 0.0 }
 0x4ab   :  { %v799_v1 = vadd.f32 %v795_v58, %v745_v54  ;;  %v828_v6 = vmul.f32 %v827_v31, %v822_v51 }
 0x4ad   :  { %v809_v13 = vadd.f32 %v805_v16, %v799_v1 }
 0x4af   :  { %v5654_v12 = vadd.f32 %v831_v2, %v809_v13  ;;  %v901_v13 = vstv %s4675_s29 }
 0x4b1   :  { %v605_v19 = vpop.permute.xlu0 %604  ;;  %v856_v21 = vmul.f32 %v5654_v12, %v5654_v12 }
 0x4b2   :  { %v616_v11 = vsel %vm125_vm8, %v605_v19, 0.0 }
 0x4b3   :  { %v622_v7 = vmul.f32 %v621_v25, %v616_v11  ;;  %v830_v11 = vmul.f32 %v827_v31, %v824_v17  ;;  %v862_v56 = vsel %vm465_vm10, %v856_v21, 0.0  ;;  %v4873_v21 = vld [vmem:[#allocation2 + $0x10] sm:$0xff] }
 0x4b5   :  { %v626_v25 = vadd.f32 %v622_v7, %v572_v49  ;;  %v802_v49 = vmul.f32 %v801_v45, %v5453_v41 }
 0x4b7   :  { %v636_v39 = vadd.f32 %v632_v40, %v626_v25  ;;  %v792_v40 = vmul.f32 %v791_v10, %v786_v14 }
 0x4b9   :  { %v662_v37 = vadd.f32 %v658_v46, %v636_v39  ;;  %v779_v18 = vpop.permute.xlu0 %778  ;;  %v841_v39 = vsel %vm465_vm10, %v5654_v12, 0.0 }
 0x4ba   :  { %v788_v34 = vsel %vm125_vm8, %v779_v18, 0.0 }
 0x4bb   :  { %v716_v59 = vadd.f32 %v712_v52, %v662_v37  ;;  %v794_v38 = vmul.f32 %v791_v10, %v788_v34 }
 0x4bd   :  { %v742_v3 = vadd.f32 %v738_v27, %v716_v59  ;;  %v798_v47 = vadd.f32 %v794_v38, %v744_v55 }
 0x4bf   :  { %v796_v19 = vadd.f32 %v792_v40, %v742_v3  ;;  %v808_v63 = vadd.f32 %v804_v60, %v798_v47 }
 0x4c1   :  { %v813_v24 = vpop.permute.xlu0 %812  ;;  %v806_v28 = vadd.f32 %v802_v49, %v796_v19  ;;  %v5648_v0 = vadd.f32 %v830_v11, %v808_v63  ;;  %v890_v63 = vstv %s4674_s28  ;;  %s6182_s28 = sld [smem:[#allocation9 + $0x23]] }
 0x4c2   :  { %v823_v7 = vsel %vm126_vm9, %v813_v24, 0.0 }
 0x4c3   :  { %v829_v41 = vmul.f32 %v827_v31, %v823_v7  ;;  %v5650_v29 = vadd.f32 %v828_v6, %v806_v28  ;;  %v855_v25 = vmul.f32 %v5648_v0, %v5648_v0  ;;  %v839_v43 = vsel %vm465_vm10, %v5648_v0, 0.0 }
 0x4c5   :  { %v5652_v32 = vadd.f32 %v829_v41, %v807_v20  ;;  %v853_v8 = vmul.f32 %v5650_v29, %v5650_v29  ;;  %v836_v42 = vsel %vm465_vm10, %v5650_v29, 0.0  ;;  %v860_v52 = vsel %vm465_vm10, %v855_v25, 0.0  ;;  %v4871_v25 = vld [vmem:[#allocation2] sm:$0xff] }
 0x4c7   :  { %v837_v26 = vsel %vm465_vm10, %v5652_v32, 0.0  ;;  %v854_v44 = vmul.f32 %v5652_v32, %v5652_v32  ;;  %v857_v36 = vsel %vm465_vm10, %v853_v8, 0.0 }
 0x4c8   :  { %v838_v45 = vadd.f32 %v837_v26, %v836_v42 }
 0x4c9   :  { %v858_v33 = vsel %vm465_vm10, %v854_v44, 0.0 }
 0x4ca   :  { %v840_v46 = vadd.f32 %v839_v43, %v838_v45  ;;  %v859_v48 = vadd.f32 %v858_v33, %v857_v36  ;;  %v4874_v36 = vld [vmem:[#allocation2 + $0x18] sm:$0xff] }
 0x4cc   :  { %v842_v53 = vadd.f32 %v841_v39, %v840_v46  ;;  %v861_v10 = vadd.f32 %v860_v52, %v859_v48 }
 0x4ce   :  { %843 = vadd.xlane.f32.xlu0 %v842_v53  ;;  %v863_v61 = vadd.f32 %v862_v56, %v861_v10 }
 0x4d0   :  { %864 = vadd.xlane.f32.xlu2 %v863_v61 }
 0x541   :  { %v844_v9 = vpop.xlane.xlu0 %843 }
 0x542   :  { %v845_v54 = vrot.slane %v844_v9, 4 }
 0x543   :  { %v865_v37 = vpop.xlane.xlu2 %864 }
 0x544   :  { %v846_v18 = vadd.f32 %v845_v54, %v844_v9  ;;  %v866_v27 = vrot.slane %v865_v37, 4 }
 0x546   :  { %v867_v57 = vadd.f32 %v866_v27, %v865_v37  ;;  %v847_v14 = vrot.slane %v846_v18, 2 }
 0x548   :  { %v848_v34 = vadd.f32 %v847_v14, %v846_v18  ;;  %v868_v58 = vrot.slane %v867_v57, 2 }
 0x54a   :  { %v849_v35 = vrot.slane %v848_v34, 1  ;;  %v869_v59 = vadd.f32 %v868_v58, %v867_v57 }
 0x54c   :  { %v850_v55 = vadd.f32 %v849_v35, %v848_v34  ;;  %v870_v38 = vrot.slane %v869_v59, 1 }
 0x54e   :  { %4800 = vpush %v850_v55  ;;  %v871_v60 = vadd.f32 %v870_v38, %v869_v59 }
 0x550   :  { %4802 = vpush %v871_v60 }
 0x57f   :  { %s4801_s25 = spop %4800 }
 0x580   :  { %v852_v23 = vstv %s4801_s25  ;;  %s6149_s25 = sld [smem:[#allocation9 + $0x21]] }
 0x581   :  { %v874_v62 = vmul.f32 0.00048828125, %v852_v23  ;;  %s4803_s27 = spop %4802 }
 0x582   :  { %v873_v1 = vstv %s4803_s27  ;;  %s6160_s27 = sld [smem:[#allocation9 + $0x22]] }
 0x583   :  { %v875_v40 = vmul.f32 0.00048828125, %v873_v1  ;;  %v876_v3 = vmul.f32 %v874_v62, %v874_v62  ;;  %v892_v4 = vsub.f32 %v5650_v29, %v874_v62  ;;  %v893_v6 = vsub.f32 %v5652_v32, %v874_v62  ;;  %v4872_v29 = vld [vmem:[#allocation2 + $0x8] sm:$0xff] }
 0x584   :  { %v894_v11 = vsub.f32 %v5648_v0, %v874_v62  ;;  %v895_v24 = vsub.f32 %v5654_v12, %v874_v62 }
 0x585   :  { %v877_v47 = vsub.f32 %v875_v40, %v876_v3 }
 0x587   :  { %v879_v31 = vadd.f32 1e-05, %v877_v47 }
 0x589   :  { %4853 = vrsqrt.f32 %v879_v31  ;;  %vm886_vm15 = vweird.f32 %v879_v31 }
 0x58f   :  { %v4854_v51 = vpop.eup %4853 }
 0x590   :  { %v881_v17 = vmul.f32 %v4854_v51, %v879_v31  ;;  %vm887_vm14 = vweird.f32 %v4854_v51 }
 0x591   :  { %vm888_vm0 = vmor %vm886_vm15, %vm887_vm14 }
 0x592   :  { %v882_v5 = vmul.f32 %v4854_v51, %v881_v17 }
 0x594   :  { %v883_v16 = vmul.f32 0.5, %v882_v5 }
 0x596   :  { %v884_v49 = vsub.f32 1.5, %v883_v16 }
 0x598   :  { %v885_v19 = vmul.f32 %v4854_v51, %v884_v49 }
 0x59a   :  { %v889_v22 = vsel %vm888_vm0, %v4854_v51, %v885_v19 }
 0x59b   :  { %v891_v28 = vmul.f32 %v890_v63, %v889_v22 }
 0x59d   :  { %v896_v20 = vmul.f32 %v892_v4, %v891_v28  ;;  %v897_v7 = vmul.f32 %v893_v6, %v891_v28  ;;  %v898_v2 = vmul.f32 %v894_v11, %v891_v28  ;;  %v899_v41 = vmul.f32 %v895_v24, %v891_v28 }
 0x59f   :  { %v902_v8 = vadd.f32 %v901_v13, %v896_v20  ;;  %v903_v42 = vadd.f32 %v901_v13, %v897_v7  ;;  %v904_v26 = vadd.f32 %v901_v13, %v898_v2  ;;  %v905_v44 = vadd.f32 %v901_v13, %v899_v41 }
 0x5a1   :  { %v906_v45 = vadd.f32 %v4871_v25, %v902_v8  ;;  %v907_v43 = vadd.f32 %v4872_v29, %v903_v42  ;;  %v908_v32 = vadd.f32 %v4873_v21, %v904_v26  ;;  %v909_v0 = vadd.f32 %v4874_v36, %v905_v44 }
 0x5a3   :  { %v5680_v33 = vmax.f32 %v909_v0, 0.0  ;;  %v5682_v12 = vmax.f32 %v908_v32, 0.0  ;;  %v5684_v46 = vmax.f32 %v907_v43, 0.0  ;;  %v5686_v48 = vmax.f32 %v906_v45, 0.0 }
 0x5a5   :  { %1046 = vrot.lane.b32.xlu2 %v5682_v12, %s5016_s4  ;;  %1043 = vrot.lane.b32.xlu0 %v5684_v46, %s5016_s4  ;;  %v929_v39 = vrot.slane %v5680_v33, 1  ;;  %v926_v52 = vrot.slane %v5686_v48, 1  ;;  %v928_v53 = vrot.slane %v5682_v12, 1  ;;  %v914_v9 = vrot.slane %v5686_v48, 7 }
 0x5a6   :  { %1040 = vrot.lane.b32.xlu1 %v5686_v48, %s5016_s4  ;;  %v915_v54 = vrot.slane %v5684_v46, 7  ;;  %v916_v18 = vrot.slane %v5682_v12, 7  ;;  %v917_v57 = vrot.slane %v5680_v33, 7  ;;  %v927_v34 = vrot.slane %v5684_v46, 1 }
 0x5a7   :  { %v933_v10 = vsel %vm183_vm3, %v929_v39, %v926_v52  ;;  %v5701_v56 = vsel %vm183_vm3, %v928_v53, %v929_v39 }
 0x5a8   :  { %v5705_v61 = vsel %vm124_vm4, %v933_v10, 0.0  ;;  %v5717_v37 = vsel %vm170_vm2, %v914_v9, %v915_v54  ;;  %v5724_v27 = vsel %vm170_vm2, %v915_v54, %v916_v18  ;;  %v5731_v14 = vsel %vm170_vm2, %v916_v18, %v917_v57 }
 0x5a9   :  { %v5738_v58 = vsel %vm183_vm3, %v926_v52, %v927_v34  ;;  %v5744_v35 = vsel %vm183_vm3, %v927_v34, %v928_v53  ;;  %v921_v59 = vsel %vm170_vm2, %v917_v57, %v914_v9 }
 0x5aa   :  { %v5752_v55 = vsel %vm117_vm5, %v921_v59, 0.0 }
 0x5ad   :  { %1126 = vrot.lane.b32.xlu0 %v5701_v56, %s5016_s4  ;;  %1129 = vrot.lane.b32.xlu2 %v5705_v61, %s5016_s4 }
 0x5ae   :  { %1049 = vrot.lane.b32.xlu1 %v5680_v33, %s5016_s4 }
 0x5b6   :  { %953 = vrot.lane.b32.xlu1 %v5717_v37, %s5016_s4 }
 0x5be   :  { %956 = vrot.lane.b32.xlu1 %v5724_v27, %s5016_s4 }
 0x5c6   :  { %959 = vrot.lane.b32.xlu1 %v5731_v14, %s5016_s4 }
 0x5ce   :  { %1120 = vrot.lane.b32.xlu1 %v5738_v58, %s5016_s4 }
 0x5d6   :  { %1123 = vrot.lane.b32.xlu1 %v5744_v35, %s5016_s4 }
 0x5de   :  { %950 = vrot.lane.b32.xlu1 %v5752_v55, %s5016_s4 }
 0x5ff   :  { %v1047_v38 = vpop.permute.xlu2 %1046 }
 0x600   :  { %v1048_v60 = vsel %vm204_vm6, %v1047_v38, %v5682_v12 }
 0x601   :  { %1056 = vrot.lane.b32.xlu1 %v1048_v60, %s5016_s4 }
 0x607   :  { %v1130_v6 = vpop.permute.xlu2 %1129 }
 0x608   :  { %v1131_v24 = vsel %vm204_vm6, %v1130_v6, %v5705_v61 }
 0x617   :  { %v1044_v23 = vpop.permute.xlu0 %1043 }
 0x618   :  { %v1041_v62 = vpop.permute.xlu1 %1040  ;;  %v1045_v1 = vsel %vm204_vm6, %v1044_v23, %v5684_v46 }
 0x619   :  { %v1042_v40 = vsel %vm204_vm6, %v1041_v62, %v5686_v48  ;;  %1054 = vrot.lane.b32.xlu2 %v1045_v1, %s5016_s4 }
 0x61a   :  { %1052 = vrot.lane.b32.xlu0 %v1042_v40, %s5016_s4 }
 0x61f   :  { %v1127_v17 = vpop.permute.xlu0 %1126 }
 0x620   :  { %v1050_v3 = vpop.permute.xlu1 %1049  ;;  %v1128_v16 = vsel %vm204_vm6, %v1127_v17, %v5701_v56 }
 0x621   :  { %v1051_v47 = vsel %vm204_vm6, %v1050_v3, %v5680_v33 }
 0x622   :  { %1058 = vrot.lane.b32.xlu0 %v1051_v47, %s5016_s4 }
 0x628   :  { %v954_v31 = vpop.permute.xlu1 %953 }
 0x629   :  { %v955_v51 = vsel %vm204_vm6, %v954_v31, %v5717_v37 }
 0x62a   :  { %964 = vrot.lane.b32.xlu0 %v955_v51, %s5016_s4 }
 0x630   :  { %v957_v5 = vpop.permute.xlu1 %956 }
 0x631   :  { %v958_v49 = vsel %vm204_vm6, %v957_v5, %v5724_v27 }
 0x632   :  { %1136 = vrot.lane.b32.xlu0 %v1128_v16, %s5016_s4  ;;  %966 = vrot.lane.b32.xlu2 %v958_v49, %s5016_s4  ;;  %v940_v49 = vstv %s4677_s30 }
 0x633   :  { %v942_v6 = vmul.f32 %v940_v49, %v5684_v46 }
 0x638   :  { %v960_v19 = vpop.permute.xlu1 %959 }
 0x639   :  { %v961_v63 = vsel %vm204_vm6, %v960_v19, %v5731_v14  ;;  %v995_v19 = vstv %s4678_s8  ;;  %s4698_s8 = sld [smem:[#allocation11 + $0x3]] }
 0x63a   :  { %968 = vrot.lane.b32.xlu1 %v961_v63, %s5016_s4 }
 0x640   :  { %v1121_v4 = vpop.permute.xlu1 %1120 }
 0x641   :  { %v1122_v22 = vsel %vm204_vm6, %v1121_v4, %v5738_v58 }
 0x642   :  { %1132 = vrot.lane.b32.xlu2 %v1122_v22, %s5016_s4  ;;  %v943_v22 = vmul.f32 %v940_v49, %v5682_v12 }
 0x648   :  { %v1124_v11 = vpop.permute.xlu1 %1123 }
 0x649   :  { %v1125_v28 = vsel %vm204_vm6, %v1124_v11, %v5744_v35 }
 0x64a   :  { %1138 = vrot.lane.b32.xlu2 %v1131_v24, %s5016_s4  ;;  %1134 = vrot.lane.b32.xlu1 %v1125_v28, %s5016_s4  ;;  %v945_v24 = vstv %s4676_s9  ;;  %v944_v28 = vmul.f32 %v940_v49, %v5680_v33  ;;  %s4699_s9 = sld [smem:[#allocation13 + $0x3]] }
 0x650   :  { %v951_v13 = vpop.permute.xlu1 %950 }
 0x651   :  { %v952_v20 = vsel %vm204_vm6, %v951_v13, %v5752_v55 }
 0x652   :  { %962 = vrot.lane.b32.xlu1 %v952_v20, %s5016_s4 }
 0x673   :  { %v1055_v7 = vpop.permute.xlu2 %1054  ;;  %v1057_v42 = vpop.permute.xlu1 %1056 }
 0x674   :  { %v1061_v2 = vsel %vm204_vm6, %v1055_v7, %v5684_v46  ;;  %v1062_v26 = vsel %vm204_vm6, %v1057_v42, %v5682_v12  ;;  %v947_v42 = vadd.f32 %v945_v24, %v942_v6 }
 0x675   :  { %1070 = vrot.lane.b32.xlu2 %v1061_v2, %s5017_s5  ;;  %1096 = vrot.lane.b32.xlu1 %v1061_v2, %s5018_s26 }
 0x68c   :  { %v1053_v41 = vpop.permute.xlu0 %1052  ;;  %v967_v45 = vpop.permute.xlu2 %966 }
 0x68d   :  { %v1060_v8 = vsel %vm204_vm6, %v1053_v41, %v5686_v48  ;;  %v972_v43 = vsel %vm204_vm6, %v967_v45, %v5724_v27 }
 0x68e   :  { %1068 = vrot.lane.b32.xlu0 %v1060_v8, %s5017_s5  ;;  %1094 = vrot.lane.b32.xlu2 %v1060_v8, %s5018_s26  ;;  %v948_v8 = vadd.f32 %v945_v24, %v943_v22 }
 0x694   :  { %v1059_v44 = vpop.permute.xlu0 %1058 }
 0x695   :  { %v1063_v25 = vsel %vm204_vm6, %v1059_v44, %v5680_v33  ;;  %v1005_v44 = vstv %s4679_s10  ;;  %s4701_s10 = sld [smem:[#allocation9 + $0x28]] }
 0x696   :  { %1098 = vrot.lane.b32.xlu2 %v1062_v26, %s5018_s26  ;;  %1072 = vrot.lane.b32.xlu0 %v1062_v26, %s5017_s5 }
 0x69c   :  { %v965_v29 = vpop.permute.xlu0 %964  ;;  %v1133_v0 = vpop.permute.xlu2 %1132 }
 0x69d   :  { %v971_v21 = vsel %vm204_vm6, %v965_v29, %v5717_v37  ;;  %v1140_v39 = vsel %vm204_vm6, %v1133_v0, %v5738_v58  ;;  %v941_v0 = vmul.f32 %v940_v49, %v5686_v48 }
 0x69e   :  { %1100 = vrot.lane.b32.xlu2 %v1063_v25, %s5018_s26  ;;  %1074 = vrot.lane.b32.xlu0 %v1063_v25, %s5017_s5  ;;  %v949_v25 = vadd.f32 %v945_v24, %v944_v28 }
 0x6a4   :  { %v1139_v52 = vpop.permute.xlu2 %1138  ;;  %v1137_v57 = vpop.permute.xlu0 %1136 }
 0x6a5   :  { %v1143_v9 = vsel %vm204_vm6, %v1139_v52, %v5705_v61  ;;  %v1142_v34 = vsel %vm204_vm6, %v1137_v57, %v5701_v56  ;;  %v1008_v52 = vmul.f32 %v1005_v44, %v5724_v27  ;;  %v1085_v57 = vstv %s4681_s13  ;;  %s4703_s13 = sld [smem:[#allocation9 + $0x25]] }
 0x6a6   :  { %982 = vrot.lane.b32.xlu2 %v972_v43, %s5017_s5  ;;  %980 = vrot.lane.b32.xlu0 %v971_v21, %s5017_s5 }
 0x6ac   :  { %v969_v32 = vpop.permute.xlu1 %968 }
 0x6ad   :  { %v973_v36 = vsel %vm204_vm6, %v969_v32, %v5731_v14  ;;  %v1031_v32 = vstv %s4680_s11  ;;  %s4702_s11 = sld [smem:[#allocation9 + $0x24]] }
 0x6ae   :  { %1016 = vrot.lane.b32.xlu2 %v971_v21, %s5018_s26  ;;  %984 = vrot.lane.b32.xlu1 %v973_v36, %s5017_s5 }
 0x6b6   :  { %1184 = vrot.lane.b32.xlu2 %v1140_v39, %s5018_s26  ;;  %1018 = vrot.lane.b32.xlu1 %v972_v43, %s5018_s26 }
 0x6bc   :  { %v1135_v53 = vpop.permute.xlu1 %1134 }
 0x6bd   :  { %v1141_v10 = vsel %vm204_vm6, %v1135_v53, %v5744_v35 }
 0x6be   :  { %1190 = vrot.lane.b32.xlu2 %v1143_v9, %s5018_s26  ;;  %1020 = vrot.lane.b32.xlu1 %v973_v36, %s5018_s26 }
 0x6bf   :  { %1150 = vrot.lane.b32.xlu0 %v1141_v10, %s5017_s5 }
 0x6c4   :  { %v963_v54 = vpop.permute.xlu1 %962 }
 0x6c5   :  { %v970_v18 = vsel %vm204_vm6, %v963_v54, %v5752_v55 }
 0x6c6   :  { %1148 = vrot.lane.b32.xlu1 %v1140_v39, %s5017_s5  ;;  %v1007_v39 = vmul.f32 %v1005_v44, %v5717_v37  ;;  %v1006_v37 = vmul.f32 %v1005_v44, %v5752_v55 }
 0x6c7   :  { %1014 = vrot.lane.b32.xlu0 %v970_v18, %s5018_s26 }
 0x6ce   :  { %978 = vrot.lane.b32.xlu1 %v970_v18, %s5017_s5 }
 0x6cf   :  { %1154 = vrot.lane.b32.xlu0 %v1143_v9, %s5017_s5  ;;  %v1071_v59 = vpop.permute.xlu2 %1070  ;;  %v1009_v9 = vmul.f32 %v1005_v44, %v5731_v14  ;;  %v946_v14 = vadd.f32 %v945_v24, %v941_v0 }
 0x6d6   :  { %1152 = vrot.lane.b32.xlu1 %v1142_v34, %s5017_s5 }
 0x6d7   :  { %1188 = vrot.lane.b32.xlu0 %v1142_v34, %s5018_s26  ;;  %v1081_v34 = vsel %vm125_vm8, %v1071_v59, 0.0 }
 0x6d8   :  { %v1087_v6 = vmul.f32 %v1085_v57, %v1081_v34 }
 0x6de   :  { %1186 = vrot.lane.b32.xlu1 %v1141_v10, %s5018_s26  ;;  %v5872_v10 = vstv %s4684_s12  ;;  %s4700_s12 = sld [smem:[#allocation10 + $0x4]] }
 0x6e7   :  { %v5844_v62 = vpop.permute.xlu1 %1096 }
 0x6e8   :  { %v5842_v60 = vpop.permute.xlu2 %1094 }
 0x6f0   :  { %v5846_v1 = vpop.permute.xlu2 %1098 }
 0x6f8   :  { %v5848_v47 = vpop.permute.xlu2 %1100 }
 0x700   :  { %v5840_v38 = vpop.permute.xlu0 %1068  ;;  %v983_v17 = vpop.permute.xlu2 %982 }
 0x701   :  { %v992_v63 = vsel %vm125_vm8, %v983_v17, 0.0 }
 0x702   :  { %v998_v13 = vmul.f32 %v995_v19, %v992_v63 }
 0x704   :  { %v1002_v29 = vadd.f32 %v998_v13, %v948_v8  ;;  %v1080_v8 = vsel %vm125_vm8, %v5840_v38, 0.0 }
 0x708   :  { %v1073_v23 = vpop.permute.xlu0 %1072  ;;  %v1017_v20 = vpop.permute.xlu2 %1016 }
 0x709   :  { %v1027_v54 = vsel %vm126_vm9, %v1017_v20, 0.0  ;;  %v1082_v27 = vsel %vm125_vm8, %v1073_v23, 0.0  ;;  %v1107_v23 = vsel %vm126_vm9, %v5844_v62, 0.0  ;;  %v1109_v62 = vsel %vm126_vm9, %v5848_v47, 0.0 }
 0x70a   :  { %v1088_v24 = vmul.f32 %v1085_v57, %v1082_v27 }
 0x710   :  { %v1075_v40 = vpop.permute.xlu0 %1074  ;;  %v1185_v49 = vpop.permute.xlu2 %1184 }
 0x711   :  { %v1083_v63 = vsel %vm125_vm8, %v1075_v40, 0.0  ;;  %v1106_v40 = vsel %vm126_vm9, %v5842_v60, 0.0 }
 0x718   :  { %v981_v51 = vpop.permute.xlu0 %980 }
 0x719   :  { %v991_v4 = vsel %vm125_vm8, %v981_v51, 0.0 }
 0x71a   :  { %v997_v7 = vmul.f32 %v995_v19, %v991_v4 }
 0x71c   :  { %v1001_v43 = vadd.f32 %v997_v7, %v947_v42  ;;  %v1108_v7 = vsel %vm126_vm9, %v5846_v1, 0.0 }
 0x720   :  { %v985_v3 = vpop.permute.xlu1 %984 }
 0x721   :  { %v993_v11 = vsel %vm125_vm8, %v985_v3, 0.0  ;;  %v1011_v3 = vadd.f32 %v1007_v39, %v1001_v43 }
 0x722   :  { %v999_v2 = vmul.f32 %v995_v19, %v993_v11  ;;  %v1111_v11 = vstv %s5863_s14  ;;  %s4704_s14 = sld [smem:[#allocation9 + $0x26]] }
 0x724   :  { %v1003_v36 = vadd.f32 %v999_v2, %v949_v25  ;;  %v1089_v2 = vmul.f32 %v1085_v57, %v1083_v63  ;;  %v1201_v63 = vstv %s5906_s15  ;;  %s4705_s15 = sld [smem:[#allocation9 + $0x27]] }
 0x726   :  { %v1013_v51 = vadd.f32 %v1009_v9, %v1003_v36  ;;  %v1086_v36 = vmul.f32 %v1085_v57, %v1080_v8  ;;  %v1178_v57 = vmul.f32 %v5872_v10, %v5701_v56 }
 0x728   :  { %v1019_v31 = vpop.permute.xlu1 %1018 }
 0x729   :  { %v1028_v45 = vsel %vm126_vm9, %v1019_v31, 0.0  ;;  %v1012_v31 = vadd.f32 %v1008_v52, %v1002_v29  ;;  %v1165_v29 = vstv %s5879_s3  ;;  %v1112_v52 = vmul.f32 %v1111_v11, %v1106_v40  ;;  %s4708_s3 = sld [smem:[#allocation9 + $0x2b]] }
 0x72a   :  { %v1034_v53 = vmul.f32 %v1031_v32, %v1028_v45  ;;  %v1114_v45 = vmul.f32 %v1111_v11, %v1108_v7 }
 0x72c   :  { %v1038_v4 = vadd.f32 %v1034_v53, %v1012_v31  ;;  %v1179_v31 = vmul.f32 %v5872_v10, %v5705_v61 }
 0x72e   :  { %v1092_v42 = vadd.f32 %v1088_v24, %v1038_v4  ;;  %v1196_v4 = vsel %vm126_vm9, %v1185_v49, 0.0 }
 0x730   :  { %v1021_v5 = vpop.permute.xlu1 %1020  ;;  %v1118_v9 = vadd.f32 %v1114_v45, %v1092_v42 }
 0x731   :  { %v5850_v16 = vpop.permute.xlu0 %1150  ;;  %v1029_v21 = vsel %vm126_vm9, %v1021_v5, 0.0  ;;  %v1033_v5 = vmul.f32 %v1031_v32, %v1027_v54 }
 0x732   :  { %v1035_v18 = vmul.f32 %v1031_v32, %v1029_v21  ;;  %v1161_v47 = vsel %vm125_vm8, %v5850_v16, 0.0  ;;  %v1115_v21 = vmul.f32 %v1111_v11, %v1109_v62 }
 0x733   :  { %v1037_v13 = vadd.f32 %v1033_v5, %v1011_v3  ;;  %v1167_v54 = vmul.f32 %v1165_v29, %v1161_v47  ;;  %v1176_v5 = vmul.f32 %v5872_v10, %v5738_v58 }
 0x734   :  { %v1039_v28 = vadd.f32 %v1035_v18, %v1013_v51 }
 0x735   :  { %v1091_v43 = vadd.f32 %v1087_v6, %v1037_v13 }
 0x736   :  { %v1093_v44 = vadd.f32 %v1089_v2, %v1039_v28  ;;  %v1202_v28 = vmul.f32 %v1201_v63, %v1196_v4 }
 0x738   :  { %v5861_v41 = vpop.permute.xlu1 %1148  ;;  %v1119_v18 = vadd.f32 %v1115_v21, %v1093_v44 }
 0x739   :  { %v1015_v26 = vpop.permute.xlu0 %1014  ;;  %v1160_v53 = vsel %vm125_vm8, %v5861_v41, 0.0 }
 0x73a   :  { %v1026_v20 = vsel %vm126_vm9, %v1015_v26, 0.0  ;;  %v1113_v26 = vmul.f32 %v1111_v11, %v1107_v23  ;;  %v1166_v51 = vmul.f32 %v1165_v29, %v1160_v53  ;;  %v1177_v11 = vmul.f32 %v5872_v10, %v5744_v35 }
 0x73b   :  { %v1032_v25 = vmul.f32 %v1031_v32, %v1026_v20 }
 0x73c   :  { %v1117_v27 = vadd.f32 %v1113_v26, %v1091_v43 }
 0x73e   :  { %v1171_v61 = vadd.f32 %v1167_v54, %v1117_v27 }
 0x740   :  { %v979_v17 = vpop.permute.xlu1 %978  ;;  %v1181_v40 = vadd.f32 %v1177_v11, %v1171_v61 }
 0x741   :  { %v1155_v59 = vpop.permute.xlu0 %1154  ;;  %v990_v22 = vsel %vm125_vm8, %v979_v17, 0.0 }
 0x742   :  { %v996_v55 = vmul.f32 %v995_v19, %v990_v22  ;;  %v1163_v60 = vsel %vm125_vm8, %v1155_v59, 0.0 }
 0x743   :  { %v1169_v38 = vmul.f32 %v1165_v29, %v1163_v60 }
 0x744   :  { %v1000_v19 = vadd.f32 %v996_v55, %v946_v14 }
 0x745   :  { %v1173_v41 = vadd.f32 %v1169_v38, %v1119_v18 }
 0x746   :  { %v1010_v1 = vadd.f32 %v1006_v37, %v1000_v19  ;;  %v1191_v37 = vpop.permute.xlu2 %1190 }
 0x747   :  { %v1199_v56 = vsel %vm126_vm9, %v1191_v37, 0.0  ;;  %v1183_v55 = vadd.f32 %v1179_v31, %v1173_v41 }
 0x748   :  { %v1036_v0 = vadd.f32 %v1032_v25, %v1010_v1  ;;  %v1153_v39 = vpop.permute.xlu1 %1152  ;;  %v1205_v13 = vmul.f32 %v1201_v63, %v1199_v56 }
 0x749   :  { %v1162_v32 = vsel %vm125_vm8, %v1153_v39, 0.0  ;;  %v1189_v3 = vpop.permute.xlu0 %1188 }
 0x74a   :  { %v1090_v34 = vadd.f32 %v1086_v36, %v1036_v0  ;;  %v1168_v16 = vmul.f32 %v1165_v29, %v1162_v32  ;;  %v1198_v59 = vsel %vm126_vm9, %v1189_v3, 0.0  ;;  %v5940_v19 = vadd.f32 %v1205_v13, %v1183_v55 }
 0x74b   :  { %v1204_v23 = vmul.f32 %v1201_v63, %v1198_v59  ;;  %v1264_v55 = vstv %s4686_s0  ;;  %s6462_s0 = sld [smem:[#allocation9 + $0x2c]] }
 0x74c   :  { %v1116_v14 = vadd.f32 %v1112_v52, %v1090_v34  ;;  %v1172_v17 = vadd.f32 %v1168_v16, %v1118_v9  ;;  %v1230_v25 = vmul.f32 %v5940_v19, %v5940_v19  ;;  %v1215_v47 = vsel %vm465_vm10, %v5940_v19, 0.0 }
 0x74e   :  { %v1170_v22 = vadd.f32 %v1166_v51, %v1116_v14  ;;  %v1182_v6 = vadd.f32 %v1178_v57, %v1172_v17  ;;  %v1236_v0 = vsel %vm465_vm10, %v1230_v25, 0.0 }
 0x750   :  { %v1187_v58 = vpop.permute.xlu1 %1186  ;;  %v1180_v24 = vadd.f32 %v1176_v5, %v1170_v22  ;;  %v5936_v20 = vadd.f32 %v1204_v23, %v1182_v6 }
 0x751   :  { %v1197_v49 = vsel %vm126_vm9, %v1187_v58, 0.0 }
 0x752   :  { %v1203_v7 = vmul.f32 %v1201_v63, %v1197_v49  ;;  %v5938_v2 = vadd.f32 %v1202_v28, %v1180_v24  ;;  %v1229_v60 = vmul.f32 %v5936_v20, %v5936_v20  ;;  %v1213_v44 = vsel %vm465_vm10, %v5936_v20, 0.0 }
 0x754   :  { %v5942_v62 = vadd.f32 %v1203_v7, %v1181_v40  ;;  %v1227_v35 = vmul.f32 %v5938_v2, %v5938_v2  ;;  %v1210_v8 = vsel %vm465_vm10, %v5938_v2, 0.0  ;;  %v1234_v21 = vsel %vm465_vm10, %v1229_v60, 0.0 }
 0x755   :  { %v1275_v7 = vstv %s4687_s18 }
 0x756   :  { %v1228_v10 = vmul.f32 %v5942_v62, %v5942_v62  ;;  %v1211_v42 = vsel %vm465_vm10, %v5942_v62, 0.0  ;;  %v1231_v1 = vsel %vm465_vm10, %v1227_v35, 0.0 }
 0x757   :  { %v1212_v26 = vadd.f32 %v1211_v42, %v1210_v8 }
 0x758   :  { %v1232_v45 = vsel %vm465_vm10, %v1228_v10, 0.0 }
 0x759   :  { %v1214_v29 = vadd.f32 %v1213_v44, %v1212_v26  ;;  %v1233_v43 = vadd.f32 %v1232_v45, %v1231_v1 }
 0x75b   :  { %v1216_v36 = vadd.f32 %v1215_v47, %v1214_v29  ;;  %v1235_v38 = vadd.f32 %v1234_v21, %v1233_v43 }
 0x75d   :  { %1217 = vadd.xlane.f32.xlu1 %v1216_v36  ;;  %v1237_v39 = vadd.f32 %v1236_v0, %v1235_v38 }
 0x75f   :  { %1238 = vadd.xlane.f32.xlu0 %v1237_v39 }
 0x7d0   :  { %v1218_v52 = vpop.xlane.xlu1 %1217 }
 0x7d1   :  { %v1219_v53 = vrot.slane %v1218_v52, 4 }
 0x7d2   :  { %v1239_v9 = vpop.xlane.xlu0 %1238 }
 0x7d3   :  { %v1220_v32 = vadd.f32 %v1219_v53, %v1218_v52  ;;  %v1240_v54 = vrot.slane %v1239_v9, 4 }
 0x7d5   :  { %v1241_v18 = vadd.f32 %v1240_v54, %v1239_v9  ;;  %v1221_v34 = vrot.slane %v1220_v32, 2 }
 0x7d7   :  { %v1222_v3 = vadd.f32 %v1221_v34, %v1220_v32  ;;  %v1242_v16 = vrot.slane %v1241_v18, 2 }
 0x7d9   :  { %v1223_v57 = vrot.slane %v1222_v3, 1  ;;  %v1243_v31 = vadd.f32 %v1242_v16, %v1241_v18 }
 0x7db   :  { %v1224_v37 = vadd.f32 %v1223_v57, %v1222_v3  ;;  %v1244_v27 = vrot.slane %v1243_v31, 1 }
 0x7dd   :  { %4804 = vpush %v1224_v37  ;;  %v1245_v51 = vadd.f32 %v1244_v27, %v1243_v31 }
 0x7df   :  { %4806 = vpush %v1245_v51 }
 0x80e   :  { %s4805_s16 = spop %4804 }
 0x80f   :  { %v1226_v41 = vstv %s4805_s16  ;;  %s4706_s16 = sld [smem:[#allocation9 + $0x29]] }
 0x810   :  { %v1248_v14 = vmul.f32 0.00048828125, %v1226_v41  ;;  %s4807_s17 = spop %4806 }
 0x811   :  { %v1247_v17 = vstv %s4807_s17  ;;  %s6438_s17 = sld [smem:[#allocation9 + $0x2a]] }
 0x812   :  { %v1249_v5 = vmul.f32 0.00048828125, %v1247_v17  ;;  %v1250_v63 = vmul.f32 %v1248_v14, %v1248_v14  ;;  %v1266_v23 = vsub.f32 %v5938_v2, %v1248_v14  ;;  %v1267_v24 = vsub.f32 %v5942_v62, %v1248_v14 }
 0x813   :  { %v1268_v13 = vsub.f32 %v5936_v20, %v1248_v14  ;;  %v1269_v49 = vsub.f32 %v5940_v19, %v1248_v14 }
 0x814   :  { %v1251_v4 = vsub.f32 %v1249_v5, %v1250_v63 }
 0x816   :  { %v1253_v59 = vadd.f32 1e-05, %v1251_v4 }
 0x818   :  { %4855 = vrsqrt.f32 %v1253_v59  ;;  %vm1260_vm7 = vweird.f32 %v1253_v59 }
 0x81e   :  { %v4856_v56 = vpop.eup %4855 }
 0x81f   :  { %v1255_v61 = vmul.f32 %v4856_v56, %v1253_v59  ;;  %vm1261_vm1 = vweird.f32 %v4856_v56 }
 0x820   :  { %vm1262_vm11 = vmor %vm1260_vm7, %vm1261_vm1 }
 0x821   :  { %v1256_v22 = vmul.f32 %v4856_v56, %v1255_v61 }
 0x823   :  { %v1257_v6 = vmul.f32 0.5, %v1256_v22 }
 0x825   :  { %v1258_v11 = vsub.f32 1.5, %v1257_v6 }
 0x827   :  { %v1259_v28 = vmul.f32 %v4856_v56, %v1258_v11 }
 0x829   :  { %v1263_v58 = vsel %vm1262_vm11, %v4856_v56, %v1259_v28 }
 0x82a   :  { %v1265_v40 = vmul.f32 %v1264_v55, %v1263_v58 }
 0x82c   :  { %v1273_v35 = vmul.f32 %v1269_v49, %v1265_v40  ;;  %v1272_v10 = vmul.f32 %v1268_v13, %v1265_v40  ;;  %v1271_v8 = vmul.f32 %v1267_v24, %v1265_v40  ;;  %v1270_v42 = vmul.f32 %v1266_v23, %v1265_v40 }
 0x82e   :  { %v1279_v60 = vadd.f32 %v1275_v7, %v1273_v35  ;;  %v1278_v26 = vadd.f32 %v1275_v7, %v1272_v10  ;;  %v1277_v44 = vadd.f32 %v1275_v7, %v1271_v8  ;;  %v1276_v25 = vadd.f32 %v1275_v7, %v1270_v42 }
 0x830   :  { %v5968_v1 = vmax.f32 %v1279_v60, 0.0  ;;  %v5970_v2 = vmax.f32 %v1278_v26, 0.0  ;;  %v5972_v45 = vmax.f32 %v1277_v44, 0.0  ;;  %v5974_v62 = vmax.f32 %v1276_v25, 0.0 }
 0x832   :  { %1416 = vrot.lane.b32.xlu0 %v5970_v2, %s5016_s4  ;;  %1413 = vrot.lane.b32.xlu1 %v5972_v45, %s5016_s4  ;;  %v1299_v20 = vrot.slane %v5968_v1, 1  ;;  %v1296_v19 = vrot.slane %v5974_v62, 1  ;;  %v1298_v29 = vrot.slane %v5970_v2, 1  ;;  %v1284_v36 = vrot.slane %v5974_v62, 7 }
 0x833   :  { %1410 = vrot.lane.b32.xlu2 %v5974_v62, %s5016_s4  ;;  %v1285_v38 = vrot.slane %v5972_v45, 7  ;;  %v1286_v39 = vrot.slane %v5970_v2, 7  ;;  %v1287_v53 = vrot.slane %v5968_v1, 7  ;;  %v1297_v32 = vrot.slane %v5972_v45, 1 }
 0x834   :  { %v1303_v43 = vsel %vm183_vm3, %v1299_v20, %v1296_v19  ;;  %v5989_v47 = vsel %vm183_vm3, %v1298_v29, %v1299_v20 }
 0x835   :  { %v5993_v21 = vsel %vm124_vm4, %v1303_v43, 0.0  ;;  %v6005_v0 = vsel %vm170_vm2, %v1284_v36, %v1285_v38  ;;  %v6012_v52 = vsel %vm170_vm2, %v1285_v38, %v1286_v39  ;;  %v6019_v9 = vsel %vm170_vm2, %v1286_v39, %v1287_v53 }
 0x836   :  { %v6026_v54 = vsel %vm183_vm3, %v1296_v19, %v1297_v32  ;;  %v6032_v18 = vsel %vm183_vm3, %v1297_v32, %v1298_v29  ;;  %v1291_v34 = vsel %vm170_vm2, %v1287_v53, %v1284_v36 }
 0x837   :  { %v6040_v3 = vsel %vm117_vm5, %v1291_v34, 0.0 }
 0x83a   :  { %1496 = vrot.lane.b32.xlu0 %v5989_v47, %s5016_s4  ;;  %1499 = vrot.lane.b32.xlu1 %v5993_v21, %s5016_s4 }
 0x83b   :  { %1419 = vrot.lane.b32.xlu2 %v5968_v1, %s5016_s4 }
 0x843   :  { %1323 = vrot.lane.b32.xlu2 %v6005_v0, %s5016_s4 }
 0x84b   :  { %1326 = vrot.lane.b32.xlu2 %v6012_v52, %s5016_s4 }
 0x853   :  { %1329 = vrot.lane.b32.xlu2 %v6019_v9, %s5016_s4 }
 0x85b   :  { %1490 = vrot.lane.b32.xlu2 %v6026_v54, %s5016_s4 }
 0x863   :  { %1493 = vrot.lane.b32.xlu2 %v6032_v18, %s5016_s4 }
 0x86b   :  { %1320 = vrot.lane.b32.xlu2 %v6040_v3, %s5016_s4 }
 0x88d   :  { %v1411_v16 = vpop.permute.xlu2 %1410 }
 0x88e   :  { %v1412_v57 = vsel %vm204_vm6, %v1411_v16, %v5974_v62 }
 0x88f   :  { %1422 = vrot.lane.b32.xlu0 %v1412_v57, %s5016_s4 }
 0x895   :  { %v1420_v31 = vpop.permute.xlu2 %1419 }
 0x896   :  { %v1421_v37 = vsel %vm204_vm6, %v1420_v31, %v5968_v1 }
 0x897   :  { %1428 = vrot.lane.b32.xlu0 %v1421_v37, %s5016_s4 }
 0x89d   :  { %v1324_v27 = vpop.permute.xlu2 %1323 }
 0x89e   :  { %v1325_v51 = vsel %vm204_vm6, %v1324_v27, %v6005_v0 }
 0x89f   :  { %1334 = vrot.lane.b32.xlu0 %v1325_v51, %s5016_s4 }
 0x8a4   :  { %v1417_v41 = vpop.permute.xlu0 %1416  ;;  %v1414_v14 = vpop.permute.xlu1 %1413 }
 0x8a5   :  { %v1418_v17 = vsel %vm204_vm6, %v1417_v41, %v5970_v2  ;;  %v1415_v5 = vsel %vm204_vm6, %v1414_v14, %v5972_v45  ;;  %v1327_v63 = vpop.permute.xlu2 %1326 }
 0x8a6   :  { %1424 = vrot.lane.b32.xlu1 %v1415_v5, %s5016_s4  ;;  %1426 = vrot.lane.b32.xlu2 %v1418_v17, %s5016_s4  ;;  %v1328_v59 = vsel %vm204_vm6, %v1327_v63, %v6012_v52 }
 0x8ac   :  { %v1497_v4 = vpop.permute.xlu0 %1496  ;;  %v1500_v28 = vpop.permute.xlu1 %1499 }
 0x8ad   :  { %v1498_v56 = vsel %vm204_vm6, %v1497_v4, %v5989_v47  ;;  %v1330_v61 = vpop.permute.xlu2 %1329  ;;  %v1501_v23 = vsel %vm204_vm6, %v1500_v28, %v5993_v21 }
 0x8ae   :  { %v1331_v22 = vsel %vm204_vm6, %v1330_v61, %v6019_v9  ;;  %1506 = vrot.lane.b32.xlu0 %v1498_v56, %s5016_s4  ;;  %1336 = vrot.lane.b32.xlu1 %v1328_v59, %s5016_s4 }
 0x8af   :  { %1338 = vrot.lane.b32.xlu2 %v1331_v22, %s5016_s4 }
 0x8b5   :  { %v1491_v6 = vpop.permute.xlu2 %1490 }
 0x8b6   :  { %v1492_v11 = vsel %vm204_vm6, %v1491_v6, %v6026_v54 }
 0x8b7   :  { %1502 = vrot.lane.b32.xlu1 %v1492_v11, %s5016_s4  ;;  %v1310_v11 = vstv %s4689_s19 }
 0x8bd   :  { %v1494_v55 = vpop.permute.xlu2 %1493 }
 0x8be   :  { %v1495_v58 = vsel %vm204_vm6, %v1494_v55, %v6032_v18  ;;  %v1311_v55 = vmul.f32 %v1310_v11, %v5974_v62 }
 0x8bf   :  { %1508 = vrot.lane.b32.xlu1 %v1501_v23, %s5016_s4  ;;  %1504 = vrot.lane.b32.xlu2 %v1495_v58, %s5016_s4  ;;  %v1315_v23 = vstv %s4688_s20  ;;  %v1365_v58 = vstv %s4690_s21  ;;  %s4710_s20 = sld [smem:[#allocation11 + $0x4]] }
 0x8c0   :  { %s4711_s21 = sld [smem:[#allocation13 + $0x4]] }
 0x8c5   :  { %v1321_v24 = vpop.permute.xlu2 %1320 }
 0x8c6   :  { %v1322_v13 = vsel %vm204_vm6, %v1321_v24, %v6040_v3 }
 0x8c7   :  { %1332 = vrot.lane.b32.xlu2 %v1322_v13, %s5016_s4  ;;  %v1316_v13 = vadd.f32 %v1315_v23, %v1311_v55 }
 0x900   :  { %v1427_v7 = vpop.permute.xlu2 %1426 }
 0x901   :  { %v1423_v49 = vpop.permute.xlu0 %1422  ;;  %v1432_v35 = vsel %vm204_vm6, %v1427_v7, %v5970_v2 }
 0x902   :  { %v1430_v40 = vsel %vm204_vm6, %v1423_v49, %v5974_v62 }
 0x903   :  { %1438 = vrot.lane.b32.xlu0 %v1430_v40, %s5017_s5 }
 0x909   :  { %v1429_v10 = vpop.permute.xlu0 %1428  ;;  %v1339_v42 = vpop.permute.xlu2 %1338 }
 0x90a   :  { %v1433_v8 = vsel %vm204_vm6, %v1429_v10, %v5968_v1  ;;  %v1343_v29 = vsel %vm204_vm6, %v1339_v42, %v6019_v9  ;;  %v1314_v42 = vmul.f32 %v1310_v11, %v5968_v1 }
 0x90b   :  { %1442 = vrot.lane.b32.xlu0 %v1432_v35, %s5017_s5 }
 0x911   :  { %v1335_v60 = vpop.permute.xlu0 %1334 }
 0x912   :  { %v1341_v25 = vsel %vm204_vm6, %v1335_v60, %v6005_v0 }
 0x913   :  { %1444 = vrot.lane.b32.xlu0 %v1433_v8, %s5017_s5 }
 0x918   :  { %v1425_v26 = vpop.permute.xlu1 %1424 }
 0x919   :  { %v1431_v44 = vsel %vm204_vm6, %v1425_v26, %v5972_v45  ;;  %v1505_v20 = vpop.permute.xlu2 %1504  ;;  %v1312_v26 = vmul.f32 %v1310_v11, %v5972_v45 }
 0x91a   :  { %1440 = vrot.lane.b32.xlu1 %v1431_v44, %s5017_s5  ;;  %1466 = vrot.lane.b32.xlu2 %v1431_v44, %s5018_s26  ;;  %v1511_v43 = vsel %vm204_vm6, %v1505_v20, %v6032_v18  ;;  %v1401_v20 = vstv %s4692_s23  ;;  %s4712_s23 = sld [smem:[#allocation10 + $0x5]] }
 0x91b   :  { %1350 = vrot.lane.b32.xlu0 %v1341_v25, %s5017_s5 }
 0x920   :  { %v1337_v19 = vpop.permute.xlu1 %1336  ;;  %v1507_v16 = vpop.permute.xlu0 %1506 }
 0x921   :  { %v1333_v36 = vpop.permute.xlu2 %1332  ;;  %v1342_v38 = vsel %vm204_vm6, %v1337_v19, %v6012_v52  ;;  %v1512_v31 = vsel %vm204_vm6, %v1507_v16, %v5989_v47  ;;  %v1455_v19 = vstv %s4693_s1  ;;  %s4714_s1 = sld [smem:[#allocation9 + $0x2d]] }
 0x922   :  { %1464 = vrot.lane.b32.xlu1 %v1430_v40, %s5018_s26  ;;  %1354 = vrot.lane.b32.xlu2 %v1343_v29, %s5017_s5  ;;  %v1340_v53 = vsel %vm204_vm6, %v1333_v36, %v6040_v3  ;;  %v1375_v40 = vstv %s4691_s22  ;;  %s4713_s22 = sld [smem:[#allocation9 + $0x31]] }
 0x923   :  { %1520 = vrot.lane.b32.xlu0 %v1511_v43, %s5017_s5  ;;  %v1376_v10 = vmul.f32 %v1375_v40, %v6040_v3  ;;  %v1313_v3 = vmul.f32 %v1310_v11, %v5970_v2  ;;  %v1378_v16 = vmul.f32 %v1375_v40, %v6012_v52  ;;  %v1379_v55 = vmul.f32 %v1375_v40, %v6019_v9 }
 0x929   :  { %v1503_v39 = vpop.permute.xlu1 %1502 }
 0x92a   :  { %1468 = vrot.lane.b32.xlu1 %v1432_v35, %s5018_s26  ;;  %1388 = vrot.lane.b32.xlu2 %v1342_v38, %s5018_s26  ;;  %v1510_v57 = vsel %vm204_vm6, %v1503_v39, %v6026_v54  ;;  %v1319_v39 = vadd.f32 %v1315_v23, %v1314_v42 }
 0x92b   :  { %1384 = vrot.lane.b32.xlu0 %v1340_v53, %s5018_s26 }
 0x931   :  { %v1509_v32 = vpop.permute.xlu1 %1508 }
 0x932   :  { %v1513_v34 = vsel %vm204_vm6, %v1509_v32, %v5993_v21  ;;  %1470 = vrot.lane.b32.xlu1 %v1433_v8, %s5018_s26  ;;  %1390 = vrot.lane.b32.xlu2 %v1343_v29, %s5018_s26  ;;  %v1317_v32 = vadd.f32 %v1315_v23, %v1312_v26 }
 0x933   :  { %1524 = vrot.lane.b32.xlu0 %v1513_v34, %s5017_s5 }
 0x93a   :  { %1352 = vrot.lane.b32.xlu1 %v1342_v38, %s5017_s5  ;;  %1518 = vrot.lane.b32.xlu2 %v1510_v57, %s5017_s5  ;;  %v1377_v38 = vmul.f32 %v1375_v40, %v6005_v0 }
 0x93b   :  { %1558 = vrot.lane.b32.xlu0 %v1512_v31, %s5018_s26 }
 0x942   :  { %1386 = vrot.lane.b32.xlu1 %v1341_v25, %s5018_s26  ;;  %1348 = vrot.lane.b32.xlu2 %v1340_v53, %s5017_s5 }
 0x94a   :  { %1554 = vrot.lane.b32.xlu1 %v1510_v57, %s5018_s26  ;;  %1522 = vrot.lane.b32.xlu2 %v1512_v31, %s5017_s5 }
 0x952   :  { %1560 = vrot.lane.b32.xlu1 %v1513_v34, %s5018_s26  ;;  %1556 = vrot.lane.b32.xlu2 %v1511_v43, %s5018_s26  ;;  %v1318_v34 = vadd.f32 %v1315_v23, %v1313_v3  ;;  %v1481_v23 = vstv %s6142_s24  ;;  %s4715_s24 = sld [smem:[#allocation9 + $0x2e]] }
 0x974   :  { %v6128_v37 = vpop.permute.xlu2 %1466 }
 0x975   :  { %v1439_v27 = vpop.permute.xlu0 %1438 }
 0x976   :  { %v1450_v29 = vsel %vm125_vm8, %v1439_v27, 0.0 }
 0x977   :  { %v1456_v57 = vmul.f32 %v1455_v19, %v1450_v29  ;;  %v1477_v29 = vsel %vm126_vm9, %v6128_v37, 0.0 }
 0x97c   :  { %v1355_v51 = vpop.permute.xlu2 %1354 }
 0x97d   :  { %v1443_v41 = vpop.permute.xlu0 %1442  ;;  %v1363_v8 = vsel %vm125_vm8, %v1355_v51, 0.0 }
 0x97e   :  { %v1369_v25 = vmul.f32 %v1365_v58, %v1363_v8  ;;  %v1452_v0 = vsel %vm125_vm8, %v1443_v41, 0.0 }
 0x980   :  { %v1373_v31 = vadd.f32 %v1369_v25, %v1319_v39  ;;  %v1545_v25 = vstv %s6160_s27  ;;  %s4717_s27 = sld [smem:[#allocation9 + $0x30]] }
 0x981   :  { %v1548_v37 = vmul.f32 %v1545_v25, %v5989_v47 }
 0x984   :  { %v1389_v14 = vpop.permute.xlu2 %1388 }
 0x985   :  { %v6130_v17 = vpop.permute.xlu0 %1444  ;;  %v1398_v27 = vsel %vm126_vm9, %v1389_v14, 0.0 }
 0x98c   :  { %v6132_v5 = vpop.permute.xlu1 %1440  ;;  %v1391_v63 = vpop.permute.xlu2 %1390 }
 0x98d   :  { %v1351_v4 = vpop.permute.xlu0 %1350  ;;  %v1451_v9 = vsel %vm125_vm8, %v6132_v5, 0.0 }
 0x98e   :  { %v1361_v62 = vsel %vm125_vm8, %v1351_v4, 0.0  ;;  %v1399_v4 = vsel %vm126_vm9, %v1391_v63, 0.0  ;;  %v1453_v63 = vsel %vm125_vm8, %v6130_v17, 0.0 }
 0x98f   :  { %v1367_v1 = vmul.f32 %v1365_v58, %v1361_v62 }
 0x991   :  { %v1371_v51 = vadd.f32 %v1367_v1, %v1317_v32  ;;  %v1457_v1 = vmul.f32 %v1455_v19, %v1451_v9 }
 0x994   :  { %v1465_v59 = vpop.permute.xlu1 %1464  ;;  %v6134_v56 = vpop.permute.xlu2 %1518 }
 0x995   :  { %v6136_v61 = vpop.permute.xlu0 %1520  ;;  %v1476_v52 = vsel %vm126_vm9, %v1465_v59, 0.0  ;;  %v1530_v42 = vsel %vm125_vm8, %v6134_v56, 0.0 }
 0x996   :  { %v1482_v59 = vmul.f32 %v1481_v23, %v1476_v52 }
 0x99c   :  { %v1469_v22 = vpop.permute.xlu1 %1468  ;;  %v1349_v6 = vpop.permute.xlu2 %1348 }
 0x99d   :  { %v1360_v28 = vsel %vm125_vm8, %v1349_v6, 0.0  ;;  %v1385_v7 = vpop.permute.xlu0 %1384  ;;  %v1478_v14 = vsel %vm126_vm9, %v1469_v22, 0.0  ;;  %v1381_v22 = vadd.f32 %v1377_v38, %v1371_v51 }
 0x99e   :  { %v1366_v24 = vmul.f32 %v1365_v58, %v1360_v28  ;;  %v1396_v60 = vsel %vm126_vm9, %v1385_v7, 0.0  ;;  %v1458_v7 = vmul.f32 %v1455_v19, %v1452_v0  ;;  %v1484_v62 = vmul.f32 %v1481_v23, %v1478_v14 }
 0x99f   :  { %v1402_v43 = vmul.f32 %v1401_v20, %v1396_v60 }
 0x9a0   :  { %v1370_v35 = vadd.f32 %v1366_v24, %v1316_v13  ;;  %v1404_v24 = vmul.f32 %v1401_v20, %v1398_v27  ;;  %v1547_v27 = vmul.f32 %v1545_v25, %v6032_v18 }
 0x9a2   :  { %v1380_v44 = vadd.f32 %v1376_v10, %v1370_v35  ;;  %v1383_v35 = vadd.f32 %v1379_v55, %v1373_v31  ;;  %v1405_v10 = vmul.f32 %v1401_v20, %v1399_v4  ;;  %v1546_v31 = vmul.f32 %v1545_v25, %v6026_v54 }
 0x9a3   :  { %v1571_v4 = vstv %s6182_s28  ;;  %s6709_s28 = sld [smem:[#allocation9 + $0x32]] }
 0x9a4   :  { %v1471_v49 = vpop.permute.xlu1 %1470  ;;  %v1406_v45 = vadd.f32 %v1402_v43, %v1380_v44  ;;  %v1523_v11 = vpop.permute.xlu2 %1522  ;;  %v1409_v56 = vadd.f32 %v1405_v10, %v1383_v35 }
 0x9a5   :  { %v1525_v6 = vpop.permute.xlu0 %1524  ;;  %v1532_v17 = vsel %vm125_vm8, %v1523_v11, 0.0  ;;  %v1479_v5 = vsel %vm126_vm9, %v1471_v49, 0.0  ;;  %v1531_v49 = vsel %vm125_vm8, %v6136_v61, 0.0 }
 0x9a6   :  { %v1460_v13 = vadd.f32 %v1456_v57, %v1406_v45  ;;  %v1485_v32 = vmul.f32 %v1481_v23, %v1479_v5 }
 0x9a8   :  { %v1486_v3 = vadd.f32 %v1482_v59, %v1460_v13  ;;  %v1549_v59 = vmul.f32 %v1545_v25, %v5993_v21 }
 0x9ac   :  { %v1353_v36 = vpop.permute.xlu1 %1352 }
 0x9ad   :  { %v1362_v53 = vsel %vm125_vm8, %v1353_v36, 0.0  ;;  %v1559_v45 = vpop.permute.xlu0 %1558 }
 0x9ae   :  { %v1368_v2 = vmul.f32 %v1365_v58, %v1362_v53  ;;  %v1535_v58 = vstv %s6149_s25  ;;  %v1459_v53 = vmul.f32 %v1455_v19, %v1453_v63  ;;  %v1533_v19 = vsel %vm125_vm8, %v1525_v6, 0.0  ;;  %s4716_s25 = sld [smem:[#allocation9 + $0x2f]] }
 0x9af   :  { %v1536_v43 = vmul.f32 %v1535_v58, %v1530_v42  ;;  %v1538_v36 = vmul.f32 %v1535_v58, %v1532_v17  ;;  %v1537_v51 = vmul.f32 %v1535_v58, %v1531_v49  ;;  %v1568_v55 = vsel %vm126_vm9, %v1559_v45, 0.0 }
 0x9b0   :  { %v1372_v28 = vadd.f32 %v1368_v2, %v1318_v34  ;;  %v1557_v2 = vpop.permute.xlu2 %1556  ;;  %v1463_v0 = vadd.f32 %v1459_v53, %v1409_v56  ;;  %v1539_v14 = vmul.f32 %v1535_v58, %v1533_v19  ;;  %v1574_v13 = vmul.f32 %v1571_v4, %v1568_v55 }
 0x9b1   :  { %v1540_v57 = vadd.f32 %v1536_v43, %v1486_v3 }
 0x9b2   :  { %v1382_v41 = vadd.f32 %v1378_v16, %v1372_v28  ;;  %v1489_v28 = vadd.f32 %v1485_v32, %v1463_v0 }
 0x9b3   :  { %v1550_v52 = vadd.f32 %v1546_v31, %v1540_v57 }
 0x9b4   :  { %v1408_v40 = vadd.f32 %v1404_v24, %v1382_v41  ;;  %v1387_v8 = vpop.permute.xlu1 %1386  ;;  %v1543_v63 = vadd.f32 %v1539_v14, %v1489_v28 }
 0x9b5   :  { %v1397_v60 = vsel %vm126_vm9, %v1387_v8, 0.0 }
 0x9b6   :  { %v1462_v26 = vadd.f32 %v1458_v7, %v1408_v40  ;;  %v1403_v44 = vmul.f32 %v1401_v20, %v1397_v60  ;;  %v1483_v20 = vmul.f32 %v1481_v23, %v1477_v29  ;;  %v1567_v23 = vsel %vm126_vm9, %v1557_v2, 0.0 }
 0x9b7   :  { %v1573_v6 = vmul.f32 %v1571_v4, %v1567_v23  ;;  %v1553_v42 = vadd.f32 %v1549_v59, %v1543_v63 }
 0x9b8   :  { %v1488_v38 = vadd.f32 %v1484_v62, %v1462_v26  ;;  %v1407_v39 = vadd.f32 %v1403_v44, %v1381_v22 }
 0x9ba   :  { %v1542_v34 = vadd.f32 %v1538_v36, %v1488_v38  ;;  %v1461_v16 = vadd.f32 %v1457_v1, %v1407_v39 }
 0x9bc   :  { %v1487_v61 = vadd.f32 %v1483_v20, %v1461_v16  ;;  %v1555_v11 = vpop.permute.xlu1 %1554  ;;  %v1552_v54 = vadd.f32 %v1548_v37, %v1542_v34 }
 0x9bd   :  { %v1566_v47 = vsel %vm126_vm9, %v1555_v11, 0.0 }
 0x9be   :  { %v1541_v18 = vadd.f32 %v1537_v51, %v1487_v61  ;;  %v1572_v24 = vmul.f32 %v1571_v4, %v1566_v47  ;;  %v6214_v35 = vadd.f32 %v1574_v13, %v1552_v54 }
 0x9c0   :  { %v1551_v41 = vadd.f32 %v1547_v27, %v1541_v18  ;;  %v6212_v7 = vadd.f32 %v1572_v24, %v1550_v52  ;;  %v1599_v5 = vmul.f32 %v6214_v35, %v6214_v35  ;;  %v1583_v25 = vsel %vm465_vm10, %v6214_v35, 0.0 }
 0x9c2   :  { %v1597_v10 = vmul.f32 %v6212_v7, %v6212_v7  ;;  %v6218_v9 = vadd.f32 %v1573_v6, %v1551_v41  ;;  %v1580_v8 = vsel %vm465_vm10, %v6212_v7, 0.0  ;;  %v1604_v43 = vsel %vm465_vm10, %v1599_v5, 0.0 }
 0x9c3   :  { %v1634_v6 = vstv %s4698_s8  ;;  %s6749_s8 = sld [smem:[#allocation9 + $0x35]] }
 0x9c4   :  { %v1561_v40 = vpop.permute.xlu1 %1560  ;;  %v1581_v58 = vsel %vm465_vm10, %v6218_v9, 0.0  ;;  %v1598_v22 = vmul.f32 %v6218_v9, %v6218_v9  ;;  %v1601_v21 = vsel %vm465_vm10, %v1597_v10, 0.0 }
 0x9c5   :  { %v1569_v62 = vsel %vm126_vm9, %v1561_v40, 0.0  ;;  %v1582_v17 = vadd.f32 %v1581_v58, %v1580_v8  ;;  %v1645_v58 = vstv %s4699_s9 }
 0x9c6   :  { %v1575_v60 = vmul.f32 %v1571_v4, %v1569_v62  ;;  %v1602_v26 = vsel %vm465_vm10, %v1598_v22, 0.0 }
 0x9c7   :  { %v1603_v44 = vadd.f32 %v1602_v26, %v1601_v21  ;;  %v1584_v29 = vadd.f32 %v1583_v25, %v1582_v17 }
 0x9c8   :  { %v1579_v3 = vadd.f32 %v1575_v60, %v1553_v42 }
 0x9c9   :  { %v1605_v38 = vadd.f32 %v1604_v43, %v1603_v44 }
 0x9ca   :  { %v1585_v1 = vsel %vm465_vm10, %v1579_v3, 0.0  ;;  %v1600_v56 = vmul.f32 %v1579_v3, %v1579_v3 }
 0x9cb   :  { %v1586_v36 = vadd.f32 %v1585_v1, %v1584_v29 }
 0x9cc   :  { %v1606_v39 = vsel %vm465_vm10, %v1600_v56, 0.0 }
 0x9cd   :  { %1587 = vadd.xlane.f32.xlu2 %v1586_v36  ;;  %v1607_v53 = vadd.f32 %v1606_v39, %v1605_v38 }
 0x9cf   :  { %1608 = vadd.xlane.f32.xlu0 %v1607_v53 }
 0xa40   :  { %v1588_v49 = vpop.xlane.xlu2 %1587 }
 0xa41   :  { %v1589_v32 = vrot.slane %v1588_v49, 4 }
 0xa42   :  { %v1609_v20 = vpop.xlane.xlu0 %1608 }
 0xa43   :  { %v1590_v45 = vadd.f32 %v1589_v32, %v1588_v49  ;;  %v1610_v34 = vrot.slane %v1609_v20, 4 }
 0xa45   :  { %v1611_v2 = vadd.f32 %v1610_v34, %v1609_v20  ;;  %v1591_v16 = vrot.slane %v1590_v45, 2 }
 0xa47   :  { %v1592_v57 = vadd.f32 %v1591_v16, %v1590_v45  ;;  %v1612_v37 = vrot.slane %v1611_v2, 2 }
 0xa49   :  { %v1593_v31 = vrot.slane %v1592_v57, 1  ;;  %v1613_v27 = vadd.f32 %v1612_v37, %v1611_v2 }
 0xa4b   :  { %v1594_v0 = vadd.f32 %v1593_v31, %v1592_v57  ;;  %v1614_v51 = vrot.slane %v1613_v27, 1 }
 0xa4d   :  { %4808 = vpush %v1594_v0  ;;  %v1615_v19 = vadd.f32 %v1614_v51, %v1613_v27 }
 0xa4f   :  { %4810 = vpush %v1615_v19 }
 0xa7e   :  { %s4809_s29 = spop %4808 }
 0xa7f   :  { %v1596_v4 = vstv %s4809_s29  ;;  %s6714_s29 = sld [smem:[#allocation9 + $0x33]] }
 0xa80   :  { %v1618_v61 = vmul.f32 0.00048828125, %v1596_v4  ;;  %s4811_s30 = spop %4810 }
 0xa81   :  { %v1617_v11 = vstv %s4811_s30  ;;  %s6724_s30 = sld [smem:[#allocation9 + $0x34]] }
 0xa82   :  { %v1619_v28 = vmul.f32 0.00048828125, %v1617_v11  ;;  %v1620_v55 = vmul.f32 %v1618_v61, %v1618_v61  ;;  %v1636_v41 = vsub.f32 %v6212_v7, %v1618_v61  ;;  %v1637_v10 = vsub.f32 %v6218_v9, %v1618_v61 }
 0xa83   :  { %v1638_v59 = vsub.f32 %v6214_v35, %v1618_v61  ;;  %v1639_v40 = vsub.f32 %v1579_v3, %v1618_v61 }
 0xa84   :  { %v1621_v23 = vsub.f32 %v1619_v28, %v1620_v55 }
 0xa86   :  { %v1623_v47 = vadd.f32 1e-05, %v1621_v23 }
 0xa88   :  { %4857 = vrsqrt.f32 %v1623_v47  ;;  %vm1630_vm13 = vweird.f32 %v1623_v47 }
 0xa8e   :  { %v4858_v54 = vpop.eup %4857 }
 0xa8f   :  { %v1625_v18 = vmul.f32 %v4858_v54, %v1623_v47  ;;  %vm1631_vm12 = vweird.f32 %v4858_v54 }
 0xa90   :  { %vm1632_vm14 = vmor %vm1630_vm13, %vm1631_vm12 }
 0xa91   :  { %v1626_v52 = vmul.f32 %v4858_v54, %v1625_v18 }
 0xa93   :  { %v1627_v24 = vmul.f32 0.5, %v1626_v52 }
 0xa95   :  { %v1628_v14 = vsub.f32 1.5, %v1627_v24 }
 0xa97   :  { %v1629_v13 = vmul.f32 %v4858_v54, %v1628_v14 }
 0xa99   :  { %v1633_v63 = vsel %vm1632_vm14, %v4858_v54, %v1629_v13 }
 0xa9a   :  { %v1635_v8 = vmul.f32 %v1634_v6, %v1633_v63 }
 0xa9c   :  { %v1640_v22 = vmul.f32 %v1636_v41, %v1635_v8  ;;  %v1641_v42 = vmul.f32 %v1637_v10, %v1635_v8  ;;  %v1642_v62 = vmul.f32 %v1638_v59, %v1635_v8  ;;  %v1643_v17 = vmul.f32 %v1639_v40, %v1635_v8 }
 0xa9e   :  { %v1646_v60 = vadd.f32 %v1645_v58, %v1640_v22  ;;  %v1647_v5 = vadd.f32 %v1645_v58, %v1641_v42  ;;  %v1648_v21 = vadd.f32 %v1645_v58, %v1642_v62  ;;  %v1649_v26 = vadd.f32 %v1645_v58, %v1643_v17 }
 0xaa0   :  { %v1650_v44 = vadd.f32 %v1646_v60, %v5686_v48  ;;  %v1651_v7 = vadd.f32 %v1647_v5, %v5684_v46  ;;  %v1652_v25 = vadd.f32 %v1648_v21, %v5682_v12  ;;  %v1653_v9 = vadd.f32 %v1649_v26, %v5680_v33 }
 0xaa2   :  { %v6245_v35 = vmax.f32 %v1653_v9, 0.0  ;;  %v6247_v3 = vmax.f32 %v1652_v25, 0.0  ;;  %v6249_v29 = vmax.f32 %v1651_v7, 0.0  ;;  %v6251_v1 = vmax.f32 %v1650_v44, 0.0 }
 0xaa4   :  { %1790 = vrot.lane.b32.xlu0 %v6247_v3, %s5016_s4  ;;  %1787 = vrot.lane.b32.xlu2 %v6249_v29, %s5016_s4  ;;  %v1673_v46 = vrot.slane %v6245_v35, 1  ;;  %v1670_v12 = vrot.slane %v6251_v1, 1  ;;  %v1672_v33 = vrot.slane %v6247_v3, 1  ;;  %v1658_v36 = vrot.slane %v6251_v1, 7 }
 0xaa5   :  { %1784 = vrot.lane.b32.xlu1 %v6251_v1, %s5016_s4  ;;  %v1659_v38 = vrot.slane %v6249_v29, 7  ;;  %v1660_v53 = vrot.slane %v6247_v3, 7  ;;  %v1661_v32 = vrot.slane %v6245_v35, 7  ;;  %v1671_v45 = vrot.slane %v6249_v29, 1 }
 0xaa6   :  { %v1677_v48 = vsel %vm183_vm3, %v1673_v46, %v1670_v12  ;;  %v6266_v56 = vsel %vm183_vm3, %v1672_v33, %v1673_v46 }
 0xaa7   :  { %v6270_v43 = vsel %vm124_vm4, %v1677_v48, 0.0  ;;  %v6282_v39 = vsel %vm170_vm2, %v1658_v36, %v1659_v38  ;;  %v6289_v49 = vsel %vm170_vm2, %v1659_v38, %v1660_v53  ;;  %v6296_v20 = vsel %vm170_vm2, %v1660_v53, %v1661_v32 }
 0xaa8   :  { %v6303_v34 = vsel %vm183_vm3, %v1670_v12, %v1671_v45  ;;  %v6309_v2 = vsel %vm183_vm3, %v1671_v45, %v1672_v33  ;;  %v1665_v16 = vsel %vm170_vm2, %v1661_v32, %v1658_v36 }
 0xaa9   :  { %v6317_v57 = vsel %vm117_vm5, %v1665_v16, 0.0 }
 0xaac   :  { %1870 = vrot.lane.b32.xlu0 %v6266_v56, %s5016_s4  ;;  %1873 = vrot.lane.b32.xlu2 %v6270_v43, %s5016_s4 }
 0xaad   :  { %1793 = vrot.lane.b32.xlu1 %v6245_v35, %s5016_s4 }
 0xab5   :  { %1697 = vrot.lane.b32.xlu1 %v6282_v39, %s5016_s4 }
 0xabd   :  { %1700 = vrot.lane.b32.xlu1 %v6289_v49, %s5016_s4 }
 0xac5   :  { %1703 = vrot.lane.b32.xlu1 %v6296_v20, %s5016_s4 }
 0xacd   :  { %1864 = vrot.lane.b32.xlu1 %v6303_v34, %s5016_s4 }
 0xad5   :  { %1867 = vrot.lane.b32.xlu1 %v6309_v2, %s5016_s4 }
 0xadd   :  { %1694 = vrot.lane.b32.xlu1 %v6317_v57, %s5016_s4 }
 0xafe   :  { %v1788_v37 = vpop.permute.xlu2 %1787 }
 0xaff   :  { %v1789_v31 = vsel %vm204_vm6, %v1788_v37, %v6249_v29 }
 0xb00   :  { %1798 = vrot.lane.b32.xlu2 %v1789_v31, %s5016_s4 }
 0xb06   :  { %v1874_v13 = vpop.permute.xlu2 %1873 }
 0xb07   :  { %v1875_v41 = vsel %vm204_vm6, %v1874_v13, %v6270_v43 }
 0xb16   :  { %v1791_v27 = vpop.permute.xlu0 %1790 }
 0xb17   :  { %v1792_v0 = vsel %vm204_vm6, %v1791_v27, %v6247_v3  ;;  %v1785_v51 = vpop.permute.xlu1 %1784 }
 0xb18   :  { %v1786_v19 = vsel %vm204_vm6, %v1785_v51, %v6251_v1  ;;  %1800 = vrot.lane.b32.xlu1 %v1792_v0, %s5016_s4 }
 0xb19   :  { %1796 = vrot.lane.b32.xlu0 %v1786_v19, %s5016_s4 }
 0xb1e   :  { %v1871_v55 = vpop.permute.xlu0 %1870 }
 0xb1f   :  { %v1794_v4 = vpop.permute.xlu1 %1793  ;;  %v1872_v47 = vsel %vm204_vm6, %v1871_v55, %v6266_v56 }
 0xb20   :  { %v1795_v61 = vsel %vm204_vm6, %v1794_v4, %v6245_v35 }
 0xb21   :  { %1802 = vrot.lane.b32.xlu0 %v1795_v61, %s5016_s4 }
 0xb27   :  { %v1698_v11 = vpop.permute.xlu1 %1697 }
 0xb28   :  { %v1699_v28 = vsel %vm204_vm6, %v1698_v11, %v6282_v39 }
 0xb29   :  { %1708 = vrot.lane.b32.xlu0 %v1699_v28, %s5016_s4 }
 0xb2f   :  { %v1701_v23 = vpop.permute.xlu1 %1700 }
 0xb30   :  { %v1702_v54 = vsel %vm204_vm6, %v1701_v23, %v6289_v49 }
 0xb31   :  { %1880 = vrot.lane.b32.xlu0 %v1872_v47, %s5016_s4  ;;  %1710 = vrot.lane.b32.xlu2 %v1702_v54, %s5016_s4  ;;  %v1684_v54 = vstv %s4701_s10 }
 0xb32   :  { %v1686_v13 = vmul.f32 %v1684_v54, %v6249_v29 }
 0xb37   :  { %v1704_v18 = vpop.permute.xlu1 %1703 }
 0xb38   :  { %v1705_v52 = vsel %vm204_vm6, %v1704_v18, %v6296_v20  ;;  %v1739_v18 = vstv %s4702_s11  ;;  %s4722_s11 = sld [smem:[#allocation11 + $0x5]] }
 0xb39   :  { %1712 = vrot.lane.b32.xlu1 %v1705_v52, %s5016_s4 }
 0xb3f   :  { %v1865_v24 = vpop.permute.xlu1 %1864 }
 0xb40   :  { %v1866_v14 = vsel %vm204_vm6, %v1865_v24, %v6303_v34 }
 0xb41   :  { %1876 = vrot.lane.b32.xlu2 %v1866_v14, %s5016_s4  ;;  %v1687_v14 = vmul.f32 %v1684_v54, %v6247_v3 }
 0xb47   :  { %v1868_v6 = vpop.permute.xlu1 %1867 }
 0xb48   :  { %v1869_v63 = vsel %vm204_vm6, %v1868_v6, %v6309_v2 }
 0xb49   :  { %1882 = vrot.lane.b32.xlu2 %v1875_v41, %s5016_s4  ;;  %1878 = vrot.lane.b32.xlu1 %v1869_v63, %s5016_s4  ;;  %v1689_v41 = vstv %s4700_s12  ;;  %v1688_v63 = vmul.f32 %v1684_v54, %v6245_v35  ;;  %s4723_s12 = sld [smem:[#allocation13 + $0x5]] }
 0xb4f   :  { %v1695_v10 = vpop.permute.xlu1 %1694 }
 0xb50   :  { %v1696_v59 = vsel %vm204_vm6, %v1695_v10, %v6317_v57 }
 0xb51   :  { %1706 = vrot.lane.b32.xlu1 %v1696_v59, %s5016_s4 }
 0xb5a   :  { %v1799_v40 = vpop.permute.xlu2 %1798 }
 0xb5b   :  { %v1805_v8 = vsel %vm204_vm6, %v1799_v40, %v6249_v29 }
 0xb5c   :  { %1814 = vrot.lane.b32.xlu2 %v1805_v8, %s5017_s5  ;;  %1840 = vrot.lane.b32.xlu1 %v1805_v8, %s5018_s26 }
 0xb8a   :  { %v1801_v42 = vpop.permute.xlu1 %1800 }
 0xb8b   :  { %v1797_v58 = vpop.permute.xlu0 %1796  ;;  %v1806_v62 = vsel %vm204_vm6, %v1801_v42, %v6247_v3  ;;  %v1711_v5 = vpop.permute.xlu2 %1710  ;;  %v1691_v42 = vadd.f32 %v1689_v41, %v1686_v13 }
 0xb8c   :  { %v1804_v22 = vsel %vm204_vm6, %v1797_v58, %v6251_v1  ;;  %v1716_v26 = vsel %vm204_vm6, %v1711_v5, %v6289_v49 }
 0xb8d   :  { %1812 = vrot.lane.b32.xlu0 %v1804_v22, %s5017_s5  ;;  %1838 = vrot.lane.b32.xlu2 %v1804_v22, %s5018_s26  ;;  %v1692_v22 = vadd.f32 %v1689_v41, %v1687_v14 }
 0xb93   :  { %v1803_v17 = vpop.permute.xlu0 %1802 }
 0xb94   :  { %v1807_v60 = vsel %vm204_vm6, %v1803_v17, %v6245_v35  ;;  %v1749_v17 = vstv %s4703_s13  ;;  %s4725_s13 = sld [smem:[#allocation9 + $0x3a]] }
 0xb95   :  { %1842 = vrot.lane.b32.xlu2 %v1806_v62, %s5018_s26  ;;  %1816 = vrot.lane.b32.xlu0 %v1806_v62, %s5017_s5 }
 0xb9b   :  { %v1709_v21 = vpop.permute.xlu0 %1708  ;;  %v1877_v9 = vpop.permute.xlu2 %1876 }
 0xb9c   :  { %v1715_v44 = vsel %vm204_vm6, %v1709_v21, %v6282_v39  ;;  %v1884_v46 = vsel %vm204_vm6, %v1877_v9, %v6303_v34  ;;  %v6430_v9 = vstv %s4708_s3  ;;  %s4724_s3 = sld [smem:[#allocation10 + $0x6]] }
 0xb9d   :  { %1844 = vrot.lane.b32.xlu2 %v1807_v60, %s5018_s26  ;;  %1818 = vrot.lane.b32.xlu0 %v1807_v60, %s5017_s5  ;;  %v1693_v60 = vadd.f32 %v1689_v41, %v1688_v63 }
 0xba3   :  { %v1883_v12 = vpop.permute.xlu2 %1882  ;;  %v1881_v32 = vpop.permute.xlu0 %1880 }
 0xba4   :  { %v1887_v48 = vsel %vm204_vm6, %v1883_v12, %v6270_v43  ;;  %v1886_v45 = vsel %vm204_vm6, %v1881_v32, %v6266_v56  ;;  %v1752_v12 = vmul.f32 %v1749_v17, %v6289_v49  ;;  %v1829_v32 = vstv %s4705_s15  ;;  %s4727_s15 = sld [smem:[#allocation9 + $0x37]] }
 0xba5   :  { %1726 = vrot.lane.b32.xlu2 %v1716_v26, %s5017_s5  ;;  %1724 = vrot.lane.b32.xlu0 %v1715_v44, %s5017_s5 }
 0xbab   :  { %v1713_v7 = vpop.permute.xlu1 %1712 }
 0xbac   :  { %v1717_v25 = vsel %vm204_vm6, %v1713_v7, %v6296_v20  ;;  %v1775_v7 = vstv %s4704_s14  ;;  %s4726_s14 = sld [smem:[#allocation9 + $0x36]] }
 0xbad   :  { %1760 = vrot.lane.b32.xlu2 %v1715_v44, %s5018_s26  ;;  %1728 = vrot.lane.b32.xlu1 %v1717_v25, %s5017_s5 }
 0xbb5   :  { %1928 = vrot.lane.b32.xlu2 %v1884_v46, %s5018_s26  ;;  %1762 = vrot.lane.b32.xlu1 %v1716_v26, %s5018_s26 }
 0xbb6   :  { %v1815_v16 = vpop.permute.xlu2 %1814 }
 0xbbb   :  { %v1879_v33 = vpop.permute.xlu1 %1878 }
 0xbbc   :  { %v1885_v36 = vsel %vm204_vm6, %v1879_v33, %v6309_v2 }
 0xbbd   :  { %1934 = vrot.lane.b32.xlu2 %v1887_v48, %s5018_s26  ;;  %1764 = vrot.lane.b32.xlu1 %v1717_v25, %s5018_s26 }
 0xbbe   :  { %1894 = vrot.lane.b32.xlu0 %v1885_v36, %s5017_s5 }
 0xbc3   :  { %v1707_v38 = vpop.permute.xlu1 %1706 }
 0xbc4   :  { %v1714_v53 = vsel %vm204_vm6, %v1707_v38, %v6317_v57 }
 0xbc5   :  { %1892 = vrot.lane.b32.xlu1 %v1884_v46, %s5017_s5  ;;  %v1751_v46 = vmul.f32 %v1749_v17, %v6282_v39  ;;  %v1825_v39 = vsel %vm125_vm8, %v1815_v16, 0.0  ;;  %v1750_v16 = vmul.f32 %v1749_v17, %v6317_v57 }
 0xbc6   :  { %1758 = vrot.lane.b32.xlu0 %v1714_v53, %s5018_s26 }
 0xbcd   :  { %1722 = vrot.lane.b32.xlu1 %v1714_v53, %s5017_s5  ;;  %v1685_v53 = vmul.f32 %v1684_v54, %v6251_v1 }
 0xbce   :  { %1898 = vrot.lane.b32.xlu0 %v1887_v48, %s5017_s5  ;;  %v1841_v0 = vpop.permute.xlu1 %1840  ;;  %v1753_v48 = vmul.f32 %v1749_v17, %v6296_v20 }
 0xbcf   :  { %v1851_v49 = vsel %vm126_vm9, %v1841_v0, 0.0  ;;  %v1690_v63 = vadd.f32 %v1689_v41, %v1685_v53 }
 0xbd5   :  { %1896 = vrot.lane.b32.xlu1 %v1886_v45, %s5017_s5 }
 0xbd6   :  { %1932 = vrot.lane.b32.xlu0 %v1886_v45, %s5018_s26  ;;  %v1855_v45 = vstv %s4706_s16  ;;  %s4728_s16 = sld [smem:[#allocation9 + $0x38]] }
 0xbdd   :  { %1930 = vrot.lane.b32.xlu1 %v1885_v36, %s5018_s26 }
 0xbe7   :  { %v6407_v31 = vpop.permute.xlu2 %1838 }
 0xbef   :  { %v6409_v51 = vpop.permute.xlu2 %1842 }
 0xbf7   :  { %v6411_v61 = vpop.permute.xlu2 %1844 }
 0xbf8   :  { %v1853_v57 = vsel %vm126_vm9, %v6411_v61, 0.0 }
 0xbff   :  { %v6405_v37 = vpop.permute.xlu0 %1812  ;;  %v1727_v55 = vpop.permute.xlu2 %1726 }
 0xc00   :  { %v1736_v52 = vsel %vm125_vm8, %v1727_v55, 0.0 }
 0xc01   :  { %v1742_v10 = vmul.f32 %v1739_v18, %v1736_v52 }
 0xc03   :  { %v1746_v21 = vadd.f32 %v1742_v10, %v1692_v22  ;;  %v1831_v10 = vmul.f32 %v1829_v32, %v1825_v39 }
 0xc07   :  { %v1817_v27 = vpop.permute.xlu0 %1816  ;;  %v1761_v59 = vpop.permute.xlu2 %1760 }
 0xc08   :  { %v1771_v36 = vsel %vm126_vm9, %v1761_v59, 0.0  ;;  %v1826_v20 = vsel %vm125_vm8, %v1817_v27, 0.0 }
 0xc09   :  { %v1832_v59 = vmul.f32 %v1829_v32, %v1826_v20 }
 0xc0f   :  { %v1819_v19 = vpop.permute.xlu0 %1818  ;;  %v1929_v52 = vpop.permute.xlu2 %1928 }
 0xc10   :  { %v1827_v54 = vsel %vm125_vm8, %v1819_v19, 0.0  ;;  %v1852_v19 = vsel %vm126_vm9, %v6409_v51, 0.0  ;;  %v1850_v51 = vsel %vm126_vm9, %v6407_v31, 0.0 }
 0xc11   :  { %v1833_v22 = vmul.f32 %v1829_v32, %v1827_v54  ;;  %v1945_v54 = vstv %s6462_s0  ;;  %s6997_s0 = sld [smem:[#allocation9 + $0x3b]] }
 0xc17   :  { %v1725_v28 = vpop.permute.xlu0 %1724  ;;  %v1935_v39 = vpop.permute.xlu2 %1934 }
 0xc18   :  { %v1735_v24 = vsel %vm125_vm8, %v1725_v28, 0.0 }
 0xc19   :  { %v1741_v40 = vmul.f32 %v1739_v18, %v1735_v24 }
 0xc1b   :  { %v1745_v26 = vadd.f32 %v1741_v40, %v1691_v42 }
 0xc1f   :  { %v1729_v4 = vpop.permute.xlu1 %1728 }
 0xc20   :  { %v1737_v6 = vsel %vm125_vm8, %v1729_v4, 0.0  ;;  %v1755_v4 = vadd.f32 %v1751_v46, %v1745_v26  ;;  %v1909_v26 = vstv %s6438_s17  ;;  %s4729_s17 = sld [smem:[#allocation9 + $0x39]] }
 0xc21   :  { %v1743_v8 = vmul.f32 %v1739_v18, %v1737_v6 }
 0xc23   :  { %v1747_v25 = vadd.f32 %v1743_v8, %v1693_v60  ;;  %v1857_v8 = vmul.f32 %v1855_v45, %v1851_v49 }
 0xc25   :  { %v1757_v28 = vadd.f32 %v1753_v48, %v1747_v25  ;;  %v1856_v48 = vmul.f32 %v1855_v45, %v1850_v51 }
 0xc27   :  { %v1763_v11 = vpop.permute.xlu1 %1762 }
 0xc28   :  { %v1772_v5 = vsel %vm126_vm9, %v1763_v11, 0.0  ;;  %v1756_v11 = vadd.f32 %v1752_v12, %v1746_v21  ;;  %v1858_v21 = vmul.f32 %v1855_v45, %v1852_v19 }
 0xc29   :  { %v1778_v33 = vmul.f32 %v1775_v7, %v1772_v5 }
 0xc2b   :  { %v1782_v24 = vadd.f32 %v1778_v33, %v1756_v11 }
 0xc2d   :  { %v1836_v41 = vadd.f32 %v1832_v59, %v1782_v24  ;;  %v1940_v24 = vsel %vm126_vm9, %v1929_v52, 0.0 }
 0xc2f   :  { %v1765_v23 = vpop.permute.xlu1 %1764 }
 0xc30   :  { %v6413_v47 = vpop.permute.xlu0 %1894  ;;  %v1773_v44 = vsel %vm126_vm9, %v1765_v23, 0.0  ;;  %v1777_v23 = vmul.f32 %v1775_v7, %v1771_v36  ;;  %v1862_v36 = vadd.f32 %v1858_v21, %v1836_v41 }
 0xc31   :  { %v1779_v38 = vmul.f32 %v1775_v7, %v1773_v44  ;;  %v1859_v44 = vmul.f32 %v1855_v45, %v1853_v57  ;;  %v1923_v45 = vmul.f32 %v6430_v9, %v6270_v43 }
 0xc32   :  { %v1781_v27 = vadd.f32 %v1777_v23, %v1755_v4  ;;  %v1920_v23 = vmul.f32 %v6430_v9, %v6303_v34 }
 0xc33   :  { %v1783_v6 = vadd.f32 %v1779_v38, %v1757_v28 }
 0xc34   :  { %v1835_v61 = vadd.f32 %v1831_v10, %v1781_v27 }
 0xc35   :  { %v1837_v17 = vadd.f32 %v1833_v22, %v1783_v6  ;;  %v1921_v6 = vmul.f32 %v6430_v9, %v6309_v2 }
 0xc36   :  { %v1861_v49 = vadd.f32 %v1857_v8, %v1835_v61 }
 0xc37   :  { %v6424_v58 = vpop.permute.xlu1 %1892  ;;  %v1863_v53 = vadd.f32 %v1859_v44, %v1837_v17 }
 0xc38   :  { %v1759_v62 = vpop.permute.xlu0 %1758  ;;  %v1904_v31 = vsel %vm125_vm8, %v6424_v58, 0.0 }
 0xc39   :  { %v1770_v40 = vsel %vm126_vm9, %v1759_v62, 0.0  ;;  %v1910_v20 = vmul.f32 %v1909_v26, %v1904_v31 }
 0xc3a   :  { %v1776_v60 = vmul.f32 %v1775_v7, %v1770_v40 }
 0xc3f   :  { %v1723_v55 = vpop.permute.xlu1 %1722 }
 0xc40   :  { %v1899_v14 = vpop.permute.xlu0 %1898  ;;  %v1734_v13 = vsel %vm125_vm8, %v1723_v55, 0.0 }
 0xc41   :  { %v1740_v0 = vmul.f32 %v1739_v18, %v1734_v13  ;;  %v1824_v18 = vsel %vm125_vm8, %v6405_v37, 0.0  ;;  %v1907_v62 = vsel %vm125_vm8, %v1899_v14, 0.0  ;;  %v1905_v37 = vsel %vm125_vm8, %v6413_v47, 0.0 }
 0xc42   :  { %v1830_v25 = vmul.f32 %v1829_v32, %v1824_v18  ;;  %v1913_v46 = vmul.f32 %v1909_v26, %v1907_v62  ;;  %v1911_v38 = vmul.f32 %v1909_v26, %v1905_v37  ;;  %v1922_v32 = vmul.f32 %v6430_v9, %v6266_v56 }
 0xc43   :  { %v1744_v42 = vadd.f32 %v1740_v0, %v1690_v63  ;;  %v1943_v56 = vsel %vm126_vm9, %v1935_v39, 0.0  ;;  %v1946_v63 = vmul.f32 %v1945_v54, %v1940_v24 }
 0xc44   :  { %v1917_v58 = vadd.f32 %v1913_v46, %v1863_v53  ;;  %v1915_v43 = vadd.f32 %v1911_v38, %v1861_v49  ;;  %v1949_v27 = vmul.f32 %v1945_v54, %v1943_v56 }
 0xc45   :  { %v1754_v5 = vadd.f32 %v1750_v16, %v1744_v42 }
 0xc46   :  { %v1927_v0 = vadd.f32 %v1923_v45, %v1917_v58  ;;  %v1925_v8 = vadd.f32 %v1921_v6, %v1915_v43 }
 0xc47   :  { %v1780_v12 = vadd.f32 %v1776_v60, %v1754_v5  ;;  %v1897_v33 = vpop.permute.xlu1 %1896 }
 0xc48   :  { %v1906_v7 = vsel %vm125_vm8, %v1897_v33, 0.0  ;;  %v1933_v11 = vpop.permute.xlu0 %1932  ;;  %v6499_v42 = vadd.f32 %v1949_v27, %v1927_v0  ;;  %v2008_v0 = vstv %s4710_s20  ;;  %s4733_s20 = sld [smem:[#allocation9 + $0x3e]] }
 0xc49   :  { %v1834_v4 = vadd.f32 %v1830_v25, %v1780_v12  ;;  %v1912_v47 = vmul.f32 %v1909_v26, %v1906_v7  ;;  %v1942_v14 = vsel %vm126_vm9, %v1933_v11, 0.0 }
 0xc4a   :  { %v1948_v10 = vmul.f32 %v1945_v54, %v1942_v14  ;;  %v1974_v60 = vmul.f32 %v6499_v42, %v6499_v42  ;;  %v1959_v37 = vsel %vm465_vm10, %v6499_v42, 0.0 }
 0xc4b   :  { %v1860_v28 = vadd.f32 %v1856_v48, %v1834_v4  ;;  %v1916_v55 = vadd.f32 %v1912_v47, %v1862_v36 }
 0xc4c   :  { %v1980_v12 = vsel %vm465_vm10, %v1974_v60, 0.0 }
 0xc4d   :  { %v1914_v13 = vadd.f32 %v1910_v20, %v1860_v28  ;;  %v1926_v16 = vadd.f32 %v1922_v32, %v1916_v55 }
 0xc4f   :  { %v1931_v34 = vpop.permute.xlu1 %1930  ;;  %v1924_v59 = vadd.f32 %v1920_v23, %v1914_v13  ;;  %v6495_v40 = vadd.f32 %v1948_v10, %v1926_v16 }
 0xc50   :  { %v1941_v52 = vsel %vm126_vm9, %v1931_v34, 0.0 }
 0xc51   :  { %v1947_v19 = vmul.f32 %v1945_v54, %v1941_v52  ;;  %v6497_v22 = vadd.f32 %v1946_v63, %v1924_v59  ;;  %v1973_v62 = vmul.f32 %v6495_v40, %v6495_v40  ;;  %v1957_v17 = vsel %vm465_vm10, %v6495_v40, 0.0 }
 0xc53   :  { %v6501_v57 = vadd.f32 %v1947_v19, %v1925_v8  ;;  %v1971_v2 = vmul.f32 %v6497_v22, %v6497_v22  ;;  %v1954_v18 = vsel %vm465_vm10, %v6497_v22, 0.0  ;;  %v1978_v44 = vsel %vm465_vm10, %v1973_v62, 0.0 }
 0xc54   :  { %v2019_v19 = vstv %s4711_s21 }
 0xc55   :  { %v1972_v9 = vmul.f32 %v6501_v57, %v6501_v57  ;;  %v1955_v41 = vsel %vm465_vm10, %v6501_v57, 0.0  ;;  %v1975_v5 = vsel %vm465_vm10, %v1971_v2, 0.0 }
 0xc56   :  { %v1956_v51 = vadd.f32 %v1955_v41, %v1954_v18 }
 0xc57   :  { %v1976_v21 = vsel %vm465_vm10, %v1972_v9, 0.0 }
 0xc58   :  { %v1958_v26 = vadd.f32 %v1957_v17, %v1956_v51  ;;  %v1977_v61 = vadd.f32 %v1976_v21, %v1975_v5 }
 0xc5a   :  { %v1960_v25 = vadd.f32 %v1959_v37, %v1958_v26  ;;  %v1979_v46 = vadd.f32 %v1978_v44, %v1977_v61 }
 0xc5c   :  { %1961 = vadd.xlane.f32.xlu1 %v1960_v25  ;;  %v1981_v33 = vadd.f32 %v1980_v12, %v1979_v46 }
 0xc5e   :  { %1982 = vadd.xlane.f32.xlu0 %v1981_v33 }
 0xccf   :  { %v1962_v48 = vpop.xlane.xlu1 %1961 }
 0xcd0   :  { %v1963_v31 = vrot.slane %v1962_v48, 4 }
 0xcd1   :  { %v1983_v36 = vpop.xlane.xlu0 %1982 }
 0xcd2   :  { %v1964_v7 = vadd.f32 %v1963_v31, %v1962_v48  ;;  %v1984_v38 = vrot.slane %v1983_v36, 4 }
 0xcd4   :  { %v1985_v53 = vadd.f32 %v1984_v38, %v1983_v36  ;;  %v1965_v4 = vrot.slane %v1964_v7, 2 }
 0xcd6   :  { %v1966_v11 = vadd.f32 %v1965_v4, %v1964_v7  ;;  %v1986_v47 = vrot.slane %v1985_v53, 2 }
 0xcd8   :  { %v1967_v32 = vrot.slane %v1966_v11, 1  ;;  %v1987_v45 = vadd.f32 %v1986_v47, %v1985_v53 }
 0xcda   :  { %v1968_v39 = vadd.f32 %v1967_v32, %v1966_v11  ;;  %v1988_v49 = vrot.slane %v1987_v45, 1 }
 0xcdc   :  { %4812 = vpush %v1968_v39  ;;  %v1989_v20 = vadd.f32 %v1988_v49, %v1987_v45 }
 0xcde   :  { %4814 = vpush %v1989_v20 }
 0xd0d   :  { %s4813_s18 = spop %4812 }
 0xd0e   :  { %v1970_v58 = vstv %s4813_s18  ;;  %s7005_s18 = sld [smem:[#allocation9 + $0x3d]] }
 0xd0f   :  { %v1992_v28 = vmul.f32 0.00048828125, %v1970_v58  ;;  %s4815_s19 = spop %4814 }
 0xd10   :  { %v1991_v55 = vstv %s4815_s19  ;;  %s7012_s19 = sld [smem:[#allocation9 + $0x3c]] }
 0xd11   :  { %v1993_v23 = vmul.f32 0.00048828125, %v1991_v55  ;;  %v1994_v54 = vmul.f32 %v1992_v28, %v1992_v28  ;;  %v2010_v10 = vsub.f32 %v6497_v22, %v1992_v28  ;;  %v2011_v59 = vsub.f32 %v6501_v57, %v1992_v28 }
 0xd12   :  { %v2012_v27 = vsub.f32 %v6495_v40, %v1992_v28  ;;  %v2013_v52 = vsub.f32 %v6499_v42, %v1992_v28 }
 0xd13   :  { %v1995_v24 = vsub.f32 %v1993_v23, %v1994_v54 }
 0xd15   :  { %v1997_v14 = vadd.f32 1e-05, %v1995_v24 }
 0xd17   :  { %4859 = vrsqrt.f32 %v1997_v14  ;;  %vm2004_vm0 = vweird.f32 %v1997_v14 }
 0xd1d   :  { %v4860_v56 = vpop.eup %4859 }
 0xd1e   :  { %v1999_v43 = vmul.f32 %v4860_v56, %v1997_v14  ;;  %vm2005_vm15 = vweird.f32 %v4860_v56 }
 0xd1f   :  { %vm2006_vm1 = vmor %vm2004_vm0, %vm2005_vm15 }
 0xd20   :  { %v2000_v13 = vmul.f32 %v4860_v56, %v1999_v43 }
 0xd22   :  { %v2001_v16 = vmul.f32 0.5, %v2000_v13 }
 0xd24   :  { %v2002_v6 = vsub.f32 1.5, %v2001_v16 }
 0xd26   :  { %v2003_v63 = vmul.f32 %v4860_v56, %v2002_v6 }
 0xd28   :  { %v2007_v34 = vsel %vm2006_vm1, %v4860_v56, %v2003_v63 }
 0xd29   :  { %v2009_v8 = vmul.f32 %v2008_v0, %v2007_v34 }
 0xd2b   :  { %v2016_v2 = vmul.f32 %v2012_v27, %v2009_v8  ;;  %v2017_v9 = vmul.f32 %v2013_v52, %v2009_v8  ;;  %v2015_v18 = vmul.f32 %v2011_v59, %v2009_v8  ;;  %v2014_v41 = vmul.f32 %v2010_v10, %v2009_v8 }
 0xd2d   :  { %v2022_v62 = vadd.f32 %v2019_v19, %v2016_v2  ;;  %v2023_v51 = vadd.f32 %v2019_v19, %v2017_v9  ;;  %v2021_v17 = vadd.f32 %v2019_v19, %v2015_v18  ;;  %v2020_v60 = vadd.f32 %v2019_v19, %v2014_v41 }
 0xd2f   :  { %v6527_v5 = vmax.f32 %v2023_v51, 0.0  ;;  %v6529_v22 = vmax.f32 %v2021_v17, 0.0  ;;  %v6531_v21 = vmax.f32 %v2020_v60, 0.0  ;;  %v6533_v57 = vmax.f32 %v2022_v62, 0.0 }
 0xd31   :  { %2163 = vrot.lane.b32.xlu0 %v6527_v5, %s5016_s4  ;;  %2157 = vrot.lane.b32.xlu1 %v6529_v22, %s5016_s4  ;;  %v2043_v40 = vrot.slane %v6527_v5, 1  ;;  %v2040_v42 = vrot.slane %v6531_v21, 1  ;;  %v2042_v26 = vrot.slane %v6533_v57, 1  ;;  %v2028_v25 = vrot.slane %v6531_v21, 7 }
 0xd32   :  { %2154 = vrot.lane.b32.xlu2 %v6531_v21, %s5016_s4  ;;  %v2029_v46 = vrot.slane %v6529_v22, 7  ;;  %v2030_v33 = vrot.slane %v6533_v57, 7  ;;  %v2031_v31 = vrot.slane %v6527_v5, 7  ;;  %v2041_v7 = vrot.slane %v6529_v22, 1 }
 0xd33   :  { %v2047_v61 = vsel %vm183_vm3, %v2043_v40, %v2040_v42  ;;  %v6548_v37 = vsel %vm183_vm3, %v2042_v26, %v2043_v40 }
 0xd34   :  { %v6552_v44 = vsel %vm124_vm4, %v2047_v61, 0.0  ;;  %v6564_v12 = vsel %vm170_vm2, %v2028_v25, %v2029_v46  ;;  %v6571_v48 = vsel %vm170_vm2, %v2029_v46, %v2030_v33  ;;  %v6578_v36 = vsel %vm170_vm2, %v2030_v33, %v2031_v31 }
 0xd35   :  { %v6585_v38 = vsel %vm183_vm3, %v2040_v42, %v2041_v7  ;;  %v6591_v53 = vsel %vm183_vm3, %v2041_v7, %v2042_v26  ;;  %v2035_v4 = vsel %vm170_vm2, %v2031_v31, %v2028_v25 }
 0xd36   :  { %v6599_v11 = vsel %vm117_vm5, %v2035_v4, 0.0 }
 0xd39   :  { %2240 = vrot.lane.b32.xlu0 %v6548_v37, %s5016_s4  ;;  %2243 = vrot.lane.b32.xlu1 %v6552_v44, %s5016_s4 }
 0xd3a   :  { %2160 = vrot.lane.b32.xlu2 %v6533_v57, %s5016_s4 }
 0xd42   :  { %2067 = vrot.lane.b32.xlu2 %v6564_v12, %s5016_s4 }
 0xd4a   :  { %2070 = vrot.lane.b32.xlu2 %v6571_v48, %s5016_s4 }
 0xd52   :  { %2073 = vrot.lane.b32.xlu2 %v6578_v36, %s5016_s4 }
 0xd5a   :  { %2234 = vrot.lane.b32.xlu2 %v6585_v38, %s5016_s4 }
 0xd62   :  { %2237 = vrot.lane.b32.xlu2 %v6591_v53, %s5016_s4 }
 0xd6a   :  { %2064 = vrot.lane.b32.xlu2 %v6599_v11, %s5016_s4 }
 0xd8c   :  { %v2155_v47 = vpop.permute.xlu2 %2154 }
 0xd8d   :  { %v2156_v32 = vsel %vm204_vm6, %v2155_v47, %v6531_v21 }
 0xd8e   :  { %2166 = vrot.lane.b32.xlu0 %v2156_v32, %s5016_s4 }
 0xd94   :  { %v2161_v45 = vpop.permute.xlu2 %2160 }
 0xd95   :  { %v2162_v39 = vsel %vm204_vm6, %v2161_v45, %v6533_v57 }
 0xd96   :  { %2170 = vrot.lane.b32.xlu2 %v2162_v39, %s5016_s4 }
 0xd9c   :  { %v2068_v49 = vpop.permute.xlu2 %2067 }
 0xd9d   :  { %v2069_v54 = vsel %vm204_vm6, %v2068_v49, %v6564_v12 }
 0xda3   :  { %v2164_v20 = vpop.permute.xlu0 %2163  ;;  %v2158_v58 = vpop.permute.xlu1 %2157 }
 0xda4   :  { %v2165_v28 = vsel %vm204_vm6, %v2164_v20, %v6527_v5  ;;  %v2159_v55 = vsel %vm204_vm6, %v2158_v58, %v6529_v22  ;;  %v2071_v23 = vpop.permute.xlu2 %2070 }
 0xda5   :  { %2172 = vrot.lane.b32.xlu0 %v2165_v28, %s5016_s4  ;;  %2168 = vrot.lane.b32.xlu1 %v2159_v55, %s5016_s4  ;;  %v2072_v24 = vsel %vm204_vm6, %v2071_v23, %v6571_v48 }
 0xdab   :  { %v2241_v43 = vpop.permute.xlu0 %2240  ;;  %v2244_v63 = vpop.permute.xlu1 %2243 }
 0xdac   :  { %v2074_v14 = vpop.permute.xlu2 %2073  ;;  %v2242_v13 = vsel %vm204_vm6, %v2241_v43, %v6548_v37  ;;  %v2245_v10 = vsel %vm204_vm6, %v2244_v63, %v6552_v44 }
 0xdad   :  { %v2075_v56 = vsel %vm204_vm6, %v2074_v14, %v6578_v36  ;;  %2078 = vrot.lane.b32.xlu0 %v2069_v54, %s5016_s4  ;;  %2080 = vrot.lane.b32.xlu1 %v2072_v24, %s5016_s4 }
 0xdae   :  { %2082 = vrot.lane.b32.xlu2 %v2075_v56, %s5016_s4 }
 0xdb4   :  { %v2235_v16 = vpop.permute.xlu2 %2234 }
 0xdb5   :  { %v2236_v6 = vsel %vm204_vm6, %v2235_v16, %v6585_v38  ;;  %2250 = vrot.lane.b32.xlu0 %v2242_v13, %s5016_s4 }
 0xdb6   :  { %2246 = vrot.lane.b32.xlu1 %v2236_v6, %s5016_s4  ;;  %v2054_v6 = vstv %s4713_s22 }
 0xdbc   :  { %v2238_v0 = vpop.permute.xlu2 %2237 }
 0xdbd   :  { %v2239_v34 = vsel %vm204_vm6, %v2238_v0, %v6591_v53  ;;  %v2055_v0 = vmul.f32 %v2054_v6, %v6531_v21 }
 0xdbe   :  { %2252 = vrot.lane.b32.xlu1 %v2245_v10, %s5016_s4  ;;  %2248 = vrot.lane.b32.xlu2 %v2239_v34, %s5016_s4  ;;  %v2059_v10 = vstv %s4712_s23  ;;  %v2109_v34 = vstv %s4714_s1  ;;  %s4734_s23 = sld [smem:[#allocation11 + $0x6]] }
 0xdbf   :  { %s4735_s1 = sld [smem:[#allocation13 + $0x6]] }
 0xdc4   :  { %v2065_v59 = vpop.permute.xlu2 %2064 }
 0xdc5   :  { %v2066_v27 = vsel %vm204_vm6, %v2065_v59, %v6599_v11 }
 0xdc6   :  { %2076 = vrot.lane.b32.xlu2 %v2066_v27, %s5016_s4 }
 0xdf0   :  { %v2171_v19 = vpop.permute.xlu2 %2170 }
 0xdf1   :  { %v2176_v2 = vsel %vm204_vm6, %v2171_v19, %v6533_v57  ;;  %v2119_v19 = vstv %s4715_s24  ;;  %s4737_s24 = sld [smem:[#allocation9 + $0x43]] }
 0xe00   :  { %v2167_v52 = vpop.permute.xlu0 %2166 }
 0xe01   :  { %v2174_v8 = vsel %vm204_vm6, %v2167_v52, %v6531_v21  ;;  %v2145_v21 = vstv %s4716_s25  ;;  %s4738_s25 = sld [smem:[#allocation9 + $0x3f]] }
 0xe02   :  { %2182 = vrot.lane.b32.xlu0 %v2174_v8, %s5017_s5 }
 0xe08   :  { %v2083_v51 = vpop.permute.xlu2 %2082 }
 0xe09   :  { %v2087_v60 = vsel %vm204_vm6, %v2083_v51, %v6578_v36 }
 0xe0a   :  { %2186 = vrot.lane.b32.xlu0 %v2176_v2, %s5017_s5 }
 0xe17   :  { %v2173_v9 = vpop.permute.xlu0 %2172  ;;  %v2169_v18 = vpop.permute.xlu1 %2168 }
 0xe18   :  { %v2177_v41 = vsel %vm204_vm6, %v2173_v9, %v6527_v5  ;;  %v2175_v62 = vsel %vm204_vm6, %v2169_v18, %v6529_v22  ;;  %v2249_v26 = vpop.permute.xlu2 %2248  ;;  %v2058_v9 = vmul.f32 %v2054_v6, %v6527_v5  ;;  %v2056_v5 = vmul.f32 %v2054_v6, %v6529_v22 }
 0xe19   :  { %2184 = vrot.lane.b32.xlu1 %v2175_v62, %s5017_s5  ;;  %2210 = vrot.lane.b32.xlu2 %v2175_v62, %s5018_s26  ;;  %v2255_v25 = vsel %vm204_vm6, %v2249_v26, %v6591_v53  ;;  %v2120_v62 = vmul.f32 %v2119_v19, %v6599_v11  ;;  %v2123_v22 = vmul.f32 %v2119_v19, %v6578_v36 }
 0xe1a   :  { %2188 = vrot.lane.b32.xlu0 %v2177_v41, %s5017_s5  ;;  %v2063_v26 = vadd.f32 %v2059_v10, %v2058_v9 }
 0xe1f   :  { %v2079_v17 = vpop.permute.xlu0 %2078  ;;  %v2081_v42 = vpop.permute.xlu1 %2080 }
 0xe20   :  { %v2085_v40 = vsel %vm204_vm6, %v2079_v17, %v6564_v12  ;;  %v2086_v61 = vsel %vm204_vm6, %v2081_v42, %v6571_v48  ;;  %v2077_v33 = vpop.permute.xlu2 %2076  ;;  %v2121_v42 = vmul.f32 %v2119_v19, %v6564_v12 }
 0xe21   :  { %2208 = vrot.lane.b32.xlu1 %v2174_v8, %s5018_s26  ;;  %2098 = vrot.lane.b32.xlu2 %v2087_v60, %s5017_s5  ;;  %v2084_v31 = vsel %vm204_vm6, %v2077_v33, %v6599_v11  ;;  %v2060_v8 = vadd.f32 %v2059_v10, %v2055_v0 }
 0xe22   :  { %2094 = vrot.lane.b32.xlu0 %v2085_v40, %s5017_s5 }
 0xe27   :  { %v2251_v32 = vpop.permute.xlu0 %2250 }
 0xe28   :  { %v2247_v46 = vpop.permute.xlu1 %2246  ;;  %v2256_v45 = vsel %vm204_vm6, %v2251_v32, %v6548_v37 }
 0xe29   :  { %2212 = vrot.lane.b32.xlu1 %v2176_v2, %s5018_s26  ;;  %2132 = vrot.lane.b32.xlu2 %v2086_v61, %s5018_s26  ;;  %v2254_v4 = vsel %vm204_vm6, %v2247_v46, %v6585_v38  ;;  %v2199_v46 = vstv %s4717_s27  ;;  %s4736_s27 = sld [smem:[#allocation10 + $0x7]] }
 0xe2a   :  { %2264 = vrot.lane.b32.xlu0 %v2255_v25, %s5017_s5 }
 0xe30   :  { %v2253_v7 = vpop.permute.xlu1 %2252 }
 0xe31   :  { %2214 = vrot.lane.b32.xlu1 %v2177_v41, %s5018_s26  ;;  %2134 = vrot.lane.b32.xlu2 %v2087_v60, %s5018_s26  ;;  %v2257_v47 = vsel %vm204_vm6, %v2253_v7, %v6552_v44  ;;  %v2057_v60 = vmul.f32 %v2054_v6, %v6533_v57  ;;  %v2122_v7 = vmul.f32 %v2119_v19, %v6571_v48 }
 0xe32   :  { %2128 = vrot.lane.b32.xlu0 %v2084_v31, %s5018_s26 }
 0xe39   :  { %2096 = vrot.lane.b32.xlu1 %v2086_v61, %s5017_s5  ;;  %2262 = vrot.lane.b32.xlu2 %v2254_v4, %s5017_s5 }
 0xe3a   :  { %2268 = vrot.lane.b32.xlu0 %v2257_v47, %s5017_s5 }
 0xe41   :  { %2130 = vrot.lane.b32.xlu1 %v2085_v40, %s5018_s26  ;;  %2092 = vrot.lane.b32.xlu2 %v2084_v31, %s5017_s5 }
 0xe42   :  { %2302 = vrot.lane.b32.xlu0 %v2256_v45, %s5018_s26 }
 0xe49   :  { %2298 = vrot.lane.b32.xlu1 %v2254_v4, %s5018_s26  ;;  %2266 = vrot.lane.b32.xlu2 %v2256_v45, %s5017_s5  ;;  %v2062_v4 = vadd.f32 %v2059_v10, %v2057_v60  ;;  %v2061_v45 = vadd.f32 %v2059_v10, %v2056_v5 }
 0xe51   :  { %2304 = vrot.lane.b32.xlu1 %v2257_v47, %s5018_s26  ;;  %2300 = vrot.lane.b32.xlu2 %v2255_v25, %s5018_s26 }
 0xe73   :  { %v6687_v39 = vpop.permute.xlu2 %2210 }
 0xe74   :  { %v2183_v49 = vpop.permute.xlu0 %2182  ;;  %v2221_v36 = vsel %vm126_vm9, %v6687_v39, 0.0 }
 0xe75   :  { %v2194_v11 = vsel %vm125_vm8, %v2183_v49, 0.0 }
 0xe76   :  { %v2200_v49 = vmul.f32 %v2199_v46, %v2194_v11 }
 0xe7b   :  { %v2099_v20 = vpop.permute.xlu2 %2098 }
 0xe7c   :  { %v2187_v28 = vpop.permute.xlu0 %2186  ;;  %v2107_v18 = vsel %vm125_vm8, %v2099_v20, 0.0 }
 0xe7d   :  { %v2113_v40 = vmul.f32 %v2109_v34, %v2107_v18  ;;  %v2196_v20 = vsel %vm125_vm8, %v2187_v28, 0.0 }
 0xe7e   :  { %v2202_v28 = vmul.f32 %v2199_v46, %v2196_v20 }
 0xe7f   :  { %v2117_v12 = vadd.f32 %v2113_v40, %v2063_v26 }
 0xe83   :  { %v2133_v58 = vpop.permute.xlu2 %2132 }
 0xe84   :  { %v2142_v32 = vsel %vm126_vm9, %v2133_v58, 0.0 }
 0xe85   :  { %v2148_v10 = vmul.f32 %v2145_v21, %v2142_v32 }
 0xe8b   :  { %v6689_v55 = vpop.permute.xlu1 %2184  ;;  %v2135_v23 = vpop.permute.xlu2 %2134 }
 0xe8c   :  { %v6691_v54 = vpop.permute.xlu0 %2188  ;;  %v2143_v48 = vsel %vm126_vm9, %v2135_v23, 0.0  ;;  %v2195_v39 = vsel %vm125_vm8, %v6689_v55, 0.0 }
 0xe8d   :  { %v2149_v19 = vmul.f32 %v2145_v21, %v2143_v48  ;;  %v2201_v5 = vmul.f32 %v2199_v46, %v2195_v39  ;;  %v2315_v48 = vstv %s6749_s8  ;;  %s4741_s8 = sld [smem:[#allocation9 + $0x42]] }
 0xe93   :  { %v2209_v24 = vpop.permute.xlu1 %2208  ;;  %v6693_v14 = vpop.permute.xlu2 %2262 }
 0xe94   :  { %v2095_v56 = vpop.permute.xlu0 %2094  ;;  %v2220_v0 = vsel %vm126_vm9, %v2209_v24, 0.0  ;;  %v2274_v24 = vsel %vm125_vm8, %v6693_v14, 0.0  ;;  %v2289_v14 = vstv %s6724_s30  ;;  %s4744_s30 = sld [smem:[#allocation9 + $0x46]] }
 0xe95   :  { %v2105_v51 = vsel %vm125_vm8, %v2095_v56, 0.0  ;;  %v2290_v32 = vmul.f32 %v2289_v14, %v6585_v38  ;;  %v2293_v39 = vmul.f32 %v2289_v14, %v6552_v44 }
 0xe96   :  { %v2111_v33 = vmul.f32 %v2109_v34, %v2105_v51 }
 0xe98   :  { %v2115_v58 = vadd.f32 %v2111_v33, %v2061_v45  ;;  %v2291_v45 = vmul.f32 %v2289_v14, %v6591_v53 }
 0xe9b   :  { %v6695_v43 = vpop.permute.xlu1 %2212  ;;  %v2093_v16 = vpop.permute.xlu2 %2092 }
 0xe9c   :  { %v6697_v13 = vpop.permute.xlu0 %2264  ;;  %v2104_v63 = vsel %vm125_vm8, %v2093_v16, 0.0  ;;  %v2222_v23 = vsel %vm126_vm9, %v6695_v43, 0.0 }
 0xe9d   :  { %v2110_v59 = vmul.f32 %v2109_v34, %v2104_v63  ;;  %v2225_v63 = vstv %s6709_s28  ;;  %s4739_s28 = sld [smem:[#allocation9 + $0x40]] }
 0xe9e   :  { %v2228_v51 = vmul.f32 %v2225_v63, %v2222_v23 }
 0xe9f   :  { %v2114_v41 = vadd.f32 %v2110_v59, %v2060_v8  ;;  %v2127_v8 = vadd.f32 %v2123_v22, %v2117_v12 }
 0xea1   :  { %v2124_v61 = vadd.f32 %v2120_v62, %v2114_v41  ;;  %v2197_v41 = vsel %vm125_vm8, %v6691_v54, 0.0  ;;  %v2125_v62 = vadd.f32 %v2121_v42, %v2115_v58  ;;  %v2153_v26 = vadd.f32 %v2149_v19, %v2127_v8 }
 0xea2   :  { %v2227_v42 = vmul.f32 %v2225_v63, %v2221_v36 }
 0xea3   :  { %v6702_v27 = vpop.permute.xlu1 %2214  ;;  %v2267_v56 = vpop.permute.xlu2 %2266 }
 0xea4   :  { %v2129_v52 = vpop.permute.xlu0 %2128  ;;  %v2276_v43 = vsel %vm125_vm8, %v2267_v56, 0.0 }
 0xea5   :  { %v2140_v2 = vsel %vm126_vm9, %v2129_v52, 0.0 }
 0xea6   :  { %v2146_v17 = vmul.f32 %v2145_v21, %v2140_v2  ;;  %v2226_v2 = vmul.f32 %v2225_v63, %v2220_v0 }
 0xea8   :  { %v2150_v57 = vadd.f32 %v2146_v17, %v2124_v61 }
 0xeaa   :  { %v2204_v59 = vadd.f32 %v2200_v49, %v2150_v57 }
 0xeab   :  { %v2097_v25 = vpop.permute.xlu1 %2096  ;;  %v2301_v57 = vpop.permute.xlu2 %2300 }
 0xeac   :  { %v2106_v31 = vsel %vm125_vm8, %v2097_v25, 0.0  ;;  %v2269_v6 = vpop.permute.xlu0 %2268  ;;  %v2230_v17 = vadd.f32 %v2226_v2, %v2204_v59  ;;  %v2223_v25 = vsel %vm126_vm9, %v6702_v27, 0.0  ;;  %v2292_v27 = vmul.f32 %v2289_v14, %v6548_v37 }
 0xead   :  { %v2112_v47 = vmul.f32 %v2109_v34, %v2106_v31  ;;  %v2279_v34 = vstv %s6714_s29  ;;  %v2203_v31 = vmul.f32 %v2199_v46, %v2197_v41  ;;  %v2229_v49 = vmul.f32 %v2225_v63, %v2223_v25  ;;  %s4740_s29 = sld [smem:[#allocation9 + $0x41]] }
 0xeae   :  { %v2280_v61 = vmul.f32 %v2279_v34, %v2274_v24  ;;  %v2282_v54 = vmul.f32 %v2279_v34, %v2276_v43 }
 0xeaf   :  { %v2116_v16 = vadd.f32 %v2112_v47, %v2062_v4  ;;  %v2207_v20 = vadd.f32 %v2203_v31, %v2153_v26 }
 0xeb0   :  { %v2284_v12 = vadd.f32 %v2280_v61, %v2230_v17 }
 0xeb1   :  { %v2126_v52 = vadd.f32 %v2122_v7, %v2116_v16  ;;  %v2275_v7 = vsel %vm125_vm8, %v6697_v13, 0.0  ;;  %v2233_v63 = vadd.f32 %v2229_v49, %v2207_v20 }
 0xeb2   :  { %v2281_v46 = vmul.f32 %v2279_v34, %v2275_v7  ;;  %v2294_v58 = vadd.f32 %v2290_v32, %v2284_v12 }
 0xeb3   :  { %v2152_v9 = vadd.f32 %v2148_v10, %v2126_v52  ;;  %v2131_v18 = vpop.permute.xlu1 %2130 }
 0xeb4   :  { %v2141_v55 = vsel %vm126_vm9, %v2131_v18, 0.0  ;;  %v2303_v47 = vpop.permute.xlu0 %2302 }
 0xeb5   :  { %v2206_v60 = vadd.f32 %v2202_v28, %v2152_v9  ;;  %v2147_v40 = vmul.f32 %v2145_v21, %v2141_v55  ;;  %v2277_v21 = vsel %vm125_vm8, %v2269_v6, 0.0  ;;  %v2311_v6 = vsel %vm126_vm9, %v2301_v57, 0.0 }
 0xeb6   :  { %v2283_v16 = vmul.f32 %v2279_v34, %v2277_v21  ;;  %v2312_v36 = vsel %vm126_vm9, %v2303_v47, 0.0  ;;  %v2317_v10 = vmul.f32 %v2315_v48, %v2311_v6 }
 0xeb7   :  { %v2151_v11 = vadd.f32 %v2147_v40, %v2125_v62  ;;  %v2232_v33 = vadd.f32 %v2228_v51, %v2206_v60  ;;  %v2318_v52 = vmul.f32 %v2315_v48, %v2312_v36 }
 0xeb8   :  { %v2287_v34 = vadd.f32 %v2283_v16, %v2233_v63 }
 0xeb9   :  { %v2205_v4 = vadd.f32 %v2201_v5, %v2151_v11  ;;  %v2286_v22 = vadd.f32 %v2282_v54, %v2232_v33 }
 0xeba   :  { %v2297_v41 = vadd.f32 %v2293_v39, %v2287_v34 }
 0xebb   :  { %v2231_v56 = vadd.f32 %v2227_v42, %v2205_v4  ;;  %v2299_v13 = vpop.permute.xlu1 %2298  ;;  %v2296_v38 = vadd.f32 %v2292_v27, %v2286_v22 }
 0xebc   :  { %v2310_v37 = vsel %vm126_vm9, %v2299_v13, 0.0 }
 0xebd   :  { %v2285_v0 = vadd.f32 %v2281_v46, %v2231_v56  ;;  %v2316_v53 = vmul.f32 %v2315_v48, %v2310_v37  ;;  %v6779_v8 = vadd.f32 %v2318_v52, %v2296_v38 }
 0xebf   :  { %v2295_v59 = vadd.f32 %v2291_v45, %v2285_v0  ;;  %v6777_v28 = vadd.f32 %v2316_v53, %v2294_v58  ;;  %v2343_v51 = vmul.f32 %v6779_v8, %v6779_v8  ;;  %v2327_v14 = vsel %vm465_vm10, %v6779_v8, 0.0 }
 0xec1   :  { %v2341_v19 = vmul.f32 %v6777_v28, %v6777_v28  ;;  %v6783_v23 = vadd.f32 %v2317_v10, %v2295_v59  ;;  %v2324_v24 = vsel %vm465_vm10, %v6777_v28, 0.0  ;;  %v2348_v25 = vsel %vm465_vm10, %v2343_v51, 0.0 }
 0xec2   :  { %v2378_v59 = vstv %s4722_s11  ;;  %s7321_s11 = sld [smem:[#allocation9 + $0x47]] }
 0xec3   :  { %v2305_v2 = vpop.permute.xlu1 %2304  ;;  %v2325_v9 = vsel %vm465_vm10, %v6783_v23, 0.0  ;;  %v2342_v18 = vmul.f32 %v6783_v23, %v6783_v23  ;;  %v2345_v44 = vsel %vm465_vm10, %v2341_v19, 0.0 }
 0xec4   :  { %v2313_v43 = vsel %vm126_vm9, %v2305_v2, 0.0  ;;  %v2326_v62 = vadd.f32 %v2325_v9, %v2324_v24  ;;  %v2389_v9 = vstv %s4723_s12 }
 0xec5   :  { %v2319_v55 = vmul.f32 %v2315_v48, %v2313_v43  ;;  %v2346_v17 = vsel %vm465_vm10, %v2342_v18, 0.0 }
 0xec6   :  { %v2347_v60 = vadd.f32 %v2346_v17, %v2345_v44  ;;  %v2328_v5 = vadd.f32 %v2327_v14, %v2326_v62 }
 0xec7   :  { %v2323_v40 = vadd.f32 %v2319_v55, %v2297_v41 }
 0xec8   :  { %v2349_v11 = vadd.f32 %v2348_v25, %v2347_v60 }
 0xec9   :  { %v2329_v26 = vsel %vm465_vm10, %v2323_v40, 0.0  ;;  %v2344_v61 = vmul.f32 %v2323_v40, %v2323_v40 }
 0xeca   :  { %v2330_v54 = vadd.f32 %v2329_v26, %v2328_v5 }
 0xecb   :  { %v2350_v33 = vsel %vm465_vm10, %v2344_v61, 0.0 }
 0xecc   :  { %2331 = vadd.xlane.f32.xlu2 %v2330_v54  ;;  %v2351_v42 = vadd.f32 %v2350_v33, %v2349_v11 }
 0xece   :  { %2352 = vadd.xlane.f32.xlu0 %v2351_v42 }
 0xf3f   :  { %v2332_v31 = vpop.xlane.xlu2 %2331 }
 0xf40   :  { %v2333_v7 = vrot.slane %v2332_v31, 4 }
 0xf41   :  { %v2353_v21 = vpop.xlane.xlu0 %2352 }
 0xf42   :  { %v2334_v57 = vadd.f32 %v2333_v7, %v2332_v31  ;;  %v2354_v4 = vrot.slane %v2353_v21, 4 }
 0xf44   :  { %v2355_v47 = vadd.f32 %v2354_v4, %v2353_v21  ;;  %v2335_v22 = vrot.slane %v2334_v57, 2 }
 0xf46   :  { %v2336_v12 = vadd.f32 %v2335_v22, %v2334_v57  ;;  %v2356_v27 = vrot.slane %v2355_v47, 2 }
 0xf48   :  { %v2337_v32 = vrot.slane %v2336_v12, 1  ;;  %v2357_v45 = vadd.f32 %v2356_v27, %v2355_v47 }
 0xf4a   :  { %v2338_v49 = vadd.f32 %v2337_v32, %v2336_v12  ;;  %v2358_v46 = vrot.slane %v2357_v45, 1 }
 0xf4c   :  { %4816 = vpush %v2338_v49  ;;  %v2359_v20 = vadd.f32 %v2358_v46, %v2357_v45 }
 0xf4e   :  { %4818 = vpush %v2359_v20 }
 0xf7d   :  { %s4817_s9 = spop %4816 }
 0xf7e   :  { %v2340_v48 = vstv %s4817_s9  ;;  %s7278_s9 = sld [smem:[#allocation9 + $0x44]] }
 0xf7f   :  { %v2362_v56 = vmul.f32 0.00048828125, %v2340_v48  ;;  %s4819_s10 = spop %4818 }
 0xf80   :  { %v2361_v13 = vstv %s4819_s10  ;;  %s7294_s10 = sld [smem:[#allocation9 + $0x45]] }
 0xf81   :  { %v2363_v16 = vmul.f32 0.00048828125, %v2361_v13  ;;  %v2364_v6 = vmul.f32 %v2362_v56, %v2362_v56  ;;  %v2380_v52 = vsub.f32 %v6777_v28, %v2362_v56  ;;  %v2381_v19 = vsub.f32 %v6783_v23, %v2362_v56 }
 0xf82   :  { %v2382_v39 = vsub.f32 %v6779_v8, %v2362_v56  ;;  %v2383_v2 = vsub.f32 %v2323_v40, %v2362_v56 }
 0xf83   :  { %v2365_v36 = vsub.f32 %v2363_v16, %v2364_v6 }
 0xf85   :  { %v2367_v37 = vadd.f32 1e-05, %v2365_v36 }
 0xf87   :  { %4861 = vrsqrt.f32 %v2367_v37  ;;  %vm2374_vm11 = vweird.f32 %v2367_v37 }
 0xf8d   :  { %v4862_v0 = vpop.eup %4861 }
 0xf8e   :  { %v2369_v38 = vmul.f32 %v4862_v0, %v2367_v37  ;;  %vm2375_vm7 = vweird.f32 %v4862_v0 }
 0xf8f   :  { %vm2376_vm12 = vmor %vm2374_vm11, %vm2375_vm7 }
 0xf90   :  { %v2370_v58 = vmul.f32 %v4862_v0, %v2369_v38 }
 0xf92   :  { %v2371_v53 = vmul.f32 0.5, %v2370_v58 }
 0xf94   :  { %v2372_v63 = vsub.f32 1.5, %v2371_v53 }
 0xf96   :  { %v2373_v10 = vmul.f32 %v4862_v0, %v2372_v63 }
 0xf98   :  { %v2377_v34 = vsel %vm2376_vm12, %v4862_v0, %v2373_v10 }
 0xf99   :  { %v2379_v24 = vmul.f32 %v2378_v59, %v2377_v34 }
 0xf9b   :  { %v2384_v18 = vmul.f32 %v2380_v52, %v2379_v24  ;;  %v2385_v41 = vmul.f32 %v2381_v19, %v2379_v24  ;;  %v2386_v43 = vmul.f32 %v2382_v39, %v2379_v24  ;;  %v2387_v62 = vmul.f32 %v2383_v2, %v2379_v24 }
 0xf9d   :  { %v2390_v55 = vadd.f32 %v2389_v9, %v2384_v18  ;;  %v2391_v51 = vadd.f32 %v2389_v9, %v2385_v41  ;;  %v2392_v44 = vadd.f32 %v2389_v9, %v2386_v43  ;;  %v2393_v17 = vadd.f32 %v2389_v9, %v2387_v62 }
 0xf9f   :  { %v2394_v60 = vadd.f32 %v2390_v55, %v6251_v1  ;;  %v2395_v28 = vadd.f32 %v2391_v51, %v6249_v29  ;;  %v2396_v14 = vadd.f32 %v2392_v44, %v6247_v3  ;;  %v2397_v23 = vadd.f32 %v2393_v17, %v6245_v35 }
 0xfa1   :  { %v6810_v8 = vmax.f32 %v2397_v23, 0.0  ;;  %v6812_v40 = vmax.f32 %v2395_v28, 0.0  ;;  %v6814_v5 = vmax.f32 %v2394_v60, 0.0  ;;  %v6816_v26 = vmax.f32 %v2396_v14, 0.0 }
 0xfa3   :  { %2537 = vrot.lane.b32.xlu0 %v6810_v8, %s5016_s4  ;;  %2531 = vrot.lane.b32.xlu2 %v6812_v40, %s5016_s4  ;;  %v2417_v29 = vrot.slane %v6810_v8, 1  ;;  %v2414_v3 = vrot.slane %v6814_v5, 1  ;;  %v2416_v35 = vrot.slane %v6816_v26, 1  ;;  %v2402_v54 = vrot.slane %v6814_v5, 7 }
 0xfa4   :  { %2528 = vrot.lane.b32.xlu1 %v6814_v5, %s5016_s4  ;;  %v2403_v11 = vrot.slane %v6812_v40, 7  ;;  %v2404_v42 = vrot.slane %v6816_v26, 7  ;;  %v2405_v7 = vrot.slane %v6810_v8, 7  ;;  %v2415_v57 = vrot.slane %v6812_v40, 1 }
 0xfa5   :  { %v2421_v1 = vsel %vm183_vm3, %v2417_v29, %v2414_v3  ;;  %v6831_v61 = vsel %vm183_vm3, %v2416_v35, %v2417_v29 }
 0xfa6   :  { %v6835_v25 = vsel %vm124_vm4, %v2421_v1, 0.0  ;;  %v6847_v33 = vsel %vm170_vm2, %v2402_v54, %v2403_v11  ;;  %v6854_v31 = vsel %vm170_vm2, %v2403_v11, %v2404_v42  ;;  %v6861_v21 = vsel %vm170_vm2, %v2404_v42, %v2405_v7 }
 0xfa7   :  { %v6868_v4 = vsel %vm183_vm3, %v2414_v3, %v2415_v57  ;;  %v6874_v47 = vsel %vm183_vm3, %v2415_v57, %v2416_v35  ;;  %v2409_v22 = vsel %vm170_vm2, %v2405_v7, %v2402_v54 }
 0xfa8   :  { %v6882_v12 = vsel %vm117_vm5, %v2409_v22, 0.0 }
 0xfab   :  { %2614 = vrot.lane.b32.xlu2 %v6831_v61, %s5016_s4  ;;  %2617 = vrot.lane.b32.xlu0 %v6835_v25, %s5016_s4 }
 0xfac   :  { %2534 = vrot.lane.b32.xlu1 %v6816_v26, %s5016_s4 }
 0xfb4   :  { %2441 = vrot.lane.b32.xlu1 %v6847_v33, %s5016_s4 }
 0xfbc   :  { %2444 = vrot.lane.b32.xlu1 %v6854_v31, %s5016_s4 }
 0xfc4   :  { %2447 = vrot.lane.b32.xlu1 %v6861_v21, %s5016_s4 }
 0xfcc   :  { %2608 = vrot.lane.b32.xlu1 %v6868_v4, %s5016_s4 }
 0xfd4   :  { %2611 = vrot.lane.b32.xlu1 %v6874_v47, %s5016_s4 }
 0xfdc   :  { %2438 = vrot.lane.b32.xlu1 %v6882_v12, %s5016_s4 }
 0xffd   :  { %v2532_v27 = vpop.permute.xlu2 %2531 }
 0xffe   :  { %v2533_v32 = vsel %vm204_vm6, %v2532_v27, %v6812_v40 }
 0xfff   :  { %2542 = vrot.lane.b32.xlu0 %v2533_v32, %s5016_s4 }
0x1005   :  { %v2615_v6 = vpop.permute.xlu2 %2614 }
0x1006   :  { %v2616_v37 = vsel %vm204_vm6, %v2615_v6, %v6831_v61 }
0x1015   :  { %v2538_v46 = vpop.permute.xlu0 %2537 }
0x1016   :  { %v2529_v45 = vpop.permute.xlu1 %2528  ;;  %v2539_v48 = vsel %vm204_vm6, %v2538_v46, %v6810_v8 }
0x1017   :  { %v2530_v49 = vsel %vm204_vm6, %v2529_v45, %v6814_v5 }
0x1018   :  { %2540 = vrot.lane.b32.xlu2 %v2530_v49, %s5016_s4 }
0x101d   :  { %v2618_v10 = vpop.permute.xlu0 %2617 }
0x101e   :  { %v2535_v20 = vpop.permute.xlu1 %2534  ;;  %v2619_v52 = vsel %vm204_vm6, %v2618_v10, %v6835_v25 }
0x101f   :  { %v2536_v56 = vsel %vm204_vm6, %v2535_v20, %v6816_v26 }
0x1020   :  { %2546 = vrot.lane.b32.xlu2 %v2539_v48, %s5016_s4  ;;  %2544 = vrot.lane.b32.xlu1 %v2536_v56, %s5016_s4 }
0x1026   :  { %v2442_v13 = vpop.permute.xlu1 %2441 }
0x1027   :  { %v2443_v16 = vsel %vm204_vm6, %v2442_v13, %v6847_v33 }
0x1028   :  { %2452 = vrot.lane.b32.xlu2 %v2443_v16, %s5016_s4 }
0x102e   :  { %v2445_v36 = vpop.permute.xlu1 %2444 }
0x102f   :  { %v2446_v0 = vsel %vm204_vm6, %v2445_v36, %v6854_v31 }
0x1030   :  { %2624 = vrot.lane.b32.xlu2 %v2616_v37, %s5016_s4  ;;  %2454 = vrot.lane.b32.xlu0 %v2446_v0, %s5016_s4  ;;  %v2428_v0 = vstv %s4725_s13 }
0x1031   :  { %v2430_v10 = vmul.f32 %v2428_v0, %v6812_v40 }
0x1036   :  { %v2448_v38 = vpop.permute.xlu1 %2447 }
0x1037   :  { %v2449_v58 = vsel %vm204_vm6, %v2448_v38, %v6861_v21 }
0x1038   :  { %2456 = vrot.lane.b32.xlu1 %v2449_v58, %s5016_s4  ;;  %v2483_v58 = vstv %s4726_s14  ;;  %s4746_s14 = sld [smem:[#allocation11 + $0x7]] }
0x103e   :  { %v2609_v53 = vpop.permute.xlu1 %2608 }
0x103f   :  { %v2610_v63 = vsel %vm204_vm6, %v2609_v53, %v6868_v4 }
0x1040   :  { %2620 = vrot.lane.b32.xlu0 %v2610_v63, %s5016_s4  ;;  %v2432_v63 = vmul.f32 %v2428_v0, %v6810_v8 }
0x1046   :  { %v2612_v59 = vpop.permute.xlu1 %2611 }
0x1047   :  { %v2613_v34 = vsel %vm204_vm6, %v2612_v59, %v6874_v47  ;;  %v2433_v59 = vstv %s4724_s3  ;;  %s4747_s3 = sld [smem:[#allocation13 + $0x7]] }
0x1048   :  { %2626 = vrot.lane.b32.xlu0 %v2619_v52, %s5016_s4  ;;  %2622 = vrot.lane.b32.xlu1 %v2613_v34, %s5016_s4  ;;  %v2431_v34 = vmul.f32 %v2428_v0, %v6816_v26 }
0x104e   :  { %v2439_v19 = vpop.permute.xlu1 %2438 }
0x104f   :  { %v2440_v39 = vsel %vm204_vm6, %v2439_v19, %v6882_v12 }
0x1050   :  { %2450 = vrot.lane.b32.xlu1 %v2440_v39, %s5016_s4 }
0x1071   :  { %v2543_v2 = vpop.permute.xlu0 %2542 }
0x1072   :  { %v2541_v24 = vpop.permute.xlu2 %2540  ;;  %v2549_v9 = vsel %vm204_vm6, %v2543_v2, %v6812_v40 }
0x1073   :  { %v2548_v18 = vsel %vm204_vm6, %v2541_v24, %v6814_v5  ;;  %2558 = vrot.lane.b32.xlu0 %v2549_v9, %s5017_s5  ;;  %2584 = vrot.lane.b32.xlu1 %v2549_v9, %s5018_s26 }
0x1074   :  { %2556 = vrot.lane.b32.xlu2 %v2548_v18, %s5017_s5 }
0x107a   :  { %v2547_v62 = vpop.permute.xlu2 %2546 }
0x107b   :  { %2582 = vrot.lane.b32.xlu0 %v2548_v18, %s5018_s26  ;;  %v2551_v55 = vsel %vm204_vm6, %v2547_v62, %v6810_v8  ;;  %v2437_v18 = vadd.f32 %v2433_v59, %v2432_v63  ;;  %v2435_v62 = vadd.f32 %v2433_v59, %v2430_v10 }
0x1082   :  { %v2453_v51 = vpop.permute.xlu2 %2452 }
0x1083   :  { %v2459_v17 = vsel %vm204_vm6, %v2453_v51, %v6847_v33  ;;  %v2436_v51 = vadd.f32 %v2433_v59, %v2431_v34 }
0x108a   :  { %v2625_v7 = vpop.permute.xlu2 %2624 }
0x108b   :  { %v2630_v57 = vsel %vm204_vm6, %v2625_v7, %v6831_v61 }
0x1092   :  { %v2545_v41 = vpop.permute.xlu1 %2544 }
0x1093   :  { %v2550_v43 = vsel %vm204_vm6, %v2545_v41, %v6816_v26 }
0x1094   :  { %2586 = vrot.lane.b32.xlu0 %v2550_v43, %s5018_s26  ;;  %2560 = vrot.lane.b32.xlu2 %v2550_v43, %s5017_s5  ;;  %v2493_v43 = vstv %s4727_s15  ;;  %s4749_s15 = sld [smem:[#allocation9 + $0x4c]] }
0x109c   :  { %2588 = vrot.lane.b32.xlu0 %v2551_v55, %s5018_s26  ;;  %2562 = vrot.lane.b32.xlu2 %v2551_v55, %s5017_s5 }
0x10a2   :  { %v2455_v44 = vpop.permute.xlu0 %2454 }
0x10a3   :  { %v2460_v60 = vsel %vm204_vm6, %v2455_v44, %v6854_v31  ;;  %v2519_v44 = vstv %s4728_s16  ;;  %s4748_s16 = sld [smem:[#allocation10 + $0x8]] }
0x10a4   :  { %2470 = vrot.lane.b32.xlu0 %v2460_v60, %s5017_s5  ;;  %2468 = vrot.lane.b32.xlu2 %v2459_v17, %s5017_s5 }
0x10aa   :  { %v2457_v28 = vpop.permute.xlu1 %2456 }
0x10ab   :  { %v2461_v14 = vsel %vm204_vm6, %v2457_v28, %v6861_v21 }
0x10ac   :  { %2504 = vrot.lane.b32.xlu0 %v2459_v17, %s5018_s26  ;;  %2472 = vrot.lane.b32.xlu1 %v2461_v14, %s5017_s5 }
0x10b2   :  { %v2621_v23 = vpop.permute.xlu0 %2620 }
0x10b3   :  { %v2628_v29 = vsel %vm204_vm6, %v2621_v23, %v6868_v4  ;;  %v2497_v23 = vmul.f32 %v2493_v43, %v6861_v21 }
0x10b4   :  { %2672 = vrot.lane.b32.xlu0 %v2628_v29, %s5018_s26  ;;  %2506 = vrot.lane.b32.xlu1 %v2460_v60, %s5018_s26 }
0x10ba   :  { %v2627_v3 = vpop.permute.xlu0 %2626  ;;  %v2623_v35 = vpop.permute.xlu1 %2622 }
0x10bb   :  { %v2631_v1 = vsel %vm204_vm6, %v2627_v3, %v6835_v25  ;;  %v2629_v54 = vsel %vm204_vm6, %v2623_v35, %v6874_v47  ;;  %v2429_v35 = vmul.f32 %v2428_v0, %v6814_v5 }
0x10bc   :  { %2678 = vrot.lane.b32.xlu0 %v2631_v1, %s5018_s26  ;;  %2508 = vrot.lane.b32.xlu1 %v2461_v14, %s5018_s26 }
0x10bd   :  { %2638 = vrot.lane.b32.xlu2 %v2629_v54, %s5017_s5 }
0x10c2   :  { %v2451_v11 = vpop.permute.xlu1 %2450 }
0x10c3   :  { %v2458_v42 = vsel %vm204_vm6, %v2451_v11, %v6882_v12  ;;  %v2496_v11 = vmul.f32 %v2493_v43, %v6854_v31  ;;  %v2573_v31 = vstv %s4729_s17  ;;  %s4750_s17 = sld [smem:[#allocation9 + $0x48]] }
0x10c4   :  { %2636 = vrot.lane.b32.xlu1 %v2628_v29, %s5017_s5 }
0x10c5   :  { %2502 = vrot.lane.b32.xlu2 %v2458_v42, %s5018_s26 }
0x10cc   :  { %2466 = vrot.lane.b32.xlu1 %v2458_v42, %s5017_s5 }
0x10cd   :  { %2642 = vrot.lane.b32.xlu2 %v2631_v1, %s5017_s5  ;;  %v2495_v1 = vmul.f32 %v2493_v43, %v6847_v33 }
0x10ce   :  { %v6970_v27 = vpop.permute.xlu2 %2556 }
0x10d4   :  { %2640 = vrot.lane.b32.xlu1 %v2630_v57, %s5017_s5 }
0x10d5   :  { %2676 = vrot.lane.b32.xlu2 %v2630_v57, %s5018_s26  ;;  %v2494_v57 = vmul.f32 %v2493_v43, %v6882_v12 }
0x10dc   :  { %2674 = vrot.lane.b32.xlu1 %v2629_v54, %s5018_s26 }
0x10e5   :  { %v2559_v22 = vpop.permute.xlu0 %2558  ;;  %v6976_v49 = vpop.permute.xlu1 %2584 }
0x10ed   :  { %v6974_v45 = vpop.permute.xlu0 %2582 }
0x10ee   :  { %v6972_v32 = vpop.permute.xlu2 %2560 }
0x10f6   :  { %v2563_v20 = vpop.permute.xlu2 %2562 }
0x10fe   :  { %v2469_v13 = vpop.permute.xlu2 %2468 }
0x10ff   :  { %v2479_v53 = vsel %vm125_vm8, %v2469_v13, 0.0  ;;  %v2569_v13 = vsel %vm125_vm8, %v2559_v22, 0.0 }
0x1100   :  { %v2485_v2 = vmul.f32 %v2483_v58, %v2479_v53  ;;  %v2599_v53 = vstv %s6997_s0  ;;  %v2575_v34 = vmul.f32 %v2573_v31, %v2569_v13  ;;  %s4751_s0 = sld [smem:[#allocation9 + $0x49]] }
0x1102   :  { %v2489_v28 = vadd.f32 %v2485_v2, %v2435_v62  ;;  %v2595_v2 = vsel %vm126_vm9, %v6976_v49, 0.0 }
0x1103   :  { %v2601_v49 = vmul.f32 %v2599_v53, %v2595_v2 }
0x1104   :  { %v2499_v21 = vadd.f32 %v2495_v1, %v2489_v28 }
0x1106   :  { %v6978_v46 = vpop.permute.xlu0 %2586 }
0x110e   :  { %v6980_v56 = vpop.permute.xlu0 %2588 }
0x1116   :  { %v2471_v36 = vpop.permute.xlu0 %2470 }
0x1117   :  { %v6982_v6 = vpop.permute.xlu2 %2638  ;;  %v2480_v52 = vsel %vm125_vm8, %v2471_v36, 0.0 }
0x1118   :  { %v2486_v9 = vmul.f32 %v2483_v58, %v2480_v52 }
0x111a   :  { %v2490_v29 = vadd.f32 %v2486_v9, %v2436_v51 }
0x111c   :  { %v2500_v36 = vadd.f32 %v2496_v11, %v2490_v29 }
0x111e   :  { %v2473_v48 = vpop.permute.xlu1 %2472  ;;  %v2505_v24 = vpop.permute.xlu0 %2504 }
0x111f   :  { %v2481_v38 = vsel %vm125_vm8, %v2473_v48, 0.0  ;;  %v2503_v19 = vpop.permute.xlu2 %2502  ;;  %v2515_v17 = vsel %vm126_vm9, %v2505_v24, 0.0  ;;  %v2571_v48 = vsel %vm125_vm8, %v2563_v20, 0.0 }
0x1120   :  { %v2487_v39 = vmul.f32 %v2483_v58, %v2481_v38  ;;  %v2521_v54 = vmul.f32 %v2519_v44, %v2515_v17  ;;  %v2570_v38 = vsel %vm125_vm8, %v6972_v32, 0.0  ;;  %v2577_v63 = vmul.f32 %v2573_v31, %v2571_v48 }
0x1121   :  { %v2514_v32 = vsel %vm126_vm9, %v2503_v19, 0.0  ;;  %v2576_v24 = vmul.f32 %v2573_v31, %v2570_v38 }
0x1122   :  { %v2491_v60 = vadd.f32 %v2487_v39, %v2437_v18  ;;  %v2525_v12 = vadd.f32 %v2521_v54, %v2499_v21  ;;  %v2597_v39 = vsel %vm126_vm9, %v6980_v56, 0.0  ;;  %v2663_v18 = vstv %s7005_s18  ;;  %s4752_s18 = sld [smem:[#allocation9 + $0x4a]] }
0x1123   :  { %v2596_v56 = vsel %vm126_vm9, %v6978_v46, 0.0  ;;  %v2603_v19 = vmul.f32 %v2599_v53, %v2597_v39  ;;  %v2520_v62 = vmul.f32 %v2519_v44, %v2514_v32  ;;  %v2666_v48 = vmul.f32 %v2663_v18, %v6831_v61 }
0x1124   :  { %v2501_v7 = vadd.f32 %v2497_v23, %v2491_v60  ;;  %v2579_v43 = vadd.f32 %v2575_v34, %v2525_v12  ;;  %v2653_v60 = vstv %s7012_s19  ;;  %v2667_v38 = vmul.f32 %v2663_v18, %v6835_v25  ;;  %s4753_s19 = sld [smem:[#allocation9 + $0x4b]] }
0x1125   :  { %v2664_v12 = vmul.f32 %v2663_v18, %v6868_v4 }
0x1126   :  { %v2507_v16 = vpop.permute.xlu1 %2506  ;;  %v2673_v10 = vpop.permute.xlu0 %2672 }
0x1127   :  { %v2516_v14 = vsel %vm126_vm9, %v2507_v16, 0.0  ;;  %v2643_v16 = vpop.permute.xlu2 %2642 }
0x1128   :  { %v2522_v42 = vmul.f32 %v2519_v44, %v2516_v14  ;;  %v2651_v28 = vsel %vm125_vm8, %v2643_v16, 0.0  ;;  %v2602_v14 = vmul.f32 %v2599_v53, %v2596_v56 }
0x1129   :  { %v2657_v54 = vmul.f32 %v2653_v60, %v2651_v28 }
0x112a   :  { %v2526_v52 = vadd.f32 %v2522_v42, %v2500_v36 }
0x112e   :  { %v2509_v37 = vpop.permute.xlu1 %2508  ;;  %v2679_v21 = vpop.permute.xlu0 %2678 }
0x112f   :  { %v2517_v55 = vsel %vm126_vm9, %v2509_v37, 0.0  ;;  %v2434_v37 = vadd.f32 %v2433_v59, %v2429_v35  ;;  %v2568_v59 = vsel %vm125_vm8, %v6970_v27, 0.0  ;;  %v2594_v27 = vsel %vm126_vm9, %v6974_v45, 0.0  ;;  %v2677_v11 = vpop.permute.xlu2 %2676 }
0x1130   :  { %v2523_v3 = vmul.f32 %v2519_v44, %v2517_v55  ;;  %v2580_v55 = vadd.f32 %v2576_v24, %v2526_v52  ;;  %v2574_v17 = vmul.f32 %v2573_v31, %v2568_v59  ;;  %v2649_v45 = vsel %vm125_vm8, %v6982_v6, 0.0 }
0x1131   :  { %v2605_v35 = vadd.f32 %v2601_v49, %v2579_v43  ;;  %v2655_v6 = vmul.f32 %v2653_v60, %v2649_v45 }
0x1132   :  { %v2527_v33 = vadd.f32 %v2523_v3, %v2501_v7  ;;  %v2600_v3 = vmul.f32 %v2599_v53, %v2594_v27  ;;  %v2606_v7 = vadd.f32 %v2602_v14, %v2580_v55  ;;  %v2665_v53 = vmul.f32 %v2663_v18, %v6874_v47 }
0x1133   :  { %v2659_v31 = vadd.f32 %v2655_v6, %v2605_v35 }
0x1134   :  { %v2581_v9 = vadd.f32 %v2577_v63, %v2527_v33  ;;  %v2687_v63 = vsel %vm126_vm9, %v2679_v21, 0.0 }
0x1135   :  { %v2669_v39 = vadd.f32 %v2665_v53, %v2659_v31 }
0x1136   :  { %v6993_v41 = vpop.permute.xlu1 %2636  ;;  %v2607_v23 = vadd.f32 %v2603_v19, %v2581_v9 }
0x1137   :  { %v2648_v44 = vsel %vm125_vm8, %v6993_v41, 0.0  ;;  %v2684_v41 = vsel %vm126_vm9, %v2673_v10, 0.0 }
0x1138   :  { %v2661_v13 = vadd.f32 %v2657_v54, %v2607_v23  ;;  %v2654_v16 = vmul.f32 %v2653_v60, %v2648_v44 }
0x113a   :  { %v2671_v10 = vadd.f32 %v2667_v38, %v2661_v13 }
0x113e   :  { %v2467_v0 = vpop.permute.xlu1 %2466 }
0x113f   :  { %v2478_v20 = vsel %vm125_vm8, %v2467_v0, 0.0  ;;  %v2686_v0 = vsel %vm126_vm9, %v2677_v11, 0.0 }
0x1140   :  { %v2484_v22 = vmul.f32 %v2483_v58, %v2478_v20 }
0x1142   :  { %v2488_v58 = vadd.f32 %v2484_v22, %v2434_v37  ;;  %v2689_v37 = vstv %s4733_s20  ;;  %s7569_s20 = sld [smem:[#allocation9 + $0x4d]] }
0x1143   :  { %v2690_v52 = vmul.f32 %v2689_v37, %v2684_v41  ;;  %v2692_v22 = vmul.f32 %v2689_v37, %v2686_v0  ;;  %v2693_v2 = vmul.f32 %v2689_v37, %v2687_v63 }
0x1144   :  { %v2498_v51 = vadd.f32 %v2494_v57, %v2488_v58 }
0x1145   :  { %v7069_v47 = vadd.f32 %v2693_v2, %v2671_v10 }
0x1146   :  { %v2524_v29 = vadd.f32 %v2520_v62, %v2498_v51  ;;  %v2641_v46 = vpop.permute.xlu1 %2640 }
0x1147   :  { %v2650_v1 = vsel %vm125_vm8, %v2641_v46, 0.0  ;;  %v2718_v55 = vmul.f32 %v7069_v47, %v7069_v47  ;;  %v2703_v28 = vsel %vm465_vm10, %v7069_v47, 0.0 }
0x1148   :  { %v2578_v42 = vadd.f32 %v2574_v17, %v2524_v29  ;;  %v2656_v57 = vmul.f32 %v2653_v60, %v2650_v1 }
0x1149   :  { %v2724_v29 = vsel %vm465_vm10, %v2718_v55, 0.0 }
0x114a   :  { %v2604_v36 = vadd.f32 %v2600_v3, %v2578_v42  ;;  %v2660_v33 = vadd.f32 %v2656_v57, %v2606_v7 }
0x114c   :  { %v2658_v20 = vadd.f32 %v2654_v16, %v2604_v36  ;;  %v2670_v61 = vadd.f32 %v2666_v48, %v2660_v33 }
0x114e   :  { %v2675_v59 = vpop.permute.xlu1 %2674  ;;  %v2668_v34 = vadd.f32 %v2664_v12, %v2658_v20  ;;  %v7063_v25 = vadd.f32 %v2692_v22, %v2670_v61  ;;  %v2752_v22 = vstv %s4734_s23  ;;  %s7609_s23 = sld [smem:[#allocation9 + $0x50]] }
0x114f   :  { %v2685_v32 = vsel %vm126_vm9, %v2675_v59, 0.0 }
0x1150   :  { %v2691_v4 = vmul.f32 %v2689_v37, %v2685_v32  ;;  %v7065_v24 = vadd.f32 %v2690_v52, %v2668_v34  ;;  %v2717_v43 = vmul.f32 %v7063_v25, %v7063_v25  ;;  %v2701_v62 = vsel %vm465_vm10, %v7063_v25, 0.0 }
0x1152   :  { %v7067_v9 = vadd.f32 %v2691_v4, %v2669_v39  ;;  %v2715_v58 = vmul.f32 %v7065_v24, %v7065_v24  ;;  %v2698_v27 = vsel %vm465_vm10, %v7065_v24, 0.0  ;;  %v2722_v14 = vsel %vm465_vm10, %v2717_v43, 0.0 }
0x1153   :  { %v2763_v4 = vstv %s4735_s1 }
0x1154   :  { %v2716_v18 = vmul.f32 %v7067_v9, %v7067_v9  ;;  %v2699_v56 = vsel %vm465_vm10, %v7067_v9, 0.0  ;;  %v2719_v51 = vsel %vm465_vm10, %v2715_v58, 0.0 }
0x1155   :  { %v2700_v19 = vadd.f32 %v2699_v56, %v2698_v27 }
0x1156   :  { %v2720_v17 = vsel %vm465_vm10, %v2716_v18, 0.0 }
0x1157   :  { %v2702_v49 = vadd.f32 %v2701_v62, %v2700_v19  ;;  %v2721_v60 = vadd.f32 %v2720_v17, %v2719_v51 }
0x1159   :  { %v2704_v45 = vadd.f32 %v2703_v28, %v2702_v49  ;;  %v2723_v23 = vadd.f32 %v2722_v14, %v2721_v60 }
0x115b   :  { %2705 = vadd.xlane.f32.xlu1 %v2704_v45  ;;  %v2725_v46 = vadd.f32 %v2724_v29, %v2723_v23 }
0x115d   :  { %2726 = vadd.xlane.f32.xlu2 %v2725_v46 }
0x11ce   :  { %v2706_v3 = vpop.xlane.xlu1 %2705 }
0x11cf   :  { %v2707_v35 = vrot.slane %v2706_v3, 4 }
0x11d0   :  { %v2727_v44 = vpop.xlane.xlu2 %2726 }
0x11d1   :  { %v2708_v1 = vadd.f32 %v2707_v35, %v2706_v3  ;;  %v2728_v54 = vrot.slane %v2727_v44, 4 }
0x11d3   :  { %v2729_v11 = vadd.f32 %v2728_v54, %v2727_v44  ;;  %v2709_v42 = vrot.slane %v2708_v1, 2 }
0x11d5   :  { %v2710_v7 = vadd.f32 %v2709_v42, %v2708_v1  ;;  %v2730_v57 = vrot.slane %v2729_v11, 2 }
0x11d7   :  { %v2711_v48 = vrot.slane %v2710_v7, 1  ;;  %v2731_v6 = vadd.f32 %v2730_v57, %v2729_v11 }
0x11d9   :  { %v2712_v21 = vadd.f32 %v2711_v48, %v2710_v7  ;;  %v2732_v13 = vrot.slane %v2731_v6, 1 }
0x11db   :  { %4820 = vpush %v2712_v21  ;;  %v2733_v16 = vadd.f32 %v2732_v13, %v2731_v6 }
0x11dd   :  { %4822 = vpush %v2733_v16 }
0x120c   :  { %s4821_s21 = spop %4820 }
0x120d   :  { %v2714_v36 = vstv %s4821_s21  ;;  %s7574_s21 = sld [smem:[#allocation9 + $0x4e]] }
0x120e   :  { %v2736_v33 = vmul.f32 0.00048828125, %v2714_v36  ;;  %s4823_s22 = spop %4822 }
0x120f   :  { %v2735_v37 = vstv %s4823_s22  ;;  %s7583_s22 = sld [smem:[#allocation9 + $0x4f]] }
0x1210   :  { %v2737_v41 = vmul.f32 0.00048828125, %v2735_v37  ;;  %v2738_v0 = vmul.f32 %v2736_v33, %v2736_v33  ;;  %v2754_v59 = vsub.f32 %v7065_v24, %v2736_v33  ;;  %v2755_v10 = vsub.f32 %v7067_v9, %v2736_v33 }
0x1211   :  { %v2756_v39 = vsub.f32 %v7063_v25, %v2736_v33  ;;  %v2757_v32 = vsub.f32 %v7069_v47, %v2736_v33 }
0x1212   :  { %v2739_v31 = vsub.f32 %v2737_v41, %v2738_v0 }
0x1214   :  { %v2741_v38 = vadd.f32 1e-05, %v2739_v31 }
0x1216   :  { %4863 = vrsqrt.f32 %v2741_v38  ;;  %vm2748_vm14 = vweird.f32 %v2741_v38 }
0x121c   :  { %v4864_v12 = vpop.eup %4863 }
0x121d   :  { %v2743_v20 = vmul.f32 %v4864_v12, %v2741_v38  ;;  %vm2749_vm13 = vweird.f32 %v4864_v12 }
0x121e   :  { %vm2750_vm15 = vmor %vm2748_vm14, %vm2749_vm13 }
0x121f   :  { %v2744_v61 = vmul.f32 %v4864_v12, %v2743_v20 }
0x1221   :  { %v2745_v53 = vmul.f32 0.5, %v2744_v61 }
0x1223   :  { %v2746_v63 = vsub.f32 1.5, %v2745_v53 }
0x1225   :  { %v2747_v52 = vmul.f32 %v4864_v12, %v2746_v63 }
0x1227   :  { %v2751_v34 = vsel %vm2750_vm15, %v4864_v12, %v2747_v52 }
0x1228   :  { %v2753_v2 = vmul.f32 %v2752_v22, %v2751_v34 }
0x122a   :  { %v2761_v58 = vmul.f32 %v2757_v32, %v2753_v2  ;;  %v2760_v18 = vmul.f32 %v2756_v39, %v2753_v2  ;;  %v2759_v27 = vmul.f32 %v2755_v10, %v2753_v2  ;;  %v2758_v56 = vmul.f32 %v2754_v59, %v2753_v2 }
0x122c   :  { %v2767_v43 = vadd.f32 %v2763_v4, %v2761_v58  ;;  %v2766_v19 = vadd.f32 %v2763_v4, %v2760_v18  ;;  %v2765_v62 = vadd.f32 %v2763_v4, %v2759_v27  ;;  %v2764_v55 = vadd.f32 %v2763_v4, %v2758_v56 }
0x122e   :  { %v7095_v51 = vmax.f32 %v2767_v43, 0.0  ;;  %v7097_v24 = vmax.f32 %v2766_v19, 0.0  ;;  %v7099_v17 = vmax.f32 %v2765_v62, 0.0  ;;  %v7101_v9 = vmax.f32 %v2764_v55, 0.0 }
0x1230   :  { %2904 = vrot.lane.b32.xlu2 %v7097_v24, %s5016_s4  ;;  %2901 = vrot.lane.b32.xlu1 %v7099_v17, %s5016_s4  ;;  %v2787_v25 = vrot.slane %v7095_v51, 1  ;;  %v2784_v47 = vrot.slane %v7101_v9, 1  ;;  %v2786_v49 = vrot.slane %v7097_v24, 1  ;;  %v2772_v45 = vrot.slane %v7101_v9, 7 }
0x1231   :  { %2898 = vrot.lane.b32.xlu0 %v7101_v9, %s5016_s4  ;;  %v2773_v23 = vrot.slane %v7099_v17, 7  ;;  %v2774_v46 = vrot.slane %v7097_v24, 7  ;;  %v2775_v35 = vrot.slane %v7095_v51, 7  ;;  %v2785_v1 = vrot.slane %v7099_v17, 1 }
0x1232   :  { %v2791_v60 = vsel %vm183_vm3, %v2787_v25, %v2784_v47  ;;  %v7116_v28 = vsel %vm183_vm3, %v2786_v49, %v2787_v25 }
0x1233   :  { %v7120_v14 = vsel %vm124_vm4, %v2791_v60, 0.0  ;;  %v7132_v29 = vsel %vm170_vm2, %v2772_v45, %v2773_v23  ;;  %v7139_v3 = vsel %vm170_vm2, %v2773_v23, %v2774_v46  ;;  %v7146_v44 = vsel %vm170_vm2, %v2774_v46, %v2775_v35 }
0x1234   :  { %v7153_v54 = vsel %vm183_vm3, %v2784_v47, %v2785_v1  ;;  %v7159_v11 = vsel %vm183_vm3, %v2785_v1, %v2786_v49  ;;  %v2779_v42 = vsel %vm170_vm2, %v2775_v35, %v2772_v45 }
0x1235   :  { %v7167_v7 = vsel %vm117_vm5, %v2779_v42, 0.0 }
0x1238   :  { %2984 = vrot.lane.b32.xlu1 %v7116_v28, %s5016_s4  ;;  %2987 = vrot.lane.b32.xlu2 %v7120_v14, %s5016_s4 }
0x1239   :  { %2907 = vrot.lane.b32.xlu0 %v7095_v51, %s5016_s4 }
0x1241   :  { %2811 = vrot.lane.b32.xlu0 %v7132_v29, %s5016_s4 }
0x1249   :  { %2814 = vrot.lane.b32.xlu0 %v7139_v3, %s5016_s4 }
0x1251   :  { %2817 = vrot.lane.b32.xlu0 %v7146_v44, %s5016_s4 }
0x1259   :  { %2978 = vrot.lane.b32.xlu0 %v7153_v54, %s5016_s4 }
0x1261   :  { %2981 = vrot.lane.b32.xlu0 %v7159_v11, %s5016_s4 }
0x1269   :  { %2808 = vrot.lane.b32.xlu0 %v7167_v7, %s5016_s4 }
0x128a   :  { %v2905_v57 = vpop.permute.xlu2 %2904 }
0x128b   :  { %v2906_v48 = vsel %vm204_vm6, %v2905_v57, %v7097_v24 }
0x128c   :  { %2914 = vrot.lane.b32.xlu0 %v2906_v48, %s5016_s4 }
0x1292   :  { %v2988_v52 = vpop.permute.xlu2 %2987 }
0x1293   :  { %v2989_v59 = vsel %vm204_vm6, %v2988_v52, %v7120_v14  ;;  %v2853_v52 = vstv %s4738_s25  ;;  %s4758_s25 = sld [smem:[#allocation11 + $0x8]] }
0x12a2   :  { %v2902_v6 = vpop.permute.xlu1 %2901 }
0x12a3   :  { %v2903_v21 = vsel %vm204_vm6, %v2902_v6, %v7099_v17  ;;  %v2899_v13 = vpop.permute.xlu0 %2898 }
0x12a4   :  { %v2900_v16 = vsel %vm204_vm6, %v2899_v13, %v7101_v9  ;;  %2912 = vrot.lane.b32.xlu2 %v2903_v21, %s5016_s4 }
0x12a5   :  { %2910 = vrot.lane.b32.xlu1 %v2900_v16, %s5016_s4 }
0x12aa   :  { %v2985_v0 = vpop.permute.xlu1 %2984 }
0x12ab   :  { %v2908_v36 = vpop.permute.xlu0 %2907  ;;  %v2986_v38 = vsel %vm204_vm6, %v2985_v0, %v7116_v28 }
0x12ac   :  { %v2909_v33 = vsel %vm204_vm6, %v2908_v36, %v7095_v51 }
0x12ad   :  { %2916 = vrot.lane.b32.xlu1 %v2909_v33, %s5016_s4 }
0x12b3   :  { %v2812_v37 = vpop.permute.xlu0 %2811 }
0x12b4   :  { %v2813_v41 = vsel %vm204_vm6, %v2812_v37, %v7132_v29 }
0x12b5   :  { %2822 = vrot.lane.b32.xlu1 %v2813_v41, %s5016_s4 }
0x12bb   :  { %v2815_v31 = vpop.permute.xlu0 %2814 }
0x12bc   :  { %v2816_v12 = vsel %vm204_vm6, %v2815_v31, %v7139_v3 }
0x12bd   :  { %2994 = vrot.lane.b32.xlu1 %v2986_v38, %s5016_s4  ;;  %2824 = vrot.lane.b32.xlu2 %v2816_v12, %s5016_s4 }
0x12c3   :  { %v2818_v20 = vpop.permute.xlu0 %2817 }
0x12c4   :  { %v2819_v61 = vsel %vm204_vm6, %v2818_v20, %v7146_v44 }
0x12c5   :  { %2826 = vrot.lane.b32.xlu0 %v2819_v61, %s5016_s4 }
0x12cb   :  { %v2979_v53 = vpop.permute.xlu0 %2978 }
0x12cc   :  { %v2980_v63 = vsel %vm204_vm6, %v2979_v53, %v7153_v54 }
0x12cd   :  { %2990 = vrot.lane.b32.xlu2 %v2980_v63, %s5016_s4  ;;  %v2798_v63 = vstv %s4737_s24 }
0x12d3   :  { %v2982_v22 = vpop.permute.xlu0 %2981 }
0x12d4   :  { %v2983_v34 = vsel %vm204_vm6, %v2982_v22, %v7159_v11 }
0x12d5   :  { %2996 = vrot.lane.b32.xlu2 %v2989_v59, %s5016_s4  ;;  %2992 = vrot.lane.b32.xlu0 %v2983_v34, %s5016_s4  ;;  %v2801_v34 = vmul.f32 %v2798_v63, %v7097_v24 }
0x12db   :  { %v2809_v10 = vpop.permute.xlu0 %2808 }
0x12dc   :  { %v2810_v39 = vsel %vm204_vm6, %v2809_v10, %v7167_v7  ;;  %v2800_v10 = vmul.f32 %v2798_v63, %v7099_v17 }
0x12dd   :  { %2820 = vrot.lane.b32.xlu0 %v2810_v39, %s5016_s4 }
0x12fe   :  { %v2913_v32 = vpop.permute.xlu2 %2912  ;;  %v2915_v18 = vpop.permute.xlu0 %2914 }
0x12ff   :  { %v2919_v2 = vsel %vm204_vm6, %v2913_v32, %v7099_v17  ;;  %v2920_v27 = vsel %vm204_vm6, %v2915_v18, %v7097_v24  ;;  %v2803_v32 = vstv %s4736_s27  ;;  %v2863_v24 = vstv %s4739_s28  ;;  %s4759_s27 = sld [smem:[#allocation13 + $0x8]] }
0x1300   :  { %2928 = vrot.lane.b32.xlu2 %v2919_v2, %s5017_s5  ;;  %2954 = vrot.lane.b32.xlu0 %v2919_v2, %s5018_s26  ;;  %v2802_v2 = vmul.f32 %v2798_v63, %v7095_v51  ;;  %s4762_s28 = sld [smem:[#allocation9 + $0x51]] }
0x1302   :  { %v2807_v17 = vadd.f32 %v2803_v32, %v2802_v2 }
0x1317   :  { %v2911_v4 = vpop.permute.xlu1 %2910  ;;  %v2825_v19 = vpop.permute.xlu2 %2824 }
0x1318   :  { %v2918_v58 = vsel %vm204_vm6, %v2911_v4, %v7101_v9  ;;  %v2830_v55 = vsel %vm204_vm6, %v2825_v19, %v7139_v3  ;;  %v2805_v19 = vadd.f32 %v2803_v32, %v2800_v10 }
0x1319   :  { %2926 = vrot.lane.b32.xlu1 %v2918_v58, %s5017_s5  ;;  %2952 = vrot.lane.b32.xlu2 %v2918_v58, %s5018_s26 }
0x131f   :  { %v2917_v56 = vpop.permute.xlu1 %2916 }
0x1320   :  { %v2921_v43 = vsel %vm204_vm6, %v2917_v56, %v7095_v51 }
0x1321   :  { %2956 = vrot.lane.b32.xlu2 %v2920_v27, %s5018_s26  ;;  %2930 = vrot.lane.b32.xlu1 %v2920_v27, %s5017_s5 }
0x1327   :  { %v2823_v62 = vpop.permute.xlu1 %2822  ;;  %v2991_v60 = vpop.permute.xlu2 %2990 }
0x1328   :  { %v2829_v25 = vsel %vm204_vm6, %v2823_v62, %v7132_v29  ;;  %v2998_v45 = vsel %vm204_vm6, %v2991_v60, %v7153_v54 }
0x1329   :  { %2958 = vrot.lane.b32.xlu2 %v2921_v43, %s5018_s26  ;;  %2932 = vrot.lane.b32.xlu1 %v2921_v43, %s5017_s5  ;;  %v2806_v43 = vadd.f32 %v2803_v32, %v2801_v34 }
0x132f   :  { %v2997_v23 = vpop.permute.xlu2 %2996  ;;  %v2995_v48 = vpop.permute.xlu1 %2994 }
0x1330   :  { %v3001_v35 = vsel %vm204_vm6, %v2997_v23, %v7120_v14  ;;  %v3000_v6 = vsel %vm204_vm6, %v2995_v48, %v7116_v28  ;;  %v2865_v23 = vmul.f32 %v2863_v24, %v7132_v29  ;;  %v2864_v29 = vmul.f32 %v2863_v24, %v7167_v7 }
0x1331   :  { %2840 = vrot.lane.b32.xlu2 %v2830_v55, %s5017_s5  ;;  %2838 = vrot.lane.b32.xlu1 %v2829_v25, %s5017_s5 }
0x1337   :  { %v2827_v47 = vpop.permute.xlu0 %2826 }
0x1338   :  { %v2831_v49 = vsel %vm204_vm6, %v2827_v47, %v7146_v44 }
0x1339   :  { %2874 = vrot.lane.b32.xlu2 %v2829_v25, %s5018_s26  ;;  %2842 = vrot.lane.b32.xlu0 %v2831_v49, %s5017_s5 }
0x1341   :  { %3042 = vrot.lane.b32.xlu2 %v2998_v45, %s5018_s26  ;;  %2876 = vrot.lane.b32.xlu0 %v2830_v55, %s5018_s26 }
0x1347   :  { %v2993_v46 = vpop.permute.xlu0 %2992 }
0x1348   :  { %v2999_v1 = vsel %vm204_vm6, %v2993_v46, %v7159_v11  ;;  %v2866_v46 = vmul.f32 %v2863_v24, %v7139_v3 }
0x1349   :  { %3048 = vrot.lane.b32.xlu2 %v3001_v35, %s5018_s26  ;;  %2878 = vrot.lane.b32.xlu0 %v2831_v49, %s5018_s26  ;;  %v2889_v49 = vstv %s4740_s29  ;;  %s4763_s29 = sld [smem:[#allocation9 + $0x52]] }
0x134a   :  { %3008 = vrot.lane.b32.xlu1 %v2999_v1, %s5017_s5 }
0x134f   :  { %v2821_v42 = vpop.permute.xlu0 %2820 }
0x1350   :  { %v2828_v57 = vsel %vm204_vm6, %v2821_v42, %v7167_v7  ;;  %v2867_v42 = vmul.f32 %v2863_v24, %v7146_v44 }
0x1351   :  { %3006 = vrot.lane.b32.xlu0 %v2998_v45, %s5017_s5  ;;  %v2799_v45 = vmul.f32 %v2798_v63, %v7101_v9 }
0x1352   :  { %2872 = vrot.lane.b32.xlu1 %v2828_v57, %s5018_s26 }
0x1353   :  { %v2804_v44 = vadd.f32 %v2803_v32, %v2799_v45 }
0x1359   :  { %2836 = vrot.lane.b32.xlu0 %v2828_v57, %s5017_s5 }
0x135a   :  { %3012 = vrot.lane.b32.xlu1 %v3001_v35, %s5017_s5  ;;  %v2929_v21 = vpop.permute.xlu2 %2928 }
0x1361   :  { %3010 = vrot.lane.b32.xlu0 %v3000_v6, %s5017_s5 }
0x1362   :  { %3046 = vrot.lane.b32.xlu1 %v3000_v6, %s5018_s26  ;;  %v2943_v6 = vstv %s4741_s8  ;;  %s7851_s8 = sld [smem:[#allocation9 + $0x54]] }
0x1369   :  { %3044 = vrot.lane.b32.xlu0 %v2999_v1, %s5018_s26  ;;  %v7287_v1 = vstv %s4744_s30  ;;  %s4764_s30 = sld [smem:[#allocation9 + $0x53]] }
0x1372   :  { %v7259_v33 = vpop.permute.xlu0 %2954 }
0x1373   :  { %v7257_v16 = vpop.permute.xlu2 %2952 }
0x137b   :  { %v7261_v37 = vpop.permute.xlu2 %2956 }
0x1383   :  { %v7263_v31 = vpop.permute.xlu2 %2958 }
0x138b   :  { %v7255_v13 = vpop.permute.xlu1 %2926  ;;  %v2841_v20 = vpop.permute.xlu2 %2840 }
0x138c   :  { %v2850_v22 = vsel %vm125_vm8, %v2841_v20, 0.0 }
0x138d   :  { %v2856_v4 = vmul.f32 %v2853_v52, %v2850_v22 }
0x138f   :  { %v2860_v25 = vadd.f32 %v2856_v4, %v2806_v43  ;;  %v2938_v43 = vsel %vm125_vm8, %v7255_v13, 0.0 }
0x1391   :  { %v2870_v9 = vadd.f32 %v2866_v46, %v2860_v25  ;;  %v3023_v25 = vstv %s7294_s10  ;;  %s7863_s10 = sld [smem:[#allocation9 + $0x58]] }
0x1393   :  { %v2931_v36 = vpop.permute.xlu1 %2930  ;;  %v2875_v58 = vpop.permute.xlu2 %2874 }
0x1394   :  { %v2885_v57 = vsel %vm126_vm9, %v2875_v58, 0.0  ;;  %v2940_v3 = vsel %vm125_vm8, %v2931_v36, 0.0  ;;  %v2965_v36 = vsel %vm126_vm9, %v7259_v33, 0.0  ;;  %v2967_v33 = vsel %vm126_vm9, %v7263_v31, 0.0 }
0x1395   :  { %v2946_v32 = vmul.f32 %v2943_v6, %v2940_v3 }
0x139b   :  { %v2933_v41 = vpop.permute.xlu1 %2932  ;;  %v3043_v63 = vpop.permute.xlu2 %3042 }
0x139c   :  { %v2941_v22 = vsel %vm125_vm8, %v2933_v41, 0.0  ;;  %v2964_v41 = vsel %vm126_vm9, %v7257_v16, 0.0 }
0x13a3   :  { %v2839_v12 = vpop.permute.xlu1 %2838 }
0x13a4   :  { %v2849_v59 = vsel %vm125_vm8, %v2839_v12, 0.0 }
0x13a5   :  { %v2855_v18 = vmul.f32 %v2853_v52, %v2849_v59 }
0x13a7   :  { %v2859_v47 = vadd.f32 %v2855_v18, %v2805_v19  ;;  %v2966_v18 = vsel %vm126_vm9, %v7261_v37, 0.0 }
0x13ab   :  { %v2843_v0 = vpop.permute.xlu0 %2842 }
0x13ac   :  { %v2851_v39 = vsel %vm125_vm8, %v2843_v0, 0.0  ;;  %v2939_v0 = vsel %vm125_vm8, %v2929_v21, 0.0 }
0x13ad   :  { %v2857_v27 = vmul.f32 %v2853_v52, %v2851_v39  ;;  %v2945_v10 = vmul.f32 %v2943_v6, %v2939_v0  ;;  %v2969_v39 = vstv %s7278_s9  ;;  %s7855_s9 = sld [smem:[#allocation9 + $0x56]] }
0x13ae   :  { %v2970_v46 = vmul.f32 %v2969_v39, %v2964_v41 }
0x13af   :  { %v2861_v60 = vadd.f32 %v2857_v27, %v2807_v17  ;;  %v2947_v27 = vmul.f32 %v2943_v6, %v2941_v22  ;;  %v3059_v22 = vstv %s7321_s11  ;;  %s7869_s11 = sld [smem:[#allocation9 + $0x57]] }
0x13b1   :  { %v2871_v12 = vadd.f32 %v2867_v42, %v2861_v60  ;;  %v2944_v60 = vmul.f32 %v2943_v6, %v2938_v43  ;;  %v3036_v6 = vmul.f32 %v7287_v1, %v7116_v28 }
0x13b3   :  { %v2877_v38 = vpop.permute.xlu0 %2876 }
0x13b4   :  { %v2886_v55 = vsel %vm126_vm9, %v2877_v38, 0.0  ;;  %v2869_v38 = vadd.f32 %v2865_v23, %v2859_v47 }
0x13b5   :  { %v2892_v35 = vmul.f32 %v2889_v49, %v2886_v55  ;;  %v2972_v55 = vmul.f32 %v2969_v39, %v2966_v18 }
0x13b7   :  { %v2896_v59 = vadd.f32 %v2892_v35, %v2870_v9  ;;  %v3037_v9 = vmul.f32 %v7287_v1, %v7120_v14 }
0x13b9   :  { %v2950_v19 = vadd.f32 %v2946_v32, %v2896_v59  ;;  %v3054_v59 = vsel %vm126_vm9, %v3043_v63, 0.0 }
0x13bb   :  { %v2879_v61 = vpop.permute.xlu0 %2878  ;;  %v2976_v42 = vadd.f32 %v2972_v55, %v2950_v19 }
0x13bc   :  { %v7265_v53 = vpop.permute.xlu1 %3008  ;;  %v2887_v51 = vsel %vm126_vm9, %v2879_v61, 0.0  ;;  %v2891_v61 = vmul.f32 %v2889_v49, %v2885_v57 }
0x13bd   :  { %v2893_v48 = vmul.f32 %v2889_v49, %v2887_v51  ;;  %v3019_v31 = vsel %vm125_vm8, %v7265_v53, 0.0  ;;  %v2973_v51 = vmul.f32 %v2969_v39, %v2967_v33 }
0x13be   :  { %v2895_v4 = vadd.f32 %v2891_v61, %v2869_v38  ;;  %v3025_v57 = vmul.f32 %v3023_v25, %v3019_v31  ;;  %v3034_v61 = vmul.f32 %v7287_v1, %v7153_v54 }
0x13bf   :  { %v2897_v2 = vadd.f32 %v2893_v48, %v2871_v12 }
0x13c0   :  { %v2949_v47 = vadd.f32 %v2945_v10, %v2895_v4 }
0x13c1   :  { %v2951_v24 = vadd.f32 %v2947_v27, %v2897_v2  ;;  %v3060_v2 = vmul.f32 %v3059_v22, %v3054_v59 }
0x13c3   :  { %v7276_v56 = vpop.permute.xlu0 %3006  ;;  %v2977_v48 = vadd.f32 %v2973_v51, %v2951_v24 }
0x13c4   :  { %v2873_v62 = vpop.permute.xlu1 %2872  ;;  %v3018_v35 = vsel %vm125_vm8, %v7276_v56, 0.0 }
0x13c5   :  { %v2884_v58 = vsel %vm126_vm9, %v2873_v62, 0.0  ;;  %v2971_v62 = vmul.f32 %v2969_v39, %v2965_v36  ;;  %v3024_v12 = vmul.f32 %v3023_v25, %v3018_v35  ;;  %v3035_v39 = vmul.f32 %v7287_v1, %v7159_v11 }
0x13c6   :  { %v2890_v17 = vmul.f32 %v2889_v49, %v2884_v58 }
0x13c7   :  { %v2975_v3 = vadd.f32 %v2971_v62, %v2949_v47 }
0x13c9   :  { %v3029_v14 = vadd.f32 %v3025_v57, %v2975_v3 }
0x13cb   :  { %v2837_v20 = vpop.permute.xlu0 %2836  ;;  %v3039_v41 = vadd.f32 %v3035_v39, %v3029_v14 }
0x13cc   :  { %v3013_v21 = vpop.permute.xlu1 %3012  ;;  %v2848_v34 = vsel %vm125_vm8, %v2837_v20, 0.0 }
0x13cd   :  { %v2854_v7 = vmul.f32 %v2853_v52, %v2848_v34  ;;  %v3021_v16 = vsel %vm125_vm8, %v3013_v21, 0.0 }
0x13ce   :  { %v3027_v13 = vmul.f32 %v3023_v25, %v3021_v16 }
0x13cf   :  { %v2858_v52 = vadd.f32 %v2854_v7, %v2804_v44 }
0x13d0   :  { %v3031_v56 = vadd.f32 %v3027_v13, %v2977_v48 }
0x13d1   :  { %v2868_v37 = vadd.f32 %v2864_v29, %v2858_v52  ;;  %v3049_v29 = vpop.permute.xlu2 %3048 }
0x13d2   :  { %v3057_v28 = vsel %vm126_vm9, %v3049_v29, 0.0  ;;  %v3041_v7 = vadd.f32 %v3037_v9, %v3031_v56 }
0x13d3   :  { %v2894_v45 = vadd.f32 %v2890_v17, %v2868_v37  ;;  %v3011_v23 = vpop.permute.xlu0 %3010  ;;  %v3063_v4 = vmul.f32 %v3059_v22, %v3057_v28 }
0x13d4   :  { %v3020_v49 = vsel %vm125_vm8, %v3011_v23, 0.0  ;;  %v3047_v38 = vpop.permute.xlu1 %3046 }
0x13d5   :  { %v2948_v0 = vadd.f32 %v2944_v60, %v2894_v45  ;;  %v3026_v53 = vmul.f32 %v3023_v25, %v3020_v49  ;;  %v3056_v21 = vsel %vm126_vm9, %v3047_v38, 0.0  ;;  %v7355_v52 = vadd.f32 %v3063_v4, %v3041_v7 }
0x13d6   :  { %v3062_v36 = vmul.f32 %v3059_v22, %v3056_v21  ;;  %v3122_v7 = vstv %s4746_s14 }
0x13d7   :  { %v2974_v44 = vadd.f32 %v2970_v46, %v2948_v0  ;;  %v3030_v20 = vadd.f32 %v3026_v53, %v2976_v42  ;;  %v3088_v17 = vmul.f32 %v7355_v52, %v7355_v52  ;;  %v3073_v31 = vsel %vm465_vm10, %v7355_v52, 0.0 }
0x13d9   :  { %v3028_v34 = vadd.f32 %v3024_v12, %v2974_v44  ;;  %v3040_v10 = vadd.f32 %v3036_v6, %v3030_v20  ;;  %v3094_v45 = vsel %vm465_vm10, %v3088_v17, 0.0 }
0x13db   :  { %v3045_v54 = vpop.permute.xlu0 %3044  ;;  %v3038_v32 = vadd.f32 %v3034_v61, %v3028_v34  ;;  %v7351_v58 = vadd.f32 %v3062_v36, %v3040_v10 }
0x13dc   :  { %v3055_v63 = vsel %vm126_vm9, %v3045_v54, 0.0 }
0x13dd   :  { %v3061_v18 = vmul.f32 %v3059_v22, %v3055_v63  ;;  %v7353_v27 = vadd.f32 %v3060_v2, %v3038_v32  ;;  %v3087_v16 = vmul.f32 %v7351_v58, %v7351_v58  ;;  %v3071_v24 = vsel %vm465_vm10, %v7351_v58, 0.0 }
0x13df   :  { %v7357_v33 = vadd.f32 %v3061_v18, %v3039_v41  ;;  %v3085_v11 = vmul.f32 %v7353_v27, %v7353_v27  ;;  %v3068_v43 = vsel %vm465_vm10, %v7353_v27, 0.0  ;;  %v3092_v51 = vsel %vm465_vm10, %v3087_v16, 0.0 }
0x13e0   :  { %v3133_v18 = vstv %s4747_s3  ;;  %s4770_s3 = sld [smem:[#allocation11 + $0x9]] }
0x13e1   :  { %v3086_v1 = vmul.f32 %v7357_v33, %v7357_v33  ;;  %v3069_v19 = vsel %vm465_vm10, %v7357_v33, 0.0  ;;  %v3089_v37 = vsel %vm465_vm10, %v3085_v11, 0.0 }
0x13e2   :  { %v3070_v62 = vadd.f32 %v3069_v19, %v3068_v43 }
0x13e3   :  { %v3090_v55 = vsel %vm465_vm10, %v3086_v1, 0.0 }
0x13e4   :  { %v3072_v25 = vadd.f32 %v3071_v24, %v3070_v62  ;;  %v3091_v47 = vadd.f32 %v3090_v55, %v3089_v37 }
0x13e6   :  { %v3074_v60 = vadd.f32 %v3073_v31, %v3072_v25  ;;  %v3093_v13 = vadd.f32 %v3092_v51, %v3091_v47 }
0x13e8   :  { %3075 = vadd.xlane.f32.xlu0 %v3074_v60  ;;  %v3095_v23 = vadd.f32 %v3094_v45, %v3093_v13 }
0x13ea   :  { %3096 = vadd.xlane.f32.xlu1 %v3095_v23 }
0x145b   :  { %v3076_v46 = vpop.xlane.xlu0 %3075 }
0x145c   :  { %v3077_v35 = vrot.slane %v3076_v46, 4 }
0x145d   :  { %v3097_v42 = vpop.xlane.xlu1 %3096 }
0x145e   :  { %v3078_v49 = vadd.f32 %v3077_v35, %v3076_v46  ;;  %v3098_v57 = vrot.slane %v3097_v42, 4 }
0x1460   :  { %v3099_v48 = vadd.f32 %v3098_v57, %v3097_v42  ;;  %v3079_v0 = vrot.slane %v3078_v49, 2 }
0x1462   :  { %v3100_v38 = vrot.slane %v3099_v48, 2  ;;  %v3080_v53 = vadd.f32 %v3079_v0, %v3078_v49 }
0x1464   :  { %v3081_v6 = vrot.slane %v3080_v53, 1  ;;  %v3101_v9 = vadd.f32 %v3100_v38, %v3099_v48 }
0x1466   :  { %v3082_v29 = vadd.f32 %v3081_v6, %v3080_v53  ;;  %v3102_v3 = vrot.slane %v3101_v9, 1 }
0x1468   :  { %4824 = vpush %v3082_v29  ;;  %v3103_v12 = vadd.f32 %v3102_v3, %v3101_v9 }
0x146a   :  { %4826 = vpush %v3103_v12 }
0x1499   :  { %s4825_s12 = spop %4824 }
0x149a   :  { %v3084_v56 = vstv %s4825_s12  ;;  %s4769_s12 = sld [smem:[#allocation9 + $0x59]] }
0x149b   :  { %v3106_v44 = vmul.f32 0.00048828125, %v3084_v56  ;;  %s4827_s13 = spop %4826 }
0x149c   :  { %v3105_v20 = vstv %s4827_s13 }
0x149d   :  { %v3107_v61 = vmul.f32 0.00048828125, %v3105_v20  ;;  %v3108_v22 = vmul.f32 %v3106_v44, %v3106_v44  ;;  %v3124_v36 = vsub.f32 %v7353_v27, %v3106_v44  ;;  %v3125_v32 = vsub.f32 %v7357_v33, %v3106_v44 }
0x149e   :  { %v3126_v4 = vsub.f32 %v7351_v58, %v3106_v44  ;;  %v3127_v63 = vsub.f32 %v7355_v52, %v3106_v44 }
0x149f   :  { %v3109_v59 = vsub.f32 %v3107_v61, %v3108_v22 }
0x14a1   :  { %v3111_v21 = vadd.f32 1e-05, %v3109_v59 }
0x14a3   :  { %4865 = vrsqrt.f32 %v3111_v21  ;;  %vm3118_vm1 = vweird.f32 %v3111_v21 }
0x14a9   :  { %v4866_v28 = vpop.eup %4865 }
0x14aa   :  { %v3113_v14 = vmul.f32 %v4866_v28, %v3111_v21  ;;  %vm3119_vm0 = vweird.f32 %v4866_v28 }
0x14ab   :  { %vm3120_vm7 = vmor %vm3118_vm1, %vm3119_vm0 }
0x14ac   :  { %v3114_v34 = vmul.f32 %v4866_v28, %v3113_v14 }
0x14ae   :  { %v3115_v10 = vmul.f32 0.5, %v3114_v34 }
0x14b0   :  { %v3116_v39 = vsub.f32 1.5, %v3115_v10 }
0x14b2   :  { %v3117_v2 = vmul.f32 %v4866_v28, %v3116_v39 }
0x14b4   :  { %v3121_v54 = vsel %vm3120_vm7, %v4866_v28, %v3117_v2 }
0x14b5   :  { %v3123_v41 = vmul.f32 %v3122_v7, %v3121_v54 }
0x14b7   :  { %v3128_v11 = vmul.f32 %v3124_v36, %v3123_v41  ;;  %v3129_v1 = vmul.f32 %v3125_v32, %v3123_v41  ;;  %v3130_v43 = vmul.f32 %v3126_v4, %v3123_v41  ;;  %v3131_v19 = vmul.f32 %v3127_v63, %v3123_v41 }
0x14b9   :  { %v3134_v16 = vadd.f32 %v3133_v18, %v3128_v11  ;;  %v3135_v62 = vadd.f32 %v3133_v18, %v3129_v1  ;;  %v3136_v24 = vadd.f32 %v3133_v18, %v3130_v43  ;;  %v3137_v17 = vadd.f32 %v3133_v18, %v3131_v19 }
0x14bb   :  { %v3138_v37 = vadd.f32 %v3134_v16, %v6814_v5  ;;  %v3139_v27 = vadd.f32 %v3135_v62, %v6812_v40  ;;  %v3140_v33 = vadd.f32 %v3136_v24, %v6816_v26  ;;  %v3141_v58 = vadd.f32 %v3137_v17, %v6810_v8 }
0x14bd   :  { %v7387_v55 = vmax.f32 %v3141_v58, 0.0  ;;  %v7389_v52 = vmax.f32 %v3139_v27, 0.0  ;;  %v7391_v25 = vmax.f32 %v3138_v37, 0.0  ;;  %v7393_v47 = vmax.f32 %v3140_v33, 0.0 }
0x14bf   :  { %3281 = vrot.lane.b32.xlu1 %v7387_v55, %s5016_s4  ;;  %3275 = vrot.lane.b32.xlu0 %v7389_v52, %s5016_s4  ;;  %v3159_v40 = vrot.slane %v7389_v52, 1  ;;  %v3160_v8 = vrot.slane %v7393_v47, 1  ;;  %v3158_v26 = vrot.slane %v7391_v25, 1  ;;  %v3161_v31 = vrot.slane %v7387_v55, 1 }
0x14c0   :  { %3272 = vrot.lane.b32.xlu2 %v7391_v25, %s5016_s4  ;;  %v3146_v60 = vrot.slane %v7391_v25, 7  ;;  %v3147_v13 = vrot.slane %v7389_v52, 7  ;;  %v3148_v46 = vrot.slane %v7393_v47, 7  ;;  %v3149_v42 = vrot.slane %v7387_v55, 7 }
0x14c1   :  { %v7405_v5 = vsel %vm183_vm3, %v3159_v40, %v3160_v8  ;;  %v3165_v51 = vsel %vm183_vm3, %v3161_v31, %v3158_v26  ;;  %v7445_v57 = vsel %vm183_vm3, %v3158_v26, %v3159_v40  ;;  %v7451_v48 = vsel %vm183_vm3, %v3160_v8, %v3161_v31 }
0x14c2   :  { %v7419_v45 = vsel %vm124_vm4, %v3165_v51, 0.0  ;;  %v7425_v23 = vsel %vm170_vm2, %v3146_v60, %v3147_v13  ;;  %v7432_v35 = vsel %vm170_vm2, %v3147_v13, %v3148_v46  ;;  %v7439_v49 = vsel %vm170_vm2, %v3148_v46, %v3149_v42 }
0x14c3   :  { %v3153_v0 = vsel %vm170_vm2, %v3149_v42, %v3146_v60 }
0x14c4   :  { %v7459_v38 = vsel %vm117_vm5, %v3153_v0, 0.0 }
0x14c7   :  { %3355 = vrot.lane.b32.xlu0 %v7405_v5, %s5016_s4 }
0x14c8   :  { %3278 = vrot.lane.b32.xlu2 %v7393_v47, %s5016_s4 }
0x14cf   :  { %3361 = vrot.lane.b32.xlu0 %v7419_v45, %s5016_s4 }
0x14d0   :  { %3185 = vrot.lane.b32.xlu2 %v7425_v23, %s5016_s4 }
0x14d8   :  { %3188 = vrot.lane.b32.xlu2 %v7432_v35, %s5016_s4 }
0x14e0   :  { %3191 = vrot.lane.b32.xlu2 %v7439_v49, %s5016_s4 }
0x14e8   :  { %3352 = vrot.lane.b32.xlu2 %v7445_v57, %s5016_s4 }
0x14f0   :  { %3358 = vrot.lane.b32.xlu2 %v7451_v48, %s5016_s4 }
0x14f8   :  { %3182 = vrot.lane.b32.xlu2 %v7459_v38, %s5016_s4 }
0x151a   :  { %v3273_v53 = vpop.permute.xlu2 %3272 }
0x151b   :  { %v3274_v6 = vsel %vm204_vm6, %v3273_v53, %v7391_v25 }
0x151c   :  { %3284 = vrot.lane.b32.xlu1 %v3274_v6, %s5016_s4 }
0x1522   :  { %v3279_v9 = vpop.permute.xlu2 %3278 }
0x1523   :  { %v3280_v29 = vsel %vm204_vm6, %v3279_v9, %v7393_v47 }
0x1524   :  { %3288 = vrot.lane.b32.xlu2 %v3280_v29, %s5016_s4 }
0x152a   :  { %v3186_v3 = vpop.permute.xlu2 %3185 }
0x152b   :  { %v3187_v22 = vsel %vm204_vm6, %v3186_v3, %v7425_v23 }
0x1531   :  { %v3282_v12 = vpop.permute.xlu1 %3281  ;;  %v3276_v56 = vpop.permute.xlu0 %3275 }
0x1532   :  { %v3283_v44 = vsel %vm204_vm6, %v3282_v12, %v7387_v55  ;;  %v3277_v20 = vsel %vm204_vm6, %v3276_v56, %v7389_v52  ;;  %v3189_v61 = vpop.permute.xlu2 %3188 }
0x1533   :  { %3290 = vrot.lane.b32.xlu1 %v3283_v44, %s5016_s4  ;;  %3286 = vrot.lane.b32.xlu0 %v3277_v20, %s5016_s4  ;;  %v3190_v59 = vsel %vm204_vm6, %v3189_v61, %v7432_v35 }
0x1539   :  { %v3356_v14 = vpop.permute.xlu0 %3355 }
0x153a   :  { %v3192_v21 = vpop.permute.xlu2 %3191  ;;  %v3357_v10 = vsel %vm204_vm6, %v3356_v14, %v7405_v5 }
0x153b   :  { %v3193_v28 = vsel %vm204_vm6, %v3192_v21, %v7439_v49  ;;  %3196 = vrot.lane.b32.xlu1 %v3187_v22, %s5016_s4  ;;  %3198 = vrot.lane.b32.xlu0 %v3190_v59, %s5016_s4 }
0x153c   :  { %3200 = vrot.lane.b32.xlu2 %v3193_v28, %s5016_s4  ;;  %v3172_v28 = vstv %s4749_s15  ;;  %s4771_s15 = sld [smem:[#allocation13 + $0x9]] }
0x1541   :  { %v3362_v2 = vpop.permute.xlu0 %3361 }
0x1542   :  { %v3353_v34 = vpop.permute.xlu2 %3352  ;;  %v3363_v36 = vsel %vm204_vm6, %v3362_v2, %v7419_v45 }
0x1543   :  { %v3354_v39 = vsel %vm204_vm6, %v3353_v34, %v7445_v57  ;;  %v3173_v34 = vmul.f32 %v3172_v28, %v7391_v25 }
0x1544   :  { %3366 = vrot.lane.b32.xlu2 %v3357_v10, %s5016_s4  ;;  %3364 = vrot.lane.b32.xlu0 %v3354_v39, %s5016_s4  ;;  %v3177_v10 = vstv %s4748_s16  ;;  %v3227_v39 = vstv %s4750_s17  ;;  %s5019_s16 = smov 96   ;;  %s5020_s17 = smov [#allocation16]  }
0x154a   :  { %v3359_v7 = vpop.permute.xlu2 %3358 }
0x154b   :  { %v3360_v54 = vsel %vm204_vm6, %v3359_v7, %v7451_v48 }
0x154c   :  { %3370 = vrot.lane.b32.xlu0 %v3363_v36, %s5016_s4  ;;  %3368 = vrot.lane.b32.xlu1 %v3360_v54, %s5016_s4  ;;  %v3178_v54 = vadd.f32 %v3177_v10, %v3173_v34  ;;  %v3343_v34 = vstv %s7569_s20  ;;  %s4641_s20 = sshll.u32 %s8170_s7, 4  ;;  %s4642_s20 = int_to_ptr.hbm [resolvable:$true] %s4641_s20 }
0x1552   :  { %v3183_v32 = vpop.permute.xlu2 %3182 }
0x1553   :  { %v3184_v4 = vsel %vm204_vm6, %v3183_v32, %v7459_v38  ;;  %v3237_v32 = vstv %s4751_s0  ;;  %s4639_s0 = sshll.u32 %s5020_s17, 4  ;;  %s4640_s0 = int_to_ptr.vmem [resolvable:$true] %s4639_s0 }
0x1554   :  { %3194 = vrot.lane.b32.xlu2 %v3184_v4, %s5016_s4 }
0x157e   :  { %v3289_v18 = vpop.permute.xlu2 %3288 }
0x157f   :  { %v3294_v11 = vsel %vm204_vm6, %v3289_v18, %v7393_v47 }
0x158e   :  { %v3285_v63 = vpop.permute.xlu1 %3284 }
0x158f   :  { %v3292_v41 = vsel %vm204_vm6, %v3285_v63, %v7391_v25  ;;  %v3176_v63 = vmul.f32 %v3172_v28, %v7387_v55 }
0x1590   :  { %3300 = vrot.lane.b32.xlu1 %v3292_v41, %s5017_s5 }
0x1596   :  { %v3201_v62 = vpop.permute.xlu2 %3200 }
0x1597   :  { %v3205_v17 = vsel %vm204_vm6, %v3201_v62, %v7439_v49  ;;  %v3175_v62 = vmul.f32 %v3172_v28, %v7393_v47 }
0x1598   :  { %3304 = vrot.lane.b32.xlu1 %v3294_v11, %s5017_s5 }
0x159e   :  { %v3367_v33 = vpop.permute.xlu2 %3366 }
0x159f   :  { %v3373_v40 = vsel %vm204_vm6, %v3367_v33, %v7405_v5 }
0x15a5   :  { %v3291_v1 = vpop.permute.xlu1 %3290  ;;  %v3287_v43 = vpop.permute.xlu0 %3286 }
0x15a6   :  { %v3295_v19 = vsel %vm204_vm6, %v3291_v1, %v7387_v55  ;;  %v3293_v16 = vsel %vm204_vm6, %v3287_v43, %v7389_v52  ;;  %v3174_v1 = vmul.f32 %v3172_v28, %v7389_v52 }
0x15a7   :  { %3302 = vrot.lane.b32.xlu0 %v3293_v16, %s5017_s5  ;;  %3328 = vrot.lane.b32.xlu2 %v3293_v16, %s5018_s26 }
0x15a8   :  { %3306 = vrot.lane.b32.xlu1 %v3295_v19, %s5017_s5 }
0x15ad   :  { %v3197_v24 = vpop.permute.xlu1 %3196  ;;  %v3199_v27 = vpop.permute.xlu0 %3198 }
0x15ae   :  { %v3203_v37 = vsel %vm204_vm6, %v3197_v24, %v7425_v23  ;;  %v3204_v58 = vsel %vm204_vm6, %v3199_v27, %v7432_v35  ;;  %v3195_v26 = vpop.permute.xlu2 %3194 }
0x15af   :  { %3326 = vrot.lane.b32.xlu0 %v3292_v41, %s5018_s26  ;;  %3216 = vrot.lane.b32.xlu2 %v3205_v17, %s5017_s5  ;;  %v3202_v31 = vsel %vm204_vm6, %v3195_v26, %v7459_v38 }
0x15b0   :  { %3212 = vrot.lane.b32.xlu1 %v3203_v37, %s5017_s5 }
0x15b6   :  { %v3365_v8 = vpop.permute.xlu0 %3364 }
0x15b7   :  { %3330 = vrot.lane.b32.xlu0 %v3294_v11, %s5018_s26  ;;  %3250 = vrot.lane.b32.xlu2 %v3204_v58, %s5018_s26  ;;  %v3372_v60 = vsel %vm204_vm6, %v3365_v8, %v7445_v57  ;;  %v3263_v11 = vstv %s4752_s18 }
0x15b8   :  { %3382 = vrot.lane.b32.xlu1 %v3373_v40, %s5017_s5 }
0x15be   :  { %v3371_v51 = vpop.permute.xlu0 %3370  ;;  %v3369_v46 = vpop.permute.xlu1 %3368 }
0x15bf   :  { %3332 = vrot.lane.b32.xlu0 %v3295_v19, %s5018_s26  ;;  %3252 = vrot.lane.b32.xlu2 %v3205_v17, %s5018_s26  ;;  %v3375_v13 = vsel %vm204_vm6, %v3371_v51, %v7419_v45  ;;  %v3374_v42 = vsel %vm204_vm6, %v3369_v46, %v7451_v48  ;;  %v3238_v19 = vmul.f32 %v3237_v32, %v7459_v38 }
0x15c0   :  { %3246 = vrot.lane.b32.xlu1 %v3202_v31, %s5018_s26  ;;  %v3181_v17 = vadd.f32 %v3177_v10, %v3176_v63  ;;  %v3180_v51 = vadd.f32 %v3177_v10, %v3175_v62  ;;  %v3240_v46 = vmul.f32 %v3237_v32, %v7432_v35 }
0x15c7   :  { %3214 = vrot.lane.b32.xlu0 %v3204_v58, %s5017_s5  ;;  %3380 = vrot.lane.b32.xlu2 %v3372_v60, %s5017_s5  ;;  %v3317_v58 = vstv %s4753_s19 }
0x15c8   :  { %3386 = vrot.lane.b32.xlu1 %v3375_v13, %s5017_s5 }
0x15cf   :  { %3248 = vrot.lane.b32.xlu0 %v3203_v37, %s5018_s26  ;;  %3210 = vrot.lane.b32.xlu2 %v3202_v31, %s5017_s5  ;;  %v3241_v37 = vmul.f32 %v3237_v32, %v7439_v49  ;;  %v3179_v31 = vadd.f32 %v3177_v10, %v3174_v1 }
0x15d0   :  { %3420 = vrot.lane.b32.xlu1 %v3374_v42, %s5018_s26 }
0x15d7   :  { %3416 = vrot.lane.b32.xlu0 %v3372_v60, %s5018_s26  ;;  %3384 = vrot.lane.b32.xlu2 %v3374_v42, %s5017_s5  ;;  %v3239_v42 = vmul.f32 %v3237_v32, %v7425_v23 }
0x15df   :  { %3422 = vrot.lane.b32.xlu0 %v3375_v13, %s5018_s26  ;;  %3418 = vrot.lane.b32.xlu2 %v3373_v40, %s5018_s26 }
0x1601   :  { %v7547_v0 = vpop.permute.xlu2 %3328 }
0x1602   :  { %v3301_v53 = vpop.permute.xlu1 %3300  ;;  %v3339_v10 = vsel %vm126_vm9, %v7547_v0, 0.0 }
0x1603   :  { %v3312_v40 = vsel %vm125_vm8, %v3301_v53, 0.0 }
0x1604   :  { %v3318_v53 = vmul.f32 %v3317_v58, %v3312_v40 }
0x1609   :  { %v3217_v6 = vpop.permute.xlu2 %3216 }
0x160a   :  { %v3305_v29 = vpop.permute.xlu1 %3304  ;;  %v3225_v41 = vsel %vm125_vm8, %v3217_v6, 0.0 }
0x160b   :  { %v3231_v24 = vmul.f32 %v3227_v39, %v3225_v41  ;;  %v3314_v6 = vsel %vm125_vm8, %v3305_v29, 0.0 }
0x160c   :  { %v3320_v29 = vmul.f32 %v3317_v58, %v3314_v6 }
0x160d   :  { %v3235_v13 = vadd.f32 %v3231_v24, %v3181_v17 }
0x1611   :  { %v3251_v9 = vpop.permute.xlu2 %3250 }
0x1612   :  { %v3260_v49 = vsel %vm126_vm9, %v3251_v9, 0.0 }
0x1613   :  { %v3266_v23 = vmul.f32 %v3263_v11, %v3260_v49 }
0x1619   :  { %v7549_v3 = vpop.permute.xlu0 %3302  ;;  %v3253_v12 = vpop.permute.xlu2 %3252 }
0x161a   :  { %v7551_v56 = vpop.permute.xlu1 %3306  ;;  %v3313_v0 = vsel %vm125_vm8, %v7549_v3, 0.0 }
0x161b   :  { %v3319_v24 = vmul.f32 %v3317_v58, %v3313_v0 }
0x1621   :  { %v3327_v44 = vpop.permute.xlu0 %3326  ;;  %v7553_v20 = vpop.permute.xlu2 %3380 }
0x1622   :  { %v3213_v61 = vpop.permute.xlu1 %3212  ;;  %v3338_v35 = vsel %vm126_vm9, %v3327_v44, 0.0  ;;  %v3392_v44 = vsel %vm125_vm8, %v7553_v20, 0.0  ;;  %v3407_v20 = vstv %s7583_s22 }
0x1623   :  { %v3223_v43 = vsel %vm125_vm8, %v3213_v61, 0.0  ;;  %v3261_v61 = vsel %vm126_vm9, %v3253_v12, 0.0  ;;  %v3411_v0 = vmul.f32 %v3407_v20, %v7419_v45 }
0x1624   :  { %v3229_v8 = vmul.f32 %v3227_v39, %v3223_v43  ;;  %v3267_v32 = vmul.f32 %v3263_v11, %v3261_v61  ;;  %v3433_v61 = vstv %s7609_s23 }
0x1626   :  { %v3233_v9 = vadd.f32 %v3229_v8, %v3179_v31  ;;  %v3345_v8 = vmul.f32 %v3343_v34, %v3339_v10 }
0x1628   :  { %v3243_v1 = vadd.f32 %v3239_v42, %v3233_v9  ;;  %v3410_v42 = vmul.f32 %v3407_v20, %v7451_v48 }
0x1629   :  { %v7555_v22 = vpop.permute.xlu0 %3330  ;;  %v3211_v21 = vpop.permute.xlu2 %3210 }
0x162a   :  { %v7557_v59 = vpop.permute.xlu1 %3382  ;;  %v3222_v14 = vsel %vm125_vm8, %v3211_v21, 0.0  ;;  %v3340_v12 = vsel %vm126_vm9, %v7555_v22, 0.0 }
0x162b   :  { %v3228_v2 = vmul.f32 %v3227_v39, %v3222_v14  ;;  %v3346_v43 = vmul.f32 %v3343_v34, %v3340_v12  ;;  %v3393_v31 = vsel %vm125_vm8, %v7557_v59, 0.0 }
0x162d   :  { %v3232_v18 = vadd.f32 %v3228_v2, %v3178_v54  ;;  %v3245_v54 = vadd.f32 %v3241_v37, %v3235_v13 }
0x162f   :  { %v3242_v27 = vadd.f32 %v3238_v19, %v3232_v18  ;;  %v3315_v18 = vsel %vm125_vm8, %v7551_v56, 0.0  ;;  %v3271_v17 = vadd.f32 %v3267_v32, %v3245_v54 }
0x1631   :  { %v7562_v7 = vpop.permute.xlu0 %3332  ;;  %v3385_v21 = vpop.permute.xlu2 %3384 }
0x1632   :  { %v3247_v36 = vpop.permute.xlu1 %3246  ;;  %v3394_v22 = vsel %vm125_vm8, %v3385_v21, 0.0 }
0x1633   :  { %v3258_v4 = vsel %vm126_vm9, %v3247_v36, 0.0 }
0x1634   :  { %v3264_v16 = vmul.f32 %v3263_v11, %v3258_v4  ;;  %v3344_v4 = vmul.f32 %v3343_v34, %v3338_v35 }
0x1636   :  { %v3268_v38 = vadd.f32 %v3264_v16, %v3242_v27  ;;  %v3341_v27 = vsel %vm126_vm9, %v7562_v7, 0.0  ;;  %v3409_v7 = vmul.f32 %v3407_v20, %v7405_v5 }
0x1638   :  { %v3322_v2 = vadd.f32 %v3318_v53, %v3268_v38  ;;  %v3408_v53 = vmul.f32 %v3407_v20, %v7445_v57 }
0x1639   :  { %v3215_v33 = vpop.permute.xlu0 %3214  ;;  %v3419_v38 = vpop.permute.xlu2 %3418 }
0x163a   :  { %v3224_v26 = vsel %vm125_vm8, %v3215_v33, 0.0  ;;  %v3387_v14 = vpop.permute.xlu1 %3386  ;;  %v3348_v19 = vadd.f32 %v3344_v4, %v3322_v2 }
0x163b   :  { %v3230_v60 = vmul.f32 %v3227_v39, %v3224_v26  ;;  %v3397_v39 = vstv %s7574_s21  ;;  %v3321_v26 = vmul.f32 %v3317_v58, %v3315_v18 }
0x163c   :  { %v3398_v37 = vmul.f32 %v3397_v39, %v3392_v44  ;;  %v3400_v56 = vmul.f32 %v3397_v39, %v3394_v22  ;;  %v3399_v58 = vmul.f32 %v3397_v39, %v3393_v31 }
0x163d   :  { %v3234_v28 = vadd.f32 %v3230_v60, %v3180_v51  ;;  %v3325_v6 = vadd.f32 %v3321_v26, %v3271_v17 }
0x163e   :  { %v3402_v49 = vadd.f32 %v3398_v37, %v3348_v19 }
0x163f   :  { %v3244_v36 = vadd.f32 %v3240_v46, %v3234_v28  ;;  %v3347_v46 = vmul.f32 %v3343_v34, %v3341_v27 }
0x1640   :  { %v3412_v48 = vadd.f32 %v3408_v53, %v3402_v49 }
0x1641   :  { %v3270_v63 = vadd.f32 %v3266_v23, %v3244_v36  ;;  %v3249_v41 = vpop.permute.xlu0 %3248  ;;  %v3351_v57 = vadd.f32 %v3347_v46, %v3325_v6 }
0x1642   :  { %v3259_v3 = vsel %vm126_vm9, %v3249_v41, 0.0  ;;  %v3421_v60 = vpop.permute.xlu1 %3420 }
0x1643   :  { %v3324_v16 = vadd.f32 %v3320_v29, %v3270_v63  ;;  %v3265_v62 = vmul.f32 %v3263_v11, %v3259_v3  ;;  %v3395_v11 = vsel %vm125_vm8, %v3387_v14, 0.0  ;;  %v3429_v14 = vsel %vm126_vm9, %v3419_v38, 0.0 }
0x1644   :  { %v3401_v28 = vmul.f32 %v3397_v39, %v3395_v11  ;;  %v3430_v10 = vsel %vm126_vm9, %v3421_v60, 0.0  ;;  %v3435_v23 = vmul.f32 %v3433_v61, %v3429_v14 }
0x1645   :  { %v3269_v33 = vadd.f32 %v3265_v62, %v3243_v1  ;;  %v3350_v40 = vadd.f32 %v3346_v43, %v3324_v16  ;;  %v3436_v36 = vmul.f32 %v3433_v61, %v3430_v10 }
0x1646   :  { %v3405_v39 = vadd.f32 %v3401_v28, %v3351_v57 }
0x1647   :  { %v3323_v51 = vadd.f32 %v3319_v24, %v3269_v33  ;;  %v3404_v13 = vadd.f32 %v3400_v56, %v3350_v40 }
0x1648   :  { %v3415_v18 = vadd.f32 %v3411_v0, %v3405_v39 }
0x1649   :  { %v3349_v21 = vadd.f32 %v3345_v8, %v3323_v51  ;;  %v3417_v59 = vpop.permute.xlu0 %3416  ;;  %v3414_v35 = vadd.f32 %v3410_v42, %v3404_v13 }
0x164a   :  { %v3428_v5 = vsel %vm126_vm9, %v3417_v59, 0.0 }
0x164b   :  { %v3403_v34 = vadd.f32 %v3399_v58, %v3349_v21  ;;  %v3434_v9 = vmul.f32 %v3433_v61, %v3428_v5  ;;  %v7639_v54 = vadd.f32 %v3436_v36, %v3414_v35 }
0x164d   :  { %v3413_v2 = vadd.f32 %v3409_v7, %v3403_v34  ;;  %v7637_v29 = vadd.f32 %v3434_v9, %v3412_v48  ;;  %v3461_v3 = vmul.f32 %v7639_v54, %v7639_v54  ;;  %v3445_v20 = vsel %vm465_vm10, %v7639_v54, 0.0 }
0x164f   :  { %v3459_v32 = vmul.f32 %v7637_v29, %v7637_v29  ;;  %v7643_v12 = vadd.f32 %v3435_v23, %v3413_v2  ;;  %v3442_v4 = vsel %vm465_vm10, %v7637_v29, 0.0  ;;  %v3466_v27 = vsel %vm465_vm10, %v3461_v3, 0.0 }
0x1650   :  { %v3496_v2 = vstv %s4758_s25 }
0x1651   :  { %v3423_v44 = vpop.permute.xlu0 %3422  ;;  %v3443_v63 = vsel %vm465_vm10, %v7643_v12, 0.0  ;;  %v3460_v41 = vmul.f32 %v7643_v12, %v7643_v12  ;;  %v3463_v45 = vsel %vm465_vm10, %v3459_v32, 0.0 }
0x1652   :  { %v3431_v22 = vsel %vm126_vm9, %v3423_v44, 0.0  ;;  %v3444_v1 = vadd.f32 %v3443_v63, %v3442_v4  ;;  %v3507_v63 = vstv %s4759_s27 }
0x1653   :  { %v3437_v43 = vmul.f32 %v3433_v61, %v3431_v22  ;;  %v3464_v19 = vsel %vm465_vm10, %v3460_v41, 0.0 }
0x1654   :  { %v3465_v16 = vadd.f32 %v3464_v19, %v3463_v45  ;;  %v3446_v24 = vadd.f32 %v3445_v20, %v3444_v1 }
0x1655   :  { %v3441_v62 = vadd.f32 %v3437_v43, %v3415_v18 }
0x1656   :  { %v3467_v33 = vadd.f32 %v3466_v27, %v3465_v16 }
0x1657   :  { %v3447_v17 = vsel %vm465_vm10, %v3441_v62, 0.0  ;;  %v3462_v37 = vmul.f32 %v3441_v62, %v3441_v62 }
0x1658   :  { %v3448_v56 = vadd.f32 %v3447_v17, %v3446_v24 }
0x1659   :  { %v3468_v40 = vsel %vm465_vm10, %v3462_v37, 0.0 }
0x165a   :  { %3449 = vadd.xlane.f32.xlu2 %v3448_v56  ;;  %v3469_v8 = vadd.f32 %v3468_v40, %v3467_v33 }
0x165c   :  { %3470 = vadd.xlane.f32.xlu1 %v3469_v8 }
0x16cd   :  { %v3450_v26 = vpop.xlane.xlu2 %3449 }
0x16ce   :  { %v3451_v31 = vrot.slane %v3450_v26, 4 }
0x16cf   :  { %v3471_v11 = vpop.xlane.xlu1 %3470 }
0x16d0   :  { %v3452_v38 = vadd.f32 %v3451_v31, %v3450_v26  ;;  %v3472_v51 = vrot.slane %v3471_v11, 4 }
0x16d2   :  { %v3453_v60 = vrot.slane %v3452_v38, 2  ;;  %v3473_v13 = vadd.f32 %v3472_v51, %v3471_v11 }
0x16d4   :  { %v3474_v49 = vrot.slane %v3473_v13, 2  ;;  %v3454_v7 = vadd.f32 %v3453_v60, %v3452_v38 }
0x16d6   :  { %v3455_v46 = vrot.slane %v3454_v7, 1  ;;  %v3475_v42 = vadd.f32 %v3474_v49, %v3473_v13 }
0x16d8   :  { %v3456_v53 = vadd.f32 %v3455_v46, %v3454_v7  ;;  %v3476_v58 = vrot.slane %v3475_v42, 1 }
0x16da   :  { %4828 = vpush %v3456_v53  ;;  %v3477_v6 = vadd.f32 %v3476_v58, %v3475_v42 }
0x16dc   :  { %4830 = vpush %v3477_v6 }
0x170b   :  { %s4829_s1 = spop %4828 }
0x170c   :  { %v3458_v61 = vstv %s4829_s1 }
0x170d   :  { %v3480_v21 = vmul.f32 0.00048828125, %v3458_v61  ;;  %s4831_s24 = spop %4830 }
0x170e   :  { %v3479_v59 = vstv %s4831_s24 }
0x170f   :  { %v3481_v28 = vmul.f32 0.00048828125, %v3479_v59  ;;  %v3482_v14 = vmul.f32 %v3480_v21, %v3480_v21  ;;  %v3498_v36 = vsub.f32 %v7637_v29, %v3480_v21  ;;  %v3499_v32 = vsub.f32 %v7643_v12, %v3480_v21 }
0x1710   :  { %v3500_v0 = vsub.f32 %v7639_v54, %v3480_v21  ;;  %v3501_v4 = vsub.f32 %v3441_v62, %v3480_v21 }
0x1711   :  { %v3483_v10 = vsub.f32 %v3481_v28, %v3482_v14 }
0x1713   :  { %v3485_v5 = vadd.f32 1e-05, %v3483_v10 }
0x1715   :  { %4867 = vrsqrt.f32 %v3485_v5  ;;  %vm3492_vm12 = vweird.f32 %v3485_v5 }
0x171b   :  { %v4868_v34 = vpop.eup %4867 }
0x171c   :  { %v3487_v35 = vmul.f32 %v4868_v34, %v3485_v5  ;;  %vm3493_vm11 = vweird.f32 %v4868_v34 }
0x171d   :  { %vm3494_vm13 = vmor %vm3492_vm12, %vm3493_vm11 }
0x171e   :  { %v3488_v48 = vmul.f32 %v4868_v34, %v3487_v35 }
0x1720   :  { %v3489_v9 = vmul.f32 0.5, %v3488_v48 }
0x1722   :  { %v3490_v57 = vsub.f32 1.5, %v3489_v9 }
0x1724   :  { %v3491_v23 = vmul.f32 %v4868_v34, %v3490_v57 }
0x1726   :  { %v3495_v39 = vsel %vm3494_vm13, %v4868_v34, %v3491_v23 }
0x1727   :  { %v3497_v44 = vmul.f32 %v3496_v2, %v3495_v39 }
0x1729   :  { %v3505_v41 = vmul.f32 %v3501_v4, %v3497_v44  ;;  %v3504_v18 = vmul.f32 %v3500_v0, %v3497_v44  ;;  %v3503_v22 = vmul.f32 %v3499_v32, %v3497_v44  ;;  %v3502_v1 = vmul.f32 %v3498_v36, %v3497_v44 }
0x172b   :  { %v3511_v3 = vadd.f32 %v3507_v63, %v3505_v41  ;;  %v3510_v43 = vadd.f32 %v3507_v63, %v3504_v18  ;;  %v3509_v45 = vadd.f32 %v3507_v63, %v3503_v22  ;;  %v3508_v19 = vadd.f32 %v3507_v63, %v3502_v1 }
0x172d   :  { %v7666_v16 = vmax.f32 %v3511_v3, 0.0  ;;  %v7668_v20 = vmax.f32 %v3510_v43, 0.0  ;;  %v7670_v29 = vmax.f32 %v3509_v45, 0.0  ;;  %v7672_v12 = vmax.f32 %v3508_v19, 0.0 }
0x172f   :  { %3648 = vrot.lane.b32.xlu1 %v7668_v20, %s5016_s4  ;;  %3645 = vrot.lane.b32.xlu2 %v7670_v29, %s5016_s4  ;;  %v3531_v54 = vrot.slane %v7666_v16, 1  ;;  %v3528_v62 = vrot.slane %v7672_v12, 1  ;;  %v3530_v24 = vrot.slane %v7668_v20, 1  ;;  %v3516_v56 = vrot.slane %v7672_v12, 7 }
0x1730   :  { %3642 = vrot.lane.b32.xlu0 %v7672_v12, %s5016_s4  ;;  %v3517_v33 = vrot.slane %v7670_v29, 7  ;;  %v3518_v30 = vrot.slane %v7668_v20, 7  ;;  %v3519_v26 = vrot.slane %v7666_v16, 7  ;;  %v3529_v11 = vrot.slane %v7670_v29, 1 }
0x1731   :  { %v3535_v17 = vsel %vm183_vm3, %v3531_v54, %v3528_v62  ;;  %v7687_v37 = vsel %vm183_vm3, %v3530_v24, %v3531_v54 }
0x1732   :  { %v7691_v27 = vsel %vm124_vm4, %v3535_v17, 0.0  ;;  %v7703_v40 = vsel %vm170_vm2, %v3516_v56, %v3517_v33  ;;  %v7710_v8 = vsel %vm170_vm2, %v3517_v33, %v3518_v30  ;;  %v7717_v31 = vsel %vm170_vm2, %v3518_v30, %v3519_v26 }
0x1733   :  { %v7724_v38 = vsel %vm183_vm3, %v3528_v62, %v3529_v11  ;;  %v7730_v51 = vsel %vm183_vm3, %v3529_v11, %v3530_v24  ;;  %v3523_v60 = vsel %vm170_vm2, %v3519_v26, %v3516_v56 }
0x1734   :  { %v7738_v13 = vsel %vm117_vm5, %v3523_v60, 0.0  ;;  %vm3890_vm5 = vcmask 253952  }
0x1737   :  { %3728 = vrot.lane.b32.xlu2 %v7687_v37, %s5016_s4  ;;  %3731 = vrot.lane.b32.xlu1 %v7691_v27, %s5016_s4 }
0x1738   :  { %3651 = vrot.lane.b32.xlu0 %v7666_v16, %s5016_s4 }
0x1740   :  { %3555 = vrot.lane.b32.xlu0 %v7703_v40, %s5016_s4 }
0x1748   :  { %3558 = vrot.lane.b32.xlu0 %v7710_v8, %s5016_s4 }
0x1750   :  { %3561 = vrot.lane.b32.xlu0 %v7717_v31, %s5016_s4 }
0x1758   :  { %3722 = vrot.lane.b32.xlu0 %v7724_v38, %s5016_s4 }
0x1760   :  { %3725 = vrot.lane.b32.xlu0 %v7730_v51, %s5016_s4 }
0x1768   :  { %3552 = vrot.lane.b32.xlu0 %v7738_v13, %s5016_s4 }
0x1789   :  { %v3646_v49 = vpop.permute.xlu2 %3645 }
0x178a   :  { %v3647_v7 = vsel %vm204_vm6, %v3646_v49, %v7670_v29 }
0x178b   :  { %3656 = vrot.lane.b32.xlu1 %v3647_v7, %s5016_s4 }
0x1791   :  { %v3729_v59 = vpop.permute.xlu2 %3728 }
0x1792   :  { %v3730_v14 = vsel %vm204_vm6, %v3729_v59, %v7687_v37 }
0x17a1   :  { %v3649_v46 = vpop.permute.xlu1 %3648 }
0x17a2   :  { %v3650_v42 = vsel %vm204_vm6, %v3649_v46, %v7668_v20  ;;  %v3643_v53 = vpop.permute.xlu0 %3642 }
0x17a3   :  { %v3644_v58 = vsel %vm204_vm6, %v3643_v53, %v7672_v12  ;;  %3658 = vrot.lane.b32.xlu0 %v3650_v42, %s5016_s4 }
0x17a4   :  { %3654 = vrot.lane.b32.xlu2 %v3644_v58, %s5016_s4 }
0x17a9   :  { %v3732_v9 = vpop.permute.xlu1 %3731 }
0x17aa   :  { %v3652_v15 = vpop.permute.xlu0 %3651  ;;  %v3733_v23 = vsel %vm204_vm6, %v3732_v9, %v7691_v27 }
0x17ab   :  { %v3653_v6 = vsel %vm204_vm6, %v3652_v15, %v7666_v16 }
0x17ac   :  { %3660 = vrot.lane.b32.xlu2 %v3653_v6, %s5016_s4 }
0x17b2   :  { %v3556_v61 = vpop.permute.xlu0 %3555 }
0x17b3   :  { %v3557_v21 = vsel %vm204_vm6, %v3556_v61, %v7703_v40 }
0x17b4   :  { %3566 = vrot.lane.b32.xlu2 %v3557_v21, %s5016_s4 }
0x17ba   :  { %v3559_v28 = vpop.permute.xlu0 %3558 }
0x17bb   :  { %v3560_v10 = vsel %vm204_vm6, %v3559_v28, %v7710_v8 }
0x17bc   :  { %3738 = vrot.lane.b32.xlu2 %v3730_v14, %s5016_s4  ;;  %3568 = vrot.lane.b32.xlu1 %v3560_v10, %s5016_s4 }
0x17c2   :  { %v3562_v5 = vpop.permute.xlu0 %3561 }
0x17c3   :  { %v3563_v34 = vsel %vm204_vm6, %v3562_v5, %v7717_v31 }
0x17c4   :  { %3570 = vrot.lane.b32.xlu0 %v3563_v34, %s5016_s4 }
0x17ca   :  { %v3723_v35 = vpop.permute.xlu0 %3722 }
0x17cb   :  { %v3724_v48 = vsel %vm204_vm6, %v3723_v35, %v7724_v38 }
0x17cc   :  { %3734 = vrot.lane.b32.xlu1 %v3724_v48, %s5016_s4  ;;  %v3597_v48 = vstv %s4762_s28 }
0x17d2   :  { %v3726_v57 = vpop.permute.xlu0 %3725 }
0x17d3   :  { %v3727_v2 = vsel %vm204_vm6, %v3726_v57, %v7730_v51 }
0x17d4   :  { %3740 = vrot.lane.b32.xlu1 %v3733_v23, %s5016_s4  ;;  %3736 = vrot.lane.b32.xlu0 %v3727_v2, %s5016_s4 }
0x17da   :  { %v3553_v36 = vpop.permute.xlu0 %3552 }
0x17db   :  { %v3554_v39 = vsel %vm204_vm6, %v3553_v36, %v7738_v13 }
0x17dc   :  { %3564 = vrot.lane.b32.xlu0 %v3554_v39, %s5016_s4 }
0x17fd   :  { %v3657_v32 = vpop.permute.xlu1 %3656 }
0x17fe   :  { %v3655_v0 = vpop.permute.xlu2 %3654  ;;  %v3663_v4 = vsel %vm204_vm6, %v3657_v32, %v7670_v29 }
0x17ff   :  { %v3662_v44 = vsel %vm204_vm6, %v3655_v0, %v7672_v12  ;;  %3672 = vrot.lane.b32.xlu1 %v3663_v4, %s5017_s5  ;;  %3698 = vrot.lane.b32.xlu0 %v3663_v4, %s5018_s26 }
0x1800   :  { %3670 = vrot.lane.b32.xlu2 %v3662_v44, %s5017_s5 }
0x1806   :  { %v3661_v18 = vpop.permute.xlu2 %3660 }
0x1807   :  { %3696 = vrot.lane.b32.xlu1 %v3662_v44, %s5018_s26  ;;  %v3665_v22 = vsel %vm204_vm6, %v3661_v18, %v7666_v16 }
0x180e   :  { %v3567_v1 = vpop.permute.xlu2 %3566 }
0x180f   :  { %v3573_v3 = vsel %vm204_vm6, %v3567_v1, %v7703_v40 }
0x1815   :  { %v3659_v63 = vpop.permute.xlu0 %3658 }
0x1816   :  { %v3664_v41 = vsel %vm204_vm6, %v3659_v63, %v7668_v20  ;;  %v3739_v60 = vpop.permute.xlu2 %3738 }
0x1817   :  { %3700 = vrot.lane.b32.xlu1 %v3664_v41, %s5018_s26  ;;  %3674 = vrot.lane.b32.xlu2 %v3664_v41, %s5017_s5  ;;  %v3744_v49 = vsel %vm204_vm6, %v3739_v60, %v7687_v37 }
0x181f   :  { %3702 = vrot.lane.b32.xlu1 %v3665_v22, %s5018_s26  ;;  %3676 = vrot.lane.b32.xlu2 %v3665_v22, %s5017_s5 }
0x1827   :  { %3582 = vrot.lane.b32.xlu2 %v3573_v3, %s5017_s5 }
0x182e   :  { %v3569_v43 = vpop.permute.xlu1 %3568 }
0x182f   :  { %v3574_v45 = vsel %vm204_vm6, %v3569_v43, %v7710_v8 }
0x1830   :  { %3584 = vrot.lane.b32.xlu1 %v3574_v45, %s5017_s5 }
0x1836   :  { %v3571_v19 = vpop.permute.xlu0 %3570 }
0x1837   :  { %v3575_v54 = vsel %vm204_vm6, %v3571_v19, %v7717_v31 }
0x1838   :  { %3618 = vrot.lane.b32.xlu1 %v3573_v3, %s5018_s26  ;;  %3586 = vrot.lane.b32.xlu0 %v3575_v54, %s5017_s5  ;;  %v3633_v3 = vstv %s4764_s30 }
0x183e   :  { %v3735_v62 = vpop.permute.xlu1 %3734 }
0x183f   :  { %v3742_v24 = vsel %vm204_vm6, %v3735_v62, %v7724_v38 }
0x1840   :  { %3786 = vrot.lane.b32.xlu1 %v3742_v24, %s5018_s26  ;;  %3620 = vrot.lane.b32.xlu0 %v3574_v45, %s5018_s26 }
0x1846   :  { %v3741_v17 = vpop.permute.xlu1 %3740  ;;  %v3737_v56 = vpop.permute.xlu0 %3736 }
0x1847   :  { %v3745_v33 = vsel %vm204_vm6, %v3741_v17, %v7691_v27  ;;  %v3743_v30 = vsel %vm204_vm6, %v3737_v56, %v7730_v51 }
0x1848   :  { %3792 = vrot.lane.b32.xlu1 %v3745_v33, %s5018_s26  ;;  %3622 = vrot.lane.b32.xlu0 %v3575_v54, %s5018_s26 }
0x1849   :  { %3752 = vrot.lane.b32.xlu2 %v3743_v30, %s5017_s5 }
0x184e   :  { %v3565_v26 = vpop.permute.xlu0 %3564 }
0x184f   :  { %v3572_v11 = vsel %vm204_vm6, %v3565_v26, %v7738_v13  ;;  %vm3898_vm6 = vcmask 516352  }
0x1850   :  { %3750 = vrot.lane.b32.xlu0 %v3742_v24, %s5017_s5 }
0x1851   :  { %3616 = vrot.lane.b32.xlu2 %v3572_v11, %s5018_s26 }
0x1858   :  { %3580 = vrot.lane.b32.xlu0 %v3572_v11, %s5017_s5 }
0x1859   :  { %3756 = vrot.lane.b32.xlu2 %v3745_v33, %s5017_s5 }
0x185a   :  { %v7826_v7 = vpop.permute.xlu2 %3670 }
0x1860   :  { %3754 = vrot.lane.b32.xlu0 %v3744_v49, %s5017_s5  ;;  %s4761_s5 = sld [smem:[#allocation9 + $0x55]] }
0x1861   :  { %3790 = vrot.lane.b32.xlu2 %v3744_v49, %s5018_s26 }
0x1866   :  { %v3542_v34 = vstv %s4761_s5 }
0x1867   :  { %v3546_v57 = vmul.f32 %v3542_v34, %v7666_v16  ;;  %v3544_v23 = vmul.f32 %v3542_v34, %v7670_v29  ;;  %v3545_v39 = vmul.f32 %v3542_v34, %v7668_v20  ;;  %v3607_v16 = vstv %s4763_s29 }
0x1868   :  { %3788 = vrot.lane.b32.xlu0 %v3743_v30, %s5018_s26  ;;  %s4760_s26 = sld [smem:[#allocation10 + $0x9]]  ;;  %v3611_v62 = vmul.f32 %v3607_v16, %v7717_v31  ;;  %v3543_v17 = vmul.f32 %v3542_v34, %v7672_v12  ;;  %v3609_v56 = vmul.f32 %v3607_v16, %v7703_v40  ;;  %v3610_v30 = vmul.f32 %v3607_v16, %v7710_v8 }
0x1869   :  { %v3608_v49 = vmul.f32 %v3607_v16, %v7738_v13  ;;  %v3687_v8 = vstv %s7851_s8 }
0x186e   :  { %v3547_v2 = vstv %s4760_s26 }
0x186f   :  { %v3551_v41 = vadd.f32 %v3547_v2, %v3546_v57  ;;  %v3549_v22 = vadd.f32 %v3547_v2, %v3544_v23  ;;  %v3550_v1 = vadd.f32 %v3547_v2, %v3545_v39  ;;  %v3682_v23 = vsel %vm125_vm8, %v7826_v7, 0.0 }
0x1871   :  { %v3673_v46 = vpop.permute.xlu1 %3672  ;;  %v7828_v42 = vpop.permute.xlu2 %3674 }
0x1872   :  { %v7832_v58 = vpop.permute.xlu0 %3698  ;;  %v3683_v12 = vsel %vm125_vm8, %v3673_v46, 0.0 }
0x1879   :  { %v7830_v53 = vpop.permute.xlu1 %3696  ;;  %v3677_v15 = vpop.permute.xlu2 %3676 }
0x187a   :  { %v3685_v60 = vsel %vm125_vm8, %v3677_v15, 0.0  ;;  %v3708_v7 = vsel %vm126_vm9, %v7830_v53, 0.0 }
0x187b   :  { %v3691_v13 = vmul.f32 %v3687_v8, %v3685_v60 }
0x1881   :  { %v3583_v21 = vpop.permute.xlu2 %3582 }
0x1882   :  { %v3593_v9 = vsel %vm125_vm8, %v3583_v21, 0.0 }
0x1883   :  { %v3599_v4 = vmul.f32 %v3597_v48, %v3593_v9 }
0x1885   :  { %v3603_v45 = vadd.f32 %v3599_v4, %v3549_v22 }
0x1887   :  { %v3613_v31 = vadd.f32 %v3609_v56, %v3603_v45 }
0x1889   :  { %v7834_v6 = vpop.permute.xlu1 %3700 }
0x1891   :  { %v7836_v59 = vpop.permute.xlu1 %3702 }
0x18a2   :  { %v3585_v10 = vpop.permute.xlu1 %3584 }
0x18a3   :  { %v7838_v14 = vpop.permute.xlu2 %3752  ;;  %v3594_v36 = vsel %vm125_vm8, %v3585_v10, 0.0 }
0x18a4   :  { %v3600_v63 = vmul.f32 %v3597_v48, %v3594_v36  ;;  %v3711_v36 = vsel %vm126_vm9, %v7836_v59, 0.0  ;;  %v3710_v59 = vsel %vm126_vm9, %v7834_v6, 0.0  ;;  %v3763_v53 = vsel %vm125_vm8, %v7838_v14, 0.0 }
0x18a6   :  { %v3604_v54 = vadd.f32 %v3600_v63, %v3550_v1 }
0x18a8   :  { %v3614_v21 = vadd.f32 %v3610_v30, %v3604_v54 }
0x18aa   :  { %v3587_v61 = vpop.permute.xlu0 %3586  ;;  %v3619_v44 = vpop.permute.xlu1 %3618 }
0x18ab   :  { %v3595_v35 = vsel %vm125_vm8, %v3587_v61, 0.0  ;;  %v3617_v32 = vpop.permute.xlu2 %3616  ;;  %v3629_v20 = vsel %vm126_vm9, %v3619_v44, 0.0  ;;  %v3777_v44 = vstv %s7863_s10 }
0x18ac   :  { %v3601_v0 = vmul.f32 %v3597_v48, %v3595_v35  ;;  %v3635_v33 = vmul.f32 %v3633_v3, %v3629_v20  ;;  %v3713_v35 = vstv %s7855_s9  ;;  %v3780_v14 = vmul.f32 %v3777_v44, %v7687_v37 }
0x18ad   :  { %v3714_v54 = vmul.f32 %v3713_v35, %v3708_v7 }
0x18ae   :  { %v3605_v43 = vadd.f32 %v3601_v0, %v3551_v41  ;;  %v3639_v15 = vadd.f32 %v3635_v33, %v3613_v31  ;;  %v3709_v0 = vsel %vm126_vm9, %v7832_v58, 0.0  ;;  %v3767_v58 = vstv %s7869_s11 }
0x18af   :  { %v3715_v1 = vmul.f32 %v3713_v35, %v3709_v0 }
0x18b0   :  { %v3615_v11 = vadd.f32 %v3611_v62, %v3605_v43  ;;  %v3716_v43 = vmul.f32 %v3713_v35, %v3710_v59 }
0x18b2   :  { %v3621_v28 = vpop.permute.xlu0 %3620  ;;  %v3787_v9 = vpop.permute.xlu1 %3786 }
0x18b3   :  { %v3630_v19 = vsel %vm126_vm9, %v3621_v28, 0.0  ;;  %v3757_v61 = vpop.permute.xlu2 %3756  ;;  %v3548_v28 = vadd.f32 %v3547_v2, %v3543_v17  ;;  %v3689_v2 = vmul.f32 %v3687_v8, %v3683_v12 }
0x18b4   :  { %v3636_v26 = vmul.f32 %v3633_v3, %v3630_v19  ;;  %v3765_v20 = vsel %vm125_vm8, %v3757_v61, 0.0 }
0x18b5   :  { %v3693_v63 = vadd.f32 %v3689_v2, %v3639_v15  ;;  %v3771_v17 = vmul.f32 %v3767_v58, %v3765_v20 }
0x18b6   :  { %v3640_v57 = vadd.f32 %v3636_v26, %v3614_v21  ;;  %v3803_v21 = vstv %s4769_s12 }
0x18b7   :  { %v3719_v62 = vadd.f32 %v3715_v1, %v3693_v63 }
0x18ba   :  { %v3623_v5 = vpop.permute.xlu0 %3622  ;;  %v3793_v60 = vpop.permute.xlu1 %3792 }
0x18bb   :  { %v3631_v29 = vsel %vm126_vm9, %v3623_v5, 0.0  ;;  %v3684_v5 = vsel %vm125_vm8, %v7828_v42, 0.0  ;;  %v3628_v42 = vsel %vm126_vm9, %v3617_v32, 0.0  ;;  %v3717_v32 = vmul.f32 %v3713_v35, %v3711_v36  ;;  %v3791_v56 = vpop.permute.xlu2 %3790 }
0x18bc   :  { %v3637_v24 = vmul.f32 %v3633_v3, %v3631_v29  ;;  %v3690_v39 = vmul.f32 %v3687_v8, %v3684_v5  ;;  %v3634_v41 = vmul.f32 %v3633_v3, %v3628_v42  ;;  %v3688_v29 = vmul.f32 %v3687_v8, %v3682_v23 }
0x18bd   :  { %v3778_v8 = vmul.f32 %v3777_v44, %v7724_v38  ;;  %v3801_v37 = vsel %vm126_vm9, %v3793_v60, 0.0 }
0x18be   :  { %v3641_v40 = vadd.f32 %v3637_v24, %v3615_v11  ;;  %v3694_v22 = vadd.f32 %v3690_v39, %v3640_v57  ;;  %v3769_v11 = vmul.f32 %v3767_v58, %v3763_v53  ;;  %v3807_v36 = vmul.f32 %v3803_v21, %v3801_v37 }
0x18bf   :  { %v3866_v37 = vstv %s4770_s3 }
0x18c0   :  { %v3695_v4 = vadd.f32 %v3691_v13, %v3641_v40  ;;  %v3720_v30 = vadd.f32 %v3716_v43, %v3694_v22  ;;  %v3800_v40 = vsel %vm126_vm9, %v3791_v56, 0.0 }
0x18c1   :  { %v3806_v13 = vmul.f32 %v3803_v21, %v3800_v40 }
0x18c2   :  { %v7849_v18 = vpop.permute.xlu0 %3750  ;;  %v3721_v45 = vadd.f32 %v3717_v32, %v3695_v4 }
0x18c3   :  { %v3762_v3 = vsel %vm125_vm8, %v7849_v18, 0.0  ;;  %v3798_v18 = vsel %vm126_vm9, %v3787_v9, 0.0 }
0x18c4   :  { %v3775_v31 = vadd.f32 %v3771_v17, %v3721_v45  ;;  %v3804_v35 = vmul.f32 %v3803_v21, %v3798_v18 }
0x18ca   :  { %v3581_v10 = vpop.permute.xlu0 %3580 }
0x18cb   :  { %v3592_v34 = vsel %vm125_vm8, %v3581_v10, 0.0  ;;  %v3781_v10 = vmul.f32 %v3777_v44, %v7691_v27 }
0x18cc   :  { %v3598_v46 = vmul.f32 %v3597_v48, %v3592_v34  ;;  %v3779_v34 = vmul.f32 %v3777_v44, %v7730_v51 }
0x18cd   :  { %v3785_v9 = vadd.f32 %v3781_v10, %v3775_v31 }
0x18ce   :  { %v3602_v48 = vadd.f32 %v3598_v46, %v3548_v28  ;;  %v3773_v28 = vadd.f32 %v3769_v11, %v3719_v62 }
0x18cf   :  { %v7928_v0 = vadd.f32 %v3807_v36, %v3785_v9 }
0x18d0   :  { %v3612_v16 = vadd.f32 %v3608_v49, %v3602_v48  ;;  %v3768_v49 = vmul.f32 %v3767_v58, %v3762_v3  ;;  %v3783_v23 = vadd.f32 %v3779_v34, %v3773_v28 }
0x18d1   :  { %v3832_v63 = vmul.f32 %v7928_v0, %v7928_v0 }
0x18d2   :  { %v3638_v19 = vadd.f32 %v3634_v41, %v3612_v16  ;;  %v3755_v6 = vpop.permute.xlu0 %3754 }
0x18d3   :  { %v3764_v24 = vsel %vm125_vm8, %v3755_v6, 0.0  ;;  %v3838_v43 = vsel %vm465_vm10, %v3832_v63, 0.0  ;;  %vm3906_vm8 = vcmask 778752  }
0x18d4   :  { %v3692_v33 = vadd.f32 %v3688_v29, %v3638_v19  ;;  %v3770_v26 = vmul.f32 %v3767_v58, %v3764_v24  ;;  %v3817_v29 = vsel %vm465_vm10, %v7928_v0, 0.0 }
0x18d6   :  { %v3718_v12 = vadd.f32 %v3714_v54, %v3692_v33  ;;  %v3774_v61 = vadd.f32 %v3770_v26, %v3720_v30 }
0x18d8   :  { %v3772_v5 = vadd.f32 %v3768_v49, %v3718_v12  ;;  %v3784_v15 = vadd.f32 %v3780_v14, %v3774_v61 }
0x18da   :  { %v3789_v57 = vpop.permute.xlu0 %3788  ;;  %v3782_v46 = vadd.f32 %v3778_v8, %v3772_v5  ;;  %v7922_v27 = vadd.f32 %v3806_v13, %v3784_v15 }
0x18db   :  { %v3799_v2 = vsel %vm126_vm9, %v3789_v57, 0.0  ;;  %vm3916_vm9 = vcmask 1041152  }
0x18dc   :  { %v3805_v38 = vmul.f32 %v3803_v21, %v3799_v2  ;;  %v7924_v42 = vadd.f32 %v3804_v35, %v3782_v46  ;;  %v3831_v44 = vmul.f32 %v7922_v27, %v7922_v27  ;;  %v3815_v59 = vsel %vm465_vm10, %v7922_v27, 0.0 }
0x18de   :  { %v7926_v39 = vadd.f32 %v3805_v38, %v3783_v23  ;;  %v3829_v51 = vmul.f32 %v7924_v42, %v7924_v42  ;;  %v3812_v48 = vsel %vm465_vm10, %v7924_v42, 0.0  ;;  %v3836_v1 = vsel %vm465_vm10, %v3831_v44, 0.0 }
0x18df   :  { %v3877_v23 = vstv %s4771_s15 }
0x18e0   :  { %v3813_v4 = vsel %vm465_vm10, %v7926_v39, 0.0  ;;  %v3830_v50 = vmul.f32 %v7926_v39, %v7926_v39  ;;  %v3833_v32 = vsel %vm465_vm10, %v3829_v51, 0.0 }
0x18e1   :  { %v3814_v7 = vadd.f32 %v3813_v4, %v3812_v48 }
0x18e2   :  { %v3834_v41 = vsel %vm465_vm10, %v3830_v50, 0.0 }
0x18e3   :  { %v3816_v22 = vadd.f32 %v3815_v59, %v3814_v7  ;;  %v3835_v16 = vadd.f32 %v3834_v41, %v3833_v32 }
0x18e5   :  { %v3818_v58 = vadd.f32 %v3817_v29, %v3816_v22  ;;  %v3837_v20 = vadd.f32 %v3836_v1, %v3835_v16 }
0x18e7   :  { %3819 = vadd.xlane.f32.xlu0 %v3818_v58  ;;  %v3839_v53 = vadd.f32 %v3838_v43, %v3837_v20 }
0x18e9   :  { %3840 = vadd.xlane.f32.xlu2 %v3839_v53 }
0x195a   :  { %v3820_v45 = vpop.xlane.xlu0 %3819 }
0x195b   :  { %v3821_v19 = vrot.slane %v3820_v45, 4 }
0x195c   :  { %v3841_v6 = vpop.xlane.xlu2 %3840 }
0x195d   :  { %v3822_v54 = vadd.f32 %v3821_v19, %v3820_v45  ;;  %v3842_v62 = vrot.slane %v3841_v6, 4 }
0x195f   :  { %v3823_v3 = vrot.slane %v3822_v54, 2  ;;  %v3843_v24 = vadd.f32 %v3842_v62, %v3841_v6 }
0x1961   :  { %v3844_v17 = vrot.slane %v3843_v24, 2  ;;  %v3824_v56 = vadd.f32 %v3823_v3, %v3822_v54 }
0x1963   :  { %v3825_v33 = vrot.slane %v3824_v56, 1  ;;  %v3845_v30 = vadd.f32 %v3844_v17, %v3843_v24 }
0x1965   :  { %v3826_v26 = vadd.f32 %v3825_v33, %v3824_v56  ;;  %v3846_v11 = vrot.slane %v3845_v30, 1 }
0x1967   :  { %4832 = vpush %v3826_v26  ;;  %v3847_v14 = vadd.f32 %v3846_v11, %v3845_v30 }
0x1969   :  { %4834 = vpush %v3847_v14 }
0x1998   :  { %s4833_s13 = spop %4832 }
0x1999   :  { %v3828_v60 = vstv %s4833_s13 }
0x199a   :  { %v3850_v31 = vmul.f32 0.00048828125, %v3828_v60  ;;  %s4835_s14 = spop %4834 }
0x199b   :  { %v3849_v49 = vstv %s4835_s14 }
0x199c   :  { %v3851_v12 = vmul.f32 0.00048828125, %v3849_v49  ;;  %v3852_v61 = vmul.f32 %v3850_v31, %v3850_v31  ;;  %v3868_v34 = vsub.f32 %v7924_v42, %v3850_v31  ;;  %v3869_v13 = vsub.f32 %v7926_v39, %v3850_v31 }
0x199d   :  { %v3870_v57 = vsub.f32 %v7922_v27, %v3850_v31  ;;  %v3871_v46 = vsub.f32 %v7928_v0, %v3850_v31 }
0x199e   :  { %v3853_v21 = vsub.f32 %v3851_v12, %v3852_v61 }
0x19a0   :  { %v3855_v18 = vadd.f32 1e-05, %v3853_v21 }
0x19a2   :  { %4869 = vrsqrt.f32 %v3855_v18  ;;  %vm3862_vm3 = vweird.f32 %v3855_v18 }
0x19a8   :  { %v4870_v40 = vpop.eup %4869 }
0x19a9   :  { %v3857_v28 = vmul.f32 %v4870_v40, %v3855_v18  ;;  %vm3863_vm2 = vweird.f32 %v4870_v40 }
0x19aa   :  { %vm3864_vm4 = vmor %vm3862_vm3, %vm3863_vm2 }
0x19ab   :  { %v3858_v10 = vmul.f32 %v4870_v40, %v3857_v28 }
0x19ad   :  { %v3859_v8 = vmul.f32 0.5, %v3858_v10 }
0x19af   :  { %v3860_v5 = vsub.f32 1.5, %v3859_v8 }
0x19b1   :  { %v3861_v15 = vmul.f32 %v4870_v40, %v3860_v5 }
0x19b3   :  { %v3865_v35 = vsel %vm3864_vm4, %v4870_v40, %v3861_v15 }
0x19b4   :  { %v3867_v9 = vmul.f32 %v3866_v37, %v3865_v35 }
0x19b6   :  { %v3872_v2 = vmul.f32 %v3868_v34, %v3867_v9  ;;  %v3873_v36 = vmul.f32 %v3869_v13, %v3867_v9  ;;  %v3874_v38 = vmul.f32 %v3870_v57, %v3867_v9  ;;  %v3875_v51 = vmul.f32 %v3871_v46, %v3867_v9 }
0x19b8   :  { %v3878_v4 = vadd.f32 %v3877_v23, %v3872_v2  ;;  %v3879_v50 = vadd.f32 %v3877_v23, %v3873_v36  ;;  %v3880_v48 = vadd.f32 %v3877_v23, %v3874_v38  ;;  %v3881_v44 = vadd.f32 %v3877_v23, %v3875_v51 }
0x19ba   :  { %v3882_v7 = vadd.f32 %v3878_v4, %v7391_v25  ;;  %v3883_v42 = vadd.f32 %v3879_v50, %v7389_v52  ;;  %v3884_v39 = vadd.f32 %v3880_v48, %v7393_v47  ;;  %v3885_v27 = vadd.f32 %v3881_v44, %v7387_v55 }
0x19bc   :  { %v7958_v0 = vmax.f32 %v3882_v7, 0.0  ;;  %v7960_v59 = vmax.f32 %v3883_v42, 0.0  ;;  %v7962_v63 = vmax.f32 %v3884_v39, 0.0  ;;  %v7964_v32 = vmax.f32 %v3885_v27, 0.0 }
0x19be   :  { %3900 = vst.sshfl [vmem:[#allocation1] sm:$0xff pattern:$0x73625140] %v7958_v0  ;;  %4266 = vrot.lane.b32.xlu2 %v7964_v32, %s5019_s16  ;;  %4214 = vrot.lane.b32.xlu0 %v7962_v63, %s5019_s16  ;;  %v4058_v55 = vrot.slane %v7964_v32, 7  ;;  %v3950_v52 = vrot.slane %v7960_v59, 7  ;;  %v3893_v22 = vrot.slane %v7958_v0, 7 }
0x19bf   :  { %4110 = vrot.lane.b32.xlu1 %v7958_v0, %s5019_s16  ;;  %3891 = vst.msk [vmem:[#allocation3] sm:$0x1] %vm3890_vm5, %v7958_v0  ;;  %v4004_v1 = vrot.slane %v7962_v63, 7 }
0x19c0   :  { %3948 = vst.msk [vmem:[#allocation3 + $0x4] sm:$0x1] %vm3890_vm5, %v7960_v59  ;;  %v4059_v25 = vrot.slane %v4058_v55, 2  ;;  %v7983_v47 = vrot.slane %v3950_v52, 2  ;;  %v3894_v29 = vrot.slane %v3893_v22, 2 }
0x19c1   :  { %4002 = vst.msk [vmem:[#allocation3 + $0x8] sm:$0x1] %vm3890_vm5, %v7962_v63  ;;  %v4005_v20 = vrot.slane %v4004_v1, 2 }
0x19c2   :  { %4056 = vst.msk [vmem:[#allocation3 + $0xc] sm:$0x1] %vm3890_vm5, %v7964_v32 }
0x19c5   :  { %v3902_v41 = vld [vmem:[#allocation1 + $0x1] ss:$4 sm:$0xff] }
0x19c6   :  { %3908 = vst.sshfl [vmem:[#allocation1] sm:$0xff pattern:$0x73625140] %v7958_v0  ;;  %4060 = vrot.lane.b32.xlu0 %v4059_v25, %s5015_s2  ;;  %3952 = vrot.lane.b32.xlu2 %v7983_v47, %s5015_s2 }
0x19c7   :  { %4162 = vrot.lane.b32.xlu1 %v7960_v59, %s5019_s16 }
0x19cd   :  { %v3910_v16 = vld [vmem:[#allocation1 + $0x1] ss:$4 sm:$0xff] }
0x19ce   :  { %3918 = vst.sshfl [vmem:[#allocation1] sm:$0xff pattern:$0x73625140] %v7958_v0  ;;  %v4772_v19 = vrot.slane %v3910_v16, 9 }
0x19cf   :  { %3895 = vrot.lane.b32.xlu1 %v3894_v29, %s5015_s2 }
0x19d5   :  { %v3920_v58 = vld [vmem:[#allocation1 + $0x2] ss:$4 sm:$0xff] }
0x19d6   :  { %3923 = vst.sshfl [vmem:[#allocation1] sm:$0xff pattern:$0x73625140] %v7958_v0 }
0x19d7   :  { %4006 = vrot.lane.b32.xlu1 %v4005_v20, %s5015_s2  ;;  %3922 = vst.msk [vmem:[#allocation3 + $0x2] sm:$0x1] %vm3890_vm5, %v3920_v58 }
0x19dd   :  { %v3925_v43 = vld [vmem:[#allocation1 + $0x2] ss:$4 sm:$0xff] }
0x19de   :  { %3932 = vst.sshfl [vmem:[#allocation1] sm:$0xff pattern:$0x73625140] %v7958_v0  ;;  %v4773_v53 = vrot.slane %v3925_v43, 9 }
0x19df   :  { %3903 = vrot.lane.b32.xlu1 %v3902_v41, %s5016_s4 }
0x19e0   :  { %3928 = vrot.lane.b32.xlu0 %v4773_v53, %s5015_s2 }
0x19e5   :  { %v3934_v45 = vld [vmem:[#allocation1 + $0x3] ss:$4 sm:$0xff] }
0x19e6   :  { %3939 = vst.sshfl [vmem:[#allocation1] sm:$0xff pattern:$0x73625140] %v7958_v0 }
0x19e7   :  { %3913 = vrot.lane.b32.xlu1 %v4772_v19, %s5019_s16 }
0x19e8   :  { %3935 = vrot.lane.b32.xlu0 %v3934_v45, %s5016_s4 }
0x19ed   :  { %v3941_v6 = vld [vmem:[#allocation1 + $0x3] ss:$4 sm:$0xff] }
0x19ee   :  { %3956 = vst.sshfl [vmem:[#allocation1] sm:$0xff pattern:$0x73625140] %v7960_v59  ;;  %v4774_v54 = vrot.slane %v3941_v6, 9 }
0x19f0   :  { %3944 = vrot.lane.b32.xlu2 %v4774_v54, %s5019_s16 }
0x19f5   :  { %v3958_v62 = vld [vmem:[#allocation1 + $0x1] ss:$4 sm:$0xff] }
0x19f6   :  { %3963 = vst.sshfl [vmem:[#allocation1] sm:$0xff pattern:$0x73625140] %v7960_v59  ;;  %3959 = vrot.lane.b32.xlu1 %v3958_v62, %s5016_s4 }
0x19fd   :  { %v3965_v3 = vld [vmem:[#allocation1 + $0x1] ss:$4 sm:$0xff] }
0x19fe   :  { %3972 = vst.sshfl [vmem:[#allocation1] sm:$0xff pattern:$0x73625140] %v7960_v59  ;;  %v4775_v24 = vrot.slane %v3965_v3, 9 }
0x1a00   :  { %3968 = vrot.lane.b32.xlu0 %v4775_v24, %s5019_s16 }
0x1a05   :  { %v3974_v17 = vld [vmem:[#allocation1 + $0x2] ss:$4 sm:$0xff] }
0x1a06   :  { %3977 = vst.sshfl [vmem:[#allocation1] sm:$0xff pattern:$0x73625140] %v7960_v59 }
0x1a07   :  { %3976 = vst.msk [vmem:[#allocation3 + $0x6] sm:$0x1] %vm3890_vm5, %v3974_v17 }
0x1a0d   :  { %v3979_v56 = vld [vmem:[#allocation1 + $0x2] ss:$4 sm:$0xff] }
0x1a0e   :  { %3986 = vst.sshfl [vmem:[#allocation1] sm:$0xff pattern:$0x73625140] %v7960_v59  ;;  %v4776_v33 = vrot.slane %v3979_v56, 9 }
0x1a10   :  { %3982 = vrot.lane.b32.xlu1 %v4776_v33, %s5015_s2 }
0x1a15   :  { %v3988_v30 = vld [vmem:[#allocation1 + $0x3] ss:$4 sm:$0xff] }
0x1a16   :  { %3993 = vst.sshfl [vmem:[#allocation1] sm:$0xff pattern:$0x73625140] %v7960_v59  ;;  %3989 = vrot.lane.b32.xlu2 %v3988_v30, %s5016_s4 }
0x1a18   :  { %v4267_v26 = vpop.permute.xlu2 %4266 }
0x1a19   :  { %4269 = vst.msk [vmem:[#allocation3 + $0xd] sm:$0x1] %vm3890_vm5, %v4267_v26 }
0x1a1a   :  { %4271 = vst.msk [vmem:[#allocation3 + $0xd] sm:$0x1] %vm3898_vm6, %v4059_v25 }
0x1a1d   :  { %v3995_v11 = vld [vmem:[#allocation1 + $0x3] ss:$4 sm:$0xff] }
0x1a1e   :  { %4010 = vst.sshfl [vmem:[#allocation1] sm:$0xff pattern:$0x73625140] %v7962_v63  ;;  %v4777_v14 = vrot.slane %v3995_v11, 9 }
0x1a20   :  { %v3953_v60 = vpop.permute.xlu2 %3952  ;;  %3998 = vrot.lane.b32.xlu1 %v4777_v14, %s5019_s16 }
0x1a21   :  { %3955 = vst.msk [vmem:[#allocation3 + $0x4] sm:$0x1] %vm3898_vm6, %v3953_v60 }
0x1a25   :  { %v4012_v31 = vld [vmem:[#allocation1 + $0x1] ss:$4 sm:$0xff] }
0x1a26   :  { %4017 = vst.sshfl [vmem:[#allocation1] sm:$0xff pattern:$0x73625140] %v7962_v63  ;;  %4013 = vrot.lane.b32.xlu2 %v4012_v31, %s5016_s4 }
0x1a2d   :  { %v4019_v49 = vld [vmem:[#allocation1 + $0x1] ss:$4 sm:$0xff] }
0x1a2e   :  { %4026 = vst.sshfl [vmem:[#allocation1] sm:$0xff pattern:$0x73625140] %v7962_v63  ;;  %v4778_v12 = vrot.slane %v4019_v49, 9 }
0x1a30   :  { %v4215_v61 = vpop.permute.xlu0 %4214  ;;  %4022 = vrot.lane.b32.xlu1 %v4778_v12, %s5019_s16 }
0x1a31   :  { %4217 = vst.msk [vmem:[#allocation3 + $0x9] sm:$0x1] %vm3890_vm5, %v4215_v61  ;;  %v4111_v21 = vpop.permute.xlu1 %4110 }
0x1a32   :  { %4219 = vst.msk [vmem:[#allocation3 + $0x9] sm:$0x1] %vm3898_vm6, %v4005_v20 }
0x1a33   :  { %4113 = vst.msk [vmem:[#allocation3 + $0x1] sm:$0x1] %vm3890_vm5, %v4111_v21 }
0x1a34   :  { %4115 = vst.msk [vmem:[#allocation3 + $0x1] sm:$0x1] %vm3898_vm6, %v3894_v29 }
0x1a35   :  { %v4028_v18 = vld [vmem:[#allocation1 + $0x2] ss:$4 sm:$0xff] }
0x1a36   :  { %4031 = vst.sshfl [vmem:[#allocation1] sm:$0xff pattern:$0x73625140] %v7962_v63 }
0x1a37   :  { %4030 = vst.msk [vmem:[#allocation3 + $0xa] sm:$0x1] %vm3890_vm5, %v4028_v18 }
0x1a38   :  { %v4061_v40 = vpop.permute.xlu0 %4060 }
0x1a39   :  { %4063 = vst.msk [vmem:[#allocation3 + $0xc] sm:$0x1] %vm3898_vm6, %v4061_v40  ;;  %v4163_v28 = vpop.permute.xlu1 %4162 }
0x1a3a   :  { %4165 = vst.msk [vmem:[#allocation3 + $0x5] sm:$0x1] %vm3890_vm5, %v4163_v28 }
0x1a3b   :  { %4167 = vst.msk [vmem:[#allocation3 + $0x5] sm:$0x1] %vm3898_vm6, %v7983_v47 }
0x1a3d   :  { %v4033_v10 = vld [vmem:[#allocation1 + $0x2] ss:$4 sm:$0xff] }
0x1a3e   :  { %4040 = vst.sshfl [vmem:[#allocation1] sm:$0xff pattern:$0x73625140] %v7962_v63  ;;  %v4779_v8 = vrot.slane %v4033_v10, 9 }
0x1a40   :  { %4036 = vrot.lane.b32.xlu2 %v4779_v8, %s5015_s2 }
0x1a41   :  { %v3896_v5 = vpop.permute.xlu1 %3895 }
0x1a42   :  { %3899 = vst.msk [vmem:[#allocation3] sm:$0x1] %vm3898_vm6, %v3896_v5 }
0x1a45   :  { %v4042_v15 = vld [vmem:[#allocation1 + $0x3] ss:$4 sm:$0xff] }
0x1a46   :  { %4047 = vst.sshfl [vmem:[#allocation1] sm:$0xff pattern:$0x73625140] %v7962_v63  ;;  %4043 = vrot.lane.b32.xlu0 %v4042_v15, %s5016_s4  ;;  %v4335_v15 = vld [vmem:[#allocation14 + $0x78] sm:$0xff] }
0x1a47   :  { %4473 = vmatpush.msra.mxu0 %v4335_v15  ;;  %v4338_v15 = vld [vmem:[#allocation14 + $0x90] sm:$0xff] }
0x1a49   :  { %v4007_v37 = vpop.permute.xlu1 %4006 }
0x1a4a   :  { %4009 = vst.msk [vmem:[#allocation3 + $0x8] sm:$0x1] %vm3898_vm6, %v4007_v37  ;;  %v3945_v2 = vpop.permute.xlu2 %3944  ;;  %v4351_v37 = vld [vmem:[#allocation14 + $0xf8] sm:$0xff] }
0x1a4b   :  { %4493 = vmatpush.msra.mxu1 %v4351_v37  ;;  %v4354_v37 = vld [vmem:[#allocation14 + $0x110] sm:$0xff] }
0x1a4d   :  { %v4049_v34 = vld [vmem:[#allocation1 + $0x3] ss:$4 sm:$0xff] }
0x1a4e   :  { %4064 = vst.sshfl [vmem:[#allocation1] sm:$0xff pattern:$0x73625140] %v7964_v32  ;;  %v4780_v35 = vrot.slane %v4049_v34, 9  ;;  %v4367_v34 = vld [vmem:[#allocation14 + $0x178] sm:$0xff] }
0x1a4f   :  { %4513 = vmatpush.msra.mxu2 %v4367_v34  ;;  %v4370_v34 = vld [vmem:[#allocation14 + $0x190] sm:$0xff] }
0x1a50   :  { %4052 = vrot.lane.b32.xlu2 %v4780_v35, %s5019_s16 }
0x1a51   :  { %v3904_v13 = vpop.permute.xlu1 %3903 }
0x1a52   :  { %3907 = vst.msk [vmem:[#allocation3] sm:$0x1] %vm3906_vm8, %v3904_v13  ;;  %v3929_v57 = vpop.permute.xlu0 %3928  ;;  %v4383_v13 = vld [vmem:[#allocation14 + $0x1f8] sm:$0xff] }
0x1a53   :  { %3931 = vst.msk [vmem:[#allocation3 + $0x2] sm:$0x1] %vm3898_vm6, %v3929_v57  ;;  %v4334_v57 = vld [vmem:[#allocation14 + $0x70] sm:$0xff]  ;;  %4533 = vmatpush.msra.mxu3 %v4383_v13  ;;  %v4337_v13 = vld [vmem:[#allocation14 + $0x88] sm:$0xff] }
0x1a54   :  { %4474 = vmatpush.msra.mxu0 %v4334_v57  ;;  %v4353_v57 = vld [vmem:[#allocation14 + $0x108] sm:$0xff] }
0x1a55   :  { %v4066_v46 = vld [vmem:[#allocation1 + $0x1] ss:$4 sm:$0xff] }
0x1a56   :  { %4071 = vst.sshfl [vmem:[#allocation1] sm:$0xff pattern:$0x73625140] %v7964_v32  ;;  %4067 = vrot.lane.b32.xlu1 %v4066_v46, %s5016_s4 }
0x1a59   :  { %v3914_v9 = vpop.permute.xlu1 %3913 }
0x1a5a   :  { %3917 = vst.msk [vmem:[#allocation3] sm:$0x1] %vm3916_vm9, %v3914_v9  ;;  %v3936_v23 = vpop.permute.xlu0 %3935  ;;  %v4350_v9 = vld [vmem:[#allocation14 + $0xf0] sm:$0xff] }
0x1a5b   :  { %3938 = vst.msk [vmem:[#allocation3 + $0x2] sm:$0x1] %vm3906_vm8, %v3936_v23  ;;  %v4366_v23 = vld [vmem:[#allocation14 + $0x170] sm:$0xff]  ;;  %4494 = vmatpush.msra.mxu1 %v4350_v9 }
0x1a5c   :  { %3947 = vst.msk [vmem:[#allocation3 + $0x2] sm:$0x1] %vm3916_vm9, %v3945_v2  ;;  %v4382_v2 = vld [vmem:[#allocation14 + $0x1f0] sm:$0xff]  ;;  %4514 = vmatpush.msra.mxu2 %v4366_v23 }
0x1a5d   :  { %v4073_v36 = vld [vmem:[#allocation1 + $0x1] ss:$4 sm:$0xff]  ;;  %4534 = vmatpush.msra.mxu3 %v4382_v2 }
0x1a5e   :  { %v4781_v38 = vrot.slane %v4073_v36, 9  ;;  %4080 = vst.sshfl [vmem:[#allocation1] sm:$0xff pattern:$0x73625140] %v7964_v32  ;;  %v4333_v36 = vld [vmem:[#allocation14 + $0x68] sm:$0xff]  ;;  %v4336_v2 = vld [vmem:[#allocation14 + $0x80] sm:$0xff] }
0x1a5f   :  { %4475 = vmatpush.msra.mxu0 %v4333_v36  ;;  %v4352_v36 = vld [vmem:[#allocation14 + $0x100] sm:$0xff] }
0x1a60   :  { %4076 = vrot.lane.b32.xlu0 %v4781_v38, %s5019_s16  ;;  %v4349_v38 = vld [vmem:[#allocation14 + $0xe8] sm:$0xff] }
0x1a61   :  { %4495 = vmatpush.msra.mxu1 %v4349_v38  ;;  %v4368_v38 = vld [vmem:[#allocation14 + $0x180] sm:$0xff] }
0x1a65   :  { %v4082_v51 = vld [vmem:[#allocation1 + $0x2] ss:$4 sm:$0xff] }
0x1a66   :  { %4085 = vst.sshfl [vmem:[#allocation1] sm:$0xff pattern:$0x73625140] %v7964_v32 }
0x1a67   :  { %4084 = vst.msk [vmem:[#allocation3 + $0xe] sm:$0x1] %vm3890_vm5, %v4082_v51  ;;  %v4365_v51 = vld [vmem:[#allocation14 + $0x168] sm:$0xff] }
0x1a68   :  { %v3960_v4 = vpop.permute.xlu1 %3959  ;;  %4515 = vmatpush.msra.mxu2 %v4365_v51 }
0x1a69   :  { %3962 = vst.msk [vmem:[#allocation3 + $0x4] sm:$0x1] %vm3906_vm8, %v3960_v4  ;;  %v4381_v4 = vld [vmem:[#allocation14 + $0x1e8] sm:$0xff] }
0x1a6a   :  { %4535 = vmatpush.msra.mxu3 %v4381_v4 }
0x1a6d   :  { %v4087_v50 = vld [vmem:[#allocation1 + $0x2] ss:$4 sm:$0xff] }
0x1a6e   :  { %v4782_v48 = vrot.slane %v4087_v50, 9  ;;  %4094 = vst.sshfl [vmem:[#allocation1] sm:$0xff pattern:$0x73625140] %v7964_v32  ;;  %v4332_v50 = vld [vmem:[#allocation14 + $0x60] sm:$0xff] }
0x1a6f   :  { %4476 = vmatpush.msra.mxu0 %v4332_v50 }
0x1a70   :  { %4090 = vrot.lane.b32.xlu1 %v4782_v48, %s5015_s2  ;;  %v3990_v42 = vpop.permute.xlu2 %3989  ;;  %v4348_v48 = vld [vmem:[#allocation14 + $0xe0] sm:$0xff] }
0x1a71   :  { %4496 = vmatpush.msra.mxu1 %v4348_v48 }
0x1a72   :  { %v3969_v44 = vpop.permute.xlu0 %3968 }
0x1a73   :  { %3971 = vst.msk [vmem:[#allocation3 + $0x4] sm:$0x1] %vm3916_vm9, %v3969_v44  ;;  %v4364_v44 = vld [vmem:[#allocation14 + $0x160] sm:$0xff] }
0x1a74   :  { %4516 = vmatpush.msra.mxu2 %v4364_v44 }
0x1a75   :  { %v4096_v7 = vld [vmem:[#allocation1 + $0x3] ss:$4 sm:$0xff] }
0x1a76   :  { %4097 = vrot.lane.b32.xlu2 %v4096_v7, %s5016_s4  ;;  %4101 = vst.sshfl [vmem:[#allocation1] sm:$0xff pattern:$0x73625140] %v7964_v32 }
0x1a7d   :  { %v4103_v39 = vld [vmem:[#allocation1 + $0x3] ss:$4 sm:$0xff] }
0x1a7e   :  { %v4783_v27 = vrot.slane %v4103_v39, 9  ;;  %4116 = vst.sshfl [vmem:[#allocation1] sm:$0xff pattern:$0x73625140] %v7958_v0  ;;  %v4331_v39 = vld [vmem:[#allocation14 + $0x58] sm:$0xff] }
0x1a7f   :  { %4477 = vmatpush.msra.mxu0 %v4331_v39 }
0x1a80   :  { %v4014_v55 = vpop.permute.xlu2 %4013  ;;  %4106 = vrot.lane.b32.xlu1 %v4783_v27, %s5019_s16  ;;  %v4347_v27 = vld [vmem:[#allocation14 + $0xd8] sm:$0xff] }
0x1a81   :  { %4016 = vst.msk [vmem:[#allocation3 + $0x8] sm:$0x1] %vm3906_vm8, %v4014_v55  ;;  %v4363_v55 = vld [vmem:[#allocation14 + $0x158] sm:$0xff]  ;;  %4497 = vmatpush.msra.mxu1 %v4347_v27 }
0x1a82   :  { %v3983_v52 = vpop.permute.xlu1 %3982  ;;  %4517 = vmatpush.msra.mxu2 %v4363_v55 }
0x1a83   :  { %3985 = vst.msk [vmem:[#allocation3 + $0x6] sm:$0x1] %vm3898_vm6, %v3983_v52  ;;  %v4379_v52 = vld [vmem:[#allocation14 + $0x1d8] sm:$0xff] }
0x1a84   :  { %3992 = vst.msk [vmem:[#allocation3 + $0x6] sm:$0x1] %vm3906_vm8, %v3990_v42  ;;  %v4380_v42 = vld [vmem:[#allocation14 + $0x1e0] sm:$0xff] }
0x1a85   :  { %v4118_v25 = vld [vmem:[#allocation1 + $0x1] ss:$4 sm:$0xff]  ;;  %4536 = vmatpush.msra.mxu3 %v4380_v42 }
0x1a86   :  { %4119 = vrot.lane.b32.xlu0 %v4118_v25, %s5015_s2  ;;  %4123 = vst.sshfl [vmem:[#allocation1] sm:$0xff pattern:$0x73625140] %v7958_v0 }
0x1a87   :  { %4537 = vmatpush.msra.mxu3 %v4379_v52 }
0x1a8d   :  { %v4125_v47 = vld [vmem:[#allocation1 + $0x1] ss:$4 sm:$0xff] }
0x1a8e   :  { %v4784_v41 = vrot.slane %v4125_v47, 9  ;;  %4132 = vst.sshfl [vmem:[#allocation1] sm:$0xff pattern:$0x73625140] %v7958_v0  ;;  %v4330_v47 = vld [vmem:[#allocation14 + $0x50] sm:$0xff] }
0x1a8f   :  { %4478 = vmatpush.msra.mxu0 %v4330_v47 }
0x1a90   :  { %4128 = vrot.lane.b32.xlu2 %v4784_v41, %s5016_s4  ;;  %v4346_v41 = vld [vmem:[#allocation14 + $0xd0] sm:$0xff] }
0x1a91   :  { %4498 = vmatpush.msra.mxu1 %v4346_v41 }
0x1a92   :  { %v3999_v22 = vpop.permute.xlu1 %3998 }
0x1a93   :  { %4001 = vst.msk [vmem:[#allocation3 + $0x6] sm:$0x1] %vm3916_vm9, %v3999_v22  ;;  %v4362_v22 = vld [vmem:[#allocation14 + $0x150] sm:$0xff] }
0x1a94   :  { %4518 = vmatpush.msra.mxu2 %v4362_v22  ;;  %v4399_v22 = vld [vmem:[#allocation14 + $0x278] sm:$0xff] }
0x1a95   :  { %v4134_v16 = vld [vmem:[#allocation1 + $0x2] ss:$4 sm:$0xff] }
0x1a96   :  { %4139 = vst.sshfl [vmem:[#allocation1] sm:$0xff pattern:$0x73625140] %v7958_v0  ;;  %4135 = vrot.lane.b32.xlu1 %v4134_v16, %s5019_s16  ;;  %v4378_v16 = vld [vmem:[#allocation14 + $0x1d0] sm:$0xff] }
0x1a97   :  { %4538 = vmatpush.msra.mxu3 %v4378_v16  ;;  %v4415_v16 = vld [vmem:[#allocation14 + $0x2f8] sm:$0xff] }
0x1a9a   :  { %v4037_v29 = vpop.permute.xlu2 %4036 }
0x1a9b   :  { %4039 = vst.msk [vmem:[#allocation3 + $0xa] sm:$0x1] %vm3898_vm6, %v4037_v29  ;;  %v4329_v29 = vld [vmem:[#allocation14 + $0x48] sm:$0xff] }
0x1a9c   :  { %4479 = vmatpush.msra.mxu0 %v4329_v29  ;;  %v4431_v29 = vld [vmem:[#allocation14 + $0x378] sm:$0xff] }
0x1a9d   :  { %v8073_v1 = vld [vmem:[#allocation1 + $0x2] ss:$4 sm:$0xff] }
0x1a9e   :  { %4146 = vst.sshfl [vmem:[#allocation1] sm:$0xff pattern:$0x73625140] %v7958_v0  ;;  %v4785_v40 = vrot.slane %v8073_v1, 9  ;;  %v4345_v1 = vld [vmem:[#allocation14 + $0xc8] sm:$0xff] }
0x1a9f   :  { %4499 = vmatpush.msra.mxu1 %v4345_v1  ;;  %v4447_v1 = vld [vmem:[#allocation14 + $0x3f8] sm:$0xff] }
0x1aa2   :  { %v4023_v58 = vpop.permute.xlu1 %4022 }
0x1aa3   :  { %4025 = vst.msk [vmem:[#allocation3 + $0x8] sm:$0x1] %vm3916_vm9, %v4023_v58  ;;  %v4361_v58 = vld [vmem:[#allocation14 + $0x148] sm:$0xff] }
0x1aa4   :  { %4519 = vmatpush.msra.mxu2 %v4361_v58  ;;  %v4398_v58 = vld [vmem:[#allocation14 + $0x270] sm:$0xff] }
0x1aa5   :  { %v4148_v20 = vld [vmem:[#allocation1 + $0x3] ss:$4 sm:$0xff] }
0x1aa6   :  { %4149 = vrot.lane.b32.xlu1 %v4148_v20, %s5015_s2  ;;  %4153 = vst.sshfl [vmem:[#allocation1] sm:$0xff pattern:$0x73625140] %v7958_v0  ;;  %v4377_v20 = vld [vmem:[#allocation14 + $0x1c8] sm:$0xff] }
0x1aa7   :  { %4539 = vmatpush.msra.mxu3 %v4377_v20  ;;  %v4414_v20 = vld [vmem:[#allocation14 + $0x2f0] sm:$0xff] }
0x1aaa   :  { %v4053_v6 = vpop.permute.xlu2 %4052 }
0x1aad   :  { %v4155_v43 = vld [vmem:[#allocation1 + $0x3] ss:$4 sm:$0xff] }
0x1aae   :  { %v4786_v53 = vrot.slane %v4155_v43, 9  ;;  %4168 = vst.sshfl [vmem:[#allocation1] sm:$0xff pattern:$0x73625140] %v7960_v59  ;;  %v4328_v43 = vld [vmem:[#allocation14 + $0x40] sm:$0xff] }
0x1aaf   :  { %4480 = vmatpush.msra.mxu0 %v4328_v43  ;;  %v4446_v43 = vld [vmem:[#allocation14 + $0x3f0] sm:$0xff] }
0x1ab0   :  { %4158 = vrot.lane.b32.xlu0 %v4786_v53, %s5016_s4  ;;  %v4344_v53 = vld [vmem:[#allocation14 + $0xc0] sm:$0xff] }
0x1ab1   :  { %4500 = vmatpush.msra.mxu1 %v4344_v53  ;;  %v4397_v53 = vld [vmem:[#allocation14 + $0x268] sm:$0xff] }
0x1ab5   :  { %v4170_v45 = vld [vmem:[#allocation1 + $0x1] ss:$4 sm:$0xff] }
0x1ab6   :  { %4171 = vrot.lane.b32.xlu2 %v4170_v45, %s5015_s2  ;;  %4175 = vst.sshfl [vmem:[#allocation1] sm:$0xff pattern:$0x73625140] %v7960_v59  ;;  %v4360_v45 = vld [vmem:[#allocation14 + $0x140] sm:$0xff] }
0x1ab7   :  { %4520 = vmatpush.msra.mxu2 %v4360_v45  ;;  %v4413_v45 = vld [vmem:[#allocation14 + $0x2e8] sm:$0xff] }
0x1ab8   :  { %v4044_v19 = vpop.permute.xlu0 %4043 }
0x1ab9   :  { %4046 = vst.msk [vmem:[#allocation3 + $0xa] sm:$0x1] %vm3906_vm8, %v4044_v19  ;;  %v4376_v19 = vld [vmem:[#allocation14 + $0x1c0] sm:$0xff] }
0x1aba   :  { %4055 = vst.msk [vmem:[#allocation3 + $0xa] sm:$0x1] %vm3916_vm9, %v4053_v6  ;;  %v4327_v6 = vld [vmem:[#allocation14 + $0x38] sm:$0xff]  ;;  %4540 = vmatpush.msra.mxu3 %v4376_v19  ;;  %v4429_v19 = vld [vmem:[#allocation14 + $0x368] sm:$0xff] }
0x1abb   :  { %4481 = vmatpush.msra.mxu0 %v4327_v6  ;;  %v4445_v6 = vld [vmem:[#allocation14 + $0x3e8] sm:$0xff] }
0x1abd   :  { %v4177_v54 = vld [vmem:[#allocation1 + $0x1] ss:$4 sm:$0xff] }
0x1abe   :  { %v4787_v62 = vrot.slane %v4177_v54, 9  ;;  %4184 = vst.sshfl [vmem:[#allocation1] sm:$0xff pattern:$0x73625140] %v7960_v59  ;;  %v4343_v54 = vld [vmem:[#allocation14 + $0xb8] sm:$0xff] }
0x1abf   :  { %4501 = vmatpush.msra.mxu1 %v4343_v54  ;;  %v4396_v54 = vld [vmem:[#allocation14 + $0x260] sm:$0xff] }
0x1ac0   :  { %4180 = vrot.lane.b32.xlu1 %v4787_v62, %s5016_s4  ;;  %v4359_v62 = vld [vmem:[#allocation14 + $0x138] sm:$0xff] }
0x1ac1   :  { %4521 = vmatpush.msra.mxu2 %v4359_v62  ;;  %v4412_v62 = vld [vmem:[#allocation14 + $0x2e0] sm:$0xff] }
0x1ac5   :  { %v4186_v0 = vld [vmem:[#allocation1 + $0x2] ss:$4 sm:$0xff] }
0x1ac6   :  { %4191 = vst.sshfl [vmem:[#allocation1] sm:$0xff pattern:$0x73625140] %v7960_v59 }
0x1ac8   :  { %4187 = vrot.lane.b32.xlu1 %v4186_v0, %s5019_s16  ;;  %v4068_v3 = vpop.permute.xlu1 %4067  ;;  %v4375_v0 = vld [vmem:[#allocation14 + $0x1b8] sm:$0xff] }
0x1ac9   :  { %4070 = vst.msk [vmem:[#allocation3 + $0xc] sm:$0x1] %vm3906_vm8, %v4068_v3  ;;  %4541 = vmatpush.msra.mxu3 %v4375_v0  ;;  %v4428_v0 = vld [vmem:[#allocation14 + $0x360] sm:$0xff] }
0x1acd   :  { %v8090_v24 = vld [vmem:[#allocation1 + $0x2] ss:$4 sm:$0xff] }
0x1ace   :  { %4198 = vst.sshfl [vmem:[#allocation1] sm:$0xff pattern:$0x73625140] %v7960_v59  ;;  %v4788_v9 = vrot.slane %v8090_v24, 9 }
0x1ad0   :  { %v4098_v11 = vpop.permute.xlu2 %4097 }
0x1ad2   :  { %v4077_v17 = vpop.permute.xlu0 %4076 }
0x1ad3   :  { %4079 = vst.msk [vmem:[#allocation3 + $0xc] sm:$0x1] %vm3916_vm9, %v4077_v17  ;;  %v4326_v17 = vld [vmem:[#allocation14 + $0x30] sm:$0xff] }
0x1ad4   :  { %4482 = vmatpush.msra.mxu0 %v4326_v17  ;;  %v4444_v17 = vld [vmem:[#allocation14 + $0x3e0] sm:$0xff] }
0x1ad5   :  { %v4200_v56 = vld [vmem:[#allocation1 + $0x3] ss:$4 sm:$0xff] }
0x1ad6   :  { %4201 = vrot.lane.b32.xlu0 %v4200_v56, %s5015_s2  ;;  %4205 = vst.sshfl [vmem:[#allocation1] sm:$0xff pattern:$0x73625140] %v7960_v59  ;;  %v4342_v56 = vld [vmem:[#allocation14 + $0xb0] sm:$0xff] }
0x1ad7   :  { %4502 = vmatpush.msra.mxu1 %v4342_v56  ;;  %v4395_v56 = vld [vmem:[#allocation14 + $0x258] sm:$0xff] }
0x1add   :  { %v4207_v33 = vld [vmem:[#allocation1 + $0x3] ss:$4 sm:$0xff] }
0x1ade   :  { %v4789_v30 = vrot.slane %v4207_v33, 9  ;;  %4220 = vst.sshfl [vmem:[#allocation1] sm:$0xff pattern:$0x73625140] %v7962_v63  ;;  %v4358_v33 = vld [vmem:[#allocation14 + $0x130] sm:$0xff] }
0x1adf   :  { %4522 = vmatpush.msra.mxu2 %v4358_v33  ;;  %v4411_v33 = vld [vmem:[#allocation14 + $0x2d8] sm:$0xff] }
0x1ae0   :  { %4210 = vrot.lane.b32.xlu2 %v4789_v30, %s5016_s4  ;;  %v4374_v30 = vld [vmem:[#allocation14 + $0x1b0] sm:$0xff] }
0x1ae1   :  { %4542 = vmatpush.msra.mxu3 %v4374_v30  ;;  %v4427_v30 = vld [vmem:[#allocation14 + $0x358] sm:$0xff] }
0x1ae2   :  { %v4091_v26 = vpop.permute.xlu1 %4090 }
0x1ae3   :  { %4093 = vst.msk [vmem:[#allocation3 + $0xe] sm:$0x1] %vm3898_vm6, %v4091_v26  ;;  %v4325_v26 = vld [vmem:[#allocation14 + $0x28] sm:$0xff] }
0x1ae4   :  { %4100 = vst.msk [vmem:[#allocation3 + $0xe] sm:$0x1] %vm3906_vm8, %v4098_v11  ;;  %v4341_v11 = vld [vmem:[#allocation14 + $0xa8] sm:$0xff]  ;;  %4483 = vmatpush.msra.mxu0 %v4325_v26  ;;  %v4443_v26 = vld [vmem:[#allocation14 + $0x3d8] sm:$0xff] }
0x1ae5   :  { %v4222_v14 = vld [vmem:[#allocation1 + $0x1] ss:$4 sm:$0xff]  ;;  %4503 = vmatpush.msra.mxu1 %v4341_v11 }
0x1ae6   :  { %4223 = vrot.lane.b32.xlu0 %v4222_v14, %s5015_s2  ;;  %4227 = vst.sshfl [vmem:[#allocation1] sm:$0xff pattern:$0x73625140] %v7962_v63  ;;  %v4357_v14 = vld [vmem:[#allocation14 + $0x128] sm:$0xff]  ;;  %v4394_v11 = vld [vmem:[#allocation14 + $0x250] sm:$0xff] }
0x1ae7   :  { %4523 = vmatpush.msra.mxu2 %v4357_v14  ;;  %v4410_v14 = vld [vmem:[#allocation14 + $0x2d0] sm:$0xff] }
0x1aea   :  { %v4129_v61 = vpop.permute.xlu2 %4128 }
0x1aed   :  { %v4229_v60 = vld [vmem:[#allocation1 + $0x1] ss:$4 sm:$0xff] }
0x1aee   :  { %v4790_v31 = vrot.slane %v4229_v60, 9  ;;  %4236 = vst.sshfl [vmem:[#allocation1] sm:$0xff pattern:$0x73625140] %v7962_v63  ;;  %v4373_v60 = vld [vmem:[#allocation14 + $0x1a8] sm:$0xff] }
0x1aef   :  { %4543 = vmatpush.msra.mxu3 %v4373_v60  ;;  %v4426_v60 = vld [vmem:[#allocation14 + $0x350] sm:$0xff] }
0x1af0   :  { %4232 = vrot.lane.b32.xlu2 %v4790_v31, %s5016_s4  ;;  %v4324_v31 = vld [vmem:[#allocation14 + $0x20] sm:$0xff] }
0x1af1   :  { %4484 = vmatpush.msra.mxu0 %v4324_v31  ;;  %v4442_v31 = vld [vmem:[#allocation14 + $0x3d0] sm:$0xff] }
0x1af2   :  { %v4107_v59 = vpop.permute.xlu1 %4106 }
0x1af3   :  { %4109 = vst.msk [vmem:[#allocation3 + $0xe] sm:$0x1] %vm3916_vm9, %v4107_v59  ;;  %v4340_v59 = vld [vmem:[#allocation14 + $0xa0] sm:$0xff] }
0x1af4   :  { %4504 = vmatpush.msra.mxu1 %v4340_v59  ;;  %v4393_v59 = vld [vmem:[#allocation14 + $0x248] sm:$0xff] }
0x1af5   :  { %v4238_v49 = vld [vmem:[#allocation1 + $0x2] ss:$4 sm:$0xff] }
0x1af6   :  { %4243 = vst.sshfl [vmem:[#allocation1] sm:$0xff pattern:$0x73625140] %v7962_v63  ;;  %4239 = vrot.lane.b32.xlu1 %v4238_v49, %s5019_s16 }
0x1af8   :  { %v4120_v12 = vpop.permute.xlu0 %4119 }
0x1af9   :  { %4122 = vst.msk [vmem:[#allocation3 + $0x1] sm:$0x1] %vm3906_vm8, %v4120_v12  ;;  %v4356_v12 = vld [vmem:[#allocation14 + $0x120] sm:$0xff] }
0x1afa   :  { %4131 = vst.msk [vmem:[#allocation3 + $0x1] sm:$0x1] %vm3916_vm9, %v4129_v61  ;;  %v4372_v61 = vld [vmem:[#allocation14 + $0x1a0] sm:$0xff]  ;;  %4524 = vmatpush.msra.mxu2 %v4356_v12  ;;  %v4425_v12 = vld [vmem:[#allocation14 + $0x348] sm:$0xff] }
0x1afb   :  { %4544 = vmatpush.msra.mxu3 %v4372_v61  ;;  %v4441_v61 = vld [vmem:[#allocation14 + $0x3c8] sm:$0xff] }
0x1afd   :  { %v8109_v21 = vld [vmem:[#allocation1 + $0x2] ss:$4 sm:$0xff] }
0x1afe   :  { %4250 = vst.sshfl [vmem:[#allocation1] sm:$0xff pattern:$0x73625140] %v7962_v63  ;;  %v4791_v52 = vrot.slane %v8109_v21, 9  ;;  %v4430_v21 = vld [vmem:[#allocation14 + $0x370] sm:$0xff] }
0x1b05   :  { %v4252_v18 = vld [vmem:[#allocation1 + $0x3] ss:$4 sm:$0xff] }
0x1b06   :  { %4257 = vst.sshfl [vmem:[#allocation1] sm:$0xff pattern:$0x73625140] %v7962_v63  ;;  %4253 = vrot.lane.b32.xlu1 %v4252_v18, %s5015_s2  ;;  %v4323_v18 = vld [vmem:[#allocation14 + $0x18] sm:$0xff] }
0x1b07   :  { %4485 = vmatpush.msra.mxu0 %v4323_v18  ;;  %v4392_v18 = vld [vmem:[#allocation14 + $0x240] sm:$0xff] }
0x1b08   :  { %v4136_v28 = vpop.permute.xlu1 %4135 }
0x1b09   :  { %4138 = vst.msk [vmem:[#allocation3 + $0x3] sm:$0x1] %vm3890_vm5, %v4136_v28  ;;  %v4355_v28 = vld [vmem:[#allocation14 + $0x118] sm:$0xff] }
0x1b0a   :  { %4145 = vst.msk [vmem:[#allocation3 + $0x3] sm:$0x1] %vm3898_vm6, %v4785_v40  ;;  %v4339_v40 = vld [vmem:[#allocation14 + $0x98] sm:$0xff]  ;;  %4525 = vmatpush.msra.mxu2 %v4355_v28  ;;  %v4424_v28 = vld [vmem:[#allocation14 + $0x340] sm:$0xff] }
0x1b0b   :  { %4505 = vmatpush.msra.mxu1 %v4339_v40  ;;  %v4408_v40 = vld [vmem:[#allocation14 + $0x2c0] sm:$0xff] }
0x1b0c   :  { %4526 = vmatpush.msra.mxu2 %v4354_v37  ;;  %v4423_v37 = vld [vmem:[#allocation14 + $0x338] sm:$0xff] }
0x1b0d   :  { %v8117_v10 = vld [vmem:[#allocation1 + $0x3] ss:$4 sm:$0xff]  ;;  %4506 = vmatpush.msra.mxu1 %v4338_v15 }
0x1b0e   :  { %4272 = vst.sshfl [vmem:[#allocation1] sm:$0xff pattern:$0x73625140] %v7964_v32  ;;  %4527 = vmatpush.msra.mxu2 %v4353_v57  ;;  %v4792_v51 = vrot.slane %v8117_v10, 9  ;;  %v4407_v15 = vld [vmem:[#allocation14 + $0x2b8] sm:$0xff]  ;;  %v4390_v57 = vld [vmem:[#allocation14 + $0x230] sm:$0xff] }
0x1b0f   :  { %4507 = vmatpush.msra.mxu1 %v4337_v13 }
0x1b10   :  { %v4172_v8 = vpop.permute.xlu2 %4171  ;;  %4528 = vmatpush.msra.mxu2 %v4352_v36  ;;  %v4421_v36 = vld [vmem:[#allocation14 + $0x328] sm:$0xff] }
0x1b11   :  { %4174 = vst.msk [vmem:[#allocation3 + $0x5] sm:$0x1] %vm3906_vm8, %v4172_v8  ;;  %4508 = vmatpush.msra.mxu1 %v4336_v2  ;;  %v4405_v2 = vld [vmem:[#allocation14 + $0x2a8] sm:$0xff] }
0x1b12   :  { %4593 = vmatpush.msrb.mxu2 %v4431_v29  ;;  %v4432_v29 = vld [vmem:[#allocation14 + $0x380] sm:$0xff] }
0x1b13   :  { %4573 = vmatpush.msrb.mxu1 %v4415_v16  ;;  %v4416_v16 = vld [vmem:[#allocation14 + $0x300] sm:$0xff] }
0x1b14   :  { %4594 = vmatpush.msrb.mxu2 %v4430_v21 }
0x1b15   :  { %v4274_v5 = vld [vmem:[#allocation1 + $0x1] ss:$4 sm:$0xff]  ;;  %4574 = vmatpush.msrb.mxu1 %v4414_v20 }
0x1b16   :  { %4275 = vrot.lane.b32.xlu2 %v4274_v5, %s5015_s2  ;;  %4279 = vst.sshfl [vmem:[#allocation1] sm:$0xff pattern:$0x73625140] %v7964_v32  ;;  %v4371_v5 = vld [vmem:[#allocation14 + $0x198] sm:$0xff]  ;;  %4595 = vmatpush.msrb.mxu2 %v4429_v19 }
0x1b17   :  { %4545 = vmatpush.msra.mxu3 %v4371_v5  ;;  %4575 = vmatpush.msrb.mxu1 %v4413_v45 }
0x1b18   :  { %v4150_v63 = vpop.permute.xlu1 %4149  ;;  %4596 = vmatpush.msrb.mxu2 %v4428_v0 }
0x1b19   :  { %4152 = vst.msk [vmem:[#allocation3 + $0x3] sm:$0x1] %vm3906_vm8, %v4150_v63  ;;  %v4322_v63 = vld [vmem:[#allocation14 + $0x10] sm:$0xff]  ;;  %4546 = vmatpush.msra.mxu3 %v4370_v34  ;;  %4576 = vmatpush.msrb.mxu1 %v4412_v62  ;;  %v4439_v34 = vld [vmem:[#allocation14 + $0x3b8] sm:$0xff] }
0x1b1a   :  { %4486 = vmatpush.msra.mxu0 %v4322_v63  ;;  %4597 = vmatpush.msrb.mxu2 %v4427_v30  ;;  %v4391_v63 = vld [vmem:[#allocation14 + $0x238] sm:$0xff] }
0x1b1b   :  { %4577 = vmatpush.msrb.mxu1 %v4411_v33 }
0x1b1c   :  { %4598 = vmatpush.msrb.mxu2 %v4426_v60 }
0x1b1d   :  { %v4281_v35 = vld [vmem:[#allocation1 + $0x1] ss:$4 sm:$0xff]  ;;  %4578 = vmatpush.msrb.mxu1 %v4410_v14 }
0x1b1e   :  { %v4793_v46 = vrot.slane %v4281_v35, 9  ;;  %4288 = vst.sshfl [vmem:[#allocation1] sm:$0xff pattern:$0x73625140] %v7964_v32  ;;  %v4321_v35 = vld [vmem:[#allocation14 + $0x8] sm:$0xff]  ;;  %4599 = vmatpush.msrb.mxu2 %v4425_v12 }
0x1b1f   :  { %4487 = vmatpush.msra.mxu0 %v4321_v35 }
0x1b20   :  { %4284 = vrot.lane.b32.xlu1 %v4793_v46, %s5016_s4  ;;  %v4369_v46 = vld [vmem:[#allocation14 + $0x188] sm:$0xff]  ;;  %4600 = vmatpush.msrb.mxu2 %v4424_v28 }
0x1b21   :  { %4547 = vmatpush.msra.mxu3 %v4369_v46  ;;  %v4406_v46 = vld [vmem:[#allocation14 + $0x2b0] sm:$0xff] }
0x1b22   :  { %v4159_v7 = vpop.permute.xlu0 %4158  ;;  %4601 = vmatpush.msrb.mxu2 %v4423_v37 }
0x1b23   :  { %4161 = vst.msk [vmem:[#allocation3 + $0x3] sm:$0x1] %vm3916_vm9, %v4159_v7  ;;  %4548 = vmatpush.msra.mxu3 %v4368_v38  ;;  %v4437_v38 = vld [vmem:[#allocation14 + $0x3a8] sm:$0xff] }
0x1b25   :  { %v4290_v25 = vld [vmem:[#allocation1 + $0x2] ss:$4 sm:$0xff]  ;;  %4613 = vmatpush.msrb.mxu3 %v4447_v1 }
0x1b26   :  { %4295 = vst.sshfl [vmem:[#allocation1] sm:$0xff pattern:$0x73625140] %v7964_v32  ;;  %4291 = vrot.lane.b32.xlu0 %v4290_v25, %s5019_s16 }
0x1b27   :  { %4614 = vmatpush.msrb.mxu3 %v4446_v43 }
0x1b29   :  { %4615 = vmatpush.msrb.mxu3 %v4445_v6  ;;  %v4850_v6 = vld [vmem:[%s8169_s6] ss:$0 sm:$0xff] }
0x1b2b   :  { %4616 = vmatpush.msrb.mxu3 %v4444_v17 }
0x1b2d   :  { %v8129_v3 = vld [vmem:[#allocation1 + $0x2] ss:$4 sm:$0xff]  ;;  %4617 = vmatpush.msrb.mxu3 %v4443_v26 }
0x1b2e   :  { %4302 = vst.sshfl [vmem:[#allocation1] sm:$0xff pattern:$0x73625140] %v7964_v32  ;;  %v4794_v35 = vrot.slane %v8129_v3, 9  ;;  %v4388_v3 = vld [vmem:[#allocation14 + $0x220] sm:$0xff] }
0x1b2f   :  { %4618 = vmatpush.msrb.mxu3 %v4442_v31 }
0x1b31   :  { %4619 = vmatpush.msrb.mxu3 %v4441_v61 }
0x1b32   :  { %v4181_v49 = vpop.permute.xlu1 %4180 }
0x1b33   :  { %4183 = vst.msk [vmem:[#allocation3 + $0x5] sm:$0x1] %vm3916_vm9, %v4181_v49  ;;  %v4409_v49 = vld [vmem:[#allocation14 + $0x2c8] sm:$0xff] }
0x1b34   :  { %4579 = vmatpush.msrb.mxu1 %v4409_v49 }
0x1b35   :  { %v4304_v8 = vld [vmem:[#allocation1 + $0x3] ss:$4 sm:$0xff] }
0x1b36   :  { %4305 = vrot.lane.b32.xlu0 %v4304_v8, %s5015_s2  ;;  %4309 = vst.sshfl [vmem:[#allocation1] sm:$0xff pattern:$0x73625140] %v7964_v32  ;;  %v4320_v32 = vld [vmem:[#allocation14] sm:$0xff]  ;;  %4580 = vmatpush.msrb.mxu1 %v4408_v40 }
0x1b37   :  { %4488 = vmatpush.msra.mxu0 %v4320_v32  ;;  %v4440_v8 = vld [vmem:[#allocation14 + $0x3c0] sm:$0xff]  ;;  %v4389_v32 = vld [vmem:[#allocation14 + $0x228] sm:$0xff] }
0x1b38   :  { %4620 = vmatpush.msrb.mxu3 %v4440_v8  ;;  %4581 = vmatpush.msrb.mxu1 %v4407_v15 }
0x1b39   :  { %4553 = vmatpush.msrb.mxu0 %v4399_v22  ;;  %v4400_v22 = vld [vmem:[#allocation14 + $0x280] sm:$0xff] }
0x1b3a   :  { %v4188_v23 = vpop.permute.xlu1 %4187  ;;  %v4211_v48 = vpop.permute.xlu2 %4210  ;;  %4621 = vmatpush.msrb.mxu3 %v4439_v34  ;;  %4582 = vmatpush.msrb.mxu1 %v4406_v46 }
0x1b3b   :  { %4190 = vst.msk [vmem:[#allocation3 + $0x7] sm:$0x1] %vm3890_vm5, %v4188_v23  ;;  %4554 = vmatpush.msrb.mxu0 %v4398_v58  ;;  %v4438_v23 = vld [vmem:[#allocation14 + $0x3b0] sm:$0xff] }
0x1b3c   :  { %4197 = vst.msk [vmem:[#allocation3 + $0x7] sm:$0x1] %vm3898_vm6, %v4788_v9  ;;  %v4422_v9 = vld [vmem:[#allocation14 + $0x330] sm:$0xff]  ;;  %4622 = vmatpush.msrb.mxu3 %v4438_v23  ;;  %4583 = vmatpush.msrb.mxu1 %v4405_v2 }
0x1b3d   :  { %v4311_v4 = vld [vmem:[#allocation1 + $0x3] ss:$4 sm:$0xff]  ;;  %4555 = vmatpush.msrb.mxu0 %v4397_v53  ;;  %4602 = vmatpush.msrb.mxu2 %v4422_v9 }
0x1b3e   :  { %4262 = vrot.lane.b32.xlu0 %v4792_v51, %s5016_s4  ;;  %v4795_v24 = vrot.slane %v4311_v4, 9  ;;  %v4404_v51 = vld [vmem:[#allocation14 + $0x2a0] sm:$0xff]  ;;  %4623 = vmatpush.msrb.mxu3 %v4437_v38 }
0x1b3f   :  { %4556 = vmatpush.msrb.mxu0 %v4396_v54  ;;  %v4420_v4 = vld [vmem:[#allocation14 + $0x320] sm:$0xff]  ;;  %4603 = vmatpush.msrb.mxu2 %v4421_v36 }
0x1b40   :  { %4314 = vrot.lane.b32.xlu2 %v4795_v24, %s5016_s4  ;;  %v4436_v24 = vld [vmem:[#allocation14 + $0x3a0] sm:$0xff]  ;;  %4584 = vmatpush.msrb.mxu1 %v4404_v51 }
0x1b41   :  { %4557 = vmatpush.msrb.mxu0 %v4395_v56  ;;  %4604 = vmatpush.msrb.mxu2 %v4420_v4 }
0x1b42   :  { %4624 = vmatpush.msrb.mxu3 %v4436_v24 }
0x1b43   :  { %4558 = vmatpush.msrb.mxu0 %v4394_v11 }
0x1b45   :  { %4559 = vmatpush.msrb.mxu0 %v4393_v59 }
0x1b47   :  { %4560 = vmatpush.msrb.mxu0 %v4392_v18 }
0x1b48   :  { %v4202_v50 = vpop.permute.xlu0 %4201 }
0x1b49   :  { %4204 = vst.msk [vmem:[#allocation3 + $0x7] sm:$0x1] %vm3906_vm8, %v4202_v50  ;;  %4561 = vmatpush.msrb.mxu0 %v4391_v63  ;;  %v4387_v50 = vld [vmem:[#allocation14 + $0x218] sm:$0xff] }
0x1b4a   :  { %4213 = vst.msk [vmem:[#allocation3 + $0x7] sm:$0x1] %vm3916_vm9, %v4211_v48  ;;  %v4233_v7 = vpop.permute.xlu2 %4232  ;;  %v4403_v48 = vld [vmem:[#allocation14 + $0x298] sm:$0xff] }
0x1b4b   :  { %4562 = vmatpush.msrb.mxu0 %v4390_v57  ;;  %4585 = vmatpush.msrb.mxu1 %v4403_v48 }
0x1b4d   :  { %4563 = vmatpush.msrb.mxu0 %v4389_v32 }
0x1b4f   :  { %4564 = vmatpush.msrb.mxu0 %v4388_v3 }
0x1b51   :  { %v4318_v44 = vld [vmem:[#allocation3] sm:$0xff]  ;;  %4565 = vmatpush.msrb.mxu0 %v4387_v50 }
0x1b52   :  { %4454 = vst [vmem:[#allocation1] ss:$4 sm:$0xff] %v4318_v44  ;;  %v4419_v44 = vld [vmem:[#allocation14 + $0x318] sm:$0xff] }
0x1b53   :  { %4605 = vmatpush.msrb.mxu2 %v4419_v44 }
0x1b58   :  { %v4224_v10 = vpop.permute.xlu0 %4223 }
0x1b59   :  { %4226 = vst.msk [vmem:[#allocation3 + $0x9] sm:$0x1] %vm3906_vm8, %v4224_v10  ;;  %v4457_v42 = vld.sshfl [vmem:[#allocation1] sm:$0xff pattern:$0x73625140]  ;;  %v4435_v10 = vld [vmem:[#allocation14 + $0x398] sm:$0xff] }
0x1b5a   :  { %4235 = vst.msk [vmem:[#allocation3 + $0x9] sm:$0x1] %vm3916_vm9, %v4233_v7  ;;  %4489 = vmatmul.f32.vlgmr.msra.gmra.mxu0 %v4457_v42  ;;  %v4458_v39 = vld.sshfl [vmem:[#allocation1 + $0x8] sm:$0xff pattern:$0x73625140]  ;;  %4625 = vmatpush.msrb.mxu3 %v4435_v10 }
0x1b5b   :  { %4509 = vmatmul.f32.vlgmr.msra.gmra.mxu1 %v4458_v39  ;;  %v4459_v27 = vld.sshfl [vmem:[#allocation1 + $0x10] sm:$0xff pattern:$0x73625140]  ;;  %v4460_v55 = vld.sshfl [vmem:[#allocation1 + $0x18] sm:$0xff pattern:$0x73625140] }
0x1b5c   :  { %4529 = vmatmul.f32.vlgmr.msra.gmra.mxu2 %v4459_v27  ;;  %4549 = vmatmul.f32.vlgmr.msra.gmra.mxu3 %v4460_v55  ;;  %v4386_v7 = vld [vmem:[#allocation14 + $0x210] sm:$0xff]  ;;  %v4385_v55 = vld [vmem:[#allocation14 + $0x208] sm:$0xff] }
0x1b5d   :  { %v4402_v42 = vld [vmem:[#allocation14 + $0x290] sm:$0xff]  ;;  %4566 = vmatpush.msrb.mxu0 %v4386_v7 }
0x1b5e   :  { %v4418_v39 = vld [vmem:[#allocation14 + $0x310] sm:$0xff]  ;;  %4586 = vmatpush.msrb.mxu1 %v4402_v42 }
0x1b5f   :  { %v4434_v27 = vld [vmem:[#allocation14 + $0x390] sm:$0xff]  ;;  %4606 = vmatpush.msrb.mxu2 %v4418_v39  ;;  %4567 = vmatpush.msrb.mxu0 %v4385_v55 }
0x1b60   :  { %4626 = vmatpush.msrb.mxu3 %v4434_v27 }
0x1b68   :  { %v4240_v25 = vpop.permute.xlu1 %4239 }
0x1b69   :  { %4242 = vst.msk [vmem:[#allocation3 + $0xb] sm:$0x1] %vm3890_vm5, %v4240_v25  ;;  %v4417_v25 = vld [vmem:[#allocation14 + $0x308] sm:$0xff] }
0x1b6a   :  { %4249 = vst.msk [vmem:[#allocation3 + $0xb] sm:$0x1] %vm3898_vm6, %v4791_v52  ;;  %v4401_v52 = vld [vmem:[#allocation14 + $0x288] sm:$0xff]  ;;  %4607 = vmatpush.msrb.mxu2 %v4417_v25 }
0x1b6b   :  { %4587 = vmatpush.msrb.mxu1 %v4401_v52 }
0x1b6c   :  { %4608 = vmatpush.msrb.mxu2 %v4416_v16 }
0x1b6d   :  { %4588 = vmatpush.msrb.mxu1 %v4400_v22 }
0x1b70   :  { %v4276_v47 = vpop.permute.xlu2 %4275 }
0x1b71   :  { %4278 = vst.msk [vmem:[#allocation3 + $0xd] sm:$0x1] %vm3906_vm8, %v4276_v47  ;;  %v4433_v47 = vld [vmem:[#allocation14 + $0x388] sm:$0xff] }
0x1b72   :  { %4627 = vmatpush.msrb.mxu3 %v4433_v47 }
0x1b74   :  { %4628 = vmatpush.msrb.mxu3 %v4432_v29 }
0x1b78   :  { %v4254_v41 = vpop.permute.xlu1 %4253 }
0x1b79   :  { %4256 = vst.msk [vmem:[#allocation3 + $0xb] sm:$0x1] %vm3906_vm8, %v4254_v41  ;;  %v4384_v41 = vld [vmem:[#allocation14 + $0x200] sm:$0xff] }
0x1b7a   :  { %4568 = vmatpush.msrb.mxu0 %v4384_v41 }
0x1b92   :  { %v4285_v5 = vpop.permute.xlu1 %4284 }
0x1b93   :  { %4287 = vst.msk [vmem:[#allocation3 + $0xd] sm:$0x1] %vm3916_vm9, %v4285_v5 }
0x1b98   :  { %v4292_v13 = vpop.permute.xlu0 %4291 }
0x1b99   :  { %4294 = vst.msk [vmem:[#allocation3 + $0xf] sm:$0x1] %vm3890_vm5, %v4292_v13 }
0x1b9a   :  { %4301 = vst.msk [vmem:[#allocation3 + $0xf] sm:$0x1] %vm3898_vm6, %v4794_v35  ;;  %v4315_v58 = vpop.permute.xlu2 %4314 }
0x1ba8   :  { %v4306_v1 = vpop.permute.xlu0 %4305 }
0x1ba9   :  { %4308 = vst.msk [vmem:[#allocation3 + $0xf] sm:$0x1] %vm3906_vm8, %v4306_v1 }
0x1baa   :  { %4317 = vst.msk [vmem:[#allocation3 + $0xf] sm:$0x1] %vm3916_vm9, %v4315_v58 }
0x1bb0   :  { %v4263_v20 = vpop.permute.xlu0 %4262 }
0x1bb1   :  { %4265 = vst.msk [vmem:[#allocation3 + $0xb] sm:$0x1] %vm3916_vm9, %v4263_v20 }
0x1bb8   :  { %v4319_v21 = vld [vmem:[#allocation3 + $0x8] sm:$0xff] }
0x1bb9   :  { %4456 = vst [vmem:[#allocation1 + $0x20] ss:$4 sm:$0xff] %v4319_v21 }
0x1bc0   :  { %v4461_v43 = vld.sshfl [vmem:[#allocation1 + $0x20] sm:$0xff pattern:$0x73625140]  ;;  %v4462_v53 = vld.sshfl [vmem:[#allocation1 + $0x28] sm:$0xff pattern:$0x73625140] }
0x1bc1   :  { %4569 = vmatmul.f32.vlgmr.msrb.gmra.mxu0 %v4461_v43  ;;  %4589 = vmatmul.f32.vlgmr.msrb.gmra.mxu1 %v4462_v53  ;;  %v4463_v45 = vld.sshfl [vmem:[#allocation1 + $0x30] sm:$0xff pattern:$0x73625140]  ;;  %v4464_v19 = vld.sshfl [vmem:[#allocation1 + $0x38] sm:$0xff pattern:$0x73625140] }
0x1bc2   :  { %4609 = vmatmul.f32.vlgmr.msrb.gmra.mxu2 %v4463_v45  ;;  %4629 = vmatmul.f32.vlgmr.msrb.gmra.mxu3 %v4464_v19 }
0x1bd7   :  { %v4490_v54 = vpop.f32.mrf.mxu0 }
0x1bd8   :  { %v4491_v62 = vadd.f32 %v4850_v6, %v4490_v54  ;;  %v4510_v0 = vpop.f32.mrf.mxu1 }
0x1bda   :  { %v4511_v56 = vadd.f32 %v4510_v0, %v4491_v62 }
0x1bdf   :  { %v4530_v17 = vpop.f32.mrf.mxu2  ;;  %v4550_v30 = vpop.f32.mrf.mxu3 }
0x1be0   :  { %v4531_v33 = vadd.f32 %v4530_v17, %v4511_v56 }
0x1be2   :  { %v4551_v26 = vadd.f32 %v4550_v30, %v4531_v33 }
0x1c3e   :  { %v4570_v11 = vpop.f32.mrf.mxu0  ;;  %v4590_v60 = vpop.f32.mrf.mxu1 }
0x1c3f   :  { %v4571_v14 = vadd.f32 %v4570_v11, %v4551_v26 }
0x1c41   :  { %v4591_v31 = vadd.f32 %v4590_v60, %v4571_v14 }
0x1c45   :  { %v4610_v59 = vpop.f32.mrf.mxu2  ;;  %v4630_v12 = vpop.f32.mrf.mxu3 }
0x1c46   :  { %v4611_v49 = vadd.f32 %v4610_v59, %v4591_v31 }
0x1c48   :  { %v4631_v61 = vadd.f32 %v4630_v12, %v4611_v49 }
0x1c4a   :  { %4633 = vst [vmem:[#allocation16] sm:$0x3] %v4631_v61 }
0x1c4b   :  { %4644 = dma.vmem_to_hbm [thread:$0]  %s4640_s0, 32, %s4642_s20, [#allocation6]  }
0x1c4c   :  { %5005 = dma.done.wait [#allocation6], 32  }
0x1c4d   :  { %5006 = vsyncadd [#allocation6], 4294967264 }
0x1c4e   :  { %4649 = vsyncpa [#allocation5], 1 }
0x1c4f   :  { %4650 = vsyncpa [#allocation15], 1 }
0x1c50   :  { %4651 = vsyncpa [#allocation6], 1 }
0x1c51   :  { %4652 = vsyncpa [#allocation7], 1 }
0x1c52   :  { %4653 = vsyncpa [#allocation8], 1 }
0x1c53   :  { %4654 = vsyncpa [#allocation12], 1 }

</bundles_post_ra>
